<compile_context>
chip_gen: v6e
topology: v6e:2x2x1
jax: 0.10.0
libtpu: 0.0.40
codegen_flags: <defaults>
</compile_context>

<pallas_src>
import functools

import numpy as np
import jax
import jax.numpy as jnp
from jax import lax
from jax.experimental import pallas as pl
from jax.experimental.pallas import tpu as pltpu

BN_EPS = 1e-5
C_IN, C1, C2 = 3, 16, 32          # module: Conv2d(3,16,k) then Conv2d(16,32,k)
LANE = 128
PADT = 8                          # sublane-aligned top padding of padded rows


def _round_up(x, m):
    return (x + m - 1) // m * m


def _patch_layout(kmax, unit):
    """Lane offset of each kernel-row strip inside the dense im2col patch.

    Strips of `unit` lanes are packed LANE//unit per 128-lane block (2 per
    block for unit = W*C_IN = 48), so conv1's contraction depth is
    ceil(kmax/2)*128 instead of kmax*128."""
    if unit >= LANE:
        blk, per = _round_up(unit, LANE), 1
    else:
        per = LANE // unit
        blk = LANE
    offs = tuple((d // per) * blk + (d % per) * unit for d in range(kmax))
    width = (-(-kmax // per)) * blk
    return offs, width


# ----------------------------------------------------------------------------
# Fused Pallas kernel: NB batch elements per grid step, all three streams.
# ----------------------------------------------------------------------------
def _cross_cnn_kernel(x_ref, mask_ref, w1_ref, s1_ref, b1_ref, *refs,
                      NB, H, W, ks, dy_off, pw1):
    """refs = per-stream [w2,s2,b2] (3x3), o_ref, scratch [pad1,patch1,pad2].

    x_ref    : (NB, H, W*C_IN) f32   row-flattened NHWC input block
    mask_ref : (Wo*C2, Wo*C2)  f32   block-diagonal 0/1 pixel-group mask
    w1_ref   : (pw1, 3*W*C1)   bf16  merged banded conv1 slab (all streams)
    s1/b1    : (1, 3*W*C1)     f32   folded BatchNorm scale / bias (conv1)
    w2_s     : (K, W*C1, Wo*C2) bf16 banded conv2 blocks (stride-2 input cols)
    s2/b2    : (1, Wo*C2)      f32
    o_ref    : (3, NB, Ho, Wo*C2) f32
    """
    n_stream = len(ks)
    stream_refs = refs[:3 * n_stream]
    o_ref = refs[3 * n_stream]
    pad1_ref, patch1_ref, pad2_ref = refs[3 * n_stream + 1:]

    Ho, Wo = H // 2, W // 2
    kmax = max(ks)
    pmax = kmax // 2
    M1, M2 = NB * H, NB * Ho
    CINL = W * C_IN                 # input lanes per row strip (48)
    WC1 = W * C1                    # conv1 lanes per stream     (256)
    L1 = n_stream * WC1             # merged conv1 output lanes  (768)
    L2 = Wo * C2                    # conv2 / output lanes       (256)

    # One-time init: pad borders and patch tail lanes are zeroed here and are
    # never written again (scratch persists across the sequential grid).
    @pl.when(pl.program_id(0) == 0)
    def _init():
        pad1_ref[...] = jnp.zeros_like(pad1_ref)
        pad2_ref[...] = jnp.zeros_like(pad2_ref)
        patch1_ref[...] = jnp.zeros_like(patch1_ref)

    # Interior of the H-padded input ('same' padding along W is folded into
    # the banded weight slabs as zero rows).
    pad1_ref[:, PADT:PADT + H, :] = x_ref[...].astype(jnp.bfloat16)

    # Shared kmax im2col patch (row strips packed 2 per 128-lane block).
    for dy in range(kmax):
        off = dy_off[dy]
        patch1_ref[:, :, off:off + CINL] = (
            pad1_ref[:, PADT - pmax + dy:PADT - pmax + dy + H, :])

    # ---- conv1 of all three streams: ONE matmul + folded BN + ReLU ---------
    y1 = jnp.dot(patch1_ref[...].reshape(M1, pw1), w1_ref[...],
                 preferred_element_type=jnp.float32)              # (M1, L1)
    y1 = jnp.maximum(y1 * s1_ref[...] + b1_ref[...], 0.0)

    # ---- 2x2 max pool (all streams at once) --------------------------------
    yh = jnp.max(y1.reshape(M2, 2, L1), axis=1)                   # row pairs
    # Column pairs: one full-width 16-lane shift (== roll by -C1) + maximum.
    # The pooled value for pair w lands on the even column group 2w; odd
    # groups hold junk that the conv2 slabs multiply by zero.
    shifted = jnp.concatenate([yh[:, C1:], yh[:, :C1]], axis=1)
    yc = jnp.maximum(yh, shifted)
    pad2_ref[:, PADT:PADT + Ho, :] = (
        yc.reshape(NB, Ho, L1).astype(jnp.bfloat16))

    mask = mask_ref[...]
    for s in range(n_stream):
        K = ks[s]
        p = K // 2
        w2_ref, s2_ref, b2_ref = stream_refs[3 * s:3 * s + 3]

        # ---- conv2: accumulate K banded matmuls straight from pad2 ---------
        acc = None
        for dy in range(K):
            st = PADT - p + dy
            a = pad2_ref[:, st:st + Ho, s * WC1:(s + 1) * WC1].reshape(M2, WC1)
            t = jnp.dot(a, w2_ref[dy], preferred_element_type=jnp.float32)
            acc = t if acc is None else acc + t
        y2 = jnp.maximum(acc * s2_ref[...] + b2_ref[...], 0.0)     # (M2, L2)

        # ---- per-pixel L2 norm over this stream's C2 channels ---------------
        # (matches torch x.div(x.norm(p=2, dim=1, keepdim=True)): no epsilon)
        ss = jnp.dot(y2 * y2, mask, preferred_element_type=jnp.float32)
        o_ref[s] = (y2 * lax.rsqrt(ss)).reshape(NB, Ho, L2)


# ----------------------------------------------------------------------------
# Wrapper (NCHW in / NCHW out, PyTorch convention)
# ----------------------------------------------------------------------------
def cross_cnn_forward(x_nchw, kp, nb=None):
    """Pallas forward. x_nchw: (N, 3, H, W) -> (N, 96, H//2, W//2)."""
    N, _, H, W = x_nchw.shape
    assert H % 2 == 0 and W % 2 == 0
    Ho, Wo = H // 2, W // 2
    ks = kp["ks"]
    n_stream = len(ks)
    pmax = max(ks) // 2
    pw1 = kp["pw1"]
    L1 = n_stream * W * C1
    L2 = Wo * C2

    # Batch block: target M = NB*H ~ 256 rows per conv1 matmul (128 also fine
    # on v5e).  Batch is zero-padded to a multiple of NB and sliced after.
    if nb is None:
        nb = max(1, min(N, max(1, 256 // H)))
    Np = _round_up(N, nb)

    x = jnp.transpose(x_nchw, (0, 2, 3, 1)).astype(jnp.float32)
    x = x.reshape(N, H, W * C_IN)
    if Np != N:
        x = jnp.concatenate(
            [x, jnp.zeros((Np - N, H, W * C_IN), jnp.float32)], axis=0)

    const2 = lambda n: (0, 0)
    const3 = lambda n: (0, 0, 0)
    args = [x, kp["mask"], kp["w1"], kp["s1"], kp["b1"]]
    in_specs = [
        pl.BlockSpec((nb, H, W * C_IN), lambda n: (n, 0, 0)),
        pl.BlockSpec(kp["mask"].shape, const2),
        pl.BlockSpec(kp["w1"].shape, const2),
        pl.BlockSpec(kp["s1"].shape, const2),
        pl.BlockSpec(kp["b1"].shape, const2),
    ]
    for st in kp["streams"]:
        for nm in ("w2", "s2", "b2"):
            a = st[nm]
            args.append(a)
            in_specs.append(
                pl.BlockSpec(a.shape, const3 if a.ndim == 3 else const2))

    scratch_shapes = [
        pltpu.VMEM((nb, PADT + H + pmax, W * C_IN), jnp.bfloat16),    # pad1
        pltpu.VMEM((nb, H, pw1), jnp.bfloat16),                       # patch1
        pltpu.VMEM((nb, PADT + Ho + pmax, L1), jnp.bfloat16),         # pad2
    ]

    kernel = functools.partial(_cross_cnn_kernel, NB=nb, H=H, W=W, ks=ks,
                               dy_off=kp["offs"], pw1=pw1)
    out = pl.pallas_call(
        kernel,
        out_shape=jax.ShapeDtypeStruct((n_stream, Np, Ho, L2), jnp.float32),
        grid=(Np // nb,),
        in_specs=in_specs,
        out_specs=pl.BlockSpec((n_stream, nb, Ho, L2), lambda n: (0, n, 0, 0)),
        scratch_shapes=scratch_shapes,
        # "arbitrary": the grid must run sequentially because pad/patch
        # borders are zeroed only at program_id==0 (scratch persists).
        compiler_params=pltpu.CompilerParams(
            dimension_semantics=("arbitrary",)),
    )(*args)

    # (S, Np, Ho, Wo*C2) -> (N, S*C2, Ho, Wo)  == torch.cat(streams, dim=1)
    out = out[:, :N].reshape(n_stream, N, Ho, Wo, C2)
    out = jnp.transpose(out, (1, 0, 4, 2, 3))
    return out.reshape(N, n_stream * C2, Ho, Wo)


# ----------------------------------------------------------------------------
# Parameter construction (deterministic, in-script)
# ----------------------------------------------------------------------------
def _fold_bn(conv_bias, gamma, beta, mean, var):
    scale = gamma / jnp.sqrt(var + BN_EPS)
    bias = beta + (conv_bias - mean) * scale
    return scale.astype(jnp.float32), bias.astype(jnp.float32)


def make_stream_params(key, kernel_size):
    """Raw parameters for one block(kernel_size) stream (HWIO conv weights,
    eval-mode BatchNorm folded into per-channel scale/bias)."""
    k = kernel_size
    keys = jax.random.split(key, 12)

    def conv_init(kk, shape, fan_in):
        bound = 1.0 / jnp.sqrt(fan_in)
        return jax.random.uniform(kk, shape, jnp.float32, -bound, bound)

    w1 = conv_init(keys[0], (k, k, C_IN, C1), C_IN * k * k)
    b1 = conv_init(keys[1], (C1,), C_IN * k * k)
    g1 = 1.0 + 0.1 * jax.random.normal(keys[2], (C1,), jnp.float32)
    # Betas kept slightly positive so per-pixel norms stay away from 0 (the
    # p=2 normalisation has no epsilon, exactly like the torch module).
    be1 = 0.05 + 0.1 * jnp.abs(jax.random.normal(keys[3], (C1,), jnp.float32))
    m1 = 0.1 * jax.random.normal(keys[4], (C1,), jnp.float32)
    v1 = 1.0 + 0.1 * jax.random.uniform(keys[5], (C1,), jnp.float32)

    w2 = conv_init(keys[6], (k, k, C1, C2), C1 * k * k)
    b2 = conv_init(keys[7], (C2,), C1 * k * k)
    g2 = 1.0 + 0.1 * jax.random.normal(keys[8], (C2,), jnp.float32)
    be2 = 0.05 + 0.1 * jnp.abs(jax.random.normal(keys[9], (C2,), jnp.float32))
    m2 = 0.1 * jax.random.normal(keys[10], (C2,), jnp.float32)
    v2 = 1.0 + 0.1 * jax.random.uniform(keys[11], (C2,), jnp.float32)

    s1, bb1 = _fold_bn(b1, g1, be1, m1, v1)
    s2, bb2 = _fold_bn(b2, g2, be2, m2, v2)
    return dict(k=k, w1=w1, s1=s1, b1=bb1, w2=w2, s2=s2, b2=bb2)


def _conv1_merged_slab(raw_params, W, offs, width):
    """All streams' (K,K,C_IN,C1) 'same'-conv weights -> one block-Toeplitz
    slab (width, n_streams*W*C1) matching the shared dense kmax im2col patch.
    Out-of-image taps along W are zero rows (== zero padding); smaller
    kernels get zero rows for the extra kmax taps."""
    n_s = len(raw_params)
    kmax = max(rp["k"] for rp in raw_params)
    pmax = kmax // 2
    slab = np.zeros((width, n_s * W * C1), np.float32)
    for s, rp in enumerate(raw_params):
        w = np.asarray(rp["w1"], np.float32)          # (K, K, C_IN, C1)
        K = rp["k"]
        p = K // 2
        for r in range(K):                            # kernel row
            base = offs[r + (pmax - p)]
            for dx in range(K):                       # kernel column
                for i in range(W):                    # output column
                    g = i + dx - p                    # input column
                    if 0 <= g < W:
                        slab[base + g * C_IN:base + (g + 1) * C_IN,
                             s * W * C1 + i * C1:
                             s * W * C1 + (i + 1) * C1] = w[r, dx]
    return slab


def _conv2_slab(w_hwio, W):
    """(K,K,C1,C2) conv2 weight -> (K, W*C1, Wo*C2) banded blocks that read
    the un-compacted pooled tensor: valid data only at even column groups,
    i.e. the stride-2 column selection of the max pool is folded in here."""
    w = np.asarray(w_hwio, np.float32)
    K = w.shape[0]
    p = K // 2
    Wo = W // 2
    slab = np.zeros((K, W * C1, Wo * C2), np.float32)
    for dy in range(K):
        for dx in range(K):
            for i in range(Wo):
                g = i + dx - p
                if 0 <= g < Wo:
                    slab[dy, (2 * g) * C1:(2 * g + 1) * C1,
                         i * C2:(i + 1) * C2] = w[dy, dx]
    return slab


def prep_kernel_params(raw_params, H, W):
    """Kernel-ready constants: merged bf16 conv slabs, lane-tiled BN scale /
    bias, and the block-diagonal L2-norm mask."""
    Wo = W // 2
    ks = tuple(rp["k"] for rp in raw_params)
    offs, pw1 = _patch_layout(max(ks), W * C_IN)

    w1 = jnp.asarray(_conv1_merged_slab(raw_params, W, offs, pw1),
                     jnp.bfloat16)
    s1 = jnp.concatenate(
        [jnp.tile(rp["s1"], W) for rp in raw_params]).reshape(1, -1)
    b1 = jnp.concatenate(
        [jnp.tile(rp["b1"], W) for rp in raw_params]).reshape(1, -1)

    streams = []
    for rp in raw_params:
        streams.append(dict(
            w2=jnp.asarray(_conv2_slab(rp["w2"], W), jnp.bfloat16),
            s2=jnp.tile(rp["s2"], Wo).reshape(1, Wo * C2),
            b2=jnp.tile(rp["b2"], Wo).reshape(1, Wo * C2),
        ))

    L2 = Wo * C2
    gi = np.arange(L2)[:, None] // C2
    gj = np.arange(L2)[None, :] // C2
    mask = jnp.asarray((gi == gj).astype(np.float32))

    return dict(ks=ks, offs=offs, pw1=pw1, w1=w1, s1=s1, b1=b1,
                streams=streams, mask=mask)


# ----------------------------------------------------------------------------
# Pure-JAX reference (for correctness check)
# ----------------------------------------------------------------------------
def _ref_forward(x_nchw, raw_params):
    x = jnp.transpose(x_nchw, (0, 2, 3, 1)).astype(jnp.float32)
    outs = []
    for rp in raw_params:
        y = lax.conv_general_dilated(x, rp["w1"], (1, 1), "SAME",
                                     dimension_numbers=("NHWC", "HWIO", "NHWC"))
        y = jnp.maximum(y * rp["s1"] + rp["b1"], 0.0)
        y = lax.reduce_window(y, -jnp.inf, lax.max,
                              (1, 2, 2, 1), (1, 2, 2, 1), "VALID")
        y = lax.conv_general_dilated(y, rp["w2"], (1, 1), "SAME",
                                     dimension_numbers=("NHWC", "HWIO", "NHWC"))
        y = jnp.maximum(y * rp["s2"] + rp["b2"], 0.0)
        y = y / jnp.sqrt(jnp.sum(y * y, axis=-1, keepdims=True))
        outs.append(y)
    out = jnp.concatenate(outs, axis=-1)
    return jnp.transpose(out, (0, 3, 1, 2))


# ----------------------------------------------------------------------------
if __name__ == "__main__":
    key = jax.random.PRNGKey(0)
    kx, k1, k2, k3 = jax.random.split(key, 4)

    # Small input consistent with the module: NCHW, 3 input channels.
    N, H, W = 2, 16, 16
    x = jax.random.normal(kx, (N, C_IN, H, W), jnp.float32)

    raw_params = [make_stream_params(k1, 7),    # stream1 = block(7)
                  make_stream_params(k2, 5),    # stream2 = block(5)
                  make_stream_params(k3, 3)]    # stream3 = block(3)
    kparams = prep_kernel_params(raw_params, H, W)

    out = jax.block_until_ready(cross_cnn_forward(x, kparams))
    assert out.shape == (N, 3 * C2, H // 2, W // 2), out.shape

    ref = jax.block_until_ready(_ref_forward(x, raw_params))
    err = jnp.abs(out - ref)
    max_err = float(jnp.max(err))
    mean_err = float(jnp.mean(err))
    # bf16 matmul operands with f32 accumulation: ~1e-2 relative is expected.
    if not (max_err < 7.5e-2 and mean_err < 6e-3):
        raise AssertionError(
            f"Pallas output does not match reference "
            f"(max abs err {max_err:.3e}, mean abs err {mean_err:.3e})")
    print("KERNEL_OK")
</pallas_src>

<mosaic_0001>
module attributes {stable_mosaic.version = 11 : i64} {
  func.func @_cross_cnn_kernel(%arg0: i32, %arg1: memref<2x16x48xf32, #tpu.memory_space<vmem>>, %arg2: memref<256x256xf32, #tpu.memory_space<vmem>>, %arg3: memref<512x768xbf16, #tpu.memory_space<vmem>>, %arg4: memref<1x768xf32, #tpu.memory_space<vmem>>, %arg5: memref<1x768xf32, #tpu.memory_space<vmem>>, %arg6: memref<7x256x256xbf16, #tpu.memory_space<vmem>>, %arg7: memref<1x256xf32, #tpu.memory_space<vmem>>, %arg8: memref<1x256xf32, #tpu.memory_space<vmem>>, %arg9: memref<5x256x256xbf16, #tpu.memory_space<vmem>>, %arg10: memref<1x256xf32, #tpu.memory_space<vmem>>, %arg11: memref<1x256xf32, #tpu.memory_space<vmem>>, %arg12: memref<3x256x256xbf16, #tpu.memory_space<vmem>>, %arg13: memref<1x256xf32, #tpu.memory_space<vmem>>, %arg14: memref<1x256xf32, #tpu.memory_space<vmem>>, %arg15: memref<3x2x8x256xf32, #tpu.memory_space<vmem>>, %arg16: memref<2x27x48xbf16, #tpu.memory_space<vmem>>, %arg17: memref<2x16x512xbf16, #tpu.memory_space<vmem>>, %arg18: memref<2x19x768xbf16, #tpu.memory_space<vmem>>) attributes {dimension_semantics = [#tpu.dimension_semantics<arbitrary>], iteration_bounds = array<i64: 1>, scalar_prefetch = 0 : i64, scratch_operands = 3 : i64, tpu.core_type = #tpu.core_type<tc>, window_params = [{transform_indices = @transform_0, window_bounds = array<i64: 2, 16, 48>}, {pipeline_mode = #tpu.pipeline_mode<synchronous>, transform_indices = @transform_1, window_bounds = array<i64: 256, 256>}, {pipeline_mode = #tpu.pipeline_mode<synchronous>, transform_indices = @transform_2, window_bounds = array<i64: 512, 768>}, {pipeline_mode = #tpu.pipeline_mode<synchronous>, transform_indices = @transform_3, window_bounds = array<i64: 1, 768>}, {pipeline_mode = #tpu.pipeline_mode<synchronous>, transform_indices = @transform_4, window_bounds = array<i64: 1, 768>}, {pipeline_mode = #tpu.pipeline_mode<synchronous>, transform_indices = @transform_5, window_bounds = array<i64: 7, 256, 256>}, {pipeline_mode = #tpu.pipeline_mode<synchronous>, transform_indices = @transform_6, window_bounds = array<i64: 1, 256>}, {pipeline_mode = #tpu.pipeline_mode<synchronous>, transform_indices = @transform_7, window_bounds = array<i64: 1, 256>}, {pipeline_mode = #tpu.pipeline_mode<synchronous>, transform_indices = @transform_8, window_bounds = array<i64: 5, 256, 256>}, {pipeline_mode = #tpu.pipeline_mode<synchronous>, transform_indices = @transform_9, window_bounds = array<i64: 1, 256>}, {pipeline_mode = #tpu.pipeline_mode<synchronous>, transform_indices = @transform_10, window_bounds = array<i64: 1, 256>}, {pipeline_mode = #tpu.pipeline_mode<synchronous>, transform_indices = @transform_11, window_bounds = array<i64: 3, 256, 256>}, {pipeline_mode = #tpu.pipeline_mode<synchronous>, transform_indices = @transform_12, window_bounds = array<i64: 1, 256>}, {pipeline_mode = #tpu.pipeline_mode<synchronous>, transform_indices = @transform_13, window_bounds = array<i64: 1, 256>}, {transform_indices = @transform_14, window_bounds = array<i64: 3, 2, 8, 256>}]} {
    %c0_i32 = arith.constant 0 : i32
    %0 = arith.cmpi eq, %arg0, %c0_i32 : i32
    %1 = arith.extui %0 : i1 to i32
    %c0_i32_0 = arith.constant 0 : i32
    %2 = arith.cmpi ne, %1, %c0_i32_0 : i32
    scf.if %2 {
      %cst_181 = arith.constant 0.000000e+00 : bf16
      %177 = vector.broadcast %cst_181 : bf16 to vector<2x27x48xbf16>
      %c0_182 = arith.constant 0 : index
      %c0_183 = arith.constant 0 : index
      %c0_184 = arith.constant 0 : index
      %178 = vector.load %arg16[%c0_182, %c0_183, %c0_184] : memref<2x27x48xbf16, #tpu.memory_space<vmem>>, vector<2x27x48xbf16>
      tpu.vector_store %arg16[%c0_182, %c0_183, %c0_184], %177 {strides = array<i32>} : memref<2x27x48xbf16, #tpu.memory_space<vmem>>, vector<2x27x48xbf16>,
      %cst_185 = arith.constant 0.000000e+00 : bf16
      %179 = vector.broadcast %cst_185 : bf16 to vector<2x19x768xbf16>
      %c0_186 = arith.constant 0 : index
      %c0_187 = arith.constant 0 : index
      %c0_188 = arith.constant 0 : index
      %180 = vector.load %arg18[%c0_186, %c0_187, %c0_188] : memref<2x19x768xbf16, #tpu.memory_space<vmem>>, vector<2x19x768xbf16>
      tpu.vector_store %arg18[%c0_186, %c0_187, %c0_188], %179 {strides = array<i32>} : memref<2x19x768xbf16, #tpu.memory_space<vmem>>, vector<2x19x768xbf16>,
      %cst_189 = arith.constant 0.000000e+00 : bf16
      %181 = vector.broadcast %cst_189 : bf16 to vector<2x16x512xbf16>
      %c0_190 = arith.constant 0 : index
      %c0_191 = arith.constant 0 : index
      %c0_192 = arith.constant 0 : index
      %182 = vector.load %arg17[%c0_190, %c0_191, %c0_192] : memref<2x16x512xbf16, #tpu.memory_space<vmem>>, vector<2x16x512xbf16>
      tpu.vector_store %arg17[%c0_190, %c0_191, %c0_192], %181 {strides = array<i32>} : memref<2x16x512xbf16, #tpu.memory_space<vmem>>, vector<2x16x512xbf16>,
    } else {
    }
    %c0 = arith.constant 0 : index
    %c0_1 = arith.constant 0 : index
    %c0_2 = arith.constant 0 : index
    %3 = vector.load %arg1[%c0, %c0_1, %c0_2] : memref<2x16x48xf32, #tpu.memory_space<vmem>>, vector<2x16x48xf32>
    %4 = arith.truncf %3 : vector<2x16x48xf32> to vector<2x16x48xbf16>
    %c0_3 = arith.constant 0 : index
    %c8 = arith.constant 8 : index
    %c0_4 = arith.constant 0 : index
    %5 = vector.load %arg16[%c0_3, %c8, %c0_4] : memref<2x27x48xbf16, #tpu.memory_space<vmem>>, vector<2x16x48xbf16>
    tpu.vector_store %arg16[%c0_3, %c8, %c0_4], %4 {strides = array<i32>} : memref<2x27x48xbf16, #tpu.memory_space<vmem>>, vector<2x16x48xbf16>,
    %c0_5 = arith.constant 0 : index
    %c5 = arith.constant 5 : index
    %c0_6 = arith.constant 0 : index
    %6 = vector.load %arg16[%c0_5, %c5, %c0_6] : memref<2x27x48xbf16, #tpu.memory_space<vmem>>, vector<2x16x48xbf16>
    %c0_7 = arith.constant 0 : index
    %c0_8 = arith.constant 0 : index
    %c0_9 = arith.constant 0 : index
    %7 = vector.load %arg17[%c0_7, %c0_8, %c0_9] : memref<2x16x512xbf16, #tpu.memory_space<vmem>>, vector<2x16x48xbf16>
    tpu.vector_store %arg17[%c0_7, %c0_8, %c0_9], %6 {strides = array<i32>} : memref<2x16x512xbf16, #tpu.memory_space<vmem>>, vector<2x16x48xbf16>,
    %c0_10 = arith.constant 0 : index
    %c6 = arith.constant 6 : index
    %c0_11 = arith.constant 0 : index
    %8 = vector.load %arg16[%c0_10, %c6, %c0_11] : memref<2x27x48xbf16, #tpu.memory_space<vmem>>, vector<2x16x48xbf16>
    %c0_12 = arith.constant 0 : index
    %c0_13 = arith.constant 0 : index
    %c48 = arith.constant 48 : index
    %9 = vector.load %arg17[%c0_12, %c0_13, %c48] : memref<2x16x512xbf16, #tpu.memory_space<vmem>>, vector<2x16x48xbf16>
    tpu.vector_store %arg17[%c0_12, %c0_13, %c48], %8 {strides = array<i32>} : memref<2x16x512xbf16, #tpu.memory_space<vmem>>, vector<2x16x48xbf16>,
    %c0_14 = arith.constant 0 : index
    %c7 = arith.constant 7 : index
    %c0_15 = arith.constant 0 : index
    %10 = vector.load %arg16[%c0_14, %c7, %c0_15] : memref<2x27x48xbf16, #tpu.memory_space<vmem>>, vector<2x16x48xbf16>
    %c0_16 = arith.constant 0 : index
    %c0_17 = arith.constant 0 : index
    %c128 = arith.constant 128 : index
    %11 = vector.load %arg17[%c0_16, %c0_17, %c128] : memref<2x16x512xbf16, #tpu.memory_space<vmem>>, vector<2x16x48xbf16>
    tpu.vector_store %arg17[%c0_16, %c0_17, %c128], %10 {strides = array<i32>} : memref<2x16x512xbf16, #tpu.memory_space<vmem>>, vector<2x16x48xbf16>,
    %c0_18 = arith.constant 0 : index
    %c8_19 = arith.constant 8 : index
    %c0_20 = arith.constant 0 : index
    %12 = vector.load %arg16[%c0_18, %c8_19, %c0_20] : memref<2x27x48xbf16, #tpu.memory_space<vmem>>, vector<2x16x48xbf16>
    %c0_21 = arith.constant 0 : index
    %c0_22 = arith.constant 0 : index
    %c176 = arith.constant 176 : index
    %13 = vector.load %arg17[%c0_21, %c0_22, %c176] : memref<2x16x512xbf16, #tpu.memory_space<vmem>>, vector<2x16x48xbf16>
    tpu.vector_store %arg17[%c0_21, %c0_22, %c176], %12 {strides = array<i32>} : memref<2x16x512xbf16, #tpu.memory_space<vmem>>, vector<2x16x48xbf16>,
    %c0_23 = arith.constant 0 : index
    %c9 = arith.constant 9 : index
    %c0_24 = arith.constant 0 : index
    %14 = vector.load %arg16[%c0_23, %c9, %c0_24] : memref<2x27x48xbf16, #tpu.memory_space<vmem>>, vector<2x16x48xbf16>
    %c0_25 = arith.constant 0 : index
    %c0_26 = arith.constant 0 : index
    %c256 = arith.constant 256 : index
    %15 = vector.load %arg17[%c0_25, %c0_26, %c256] : memref<2x16x512xbf16, #tpu.memory_space<vmem>>, vector<2x16x48xbf16>
    tpu.vector_store %arg17[%c0_25, %c0_26, %c256], %14 {strides = array<i32>} : memref<2x16x512xbf16, #tpu.memory_space<vmem>>, vector<2x16x48xbf16>,
    %c0_27 = arith.constant 0 : index
    %c10 = arith.constant 10 : index
    %c0_28 = arith.constant 0 : index
    %16 = vector.load %arg16[%c0_27, %c10, %c0_28] : memref<2x27x48xbf16, #tpu.memory_space<vmem>>, vector<2x16x48xbf16>
    %c0_29 = arith.constant 0 : index
    %c0_30 = arith.constant 0 : index
    %c304 = arith.constant 304 : index
    %17 = vector.load %arg17[%c0_29, %c0_30, %c304] : memref<2x16x512xbf16, #tpu.memory_space<vmem>>, vector<2x16x48xbf16>
    tpu.vector_store %arg17[%c0_29, %c0_30, %c304], %16 {strides = array<i32>} : memref<2x16x512xbf16, #tpu.memory_space<vmem>>, vector<2x16x48xbf16>,
    %c0_31 = arith.constant 0 : index
    %c11 = arith.constant 11 : index
    %c0_32 = arith.constant 0 : index
    %18 = vector.load %arg16[%c0_31, %c11, %c0_32] : memref<2x27x48xbf16, #tpu.memory_space<vmem>>, vector<2x16x48xbf16>
    %c0_33 = arith.constant 0 : index
    %c0_34 = arith.constant 0 : index
    %c384 = arith.constant 384 : index
    %19 = vector.load %arg17[%c0_33, %c0_34, %c384] : memref<2x16x512xbf16, #tpu.memory_space<vmem>>, vector<2x16x48xbf16>
    tpu.vector_store %arg17[%c0_33, %c0_34, %c384], %18 {strides = array<i32>} : memref<2x16x512xbf16, #tpu.memory_space<vmem>>, vector<2x16x48xbf16>,
    %c0_35 = arith.constant 0 : index
    %c0_36 = arith.constant 0 : index
    %c0_37 = arith.constant 0 : index
    %20 = vector.load %arg17[%c0_35, %c0_36, %c0_37] : memref<2x16x512xbf16, #tpu.memory_space<vmem>>, vector<2x16x512xbf16>
    %21 = vector.shape_cast %20 : vector<2x16x512xbf16> to vector<32x512xbf16>
    %c0_38 = arith.constant 0 : index
    %c0_39 = arith.constant 0 : index
    %22 = vector.load %arg3[%c0_38, %c0_39] : memref<512x768xbf16, #tpu.memory_space<vmem>>, vector<512x768xbf16>
    %cst = arith.constant dense<0.000000e+00> : vector<32x768xf32>
    %23 = tpu.matmul %21, %22, %cst {dimension_numbers = #tpu.dot_dimension_numbers<[1], [0], [0], [1], [0, 0, 1, 1], [], []>} : vector<32x512xbf16>, vector<512x768xbf16>, vector<32x768xf32> -> vector<32x768xf32>
    %c0_40 = arith.constant 0 : index
    %c0_41 = arith.constant 0 : index
    %24 = vector.load %arg4[%c0_40, %c0_41] : memref<1x768xf32, #tpu.memory_space<vmem>>, vector<1x768xf32>
    %25 = vector.broadcast %24 : vector<1x768xf32> to vector<32x768xf32>
    %26 = arith.mulf %23, %25 : vector<32x768xf32>
    %c0_42 = arith.constant 0 : index
    %c0_43 = arith.constant 0 : index
    %27 = vector.load %arg5[%c0_42, %c0_43] : memref<1x768xf32, #tpu.memory_space<vmem>>, vector<1x768xf32>
    %28 = vector.broadcast %27 : vector<1x768xf32> to vector<32x768xf32>
    %29 = arith.addf %26, %28 : vector<32x768xf32>
    %cst_44 = arith.constant 0.000000e+00 : f32
    %30 = vector.broadcast %cst_44 : f32 to vector<32x768xf32>
    %31 = arith.maximumf %29, %30 : vector<32x768xf32>
    %32 = vector.shape_cast %31 : vector<32x768xf32> to vector<16x2x768xf32>
    %cst_45 = arith.constant dense<0xFF800000> : vector<16x768xf32>
    %33 = vector.multi_reduction <maximumf>, %32, %cst_45 [1] : vector<16x2x768xf32> to vector<16x768xf32>
    %34 = vector.extract_strided_slice %33 {offsets = [0, 16], sizes = [16, 752], strides = [1, 1]} : vector<16x768xf32> to vector<16x752xf32>
    %35 = vector.extract_strided_slice %33 {offsets = [0, 0], sizes = [16, 16], strides = [1, 1]} : vector<16x768xf32> to vector<16x16xf32>
    %36 = tpu.concatenate %34, %35 in 1 : vector<16x752xf32>, vector<16x16xf32> -> vector<16x768xf32>
    %37 = arith.maximumf %33, %36 : vector<16x768xf32>
    %38 = vector.shape_cast %37 : vector<16x768xf32> to vector<2x8x768xf32>
    %39 = arith.truncf %38 : vector<2x8x768xf32> to vector<2x8x768xbf16>
    %c0_46 = arith.constant 0 : index
    %c8_47 = arith.constant 8 : index
    %c0_48 = arith.constant 0 : index
    %40 = vector.load %arg18[%c0_46, %c8_47, %c0_48] : memref<2x19x768xbf16, #tpu.memory_space<vmem>>, vector<2x8x768xbf16>
    tpu.vector_store %arg18[%c0_46, %c8_47, %c0_48], %39 {strides = array<i32>} : memref<2x19x768xbf16, #tpu.memory_space<vmem>>, vector<2x8x768xbf16>,
    %c0_49 = arith.constant 0 : index
    %c0_50 = arith.constant 0 : index
    %41 = vector.load %arg2[%c0_49, %c0_50] : memref<256x256xf32, #tpu.memory_space<vmem>>, vector<256x256xf32>
    %c0_51 = arith.constant 0 : index
    %c5_52 = arith.constant 5 : index
    %c0_53 = arith.constant 0 : index
    %42 = vector.load %arg18[%c0_51, %c5_52, %c0_53] : memref<2x19x768xbf16, #tpu.memory_space<vmem>>, vector<2x8x256xbf16>
    %43 = vector.shape_cast %42 : vector<2x8x256xbf16> to vector<16x256xbf16>
    %c0_54 = arith.constant 0 : index
    %c0_55 = arith.constant 0 : index
    %c0_56 = arith.constant 0 : index
    %44 = vector.load %arg6[%c0_54, %c0_55, %c0_56] : memref<7x256x256xbf16, #tpu.memory_space<vmem>>, vector<1x256x256xbf16>
    %45 = vector.shape_cast %44 : vector<1x256x256xbf16> to vector<256x256xbf16>
    %cst_57 = arith.constant dense<0.000000e+00> : vector<16x256xf32>
    %46 = tpu.matmul %43, %45, %cst_57 {dimension_numbers = #tpu.dot_dimension_numbers<[1], [0], [0], [1], [0, 0, 1, 1], [], []>} : vector<16x256xbf16>, vector<256x256xbf16>, vector<16x256xf32> -> vector<16x256xf32>
    %c0_58 = arith.constant 0 : index
    %c6_59 = arith.constant 6 : index
    %c0_60 = arith.constant 0 : index
    %47 = vector.load %arg18[%c0_58, %c6_59, %c0_60] : memref<2x19x768xbf16, #tpu.memory_space<vmem>>, vector<2x8x256xbf16>
    %48 = vector.shape_cast %47 : vector<2x8x256xbf16> to vector<16x256xbf16>
    %c1 = arith.constant 1 : index
    %c0_61 = arith.constant 0 : index
    %c0_62 = arith.constant 0 : index
    %49 = vector.load %arg6[%c1, %c0_61, %c0_62] : memref<7x256x256xbf16, #tpu.memory_space<vmem>>, vector<1x256x256xbf16>
    %50 = vector.shape_cast %49 : vector<1x256x256xbf16> to vector<256x256xbf16>
    %cst_63 = arith.constant dense<0.000000e+00> : vector<16x256xf32>
    %51 = tpu.matmul %48, %50, %cst_63 {dimension_numbers = #tpu.dot_dimension_numbers<[1], [0], [0], [1], [0, 0, 1, 1], [], []>} : vector<16x256xbf16>, vector<256x256xbf16>, vector<16x256xf32> -> vector<16x256xf32>
    %52 = arith.addf %46, %51 : vector<16x256xf32>
    %c0_64 = arith.constant 0 : index
    %c7_65 = arith.constant 7 : index
    %c0_66 = arith.constant 0 : index
    %53 = vector.load %arg18[%c0_64, %c7_65, %c0_66] : memref<2x19x768xbf16, #tpu.memory_space<vmem>>, vector<2x8x256xbf16>
    %54 = vector.shape_cast %53 : vector<2x8x256xbf16> to vector<16x256xbf16>
    %c2 = arith.constant 2 : index
    %c0_67 = arith.constant 0 : index
    %c0_68 = arith.constant 0 : index
    %55 = vector.load %arg6[%c2, %c0_67, %c0_68] : memref<7x256x256xbf16, #tpu.memory_space<vmem>>, vector<1x256x256xbf16>
    %56 = vector.shape_cast %55 : vector<1x256x256xbf16> to vector<256x256xbf16>
    %cst_69 = arith.constant dense<0.000000e+00> : vector<16x256xf32>
    %57 = tpu.matmul %54, %56, %cst_69 {dimension_numbers = #tpu.dot_dimension_numbers<[1], [0], [0], [1], [0, 0, 1, 1], [], []>} : vector<16x256xbf16>, vector<256x256xbf16>, vector<16x256xf32> -> vector<16x256xf32>
    %58 = arith.addf %52, %57 : vector<16x256xf32>
    %c0_70 = arith.constant 0 : index
    %c8_71 = arith.constant 8 : index
    %c0_72 = arith.constant 0 : index
    %59 = vector.load %arg18[%c0_70, %c8_71, %c0_72] : memref<2x19x768xbf16, #tpu.memory_space<vmem>>, vector<2x8x256xbf16>
    %60 = vector.shape_cast %59 : vector<2x8x256xbf16> to vector<16x256xbf16>
    %c3 = arith.constant 3 : index
    %c0_73 = arith.constant 0 : index
    %c0_74 = arith.constant 0 : index
    %61 = vector.load %arg6[%c3, %c0_73, %c0_74] : memref<7x256x256xbf16, #tpu.memory_space<vmem>>, vector<1x256x256xbf16>
    %62 = vector.shape_cast %61 : vector<1x256x256xbf16> to vector<256x256xbf16>
    %cst_75 = arith.constant dense<0.000000e+00> : vector<16x256xf32>
    %63 = tpu.matmul %60, %62, %cst_75 {dimension_numbers = #tpu.dot_dimension_numbers<[1], [0], [0], [1], [0, 0, 1, 1], [], []>} : vector<16x256xbf16>, vector<256x256xbf16>, vector<16x256xf32> -> vector<16x256xf32>
    %64 = arith.addf %58, %63 : vector<16x256xf32>
    %c0_76 = arith.constant 0 : index
    %c9_77 = arith.constant 9 : index
    %c0_78 = arith.constant 0 : index
    %65 = vector.load %arg18[%c0_76, %c9_77, %c0_78] : memref<2x19x768xbf16, #tpu.memory_space<vmem>>, vector<2x8x256xbf16>
    %66 = vector.shape_cast %65 : vector<2x8x256xbf16> to vector<16x256xbf16>
    %c4 = arith.constant 4 : index
    %c0_79 = arith.constant 0 : index
    %c0_80 = arith.constant 0 : index
    %67 = vector.load %arg6[%c4, %c0_79, %c0_80] : memref<7x256x256xbf16, #tpu.memory_space<vmem>>, vector<1x256x256xbf16>
    %68 = vector.shape_cast %67 : vector<1x256x256xbf16> to vector<256x256xbf16>
    %cst_81 = arith.constant dense<0.000000e+00> : vector<16x256xf32>
    %69 = tpu.matmul %66, %68, %cst_81 {dimension_numbers = #tpu.dot_dimension_numbers<[1], [0], [0], [1], [0, 0, 1, 1], [], []>} : vector<16x256xbf16>, vector<256x256xbf16>, vector<16x256xf32> -> vector<16x256xf32>
    %70 = arith.addf %64, %69 : vector<16x256xf32>
    %c0_82 = arith.constant 0 : index
    %c10_83 = arith.constant 10 : index
    %c0_84 = arith.constant 0 : index
    %71 = vector.load %arg18[%c0_82, %c10_83, %c0_84] : memref<2x19x768xbf16, #tpu.memory_space<vmem>>, vector<2x8x256xbf16>
    %72 = vector.shape_cast %71 : vector<2x8x256xbf16> to vector<16x256xbf16>
    %c5_85 = arith.constant 5 : index
    %c0_86 = arith.constant 0 : index
    %c0_87 = arith.constant 0 : index
    %73 = vector.load %arg6[%c5_85, %c0_86, %c0_87] : memref<7x256x256xbf16, #tpu.memory_space<vmem>>, vector<1x256x256xbf16>
    %74 = vector.shape_cast %73 : vector<1x256x256xbf16> to vector<256x256xbf16>
    %cst_88 = arith.constant dense<0.000000e+00> : vector<16x256xf32>
    %75 = tpu.matmul %72, %74, %cst_88 {dimension_numbers = #tpu.dot_dimension_numbers<[1], [0], [0], [1], [0, 0, 1, 1], [], []>} : vector<16x256xbf16>, vector<256x256xbf16>, vector<16x256xf32> -> vector<16x256xf32>
    %76 = arith.addf %70, %75 : vector<16x256xf32>
    %c0_89 = arith.constant 0 : index
    %c11_90 = arith.constant 11 : index
    %c0_91 = arith.constant 0 : index
    %77 = vector.load %arg18[%c0_89, %c11_90, %c0_91] : memref<2x19x768xbf16, #tpu.memory_space<vmem>>, vector<2x8x256xbf16>
    %78 = vector.shape_cast %77 : vector<2x8x256xbf16> to vector<16x256xbf16>
    %c6_92 = arith.constant 6 : index
    %c0_93 = arith.constant 0 : index
    %c0_94 = arith.constant 0 : index
    %79 = vector.load %arg6[%c6_92, %c0_93, %c0_94] : memref<7x256x256xbf16, #tpu.memory_space<vmem>>, vector<1x256x256xbf16>
    %80 = vector.shape_cast %79 : vector<1x256x256xbf16> to vector<256x256xbf16>
    %cst_95 = arith.constant dense<0.000000e+00> : vector<16x256xf32>
    %81 = tpu.matmul %78, %80, %cst_95 {dimension_numbers = #tpu.dot_dimension_numbers<[1], [0], [0], [1], [0, 0, 1, 1], [], []>} : vector<16x256xbf16>, vector<256x256xbf16>, vector<16x256xf32> -> vector<16x256xf32>
    %82 = arith.addf %76, %81 : vector<16x256xf32>
    %c0_96 = arith.constant 0 : index
    %c0_97 = arith.constant 0 : index
    %83 = vector.load %arg7[%c0_96, %c0_97] : memref<1x256xf32, #tpu.memory_space<vmem>>, vector<1x256xf32>
    %84 = vector.broadcast %83 : vector<1x256xf32> to vector<16x256xf32>
    %85 = arith.mulf %82, %84 : vector<16x256xf32>
    %c0_98 = arith.constant 0 : index
    %c0_99 = arith.constant 0 : index
    %86 = vector.load %arg8[%c0_98, %c0_99] : memref<1x256xf32, #tpu.memory_space<vmem>>, vector<1x256xf32>
    %87 = vector.broadcast %86 : vector<1x256xf32> to vector<16x256xf32>
    %88 = arith.addf %85, %87 : vector<16x256xf32>
    %cst_100 = arith.constant 0.000000e+00 : f32
    %89 = vector.broadcast %cst_100 : f32 to vector<16x256xf32>
    %90 = arith.maximumf %88, %89 : vector<16x256xf32>
    %91 = arith.mulf %90, %90 : vector<16x256xf32>
    %cst_101 = arith.constant dense<0.000000e+00> : vector<16x256xf32>
    %92 = tpu.matmul %91, %41, %cst_101 {dimension_numbers = #tpu.dot_dimension_numbers<[1], [0], [0], [1], [0, 0, 1, 1], [], []>} : vector<16x256xf32>, vector<256x256xf32>, vector<16x256xf32> -> vector<16x256xf32>
    %93 = math.rsqrt %92 : vector<16x256xf32>
    %94 = arith.mulf %90, %93 : vector<16x256xf32>
    %95 = vector.shape_cast %94 : vector<16x256xf32> to vector<2x8x256xf32>
    %c0_102 = arith.constant 0 : index
    %c0_103 = arith.constant 0 : index
    %c0_104 = arith.constant 0 : index
    %c0_105 = arith.constant 0 : index
    %96 = vector.load %arg15[%c0_102, %c0_103, %c0_104, %c0_105] : memref<3x2x8x256xf32, #tpu.memory_space<vmem>>, vector<1x2x8x256xf32>
    %97 = vector.shape_cast %96 : vector<1x2x8x256xf32> to vector<2x8x256xf32>
    %98 = vector.shape_cast %95 : vector<2x8x256xf32> to vector<1x2x8x256xf32>
    tpu.vector_store %arg15[%c0_102, %c0_103, %c0_104, %c0_105], %98 {strides = array<i32>} : memref<3x2x8x256xf32, #tpu.memory_space<vmem>>, vector<1x2x8x256xf32>,
    %c0_106 = arith.constant 0 : index
    %c6_107 = arith.constant 6 : index
    %c256_108 = arith.constant 256 : index
    %99 = vector.load %arg18[%c0_106, %c6_107, %c256_108] : memref<2x19x768xbf16, #tpu.memory_space<vmem>>, vector<2x8x256xbf16>
    %100 = vector.shape_cast %99 : vector<2x8x256xbf16> to vector<16x256xbf16>
    %c0_109 = arith.constant 0 : index
    %c0_110 = arith.constant 0 : index
    %c0_111 = arith.constant 0 : index
    %101 = vector.load %arg9[%c0_109, %c0_110, %c0_111] : memref<5x256x256xbf16, #tpu.memory_space<vmem>>, vector<1x256x256xbf16>
    %102 = vector.shape_cast %101 : vector<1x256x256xbf16> to vector<256x256xbf16>
    %cst_112 = arith.constant dense<0.000000e+00> : vector<16x256xf32>
    %103 = tpu.matmul %100, %102, %cst_112 {dimension_numbers = #tpu.dot_dimension_numbers<[1], [0], [0], [1], [0, 0, 1, 1], [], []>} : vector<16x256xbf16>, vector<256x256xbf16>, vector<16x256xf32> -> vector<16x256xf32>
    %c0_113 = arith.constant 0 : index
    %c7_114 = arith.constant 7 : index
    %c256_115 = arith.constant 256 : index
    %104 = vector.load %arg18[%c0_113, %c7_114, %c256_115] : memref<2x19x768xbf16, #tpu.memory_space<vmem>>, vector<2x8x256xbf16>
    %105 = vector.shape_cast %104 : vector<2x8x256xbf16> to vector<16x256xbf16>
    %c1_116 = arith.constant 1 : index
    %c0_117 = arith.constant 0 : index
    %c0_118 = arith.constant 0 : index
    %106 = vector.load %arg9[%c1_116, %c0_117, %c0_118] : memref<5x256x256xbf16, #tpu.memory_space<vmem>>, vector<1x256x256xbf16>
    %107 = vector.shape_cast %106 : vector<1x256x256xbf16> to vector<256x256xbf16>
    %cst_119 = arith.constant dense<0.000000e+00> : vector<16x256xf32>
    %108 = tpu.matmul %105, %107, %cst_119 {dimension_numbers = #tpu.dot_dimension_numbers<[1], [0], [0], [1], [0, 0, 1, 1], [], []>} : vector<16x256xbf16>, vector<256x256xbf16>, vector<16x256xf32> -> vector<16x256xf32>
    %109 = arith.addf %103, %108 : vector<16x256xf32>
    %c0_120 = arith.constant 0 : index
    %c8_121 = arith.constant 8 : index
    %c256_122 = arith.constant 256 : index
    %110 = vector.load %arg18[%c0_120, %c8_121, %c256_122] : memref<2x19x768xbf16, #tpu.memory_space<vmem>>, vector<2x8x256xbf16>
    %111 = vector.shape_cast %110 : vector<2x8x256xbf16> to vector<16x256xbf16>
    %c2_123 = arith.constant 2 : index
    %c0_124 = arith.constant 0 : index
    %c0_125 = arith.constant 0 : index
    %112 = vector.load %arg9[%c2_123, %c0_124, %c0_125] : memref<5x256x256xbf16, #tpu.memory_space<vmem>>, vector<1x256x256xbf16>
    %113 = vector.shape_cast %112 : vector<1x256x256xbf16> to vector<256x256xbf16>
    %cst_126 = arith.constant dense<0.000000e+00> : vector<16x256xf32>
    %114 = tpu.matmul %111, %113, %cst_126 {dimension_numbers = #tpu.dot_dimension_numbers<[1], [0], [0], [1], [0, 0, 1, 1], [], []>} : vector<16x256xbf16>, vector<256x256xbf16>, vector<16x256xf32> -> vector<16x256xf32>
    %115 = arith.addf %109, %114 : vector<16x256xf32>
    %c0_127 = arith.constant 0 : index
    %c9_128 = arith.constant 9 : index
    %c256_129 = arith.constant 256 : index
    %116 = vector.load %arg18[%c0_127, %c9_128, %c256_129] : memref<2x19x768xbf16, #tpu.memory_space<vmem>>, vector<2x8x256xbf16>
    %117 = vector.shape_cast %116 : vector<2x8x256xbf16> to vector<16x256xbf16>
    %c3_130 = arith.constant 3 : index
    %c0_131 = arith.constant 0 : index
    %c0_132 = arith.constant 0 : index
    %118 = vector.load %arg9[%c3_130, %c0_131, %c0_132] : memref<5x256x256xbf16, #tpu.memory_space<vmem>>, vector<1x256x256xbf16>
    %119 = vector.shape_cast %118 : vector<1x256x256xbf16> to vector<256x256xbf16>
    %cst_133 = arith.constant dense<0.000000e+00> : vector<16x256xf32>
    %120 = tpu.matmul %117, %119, %cst_133 {dimension_numbers = #tpu.dot_dimension_numbers<[1], [0], [0], [1], [0, 0, 1, 1], [], []>} : vector<16x256xbf16>, vector<256x256xbf16>, vector<16x256xf32> -> vector<16x256xf32>
    %121 = arith.addf %115, %120 : vector<16x256xf32>
    %c0_134 = arith.constant 0 : index
    %c10_135 = arith.constant 10 : index
    %c256_136 = arith.constant 256 : index
    %122 = vector.load %arg18[%c0_134, %c10_135, %c256_136] : memref<2x19x768xbf16, #tpu.memory_space<vmem>>, vector<2x8x256xbf16>
    %123 = vector.shape_cast %122 : vector<2x8x256xbf16> to vector<16x256xbf16>
    %c4_137 = arith.constant 4 : index
    %c0_138 = arith.constant 0 : index
    %c0_139 = arith.constant 0 : index
    %124 = vector.load %arg9[%c4_137, %c0_138, %c0_139] : memref<5x256x256xbf16, #tpu.memory_space<vmem>>, vector<1x256x256xbf16>
    %125 = vector.shape_cast %124 : vector<1x256x256xbf16> to vector<256x256xbf16>
    %cst_140 = arith.constant dense<0.000000e+00> : vector<16x256xf32>
    %126 = tpu.matmul %123, %125, %cst_140 {dimension_numbers = #tpu.dot_dimension_numbers<[1], [0], [0], [1], [0, 0, 1, 1], [], []>} : vector<16x256xbf16>, vector<256x256xbf16>, vector<16x256xf32> -> vector<16x256xf32>
    %127 = arith.addf %121, %126 : vector<16x256xf32>
    %c0_141 = arith.constant 0 : index
    %c0_142 = arith.constant 0 : index
    %128 = vector.load %arg10[%c0_141, %c0_142] : memref<1x256xf32, #tpu.memory_space<vmem>>, vector<1x256xf32>
    %129 = vector.broadcast %128 : vector<1x256xf32> to vector<16x256xf32>
    %130 = arith.mulf %127, %129 : vector<16x256xf32>
    %c0_143 = arith.constant 0 : index
    %c0_144 = arith.constant 0 : index
    %131 = vector.load %arg11[%c0_143, %c0_144] : memref<1x256xf32, #tpu.memory_space<vmem>>, vector<1x256xf32>
    %132 = vector.broadcast %131 : vector<1x256xf32> to vector<16x256xf32>
    %133 = arith.addf %130, %132 : vector<16x256xf32>
    %cst_145 = arith.constant 0.000000e+00 : f32
    %134 = vector.broadcast %cst_145 : f32 to vector<16x256xf32>
    %135 = arith.maximumf %133, %134 : vector<16x256xf32>
    %136 = arith.mulf %135, %135 : vector<16x256xf32>
    %cst_146 = arith.constant dense<0.000000e+00> : vector<16x256xf32>
    %137 = tpu.matmul %136, %41, %cst_146 {dimension_numbers = #tpu.dot_dimension_numbers<[1], [0], [0], [1], [0, 0, 1, 1], [], []>} : vector<16x256xf32>, vector<256x256xf32>, vector<16x256xf32> -> vector<16x256xf32>
    %138 = math.rsqrt %137 : vector<16x256xf32>
    %139 = arith.mulf %135, %138 : vector<16x256xf32>
    %140 = vector.shape_cast %139 : vector<16x256xf32> to vector<2x8x256xf32>
    %c1_147 = arith.constant 1 : index
    %c0_148 = arith.constant 0 : index
    %c0_149 = arith.constant 0 : index
    %c0_150 = arith.constant 0 : index
    %141 = vector.load %arg15[%c1_147, %c0_148, %c0_149, %c0_150] : memref<3x2x8x256xf32, #tpu.memory_space<vmem>>, vector<1x2x8x256xf32>
    %142 = vector.shape_cast %141 : vector<1x2x8x256xf32> to vector<2x8x256xf32>
    %143 = vector.shape_cast %140 : vector<2x8x256xf32> to vector<1x2x8x256xf32>
    tpu.vector_store %arg15[%c1_147, %c0_148, %c0_149, %c0_150], %143 {strides = array<i32>} : memref<3x2x8x256xf32, #tpu.memory_space<vmem>>, vector<1x2x8x256xf32>,
    %c0_151 = arith.constant 0 : index
    %c7_152 = arith.constant 7 : index
    %c512 = arith.constant 512 : index
    %144 = vector.load %arg18[%c0_151, %c7_152, %c512] : memref<2x19x768xbf16, #tpu.memory_space<vmem>>, vector<2x8x256xbf16>
    %145 = vector.shape_cast %144 : vector<2x8x256xbf16> to vector<16x256xbf16>
    %c0_153 = arith.constant 0 : index
    %c0_154 = arith.constant 0 : index
    %c0_155 = arith.constant 0 : index
    %146 = vector.load %arg12[%c0_153, %c0_154, %c0_155] : memref<3x256x256xbf16, #tpu.memory_space<vmem>>, vector<1x256x256xbf16>
    %147 = vector.shape_cast %146 : vector<1x256x256xbf16> to vector<256x256xbf16>
    %cst_156 = arith.constant dense<0.000000e+00> : vector<16x256xf32>
    %148 = tpu.matmul %145, %147, %cst_156 {dimension_numbers = #tpu.dot_dimension_numbers<[1], [0], [0], [1], [0, 0, 1, 1], [], []>} : vector<16x256xbf16>, vector<256x256xbf16>, vector<16x256xf32> -> vector<16x256xf32>
    %c0_157 = arith.constant 0 : index
    %c8_158 = arith.constant 8 : index
    %c512_159 = arith.constant 512 : index
    %149 = vector.load %arg18[%c0_157, %c8_158, %c512_159] : memref<2x19x768xbf16, #tpu.memory_space<vmem>>, vector<2x8x256xbf16>
    %150 = vector.shape_cast %149 : vector<2x8x256xbf16> to vector<16x256xbf16>
    %c1_160 = arith.constant 1 : index
    %c0_161 = arith.constant 0 : index
    %c0_162 = arith.constant 0 : index
    %151 = vector.load %arg12[%c1_160, %c0_161, %c0_162] : memref<3x256x256xbf16, #tpu.memory_space<vmem>>, vector<1x256x256xbf16>
    %152 = vector.shape_cast %151 : vector<1x256x256xbf16> to vector<256x256xbf16>
    %cst_163 = arith.constant dense<0.000000e+00> : vector<16x256xf32>
    %153 = tpu.matmul %150, %152, %cst_163 {dimension_numbers = #tpu.dot_dimension_numbers<[1], [0], [0], [1], [0, 0, 1, 1], [], []>} : vector<16x256xbf16>, vector<256x256xbf16>, vector<16x256xf32> -> vector<16x256xf32>
    %154 = arith.addf %148, %153 : vector<16x256xf32>
    %c0_164 = arith.constant 0 : index
    %c9_165 = arith.constant 9 : index
    %c512_166 = arith.constant 512 : index
    %155 = vector.load %arg18[%c0_164, %c9_165, %c512_166] : memref<2x19x768xbf16, #tpu.memory_space<vmem>>, vector<2x8x256xbf16>
    %156 = vector.shape_cast %155 : vector<2x8x256xbf16> to vector<16x256xbf16>
    %c2_167 = arith.constant 2 : index
    %c0_168 = arith.constant 0 : index
    %c0_169 = arith.constant 0 : index
    %157 = vector.load %arg12[%c2_167, %c0_168, %c0_169] : memref<3x256x256xbf16, #tpu.memory_space<vmem>>, vector<1x256x256xbf16>
    %158 = vector.shape_cast %157 : vector<1x256x256xbf16> to vector<256x256xbf16>
    %cst_170 = arith.constant dense<0.000000e+00> : vector<16x256xf32>
    %159 = tpu.matmul %156, %158, %cst_170 {dimension_numbers = #tpu.dot_dimension_numbers<[1], [0], [0], [1], [0, 0, 1, 1], [], []>} : vector<16x256xbf16>, vector<256x256xbf16>, vector<16x256xf32> -> vector<16x256xf32>
    %160 = arith.addf %154, %159 : vector<16x256xf32>
    %c0_171 = arith.constant 0 : index
    %c0_172 = arith.constant 0 : index
    %161 = vector.load %arg13[%c0_171, %c0_172] : memref<1x256xf32, #tpu.memory_space<vmem>>, vector<1x256xf32>
    %162 = vector.broadcast %161 : vector<1x256xf32> to vector<16x256xf32>
    %163 = arith.mulf %160, %162 : vector<16x256xf32>
    %c0_173 = arith.constant 0 : index
    %c0_174 = arith.constant 0 : index
    %164 = vector.load %arg14[%c0_173, %c0_174] : memref<1x256xf32, #tpu.memory_space<vmem>>, vector<1x256xf32>
    %165 = vector.broadcast %164 : vector<1x256xf32> to vector<16x256xf32>
    %166 = arith.addf %163, %165 : vector<16x256xf32>
    %cst_175 = arith.constant 0.000000e+00 : f32
    %167 = vector.broadcast %cst_175 : f32 to vector<16x256xf32>
    %168 = arith.maximumf %166, %167 : vector<16x256xf32>
    %169 = arith.mulf %168, %168 : vector<16x256xf32>
    %cst_176 = arith.constant dense<0.000000e+00> : vector<16x256xf32>
    %170 = tpu.matmul %169, %41, %cst_176 {dimension_numbers = #tpu.dot_dimension_numbers<[1], [0], [0], [1], [0, 0, 1, 1], [], []>} : vector<16x256xf32>, vector<256x256xf32>, vector<16x256xf32> -> vector<16x256xf32>
    %171 = math.rsqrt %170 : vector<16x256xf32>
    %172 = arith.mulf %168, %171 : vector<16x256xf32>
    %173 = vector.shape_cast %172 : vector<16x256xf32> to vector<2x8x256xf32>
    %c2_177 = arith.constant 2 : index
    %c0_178 = arith.constant 0 : index
    %c0_179 = arith.constant 0 : index
    %c0_180 = arith.constant 0 : index
    %174 = vector.load %arg15[%c2_177, %c0_178, %c0_179, %c0_180] : memref<3x2x8x256xf32, #tpu.memory_space<vmem>>, vector<1x2x8x256xf32>
    %175 = vector.shape_cast %174 : vector<1x2x8x256xf32> to vector<2x8x256xf32>
    %176 = vector.shape_cast %173 : vector<2x8x256xf32> to vector<1x2x8x256xf32>
    tpu.vector_store %arg15[%c2_177, %c0_178, %c0_179, %c0_180], %176 {strides = array<i32>} : memref<3x2x8x256xf32, #tpu.memory_space<vmem>>, vector<1x2x8x256xf32>,
    return
  }
  func.func @transform_0(%arg0: i32) -> (i32, i32, i32) {
    %c0_i32 = arith.constant 0 : i32
    %c0_i32_0 = arith.constant 0 : i32
    %c0_i32_1 = arith.constant 0 : i32
    return %arg0, %c0_i32, %c0_i32_0 : i32, i32, i32
  }
  func.func @transform_1(%arg0: i32) -> (i32, i32) {
    %c0_i32 = arith.constant 0 : i32
    %c0_i32_0 = arith.constant 0 : i32
    %c0_i32_1 = arith.constant 0 : i32
    return %c0_i32, %c0_i32_0 : i32, i32
  }
  func.func @transform_2(%arg0: i32) -> (i32, i32) {
    %c0_i32 = arith.constant 0 : i32
    %c0_i32_0 = arith.constant 0 : i32
    %c0_i32_1 = arith.constant 0 : i32
    return %c0_i32, %c0_i32_0 : i32, i32
  }
  func.func @transform_3(%arg0: i32) -> (i32, i32) {
    %c0_i32 = arith.constant 0 : i32
    %c0_i32_0 = arith.constant 0 : i32
    %c0_i32_1 = arith.constant 0 : i32
    return %c0_i32, %c0_i32_0 : i32, i32
  }
  func.func @transform_4(%arg0: i32) -> (i32, i32) {
    %c0_i32 = arith.constant 0 : i32
    %c0_i32_0 = arith.constant 0 : i32
    %c0_i32_1 = arith.constant 0 : i32
    return %c0_i32, %c0_i32_0 : i32, i32
  }
  func.func @transform_5(%arg0: i32) -> (i32, i32, i32) {
    %c0_i32 = arith.constant 0 : i32
    %c0_i32_0 = arith.constant 0 : i32
    %c0_i32_1 = arith.constant 0 : i32
    %c0_i32_2 = arith.constant 0 : i32
    return %c0_i32, %c0_i32_0, %c0_i32_1 : i32, i32, i32
  }
  func.func @transform_6(%arg0: i32) -> (i32, i32) {
    %c0_i32 = arith.constant 0 : i32
    %c0_i32_0 = arith.constant 0 : i32
    %c0_i32_1 = arith.constant 0 : i32
    return %c0_i32, %c0_i32_0 : i32, i32
  }
  func.func @transform_7(%arg0: i32) -> (i32, i32) {
    %c0_i32 = arith.constant 0 : i32
    %c0_i32_0 = arith.constant 0 : i32
    %c0_i32_1 = arith.constant 0 : i32
    return %c0_i32, %c0_i32_0 : i32, i32
  }
  func.func @transform_8(%arg0: i32) -> (i32, i32, i32) {
    %c0_i32 = arith.constant 0 : i32
    %c0_i32_0 = arith.constant 0 : i32
    %c0_i32_1 = arith.constant 0 : i32
    %c0_i32_2 = arith.constant 0 : i32
    return %c0_i32, %c0_i32_0, %c0_i32_1 : i32, i32, i32
  }
  func.func @transform_9(%arg0: i32) -> (i32, i32) {
    %c0_i32 = arith.constant 0 : i32
    %c0_i32_0 = arith.constant 0 : i32
    %c0_i32_1 = arith.constant 0 : i32
    return %c0_i32, %c0_i32_0 : i32, i32
  }
  func.func @transform_10(%arg0: i32) -> (i32, i32) {
    %c0_i32 = arith.constant 0 : i32
    %c0_i32_0 = arith.constant 0 : i32
    %c0_i32_1 = arith.constant 0 : i32
    return %c0_i32, %c0_i32_0 : i32, i32
  }
  func.func @transform_11(%arg0: i32) -> (i32, i32, i32) {
    %c0_i32 = arith.constant 0 : i32
    %c0_i32_0 = arith.constant 0 : i32
    %c0_i32_1 = arith.constant 0 : i32
    %c0_i32_2 = arith.constant 0 : i32
    return %c0_i32, %c0_i32_0, %c0_i32_1 : i32, i32, i32
  }
  func.func @transform_12(%arg0: i32) -> (i32, i32) {
    %c0_i32 = arith.constant 0 : i32
    %c0_i32_0 = arith.constant 0 : i32
    %c0_i32_1 = arith.constant 0 : i32
    return %c0_i32, %c0_i32_0 : i32, i32
  }
  func.func @transform_13(%arg0: i32) -> (i32, i32) {
    %c0_i32 = arith.constant 0 : i32
    %c0_i32_0 = arith.constant 0 : i32
    %c0_i32_1 = arith.constant 0 : i32
    return %c0_i32, %c0_i32_0 : i32, i32
  }
  func.func @transform_14(%arg0: i32) -> (i32, i32, i32, i32) {
    %c0_i32 = arith.constant 0 : i32
    %c0_i32_0 = arith.constant 0 : i32
    %c0_i32_1 = arith.constant 0 : i32
    %c0_i32_2 = arith.constant 0 : i32
    return %c0_i32, %arg0, %c0_i32_0, %c0_i32_1 : i32, i32, i32, i32
  }
}

</mosaic_0001>

<bundles_post_ra>
// kernel: tpu_custom_call.1
= control target key start
LH: loop header
LB: loop body
LE: loop exit
PB: predicated region body
PF: predicated region fallthrough
CT: control target
= control target key end

     0   :  { %19 = vsyncpa [#allocation6], 0  ;;  %s13962_s0 = inlined_call_operand.hbm [shape: f32[2,16,48], index: 0, kind: input, shape index: {}]   ;;  %s13963_s1 = inlined_call_operand.hbm [shape: f32[256,256], index: 1, kind: input, shape index: {}]   ;;  %s13964_s2 = inlined_call_operand.hbm [shape: bf16[512,768], index: 2, kind: input, shape index: {}]   ;;  %s13965_s3 = inlined_call_operand.hbm [shape: f32[1,768], index: 3, kind: input, shape index: {}]   ;;  %s13966_s4 = inlined_call_operand.vmem [shape: f32[1,768], index: 4, kind: input, shape index: {}]   ;;  %s13967_s5 = inlined_call_operand.hbm [shape: bf16[7,256,256], index: 5, kind: input, shape index: {}]   ;;  %s13968_s6 = inlined_call_operand.vmem [shape: f32[1,256], index: 6, kind: input, shape index: {}]   ;;  %s13969_s7 = inlined_call_operand.vmem [shape: f32[1,256], index: 7, kind: input, shape index: {}]   ;;  %s13970_s8 = inlined_call_operand.hbm [shape: bf16[5,256,256], index: 8, kind: input, shape index: {}]   ;;  %s13971_s9 = inlined_call_operand.vmem [shape: f32[1,256], index: 9, kind: input, shape index: {}]   ;;  %s13972_s10 = inlined_call_operand.vmem [shape: f32[1,256], index: 10, kind: input, shape index: {}]   ;;  %s13973_s11 = inlined_call_operand.hbm [shape: bf16[3,256,256], index: 11, kind: input, shape index: {}]   ;;  %s13974_s12 = inlined_call_operand.vmem [shape: f32[1,256], index: 12, kind: input, shape index: {}]   ;;  %s13975_s13 = inlined_call_operand.vmem [shape: f32[1,256], index: 13, kind: input, shape index: {}]   ;;  %s13976_s14 = inlined_call_operand.hbm [shape: f32[3,2,8,256], index: 14, kind: output, shape index: {}]  }
   0x1   :  { %20 = vsyncpa [#allocation9], 0 }
   0x2   :  { %21 = vsyncpa [#allocation12], 0 }
   0x3   :  { %22 = vsyncpa [#allocation15], 0 }
   0x4   :  { %23 = vsyncpa [#allocation7], 0  ;;  %s11485_s29 = smov [#allocation8]  }
   0x5   :  { %s41_s30 = sshll.u32 %s11485_s29, 4  ;;  %s42_s30 = int_to_ptr.vmem [resolvable:$true] %s41_s30 }
   0x6   :  { %s11323_s15 = scalar_lea.vmem %s42_s30, 8192  ;;  %p11328_p1 = scmp.lt.s32.totalorder %s42_s30, %s42_s30 }
   0x7   :  { %p11324_p0 = scmp.ne.s32.totalorder %s42_s30, %s11323_s15  ;;  %p11329_p2 = scmp.lt.s32.totalorder %s11323_s15, %s11323_s15 }
   0x9   :  { %p11330_p3 = por %p11329_p2, %p11328_p1 }
   0xb   :  { %p11331_p4 = pnand %p11330_p3, %p11324_p0 }
   0xd   :  { %11334 = shalt.err (!%p11331_p4)
}
   0xe   :  { %s11486_s16 = smov 256   ;;  %s11487_s17 = smov 16  }
   0xf   :  { %47 = dma.hbm_to_vmem [thread:$0]  %s13963_s1, 8192, %s42_s30, [#allocation9], %s11486_s16, %s11486_s16, %s11487_s17  }
  0x10   :  { %s11488_s20 = smov [#allocation11]  }
  0x11   :  { %s66_s21 = sshll.u32 %s11488_s20, 4  ;;  %s67_s21 = int_to_ptr.vmem [resolvable:$true] %s66_s21 }
  0x12   :  { %s11343_s22 = scalar_lea.vmem %s67_s21, 96  ;;  %p11348_p6 = scmp.lt.s32.totalorder %s67_s21, %s67_s21 }
  0x13   :  { %p11344_p5 = scmp.ne.s32.totalorder %s67_s21, %s11343_s22  ;;  %p11349_p7 = scmp.lt.s32.totalorder %s11343_s22, %s11343_s22 }
  0x15   :  { %p11350_p8 = por %p11349_p7, %p11348_p6 }
  0x17   :  { %p11351_p9 = pnand %p11350_p8, %p11344_p5 }
  0x19   :  { %11354 = shalt.err (!%p11351_p9)
}
  0x1a   :  { %69 = dma.hbm_to_vmem [thread:$0]  %s13965_s3, 96, %s67_s21, [#allocation12]  }
  0x1b   :  { %s11489_s25 = smov [#allocation14]   ;;  %s11490_s27 = smov [#allocation5]  }
  0x1c   :  { %s93_s26 = sshll.u32 %s11489_s25, 4  ;;  %s29_s28 = sshll.u32 %s11490_s27, 4  ;;  %s94_s26 = int_to_ptr.vmem [resolvable:$true] %s93_s26  ;;  %s30_s28 = int_to_ptr.vmem [resolvable:$true] %s29_s28 }
  0x1d   :  { %s11363_s1 = scalar_lea.vmem %s94_s26, 20480  ;;  %p11368_p11 = scmp.lt.s32.totalorder %s94_s26, %s94_s26 }
  0x1e   :  { %p11364_p10 = scmp.ne.s32.totalorder %s94_s26, %s11363_s1  ;;  %p11369_p12 = scmp.lt.s32.totalorder %s11363_s1, %s11363_s1 }
  0x20   :  { %p11370_p13 = por %p11369_p12, %p11368_p11 }
  0x22   :  { %p11371_p0 = pnand %p11370_p13, %p11364_p10 }
  0x24   :  { %11374 = shalt.err (!%p11371_p0)
}
  0x25   :  { %s11491_s29 = smov 128   ;;  %s11492_s30 = smov 8  }
  0x26   :  { %99 = dma.hbm_to_vmem [thread:$0]  %s13970_s8, 20480, %s94_s26, [#allocation15], %s11491_s29, %s11491_s29, %s11492_s30  }
  0x27   :  { %s11383_s18 = scalar_lea.vmem %s30_s28, 512  ;;  %p11388_p2 = scmp.lt.s32.totalorder %s30_s28, %s30_s28 }
  0x28   :  { %p11384_p1 = scmp.ne.s32.totalorder %s30_s28, %s11383_s18  ;;  %p11389_p3 = scmp.lt.s32.totalorder %s11383_s18, %s11383_s18 }
  0x2a   :  { %p11390_p4 = por %p11389_p3, %p11388_p2 }
  0x2c   :  { %p11391_p5 = pnand %p11390_p4, %p11384_p1 }
  0x2e   :  { %11394 = shalt.err (!%p11391_p5)
}
  0x2f   :  { %35 = dma.hbm_to_vmem [thread:$0]  %s13962_s0, 512, %s30_s28, [#allocation6], %s11491_s29, %s11491_s29, %s11492_s30  }
  0x30   :  { %s11493_s21 = smov [#allocation10]  }
  0x31   :  { %s53_s22 = sshll.u32 %s11493_s21, 4  ;;  %s54_s22 = int_to_ptr.vmem [resolvable:$true] %s53_s22 }
  0x32   :  { %s11403_s23 = scalar_lea.vmem %s54_s22, 24576  ;;  %p11408_p7 = scmp.lt.s32.totalorder %s54_s22, %s54_s22 }
  0x33   :  { %p11404_p6 = scmp.ne.s32.totalorder %s54_s22, %s11403_s23  ;;  %p11409_p8 = scmp.lt.s32.totalorder %s11403_s23, %s11403_s23 }
  0x35   :  { %p11410_p9 = por %p11409_p8, %p11408_p7 }
  0x37   :  { %p11411_p10 = pnand %p11410_p9, %p11404_p6 }
  0x39   :  { %11414 = shalt.err (!%p11411_p10)
}
  0x3a   :  { %s11494_s8 = smov 384   ;;  %s11495_s24 = smov 24  }
  0x3b   :  { %59 = dma.hbm_to_vmem [thread:$0]  %s13964_s2, 24576, %s54_s22, [#allocation9], %s11494_s8, %s11494_s8, %s11495_s24  }
  0x3c   :  { %s11496_s27 = smov [#allocation13]   ;;  %s11497_s0 = smov [#allocation16]  }
  0x3d   :  { %s77_s1 = sshll.u32 %s11496_s27, 4  ;;  %s109_s28 = sshll.u32 %s11497_s0, 4  ;;  %s78_s1 = int_to_ptr.vmem [resolvable:$true] %s77_s1  ;;  %s110_s28 = int_to_ptr.vmem [resolvable:$true] %s109_s28 }
  0x3e   :  { %s11423_s15 = scalar_lea.vmem %s78_s1, 28672  ;;  %p11428_p12 = scmp.lt.s32.totalorder %s78_s1, %s78_s1 }
  0x3f   :  { %p11424_p11 = scmp.ne.s32.totalorder %s78_s1, %s11423_s15  ;;  %p11429_p13 = scmp.lt.s32.totalorder %s11423_s15, %s11423_s15 }
  0x41   :  { %p11430_p0 = por %p11429_p13, %p11428_p12 }
  0x43   :  { %p11431_p1 = pnand %p11430_p0, %p11424_p11 }
  0x45   :  { %11434 = shalt.err (!%p11431_p1)
}
  0x46   :  { %83 = dma.hbm_to_vmem [thread:$0]  %s13967_s5, 28672, %s78_s1, [#allocation12], %s11491_s29, %s11491_s29, %s11492_s30  }
  0x47   :  { %s11443_s2 = scalar_lea.vmem %s110_s28, 12288  ;;  %p11448_p3 = scmp.lt.s32.totalorder %s110_s28, %s110_s28 }
  0x48   :  { %p11444_p2 = scmp.ne.s32.totalorder %s110_s28, %s11443_s2  ;;  %p11449_p4 = scmp.lt.s32.totalorder %s11443_s2, %s11443_s2 }
  0x4a   :  { %p11450_p5 = por %p11449_p4, %p11448_p3 }
  0x4c   :  { %p11451_p6 = pnand %p11450_p5, %p11444_p2 }
  0x4e   :  { %11454 = shalt.err (!%p11451_p6)
}
  0x4f   :  { %115 = dma.hbm_to_vmem [thread:$0]  %s13973_s11, 12288, %s110_s28, [#allocation15], %s11491_s29, %s11491_s29, %s11492_s30  }
  0x50   :  { %11475 = dma.done.wait [#allocation6], 512  }
  0x51   :  { %11476 = vsyncadd [#allocation6], 4294966784 }
  0x52   :  { %11477 = dma.done.wait [#allocation9], 32768  }
  0x53   :  { %11478 = vsyncadd [#allocation9], 4294934528 }
  0x54   :  { %11479 = dma.done.wait [#allocation12], 28768  }
  0x55   :  { %11480 = vsyncadd [#allocation12], 4294938528 }
  0x56   :  { %11481 = dma.done.wait [#allocation15], 32768  }
  0x57   :  { %11482 = vsyncadd [#allocation15], 4294934528  ;;  %vm146_vm0 = vcmask 388096   ;;  %v11498_v0 = vmov 0   ;;  %vm150_vm1 = vcmask 386048   ;;  %vm316_vm4 = vcmask 1040384  }
  0x58   :  { %148 = vst.msk [vmem:[#allocation2 + $0x4] sm:$0xf] %vm146_vm0, %v11498_v0  ;;  %147 = vst.msk [vmem:[#allocation2] sm:$0xf] %vm146_vm0, %v11498_v0  ;;  %vm151_vm2 = vsmask.f32 1280 }
  0x59   :  { %149 = vst.msk [vmem:[#allocation2 + $0x8] sm:$0xf] %vm146_vm0, %v11498_v0  ;;  %156 = vst.msk [vmem:[#allocation2 + $0x10] sm:$0xf] %vm146_vm0, %v11498_v0  ;;  %vm317_vm5 = vcmask 1044484   ;;  %v206_v2 = vld [vmem:[#allocation5] sm:$0xff] }
  0x5a   :  { %157 = vst.msk [vmem:[#allocation2 + $0x14] sm:$0xf] %vm146_vm0, %v11498_v0  ;;  %158 = vst.msk [vmem:[#allocation2 + $0x18] sm:$0xf] %vm146_vm0, %v11498_v0  ;;  %v207_v3 = vld [vmem:[#allocation5 + $0x8] sm:$0xff]  ;;  %v10093_v5 = vpack.c.bf16 %v206_v2, %v206_v2  ;;  %v209_v8 = vld [vmem:[#allocation5 + $0x18] sm:$0xff] }
  0x5b   :  { %162 = vst [vmem:[#allocation4] sm:$0xff] %v11498_v0  ;;  %163 = vst [vmem:[#allocation4 + $0x38] sm:$0xff] %v11498_v0  ;;  %v153_v4 = vld [vmem:[#allocation2 + $0xc] sm:$0x3]  ;;  %v10094_v6 = vpack.c.bf16 %v207_v3, %v207_v3  ;;  %v14143_v9 = vmov 0  ;;  %v10096_v10 = vpack.c.bf16 %v209_v8, %v209_v8  ;;  %v208_v11 = vld [vmem:[#allocation5 + $0x10] sm:$0xff] }
  0x5c   :  { %164 = vst [vmem:[#allocation4 + $0x78] sm:$0xff] %v11498_v0  ;;  %183 = vst [vmem:[#allocation4 + $0x40] sm:$0xff] %v11498_v0  ;;  %v159_v12 = vld [vmem:[#allocation2 + $0x1c] sm:$0x3]  ;;  %v10095_v14 = vpack.c.bf16 %v208_v11, %v208_v11  ;;  %v10195_v17 = vld [vmem:[#allocation10 + $0x150] ss:$24 sps:$4 sm:$0xff]  }
  0x5d   :  { %184 = vst [vmem:[#allocation4 + $0x50] sm:$0xff] %v11498_v0  ;;  %185 = vst [vmem:[#allocation4 + $0x28] sm:$0xff] %v11498_v0  ;;  %v10193_v16 = vld [vmem:[#allocation10 + $0x154] ss:$24 sps:$4 sm:$0xff]   ;;  %v10196_v18 = vld [vmem:[#allocation10 + $0x124] ss:$24 sps:$4 sm:$0xff]  }
  0x5e   :  { %198 = vst [vmem:[#allocation3] sm:$0xff] %v11498_v0  ;;  %199 = vst [vmem:[#allocation3 + $0x8] sm:$0xff] %v11498_v0  ;;  %1818 = vmatprep.subr.bf16.mxu0 %v10193_v16  ;;  %v10198_v19 = vld [vmem:[#allocation10 + $0x454] ss:$24 sps:$4 sm:$0xff]   ;;  %v10200_v20 = vld [vmem:[#allocation10 + $0x120] ss:$24 sps:$4 sm:$0xff]  }
  0x5f   :  { %200 = vst [vmem:[#allocation3 + $0x10] sm:$0xff] %v11498_v0  ;;  %201 = vst [vmem:[#allocation3 + $0x18] sm:$0xff] %v11498_v0  ;;  %v304_v13 = vld [vmem:[#allocation2] sm:$0x8]  ;;  %1819 = vmatpush1.bf16.msra.mxu0 %v10195_v17  ;;  %vm512_vm7 = vcmask 1042432   ;;  %vm513_vm8 = vcmask 1046532   ;;  %1871 = vmatprep.subr.bf16.mxu1 %v10198_v19 }
  0x60   :  { %202 = vst [vmem:[#allocation3 + $0x20] sm:$0xff] %v11498_v0  ;;  %203 = vst [vmem:[#allocation3 + $0x28] sm:$0xff] %v11498_v0  ;;  %v10201_v21 = vld [vmem:[#allocation10 + $0x450] ss:$24 sps:$4 sm:$0xff]   ;;  %1820 = vmatprep.subr.bf16.mxu0 %v10196_v18  ;;  %v10202_v22 = vld [vmem:[#allocation10 + $0xf4] ss:$24 sps:$4 sm:$0xff]  }
  0x61   :  { %204 = vst [vmem:[#allocation3 + $0x30] sm:$0xff] %v11498_v0  ;;  %205 = vst [vmem:[#allocation3 + $0x38] sm:$0xff] %v11498_v0  ;;  %v9299_v23 = vrot.slane %v304_v13, 11  ;;  %v10204_v24 = vld [vmem:[#allocation10 + $0x424] ss:$24 sps:$4 sm:$0xff]   ;;  %1872 = vmatpush1.bf16.msra.mxu1 %v10201_v21  ;;  %s11499_s5 = smov 48  }
  0x62   :  { %vm11621_vm3 = vmand %vm150_vm1, %vm151_vm2  ;;  %227 = vst.msk [vmem:[#allocation2 + $0x4] sm:$0xf] %vm146_vm0, %v10093_v5  ;;  %v10206_v26 = vld [vmem:[#allocation10 + $0xf0] ss:$24 sps:$4 sm:$0xff]   ;;  %v10207_v27 = vld [vmem:[#allocation10 + $0x420] ss:$24 sps:$4 sm:$0xff]   ;;  %1873 = vmatprep.subr.bf16.mxu1 %v10204_v24 }
  0x63   :  { %v154_v7 = vsel %vm11621_vm3, 0, %v153_v4  ;;  %vm11628_vm6 = vmor %vm316_vm4, %vm317_vm5  ;;  %228 = vst.msk [vmem:[#allocation2 + $0x8] sm:$0xf] %vm146_vm0, %v10094_v6  ;;  %v160_v15 = vsel %vm11621_vm3, 0, %v159_v12  ;;  %1821 = vmatpush1.bf16.msra.mxu0 %v10200_v20  ;;  %v14146_v40 = vmov 0  ;;  %s11501_s30 = smov 112  }
  0x64   :  { %v14144_v9 = vsel %vm11628_vm6, 4294967295, %v14143_v9  ;;  %155 = vst [vmem:[#allocation2 + $0xc] sm:$0x3] %v154_v7  ;;  %230 = vst.msk [vmem:[#allocation2 + $0x18] sm:$0xf] %vm146_vm0, %v10096_v10  ;;  %1822 = vmatprep.subr.bf16.mxu0 %v10202_v22 }
  0x65   :  { %14145 = vst [vmem:[#allocation23_spill] sm:$0xff] %v14144_v9  ;;  %161 = vst [vmem:[#allocation2 + $0x1c] sm:$0x3] %v160_v15  ;;  %1874 = vmatpush1.bf16.msra.mxu1 %v10207_v27  ;;  %v307_v42 = vld [vmem:[#allocation2 + $0x10] sm:$0x8] }
  0x66   :  { %229 = vst.msk [vmem:[#allocation2 + $0x14] sm:$0xf] %vm146_vm0, %v10095_v14  ;;  %vm11643_vm9 = vmor %vm512_vm7, %vm513_vm8  ;;  %v10208_v49 = vld [vmem:[#allocation10 + $0xc4] ss:$24 sps:$4 sm:$0xff]   ;;  %v9300_v50 = vrot.slane %v307_v42, 11 }
  0x67   :  { %v14147_v40 = vsel %vm11643_vm9, 4294967295, %v14146_v40  ;;  %1823 = vmatpush1.bf16.msra.mxu0 %v10206_v26  ;;  %v10210_v52 = vld [vmem:[#allocation10 + $0x3f4] ss:$24 sps:$4 sm:$0xff]   ;;  %v10212_v55 = vld [vmem:[#allocation10 + $0xc0] ss:$24 sps:$4 sm:$0xff]  }
  0x68   :  { %14148 = vst [vmem:[#allocation24_spill] sm:$0xff] %v14147_v40  ;;  %1824 = vmatprep.subr.bf16.mxu0 %v10208_v49  ;;  %v10213_v56 = vld [vmem:[#allocation10 + $0x3f0] ss:$24 sps:$4 sm:$0xff]   ;;  %1875 = vmatprep.subr.bf16.mxu1 %v10210_v52  ;;  %v10214_v61 = vld [vmem:[#allocation10 + $0x94] ss:$24 sps:$4 sm:$0xff]  }
  0x69   :  { %v411_v28 = vld [vmem:[#allocation2 + $0x4] sm:$0xf]  ;;  %1876 = vmatpush1.bf16.msra.mxu1 %v10213_v56  ;;  %v10216_v62 = vld [vmem:[#allocation10 + $0x3c4] ss:$24 sps:$4 sm:$0xff]   ;;  %v10218_v63 = vld [vmem:[#allocation10 + $0x90] ss:$24 sps:$4 sm:$0xff]  }
  0x6a   :  { %v305_v29 = vld [vmem:[#allocation2 + $0x4] sm:$0xf]  ;;  %v412_v30 = vld [vmem:[#allocation2 + $0x8] sm:$0xf]  ;;  %419 = vrot.lane.b32.xlu1 %v411_v28, %s11499_s5  ;;  %v10220_v1 = vld [vmem:[#allocation10 + $0x64] ss:$24 sps:$4 sm:$0xff]   ;;  %1877 = vmatprep.subr.bf16.mxu1 %v10216_v62 }
  0x6b   :  { %v502_v25 = vld [vmem:[#allocation2 + $0xc] sm:$0x1]  ;;  %v321_v31 = vrot.slane %v305_v29, 7  ;;  %v306_v32 = vld [vmem:[#allocation2 + $0x8] sm:$0x7]  ;;  %1825 = vmatpush1.bf16.msra.mxu0 %v10212_v55 }
  0x6c   :  { %v501_v33 = vld [vmem:[#allocation2 + $0x8] sm:$0xf]  ;;  %v324_v34 = vrot.slane %v306_v32, 7  ;;  %v520_v36 = vrot.slane %v502_v25, 5  ;;  %v500_v37 = vld [vmem:[#allocation2 + $0x4] sm:$0xe]  ;;  %1826 = vmatprep.subr.bf16.mxu0 %v10214_v61 }
  0x6d   :  { %v517_v35 = vrot.slane %v501_v33, 5  ;;  %v322_v38 = vsel %vm11628_vm6, %v9299_v23, %v321_v31  ;;  %v323_v39 = vrot.slane %v321_v31, 4  ;;  %v308_v43 = vld [vmem:[#allocation2 + $0x14] sm:$0xf]  ;;  %v9303_v45 = vrot.slane %v500_v37, 9 }
  0x6e   :  { %333 = vrot.lane.b32.xlu0 %v322_v38, %s11499_s5  ;;  %421 = vrot.lane.b32.xlu1 %v412_v30, %s11499_s5  ;;  %v309_v46 = vld [vmem:[#allocation2 + $0x18] sm:$0x7]  ;;  %v328_v51 = vrot.slane %v308_v43, 7  ;;  %v505_v59 = vld [vmem:[#allocation2 + $0x1c] sm:$0x1] }
  0x6f   :  { %v519_v41 = vrot.slane %v517_v35, 4  ;;  %v325_v44 = vsel %vm11628_vm6, %v323_v39, %v324_v34  ;;  %v504_v47 = vld [vmem:[#allocation2 + $0x18] sm:$0xf]  ;;  %v331_v54 = vrot.slane %v309_v46, 7  ;;  %v518_v57 = vsel %vm11643_vm9, %v9303_v45, %v517_v35  ;;  %v10219_v0 = vld [vmem:[#allocation10 + $0x3c0] ss:$24 sps:$4 sm:$0xff]   ;;  %1827 = vmatpush1.bf16.msra.mxu0 %v10218_v63 }
  0x70   :  { %v414_v53 = vld [vmem:[#allocation2 + $0x18] sm:$0xf]  ;;  %v330_v58 = vrot.slane %v328_v51, 4  ;;  %v524_v60 = vrot.slane %v504_v47, 5  ;;  %v10222_v2 = vld [vmem:[#allocation10 + $0x394] ss:$24 sps:$4 sm:$0xff]   ;;  %v329_v3 = vsel %vm11628_vm6, %v9300_v50, %v328_v51  ;;  %1878 = vmatpush1.bf16.msra.mxu1 %v10219_v0  ;;  %1828 = vmatprep.subr.bf16.mxu0 %v10220_v1 }
  0x71   :  { %v521_v48 = vsel %vm11643_vm9, %v519_v41, %v520_v36  ;;  %v503_v4 = vld [vmem:[#allocation2 + $0x14] sm:$0xe]  ;;  %v10224_v5 = vld [vmem:[#allocation10 + $0x60] ss:$24 sps:$4 sm:$0xff]   ;;  %v527_v8 = vrot.slane %v505_v59, 5  ;;  %1879 = vmatprep.subr.bf16.mxu1 %v10222_v2  ;;  %v14149_v47 = vmov 0 }
  0x72   :  { %335 = vrot.lane.b32.xlu0 %v325_v44, %s11499_s5  ;;  %531 = vrot.lane.b32.xlu1 %v521_v48, %s11499_s5  ;;  %v332_v6 = vsel %vm11628_vm6, %v330_v58, %v331_v54  ;;  %v526_v7 = vrot.slane %v524_v60, 4  ;;  %v10225_v10 = vld [vmem:[#allocation10 + $0x390] ss:$24 sps:$4 sm:$0xff]   ;;  %v10226_v11 = vld [vmem:[#allocation10 + $0x34] ss:$24 sps:$4 sm:$0xff]   ;;  %v9304_v14 = vrot.slane %v503_v4, 9 }
  0x73   :  { %v10228_v12 = vld [vmem:[#allocation10 + $0x364] ss:$24 sps:$4 sm:$0xff]   ;;  %1829 = vmatpush1.bf16.msra.mxu0 %v10224_v5  ;;  %v10230_v16 = vld [vmem:[#allocation10 + $0x30] ss:$24 sps:$4 sm:$0xff]   ;;  %v10231_v17 = vld [vmem:[#allocation10 + $0x360] ss:$24 sps:$4 sm:$0xff]  }
  0x74   :  { %v413_v13 = vld [vmem:[#allocation2 + $0x14] sm:$0xf]  ;;  %v528_v15 = vsel %vm11643_vm9, %v526_v7, %v527_v8  ;;  %1880 = vmatpush1.bf16.msra.mxu1 %v10225_v10  ;;  %1830 = vmatprep.subr.bf16.mxu0 %v10226_v11  ;;  %v10234_v19 = vld [vmem:[#allocation10 + $0x334] ss:$24 sps:$4 sm:$0xff]   ;;  %v525_v20 = vsel %vm11643_vm9, %v9304_v14, %v524_v60  ;;  %v10236_v21 = vld [vmem:[#allocation10] ss:$24 sps:$4 sm:$0xff]  }
  0x75   :  { %v10232_v18 = vld [vmem:[#allocation10 + $0x4] ss:$24 sps:$4 sm:$0xff]   ;;  %1881 = vmatprep.subr.bf16.mxu1 %v10228_v12  ;;  %v10237_v22 = vld [vmem:[#allocation10 + $0x330] ss:$24 sps:$4 sm:$0xff]   ;;  %v10238_v23 = vld [vmem:[#allocation10 + $0x2d4] ss:$24 sps:$4 sm:$0xff]  }
  0x76   :  { %529 = vrot.lane.b32.xlu0 %v518_v57, %s11499_s5  ;;  %425 = vrot.lane.b32.xlu1 %v414_v53, %s11499_s5  ;;  %v10240_v24 = vld [vmem:[#allocation10 + $0x304] ss:$24 sps:$4 sm:$0xff]   ;;  %v10242_v25 = vld [vmem:[#allocation10 + $0x2d0] ss:$24 sps:$4 sm:$0xff]   ;;  %v10243_v26 = vld [vmem:[#allocation10 + $0x300] ss:$24 sps:$4 sm:$0xff]  }
  0x77   :  { %1831 = vmatpush1.bf16.msra.mxu0 %v10230_v16  ;;  %v10244_v27 = vld [vmem:[#allocation10 + $0x2a4] ss:$24 sps:$4 sm:$0xff]   ;;  %v10246_v28 = vld [vmem:[#allocation10 + $0x5d4] ss:$24 sps:$4 sm:$0xff]   ;;  %vm356_vm10 = vsmask.f32 256 }
  0x78   :  { %1882 = vmatpush1.bf16.msra.mxu1 %v10231_v17  ;;  %1832 = vmatprep.subr.bf16.mxu0 %v10232_v18  ;;  %v10248_v29 = vld [vmem:[#allocation10 + $0x2a0] ss:$24 sps:$4 sm:$0xff]   ;;  %vm357_vm11 = vsmask.f32 4368  ;;  %v10249_v30 = vld [vmem:[#allocation10 + $0x5d0] ss:$24 sps:$4 sm:$0xff]  }
  0x79   :  { %1883 = vmatprep.subr.bf16.mxu1 %v10234_v19  ;;  %vm238_vm12 = vsmask.f32 5392  ;;  %v10250_v31 = vld [vmem:[#allocation10 + $0x274] ss:$24 sps:$4 sm:$0xff]   ;;  %v10252_v32 = vld [vmem:[#allocation10 + $0x5a4] ss:$24 sps:$4 sm:$0xff]   ;;  %vm11674_vm13 = vmor %vm356_vm10, %vm357_vm11 }
  0x7a   :  { %337 = vrot.lane.b32.xlu0 %v329_v3, %s11499_s5  ;;  %339 = vrot.lane.b32.xlu1 %v332_v6, %s11499_s5  ;;  %v10254_v33 = vld [vmem:[#allocation10 + $0x270] ss:$24 sps:$4 sm:$0xff]   ;;  %v10255_v34 = vld [vmem:[#allocation10 + $0x5a0] ss:$24 sps:$4 sm:$0xff]   ;;  %v351_v36 = vld [vmem:[#allocation2 + $0x4] sm:$0xf] }
  0x7b   :  { %1833 = vmatpush1.bf16.msra.mxu0 %v10236_v21  ;;  %v350_v35 = vld [vmem:[#allocation2] sm:$0x8]  ;;  %v10256_v37 = vld [vmem:[#allocation10 + $0x244] ss:$24 sps:$4 sm:$0xff]   ;;  %v365_v39 = vshrl.u32 %v351_v36, 16  ;;  %v368_v41 = vshll.u32 %v351_v36, 16  ;;  %vm11686_vm4 = vmor %vm151_vm2, %vm238_vm12 }
  0x7c   :  { %1884 = vmatpush1.bf16.msra.mxu1 %v10237_v22  ;;  %1834 = vmatprep.subr.bf16.mxu0 %v10238_v23  ;;  %v360_v38 = vshrl.u32 %v350_v35, 16  ;;  %v232_v42 = vld [vmem:[#allocation2 + $0x4] sm:$0xf]  ;;  %v231_v45 = vld [vmem:[#allocation2] sm:$0xc]  ;;  %v14150_v47 = vsel %vm11674_vm13, 4294967295, %v14149_v47 }
  0x7d   :  { %1885 = vmatprep.subr.bf16.mxu1 %v10240_v24  ;;  %v250_v43 = vshrl.u32 %v232_v42, 16  ;;  %v253_v44 = vshll.u32 %v232_v42, 16  ;;  %v10258_v46 = vld [vmem:[#allocation10 + $0x574] ss:$24 sps:$4 sm:$0xff]   ;;  %14151 = vst [vmem:[#allocation25_spill] sm:$0xff] %v14150_v47  ;;  %v11678_v49 = vrot.slane %v365_v39, 7 }
  0x7e   :  { %423 = vrot.lane.b32.xlu0 %v413_v13, %s11499_s5  ;;  %535 = vrot.lane.b32.xlu1 %v528_v15, %s11499_s5  ;;  %v9301_v48 = vrot.slane %v360_v38, 11  ;;  %v241_v50 = vshrl.u32 %v231_v45, 16  ;;  %v244_v51 = vshll.u32 %v231_v45, 16  ;;  %v10260_v52 = vld [vmem:[#allocation10 + $0x240] ss:$24 sps:$4 sm:$0xff]   ;;  %v14152_v6 = vmov 0 }
  0x7f   :  { %1835 = vmatpush2.bf16.msra.mxu0 %v10242_v25  ;;  %v252_v53 = vrot.slane %v250_v43, 6  ;;  %v255_v54 = vrot.slane %v253_v44, 7  ;;  %v10261_v55 = vld [vmem:[#allocation10 + $0x570] ss:$24 sps:$4 sm:$0xff]   ;;  %v10262_v56 = vld [vmem:[#allocation10 + $0x214] ss:$24 sps:$4 sm:$0xff]   ;;  %v370_v57 = vor.u32 %v368_v41, %v11678_v49 }
  0x80   :  { %1886 = vmatpush1.bf16.msra.mxu1 %v10243_v26  ;;  %1836 = vmatprep.subr.bf16.mxu0 %v10244_v27  ;;  %v243_v58 = vrot.slane %v241_v50, 6  ;;  %v246_v59 = vrot.slane %v244_v51, 7  ;;  %vm441_vm14 = vsmask.f32 3328  ;;  %vm442_vm15 = vsmask.f32 7440 }
  0x81   :  { %1887 = vmatprep.subr.bf16.mxu1 %v10246_v28  ;;  %v256_v60 = vor.u32 %v255_v54, %v252_v53  ;;  %v352_v61 = vld [vmem:[#allocation2 + $0x8] sm:$0xf]  ;;  %v10264_v63 = vld [vmem:[#allocation10 + $0x544] ss:$24 sps:$4 sm:$0xff]   ;;  %v371_v0 = vsel %vm11674_vm13, %v9301_v48, %v370_v57  ;;  %vm551_vm1 = vsmask.f32 2304  ;;  %vm11705_vm7 = vmor %vm441_vm14, %vm442_vm15 }
  0x82   :  { %533 = vrot.lane.b32.xlu0 %v525_v20, %s11499_s5  ;;  %v233_v62 = vld [vmem:[#allocation2 + $0x8] sm:$0x7]  ;;  %v247_v1 = vor.u32 %v246_v59, %v243_v58  ;;  %v374_v2 = vshrl.u32 %v352_v61, 16  ;;  %v377_v3 = vshll.u32 %v352_v61, 16  ;;  %vm552_vm3 = vsmask.f32 6416 }
  0x83   :  { %1837 = vmatpush2.bf16.msra.mxu0 %v10248_v29  ;;  %v10266_v4 = vld [vmem:[#allocation10 + $0x210] ss:$24 sps:$4 sm:$0xff]   ;;  %v10267_v5 = vld [vmem:[#allocation10 + $0x540] ss:$24 sps:$4 sm:$0xff]   ;;  %407 = vst.msk [vmem:[#allocation3 + $0x4] sm:$0xf] %vm146_vm0, %v371_v0  ;;  %vm11711_vm8 = vmor %vm551_vm1, %vm552_vm3 }
  0x84   :  { %1888 = vmatpush2.bf16.msra.mxu1 %v10249_v30  ;;  %1838 = vmatprep.subr.bf16.mxu0 %v10250_v31  ;;  %v14153_v6 = vsel %vm11686_vm4, 4294967295, %v14152_v6  ;;  %v260_v7 = vshrl.u32 %v233_v62, 16  ;;  %v263_v8 = vshll.u32 %v233_v62, 16  ;;  %v248_v10 = vrot.slane %v247_v1, 4  ;;  %v10268_v11 = vld [vmem:[#allocation10 + $0x1e4] ss:$24 sps:$4 sm:$0xff]  }
  0x85   :  { %1889 = vmatprep.subr.bf16.mxu1 %v10252_v32  ;;  %14154 = vst [vmem:[#allocation26_spill] sm:$0xff] %v14153_v6  ;;  %v10270_v12 = vld [vmem:[#allocation10 + $0x514] ss:$24 sps:$4 sm:$0xff]   ;;  %v376_v13 = vrot.slane %v374_v2, 7  ;;  %v372_v14 = vrot.slane %v11678_v49, 4  ;;  %v258_v15 = vrot.slane %v256_v60, 4 }
  0x86   :  { %v262_v16 = vrot.slane %v260_v7, 6  ;;  %v265_v17 = vrot.slane %v263_v8, 7  ;;  %v436_v18 = vld [vmem:[#allocation2 + $0x8] sm:$0xf]  ;;  %v437_v19 = vld [vmem:[#allocation2 + $0xc] sm:$0x1]  ;;  %v257_v20 = vsel %vm11686_vm4, %v248_v10, %v256_v60 }
  0x87   :  { %1839 = vmatpush2.bf16.msra.mxu0 %v10254_v33  ;;  %v379_v21 = vor.u32 %v377_v3, %v376_v13  ;;  %v454_v22 = vshll.u32 %v436_v18, 16  ;;  %v458_v23 = vshrl.u32 %v436_v18, 16  ;;  %v546_v24 = vld [vmem:[#allocation2 + $0x8] sm:$0xf]  ;;  %v547_v25 = vld [vmem:[#allocation2 + $0xc] sm:$0x3] }
  0x88   :  { %1890 = vmatpush2.bf16.msra.mxu1 %v10255_v34  ;;  %1840 = vmatprep.subr.bf16.mxu0 %v10256_v37  ;;  %300 = vst.msk [vmem:[#allocation3] sm:$0xf] %vm146_vm0, %v257_v20  ;;  %v10272_v26 = vld [vmem:[#allocation10 + $0x1e0] ss:$24 sps:$4 sm:$0xff]   ;;  %v10273_v27 = vld [vmem:[#allocation10 + $0x510] ss:$24 sps:$4 sm:$0xff]   ;;  %v266_v28 = vor.u32 %v265_v17, %v262_v16 }
  0x89   :  { %1891 = vmatprep.subr.bf16.mxu1 %v10258_v46  ;;  %v464_v29 = vshll.u32 %v437_v19, 16  ;;  %v564_v30 = vshrl.u32 %v546_v24, 16  ;;  %v567_v31 = vshll.u32 %v546_v24, 16  ;;  %v435_v32 = vld [vmem:[#allocation2 + $0x4] sm:$0xf]  ;;  %v380_v33 = vsel %vm11674_vm13, %v372_v14, %v379_v21 }
  0x8a   :  { %v11696_v34 = vrot.slane %v454_v22, 5  ;;  %v460_v35 = vrot.slane %v458_v23, 4  ;;  %v574_v36 = vshrl.u32 %v547_v25, 16  ;;  %v545_v37 = vld [vmem:[#allocation2 + $0x4] sm:$0xe]  ;;  %v267_v38 = vsel %vm11686_vm4, %v258_v15, %v266_v28 }
  0x8b   :  { %1841 = vmatpush2.bf16.msra.mxu0 %v10260_v52  ;;  %408 = vst.msk [vmem:[#allocation3 + $0x14] sm:$0xf] %vm146_vm0, %v380_v33  ;;  %v10274_v39 = vld [vmem:[#allocation10 + $0x1b4] ss:$24 sps:$4 sm:$0xff]   ;;  %v466_v41 = vrot.slane %v464_v29, 5  ;;  %v566_v42 = vrot.slane %v564_v30, 5 }
  0x8c   :  { %1892 = vmatpush2.bf16.msra.mxu1 %v10261_v55  ;;  %1842 = vmatprep.subr.bf16.mxu0 %v10262_v56  ;;  %v569_v43 = vrot.slane %v567_v31, 6  ;;  %301 = vst.msk [vmem:[#allocation3 + $0x10] sm:$0xf] %vm146_vm0, %v267_v38  ;;  %v10276_v44 = vld [vmem:[#allocation10 + $0x4e4] ss:$24 sps:$4 sm:$0xff]   ;;  %v461_v45 = vor.u32 %v460_v35, %v11696_v34  ;;  %v576_v46 = vrot.slane %v574_v36, 5 }
  0x8d   :  { %1893 = vmatprep.subr.bf16.mxu1 %v10264_v63  ;;  %v577_v48 = vshll.u32 %v547_v25, 16  ;;  %v445_v49 = vshrl.u32 %v435_v32, 16  ;;  %v10278_v50 = vld [vmem:[#allocation10 + $0x1b0] ss:$24 sps:$4 sm:$0xff]   ;;  %v10279_v51 = vld [vmem:[#allocation10 + $0x4e0] ss:$24 sps:$4 sm:$0xff]  }
  0x8e   :  { %v14155_v52 = vmov 0  ;;  %v570_v53 = vor.u32 %v569_v43, %v566_v42  ;;  %v448_v54 = vshll.u32 %v435_v32, 16  ;;  %v555_v55 = vshrl.u32 %v545_v37, 16  ;;  %v10280_v60 = vld [vmem:[#allocation10 + $0x184] ss:$24 sps:$4 sm:$0xff]  }
  0x8f   :  { %1843 = vmatpush2.bf16.msra.mxu0 %v10266_v4  ;;  %v14156_v52 = vsel %vm11705_vm7, 4294967295, %v14155_v52  ;;  %v558_v56 = vshll.u32 %v545_v37, 16  ;;  %v462_v57 = vrot.slane %v461_v45, 4  ;;  %v579_v58 = vrot.slane %v577_v48, 6  ;;  %v10282_v61 = vld [vmem:[#allocation10 + $0x4b4] ss:$24 sps:$4 sm:$0xff]  }
  0x90   :  { %1894 = vmatpush2.bf16.msra.mxu1 %v10267_v5  ;;  %1844 = vmatprep.subr.bf16.mxu0 %v10268_v11  ;;  %14157 = vst [vmem:[#allocation27_spill] sm:$0xff] %v14156_v52  ;;  %v447_v59 = vrot.slane %v445_v49, 4  ;;  %v14158_v62 = vmov 0  ;;  %v572_v63 = vrot.slane %v570_v53, 4  ;;  %v450_v0 = vrot.slane %v448_v54, 5 }
  0x91   :  { %1895 = vmatprep.subr.bf16.mxu1 %v10270_v12  ;;  %v14159_v62 = vsel %vm11711_vm8, 4294967295, %v14158_v62  ;;  %v557_v1 = vrot.slane %v555_v55, 5  ;;  %v560_v2 = vrot.slane %v558_v56, 6  ;;  %v354_v3 = vld [vmem:[#allocation2 + $0x14] sm:$0xf]  ;;  %v467_v4 = vsel %vm11705_vm7, %v462_v57, %v466_v41 }
  0x92   :  { %14160 = vst [vmem:[#allocation28_spill] sm:$0xff] %v14159_v62  ;;  %v580_v5 = vor.u32 %v579_v58, %v576_v46  ;;  %v355_v7 = vld [vmem:[#allocation2 + $0x18] sm:$0xf]  ;;  %v387_v8 = vshrl.u32 %v354_v3, 16  ;;  %v234_v10 = vld [vmem:[#allocation2 + $0x10] sm:$0xc]  ;;  %v451_v11 = vor.u32 %v450_v0, %v447_v59 }
  0x93   :  { %1845 = vmatpush2.bf16.msra.mxu0 %v10272_v26  ;;  %497 = vst.msk [vmem:[#allocation3 + $0x18] sm:$0xf] %vm146_vm0, %v467_v4  ;;  %v561_v12 = vor.u32 %v560_v2, %v557_v1  ;;  %v10284_v13 = vld [vmem:[#allocation10 + $0x180] ss:$24 sps:$4 sm:$0xff]   ;;  %v396_v14 = vshrl.u32 %v355_v7, 16  ;;  %v399_v15 = vshll.u32 %v355_v7, 16 }
  0x94   :  { %1896 = vmatpush2.bf16.msra.mxu1 %v10273_v27  ;;  %1846 = vmatprep.subr.bf16.mxu0 %v10274_v39  ;;  %v235_v16 = vld [vmem:[#allocation2 + $0x14] sm:$0xf]  ;;  %v581_v17 = vsel %vm11711_vm8, %v572_v63, %v580_v5  ;;  %v10285_v18 = vld [vmem:[#allocation10 + $0x4b0] ss:$24 sps:$4 sm:$0xff]   ;;  %v389_v19 = vrot.slane %v387_v8, 7  ;;  %v269_v20 = vshrl.u32 %v234_v10, 16 }
  0x95   :  { %1897 = vmatprep.subr.bf16.mxu1 %v10276_v44  ;;  %v272_v21 = vshll.u32 %v234_v10, 16  ;;  %615 = vst.msk [vmem:[#allocation3 + $0x1c] sm:$0xf] %vm146_vm0, %v581_v17  ;;  %v452_v22 = vrot.slane %v451_v11, 4  ;;  %v562_v23 = vrot.slane %v561_v12, 4  ;;  %v398_v24 = vrot.slane %v396_v14, 7 }
  0x96   :  { %v278_v25 = vshrl.u32 %v235_v16, 16  ;;  %v10288_v26 = vld [vmem:[#allocation10 + $0x484] ss:$24 sps:$4 sm:$0xff]   ;;  %v394_v27 = vrot.slane %v389_v19, 4  ;;  %v271_v28 = vrot.slane %v269_v20, 6  ;;  %v281_v30 = vshll.u32 %v235_v16, 16 }
  0x97   :  { %1847 = vmatpush2.bf16.msra.mxu0 %v10278_v50  ;;  %v274_v29 = vrot.slane %v272_v21, 7  ;;  %v10292_v31 = vld [vmem:[#allocation10 + $0x15c] ss:$24 sps:$4 sm:$0xff]   ;;  %v457_v32 = vsel %vm11705_vm7, %v452_v22, %v11696_v34  ;;  %v571_v33 = vsel %vm11711_vm8, %v562_v23, %v570_v53  ;;  %v401_v35 = vor.u32 %v399_v15, %v398_v24  ;;  %v236_v37 = vld [vmem:[#allocation2 + $0x18] sm:$0x7] }
  0x98   :  { %1898 = vmatpush2.bf16.msra.mxu1 %v10279_v51  ;;  %1848 = vmatprep.subr.bf16.mxu0 %v10280_v60  ;;  %v280_v36 = vrot.slane %v278_v25, 6  ;;  %v353_v38 = vld [vmem:[#allocation2 + $0x10] sm:$0x8]  ;;  %496 = vst.msk [vmem:[#allocation3 + $0x8] sm:$0xf] %vm146_vm0, %v457_v32  ;;  %v283_v41 = vrot.slane %v281_v30, 7 }
  0x99   :  { %1899 = vmatprep.subr.bf16.mxu1 %v10282_v61  ;;  %614 = vst.msk [vmem:[#allocation3 + $0xc] sm:$0xf] %vm146_vm0, %v571_v33  ;;  %v275_v39 = vor.u32 %v274_v29, %v271_v28  ;;  %v288_v42 = vshrl.u32 %v236_v37, 16  ;;  %v291_v43 = vshll.u32 %v236_v37, 16  ;;  %v402_v34 = vsel %vm11674_vm13, %v394_v27, %v401_v35  ;;  %v10293_v44 = vld [vmem:[#allocation10 + $0x480] ss:$24 sps:$4 sm:$0xff]  }
  0x9a   :  { %v382_v45 = vshrl.u32 %v353_v38, 16  ;;  %v390_v46 = vshll.u32 %v354_v3, 16  ;;  %410 = vst.msk [vmem:[#allocation3 + $0x34] sm:$0xf] %vm146_vm0, %v402_v34  ;;  %v284_v49 = vor.u32 %v283_v41, %v280_v36  ;;  %v10301_v55 = vld [vmem:[#allocation10 + $0x45c] ss:$24 sps:$4 sm:$0xff]  }
  0x9b   :  { %1849 = vmatpush2.bf16.msra.mxu0 %v10284_v13  ;;  %v276_v48 = vrot.slane %v275_v39, 4  ;;  %v290_v50 = vrot.slane %v288_v42, 6  ;;  %v293_v51 = vrot.slane %v291_v43, 7  ;;  %v439_v56 = vld [vmem:[#allocation2 + $0x18] sm:$0xf]  ;;  %vm345_vm10 = vcmask 781696  }
  0x9c   :  { %1900 = vmatpush2.bf16.msra.mxu1 %v10285_v18  ;;  %1924 = vmatprep.subr.bf16.mxu0 %v10292_v31  ;;  %v9302_v53 = vrot.slane %v382_v45, 11  ;;  %v392_v54 = vor.u32 %v390_v46, %v389_v19  ;;  %v286_v58 = vrot.slane %v284_v49, 4  ;;  %v440_v60 = vld [vmem:[#allocation2 + $0x1c] sm:$0x1]  ;;  %v478_v61 = vshll.u32 %v439_v56, 16 }
  0x9d   :  { %1901 = vmatprep.subr.bf16.mxu1 %v10288_v26  ;;  %v285_v57 = vsel %vm11686_vm4, %v276_v48, %v284_v49  ;;  %v294_v59 = vor.u32 %v293_v51, %v290_v50  ;;  %v549_v63 = vld [vmem:[#allocation2 + $0x18] sm:$0xf]  ;;  %v482_v1 = vshrl.u32 %v439_v56, 16  ;;  %v488_v2 = vshll.u32 %v440_v60, 16  ;;  %v550_v3 = vld [vmem:[#allocation2 + $0x1c] sm:$0x3] }
  0x9e   :  { %302 = vst.msk [vmem:[#allocation3 + $0x20] sm:$0xf] %vm146_vm0, %v285_v57  ;;  %v393_v0 = vsel %vm11674_vm13, %v9302_v53, %v392_v54  ;;  %v592_v4 = vshrl.u32 %v549_v63, 16  ;;  %v480_v7 = vrot.slane %v478_v61, 5  ;;  %v595_v8 = vshll.u32 %v549_v63, 16 }
  0x9f   :  { %v295_v5 = vsel %vm11686_vm4, %v286_v58, %v294_v59  ;;  %409 = vst.msk [vmem:[#allocation3 + $0x24] sm:$0xf] %vm146_vm0, %v393_v0  ;;  %v602_v10 = vshrl.u32 %v550_v3, 16  ;;  %v438_v11 = vld [vmem:[#allocation2 + $0x14] sm:$0xf]  ;;  %v484_v12 = vrot.slane %v482_v1, 4 }
  0xa0   :  { %1902 = vmatpush2.bf16.msra.mxu1 %v10293_v44  ;;  %303 = vst.msk [vmem:[#allocation3 + $0x30] sm:$0xf] %vm146_vm0, %v295_v5  ;;  %v490_v13 = vrot.slane %v488_v2, 5  ;;  %v594_v14 = vrot.slane %v592_v4, 5  ;;  %v605_v15 = vshll.u32 %v550_v3, 16  ;;  %v597_v17 = vrot.slane %v595_v8, 6 }
  0xa1   :  { %1977 = vmatprep.subr.bf16.mxu1 %v10301_v55  ;;  %v548_v16 = vld [vmem:[#allocation2 + $0x14] sm:$0xe]  ;;  %v604_v18 = vrot.slane %v602_v10, 5  ;;  %v469_v19 = vshrl.u32 %v438_v11, 16  ;;  %v472_v20 = vshll.u32 %v438_v11, 16  ;;  %v485_v21 = vor.u32 %v484_v12, %v480_v7 }
  0xa2   :  { %v607_v22 = vrot.slane %v605_v15, 6  ;;  %v583_v23 = vshrl.u32 %v548_v16, 16  ;;  %v586_v24 = vshll.u32 %v548_v16, 16  ;;  %v598_v25 = vor.u32 %v597_v17, %v594_v14  ;;  %v10290_v50 = vld [vmem:[#allocation10 + $0x158] ss:$24 sps:$4 sm:$0xff]  }
  0xa3   :  { %v471_v26 = vrot.slane %v469_v19, 4  ;;  %v474_v27 = vrot.slane %v472_v20, 5  ;;  %v486_v28 = vrot.slane %v485_v21, 4  ;;  %v10298_v58 = vld [vmem:[#allocation10 + $0x12c] ss:$24 sps:$4 sm:$0xff]   ;;  %vm3777_vm11 = vcmask 1041409  }
  0xa4   :  { %v608_v29 = vor.u32 %v607_v22, %v604_v18  ;;  %v585_v30 = vrot.slane %v583_v23, 5  ;;  %v588_v31 = vrot.slane %v586_v24, 6  ;;  %v600_v32 = vrot.slane %v598_v25, 4  ;;  %v10296_v60 = vld [vmem:[#allocation10 + $0x128] ss:$24 sps:$4 sm:$0xff]  }
  0xa5   :  { %v475_v33 = vor.u32 %v474_v27, %v471_v26  ;;  %v491_v35 = vsel %vm11705_vm7, %v486_v28, %v490_v13  ;;  %v10299_v61 = vld [vmem:[#allocation10 + $0x458] ss:$24 sps:$4 sm:$0xff]   ;;  %v11767_v1 = vld [vmem:[#allocation3 + $0xc] ss:$16 sps:$4 sm:$0xff]   ;;  %v10305_v8 = vld [vmem:[#allocation10 + $0x428] ss:$24 sps:$4 sm:$0xff]  }
  0xa6   :  { %v589_v36 = vor.u32 %v588_v31, %v585_v30  ;;  %499 = vst.msk [vmem:[#allocation3 + $0x38] sm:$0xf] %vm146_vm0, %v491_v35  ;;  %v609_v37 = vsel %vm11711_vm8, %v600_v32, %v608_v29  ;;  %v10304_v2 = vld [vmem:[#allocation10 + $0xfc] ss:$24 sps:$4 sm:$0xff]   ;;  %v10307_v5 = vld [vmem:[#allocation10 + $0x42c] ss:$24 sps:$4 sm:$0xff]   ;;  %1903 = vmatprep.mubr.bf16.mxu1 %v11767_v1 }
  0xa7   :  { %v476_v38 = vrot.slane %v475_v33, 4  ;;  %617 = vst.msk [vmem:[#allocation3 + $0x3c] sm:$0xf] %vm146_vm0, %v609_v37  ;;  %v10312_v11 = vld [vmem:[#allocation10 + $0xcc] ss:$24 sps:$4 sm:$0xff]   ;;  %vm3779_vm12 = vcmask 1042434  }
  0xa8   :  { %v590_v39 = vrot.slane %v589_v36, 4  ;;  %v10315_v12 = vld [vmem:[#allocation10 + $0x3fc] ss:$24 sps:$4 sm:$0xff]   ;;  %v10310_v13 = vld [vmem:[#allocation10 + $0xc8] ss:$24 sps:$4 sm:$0xff]   ;;  %vm14093_vm14 = vcmask 1043459  }
  0xa9   :  { %v481_v41 = vsel %vm11705_vm7, %v476_v38, %v480_v7  ;;  %v10302_v7 = vld [vmem:[#allocation10 + $0xf8] ss:$24 sps:$4 sm:$0xff]   ;;  %v10321_v15 = vld [vmem:[#allocation10 + $0x9c] ss:$24 sps:$4 sm:$0xff]   ;;  %v10324_v18 = vld [vmem:[#allocation10 + $0x3cc] ss:$24 sps:$4 sm:$0xff]  }
  0xaa   :  { %498 = vst.msk [vmem:[#allocation3 + $0x28] sm:$0xf] %vm146_vm0, %v481_v41  ;;  %v599_v42 = vsel %vm11711_vm8, %v590_v39, %v598_v25  ;;  %v10313_v14 = vld [vmem:[#allocation10 + $0x3f8] ss:$24 sps:$4 sm:$0xff]   ;;  %v10322_v20 = vld [vmem:[#allocation10 + $0x3c8] ss:$24 sps:$4 sm:$0xff]  }
  0xab   :  { %616 = vst.msk [vmem:[#allocation3 + $0x2c] sm:$0xf] %vm146_vm0, %v599_v42  ;;  %v10319_v19 = vld [vmem:[#allocation10 + $0x98] ss:$24 sps:$4 sm:$0xff]   ;;  %v10328_v23 = vld [vmem:[#allocation10 + $0x6c] ss:$24 sps:$4 sm:$0xff]  }
  0xac   :  { %v10331_v24 = vld [vmem:[#allocation10 + $0x39c] ss:$24 sps:$4 sm:$0xff]   ;;  %v10326_v25 = vld [vmem:[#allocation10 + $0x68] ss:$24 sps:$4 sm:$0xff]   ;;  %v10329_v26 = vld [vmem:[#allocation10 + $0x398] ss:$24 sps:$4 sm:$0xff]  }
  0xad   :  { %v10334_v27 = vld [vmem:[#allocation10 + $0x3c] ss:$24 sps:$4 sm:$0xff]   ;;  %v10337_v28 = vld [vmem:[#allocation10 + $0x36c] ss:$24 sps:$4 sm:$0xff]   ;;  %v10332_v29 = vld [vmem:[#allocation10 + $0x38] ss:$24 sps:$4 sm:$0xff]  }
  0xae   :  { %v10335_v30 = vld [vmem:[#allocation10 + $0x368] ss:$24 sps:$4 sm:$0xff]   ;;  %v10340_v31 = vld [vmem:[#allocation10 + $0xc] ss:$24 sps:$4 sm:$0xff]   ;;  %v10343_v32 = vld [vmem:[#allocation10 + $0x33c] ss:$24 sps:$4 sm:$0xff]  }
  0xaf   :  { %v10338_v33 = vld [vmem:[#allocation10 + $0x8] ss:$24 sps:$4 sm:$0xff]   ;;  %v10341_v35 = vld [vmem:[#allocation10 + $0x338] ss:$24 sps:$4 sm:$0xff]   ;;  %v10346_v36 = vld [vmem:[#allocation10 + $0x2dc] ss:$24 sps:$4 sm:$0xff]  }
  0xb0   :  { %v10349_v37 = vld [vmem:[#allocation10 + $0x30c] ss:$24 sps:$4 sm:$0xff]   ;;  %v10344_v38 = vld [vmem:[#allocation10 + $0x2d8] ss:$24 sps:$4 sm:$0xff]   ;;  %v10347_v39 = vld [vmem:[#allocation10 + $0x308] ss:$24 sps:$4 sm:$0xff]  }
  0xb1   :  { %v10352_v41 = vld [vmem:[#allocation10 + $0x2ac] ss:$24 sps:$4 sm:$0xff]   ;;  %v10355_v42 = vld [vmem:[#allocation10 + $0x5dc] ss:$24 sps:$4 sm:$0xff]   ;;  %vm168_vm0 = vcmask 1041408   ;;  %vm14092_vm15 = vcmask 1045509  }
  0xb2   :  { %v11782_v21 = vld [vmem:[#allocation3 + $0x2c] ss:$16 sps:$4 sm:$0xff]   ;;  %vm14091_vm1 = vcmask 1046534   ;;  %vm14090_vm3 = vcmask 1047559  }
  0xdc   :  { %v420_v43 = vpop.permute.xlu1 %419 }
  0xdd   :  { %431 = vst.msk [vmem:[#allocation3 + $0x4] sm:$0xf] %vm345_vm10, %v420_v43  ;;  %v10350_v43 = vld [vmem:[#allocation10 + $0x2a8] ss:$24 sps:$4 sm:$0xff]  }
  0xe0   :  { %v334_v34 = vpop.permute.xlu0 %333  ;;  %v422_v44 = vpop.permute.xlu1 %421 }
  0xe1   :  { %346 = vst.msk [vmem:[#allocation3] sm:$0xf] %vm345_vm10, %v334_v34  ;;  %432 = vst.msk [vmem:[#allocation3 + $0x14] sm:$0xf] %vm345_vm10, %v422_v44  ;;  %v10353_v34 = vld [vmem:[#allocation10 + $0x5d8] ss:$24 sps:$4 sm:$0xff]  }
  0xe2   :  { %v10358_v44 = vld [vmem:[#allocation10 + $0x27c] ss:$24 sps:$4 sm:$0xff]  }
  0xe4   :  { %v336_v45 = vpop.permute.xlu0 %335  ;;  %v532_v46 = vpop.permute.xlu1 %531 }
  0xe5   :  { %347 = vst.msk [vmem:[#allocation3 + $0x10] sm:$0xf] %vm345_vm10, %v336_v45  ;;  %542 = vst.msk [vmem:[#allocation3 + $0x18] sm:$0xf] %vm345_vm10, %v532_v46  ;;  %v10361_v45 = vld [vmem:[#allocation10 + $0x5ac] ss:$24 sps:$4 sm:$0xff]  }
  0xe6   :  { %v10356_v46 = vld [vmem:[#allocation10 + $0x278] ss:$24 sps:$4 sm:$0xff]  }
  0xe8   :  { %v530_v48 = vpop.permute.xlu0 %529  ;;  %v426_v49 = vpop.permute.xlu1 %425  ;;  %v618_v53 = vld [vmem:[#allocation3] sm:$0xff] }
  0xe9   :  { %541 = vst.msk [vmem:[#allocation3 + $0x8] sm:$0xf] %vm345_vm10, %v530_v48  ;;  %434 = vst.msk [vmem:[#allocation3 + $0x34] sm:$0xf] %vm345_vm10, %v426_v49  ;;  %v11759_v55 = vld [vmem:[#allocation3 + $0x4] ss:$16 sps:$4 sm:$0xff]  }
  0xea   :  { %1850 = vmatprep.mubr.bf16.mxu0 %v11759_v55  ;;  %v10359_v48 = vld [vmem:[#allocation10 + $0x5a8] ss:$24 sps:$4 sm:$0xff]   ;;  %v10364_v49 = vld [vmem:[#allocation10 + $0x24c] ss:$24 sps:$4 sm:$0xff]  }
  0xec   :  { %v338_v51 = vpop.permute.xlu0 %337  ;;  %v620_v54 = vld [vmem:[#allocation3 + $0x10] sm:$0xff]  ;;  %v340_v56 = vpop.permute.xlu1 %339  ;;  %v621_v59 = vld [vmem:[#allocation3 + $0x18] sm:$0xff] }
  0xed   :  { %348 = vst.msk [vmem:[#allocation3 + $0x20] sm:$0xf] %vm345_vm10, %v338_v51  ;;  %v11762_v57 = vcombine.low %v618_v53, %v620_v54  ;;  %349 = vst.msk [vmem:[#allocation3 + $0x30] sm:$0xf] %vm345_vm10, %v340_v56  ;;  %v10362_v51 = vld [vmem:[#allocation10 + $0x248] ss:$24 sps:$4 sm:$0xff]  }
  0xee   :  { %v10365_v53 = vld [vmem:[#allocation10 + $0x578] ss:$24 sps:$4 sm:$0xff]   ;;  %v10370_v54 = vld [vmem:[#allocation10 + $0x21c] ss:$24 sps:$4 sm:$0xff]   ;;  %v10373_v56 = vld [vmem:[#allocation10 + $0x54c] ss:$24 sps:$4 sm:$0xff]  }
  0xef   :  { %1851 = vmatmul.mubr.bf16.vlgmr.msra.gmra.mxu0 %v11762_v57 }
  0xf0   :  { %v424_v63 = vpop.permute.xlu0 %423  ;;  %1925 = vmatpush1.bf16.msra.mxu0 %v10290_v50  ;;  %v619_v0 = vld [vmem:[#allocation3 + $0x8] sm:$0xff]  ;;  %v536_v3 = vpop.permute.xlu1 %535 }
  0xf1   :  { %433 = vst.msk [vmem:[#allocation3 + $0x24] sm:$0xf] %vm345_vm10, %v424_v63  ;;  %1926 = vmatprep.subr.bf16.mxu0 %v10298_v58  ;;  %v11770_v4 = vcombine.low %v619_v0, %v621_v59  ;;  %544 = vst.msk [vmem:[#allocation3 + $0x38] sm:$0xf] %vm345_vm10, %v536_v3  ;;  %v10367_v50 = vld [vmem:[#allocation10 + $0x57c] ss:$24 sps:$4 sm:$0xff]  }
  0xf2   :  { %v10368_v58 = vld [vmem:[#allocation10 + $0x218] ss:$24 sps:$4 sm:$0xff]   ;;  %v10371_v59 = vld [vmem:[#allocation10 + $0x548] ss:$24 sps:$4 sm:$0xff]   ;;  %v10385_v3 = vld [vmem:[#allocation10 + $0x4ec] ss:$24 sps:$4 sm:$0xff]  }
  0xf3   :  { %1904 = vmatmul.mubr.bf16.vlgmr.msra.gmra.mxu1 %v11770_v4  ;;  %v10374_v63 = vld [vmem:[#allocation10 + $0x1e8] ss:$24 sps:$4 sm:$0xff]   ;;  %v10377_v0 = vld [vmem:[#allocation10 + $0x518] ss:$24 sps:$4 sm:$0xff]  }
  0xf4   :  { %1978 = vmatpush1.bf16.msra.mxu1 %v10299_v61  ;;  %v534_v10 = vpop.permute.xlu0 %533  ;;  %1927 = vmatpush1.bf16.msra.mxu0 %v10296_v60  ;;  %v11778_v17 = vld [vmem:[#allocation3 + $0x20] ss:$16 sps:$4 sm:$0xff]   ;;  %v10376_v60 = vld [vmem:[#allocation10 + $0x1ec] ss:$24 sps:$4 sm:$0xff]   ;;  %v10379_v61 = vld [vmem:[#allocation10 + $0x51c] ss:$24 sps:$4 sm:$0xff]  }
  0xf5   :  { %543 = vst.msk [vmem:[#allocation3 + $0x28] sm:$0xf] %vm345_vm10, %v534_v10  ;;  %1928 = vmatprep.subr.bf16.mxu0 %v10304_v2  ;;  %1979 = vmatprep.subr.bf16.mxu1 %v10307_v5  ;;  %v10382_v2 = vld [vmem:[#allocation10 + $0x1bc] ss:$24 sps:$4 sm:$0xff]   ;;  %v10380_v5 = vld [vmem:[#allocation10 + $0x1b8] ss:$24 sps:$4 sm:$0xff]  }
  0xf6   :  { %1913 = vmatprep.mubr.bf16.mxu1 %v11782_v21  ;;  %v10391_v10 = vld [vmem:[#allocation10 + $0x4bc] ss:$24 sps:$4 sm:$0xff]   ;;  %vm14089_vm10 = vcmask 916480  }
  0xf8   :  { %1929 = vmatpush1.bf16.msra.mxu0 %v10302_v7  ;;  %1980 = vmatpush1.bf16.msra.mxu1 %v10305_v8  ;;  %v11776_v16 = vld [vmem:[#allocation3 + $0x24] ss:$16 sps:$4 sm:$0xff]   ;;  %v10383_v7 = vld [vmem:[#allocation10 + $0x4e8] ss:$24 sps:$4 sm:$0xff]  }
  0xf9   :  { %1930 = vmatprep.subr.bf16.mxu0 %v10312_v11  ;;  %1981 = vmatprep.subr.bf16.mxu1 %v10315_v12  ;;  %v10388_v8 = vld [vmem:[#allocation10 + $0x18c] ss:$24 sps:$4 sm:$0xff]   ;;  %v10386_v11 = vld [vmem:[#allocation10 + $0x188] ss:$24 sps:$4 sm:$0xff]   ;;  %v10389_v12 = vld [vmem:[#allocation10 + $0x4b8] ss:$24 sps:$4 sm:$0xff]  }
  0xfa   :  { %1860 = vmatprep.mubr.bf16.mxu0 %v11776_v16 }
  0xfb   :  { %1861 = vmatmul.mubr.bf16.gmra.mxu0 %v11778_v17 }
  0xfc   :  { %1931 = vmatpush1.bf16.msra.mxu0 %v10310_v13  ;;  %1982 = vmatpush1.bf16.msra.mxu1 %v10313_v14  ;;  %v11784_v22 = vld [vmem:[#allocation3 + $0x28] ss:$16 sps:$4 sm:$0xff]   ;;  %v10394_v13 = vld [vmem:[#allocation10 + $0x48c] ss:$24 sps:$4 sm:$0xff]  }
  0xfd   :  { %1956 = vmatprep.mubr.bf16.mxu0 %v11759_v55  ;;  %1932 = vmatprep.subr.bf16.mxu0 %v10321_v15  ;;  %v10397_v14 = vld [vmem:[#allocation10 + $0x164] ss:$24 sps:$4 sm:$0xff]   ;;  %v10392_v15 = vld [vmem:[#allocation10 + $0x488] ss:$24 sps:$4 sm:$0xff]  }
  0xfe   :  { %1983 = vmatprep.subr.bf16.mxu1 %v10324_v18  ;;  %1914 = vmatmul.mubr.bf16.gmra.mxu1 %v11784_v22  ;;  %v10395_v18 = vld [vmem:[#allocation10 + $0x160] ss:$24 sps:$4 sm:$0xff]  }
  0xff   :  { %2009 = vmatprep.mubr.bf16.mxu1 %v11767_v1 }
 0x100   :  { %1933 = vmatpush1.bf16.msra.mxu0 %v10319_v19  ;;  %1984 = vmatpush1.bf16.msra.mxu1 %v10322_v20  ;;  %v10403_v19 = vld [vmem:[#allocation10 + $0x464] ss:$24 sps:$4 sm:$0xff]   ;;  %v10400_v20 = vld [vmem:[#allocation10 + $0x134] ss:$24 sps:$4 sm:$0xff]  }
 0x101   :  { %1934 = vmatprep.subr.bf16.mxu0 %v10328_v23  ;;  %1985 = vmatprep.subr.bf16.mxu1 %v10331_v24  ;;  %v10401_v23 = vld [vmem:[#allocation10 + $0x460] ss:$24 sps:$4 sm:$0xff]   ;;  %v10398_v24 = vld [vmem:[#allocation10 + $0x130] ss:$24 sps:$4 sm:$0xff]  }
 0x104   :  { %1935 = vmatpush1.bf16.msra.mxu0 %v10326_v25  ;;  %1986 = vmatpush1.bf16.msra.mxu1 %v10329_v26  ;;  %v10409_v25 = vld [vmem:[#allocation10 + $0x434] ss:$24 sps:$4 sm:$0xff]   ;;  %v10406_v26 = vld [vmem:[#allocation10 + $0x104] ss:$24 sps:$4 sm:$0xff]  }
 0x105   :  { %1936 = vmatprep.subr.bf16.mxu0 %v10334_v27  ;;  %1987 = vmatprep.subr.bf16.mxu1 %v10337_v28  ;;  %v10407_v27 = vld [vmem:[#allocation10 + $0x430] ss:$24 sps:$4 sm:$0xff]   ;;  %v10404_v28 = vld [vmem:[#allocation10 + $0x100] ss:$24 sps:$4 sm:$0xff]  }
 0x108   :  { %1937 = vmatpush1.bf16.msra.mxu0 %v10332_v29  ;;  %1988 = vmatpush1.bf16.msra.mxu1 %v10335_v30  ;;  %v10412_v29 = vld [vmem:[#allocation10 + $0xd4] ss:$24 sps:$4 sm:$0xff]   ;;  %v10415_v30 = vld [vmem:[#allocation10 + $0x404] ss:$24 sps:$4 sm:$0xff]  }
 0x109   :  { %1938 = vmatprep.subr.bf16.mxu0 %v10340_v31  ;;  %1989 = vmatprep.subr.bf16.mxu1 %v10343_v32  ;;  %v10413_v31 = vld [vmem:[#allocation10 + $0x400] ss:$24 sps:$4 sm:$0xff]   ;;  %v10421_v32 = vld [vmem:[#allocation10 + $0x3d4] ss:$24 sps:$4 sm:$0xff]  }
 0x10c   :  { %1939 = vmatpush1.bf16.msra.mxu0 %v10338_v33  ;;  %1990 = vmatpush1.bf16.msra.mxu1 %v10341_v35  ;;  %v10418_v33 = vld [vmem:[#allocation10 + $0xa4] ss:$24 sps:$4 sm:$0xff]   ;;  %v10419_v35 = vld [vmem:[#allocation10 + $0x3d0] ss:$24 sps:$4 sm:$0xff]  }
 0x10d   :  { %1940 = vmatprep.subr.bf16.mxu0 %v10346_v36  ;;  %1991 = vmatprep.subr.bf16.mxu1 %v10349_v37  ;;  %v10427_v36 = vld [vmem:[#allocation10 + $0x3a4] ss:$24 sps:$4 sm:$0xff]   ;;  %v10424_v37 = vld [vmem:[#allocation10 + $0x74] ss:$24 sps:$4 sm:$0xff]  }
 0x110   :  { %1941 = vmatpush2.bf16.msra.mxu0 %v10344_v38  ;;  %1992 = vmatpush1.bf16.msra.mxu1 %v10347_v39  ;;  %v10422_v38 = vld [vmem:[#allocation10 + $0x70] ss:$24 sps:$4 sm:$0xff]   ;;  %v10430_v39 = vld [vmem:[#allocation10 + $0x44] ss:$24 sps:$4 sm:$0xff]  }
 0x111   :  { %1942 = vmatprep.subr.bf16.mxu0 %v10352_v41  ;;  %1993 = vmatprep.subr.bf16.mxu1 %v10355_v42  ;;  %v10431_v41 = vld [vmem:[#allocation10 + $0x370] ss:$24 sps:$4 sm:$0xff]   ;;  %v10428_v42 = vld [vmem:[#allocation10 + $0x40] ss:$24 sps:$4 sm:$0xff]  }
 0x114   :  { %1943 = vmatpush2.bf16.msra.mxu0 %v10350_v43  ;;  %1994 = vmatpush2.bf16.msra.mxu1 %v10353_v34  ;;  %v10436_v43 = vld [vmem:[#allocation10 + $0x14] ss:$24 sps:$4 sm:$0xff]   ;;  %v10434_v34 = vld [vmem:[#allocation10 + $0x10] ss:$24 sps:$4 sm:$0xff]  }
 0x115   :  { %1944 = vmatprep.subr.bf16.mxu0 %v10358_v44  ;;  %1995 = vmatprep.subr.bf16.mxu1 %v10361_v45  ;;  %v10445_v44 = vld [vmem:[#allocation10 + $0x314] ss:$24 sps:$4 sm:$0xff]   ;;  %v10442_v45 = vld [vmem:[#allocation10 + $0x2e4] ss:$24 sps:$4 sm:$0xff]  }
 0x118   :  { %1945 = vmatpush2.bf16.msra.mxu0 %v10356_v46  ;;  %1996 = vmatpush2.bf16.msra.mxu1 %v10359_v48  ;;  %v10443_v46 = vld [vmem:[#allocation10 + $0x310] ss:$24 sps:$4 sm:$0xff]   ;;  %v10440_v48 = vld [vmem:[#allocation10 + $0x2e0] ss:$24 sps:$4 sm:$0xff]  }
 0x119   :  { %1946 = vmatprep.subr.bf16.mxu0 %v10364_v49  ;;  %1997 = vmatprep.subr.bf16.mxu1 %v10367_v50  ;;  %v10451_v49 = vld [vmem:[#allocation10 + $0x5e4] ss:$24 sps:$4 sm:$0xff]   ;;  %v10448_v50 = vld [vmem:[#allocation10 + $0x2b4] ss:$24 sps:$4 sm:$0xff]  }
 0x11c   :  { %1947 = vmatpush2.bf16.msra.mxu0 %v10362_v51  ;;  %1998 = vmatpush2.bf16.msra.mxu1 %v10365_v53  ;;  %v10449_v51 = vld [vmem:[#allocation10 + $0x5e0] ss:$24 sps:$4 sm:$0xff]   ;;  %v10446_v53 = vld [vmem:[#allocation10 + $0x2b0] ss:$24 sps:$4 sm:$0xff]  }
 0x11d   :  { %1948 = vmatprep.subr.bf16.mxu0 %v10370_v54  ;;  %1999 = vmatprep.subr.bf16.mxu1 %v10373_v56  ;;  %v10457_v54 = vld [vmem:[#allocation10 + $0x5b4] ss:$24 sps:$4 sm:$0xff]   ;;  %v10454_v56 = vld [vmem:[#allocation10 + $0x284] ss:$24 sps:$4 sm:$0xff]  }
 0x120   :  { %1949 = vmatpush2.bf16.msra.mxu0 %v10368_v58  ;;  %2000 = vmatpush2.bf16.msra.mxu1 %v10371_v59  ;;  %v10455_v58 = vld [vmem:[#allocation10 + $0x5b0] ss:$24 sps:$4 sm:$0xff]   ;;  %v10452_v59 = vld [vmem:[#allocation10 + $0x280] ss:$24 sps:$4 sm:$0xff]  }
 0x121   :  { %1950 = vmatprep.subr.bf16.mxu0 %v10376_v60  ;;  %2001 = vmatprep.subr.bf16.mxu1 %v10379_v61  ;;  %v10463_v60 = vld [vmem:[#allocation10 + $0x584] ss:$24 sps:$4 sm:$0xff]   ;;  %v10460_v61 = vld [vmem:[#allocation10 + $0x254] ss:$24 sps:$4 sm:$0xff]  }
 0x124   :  { %1951 = vmatpush2.bf16.msra.mxu0 %v10374_v63  ;;  %2002 = vmatpush2.bf16.msra.mxu1 %v10377_v0  ;;  %v10461_v63 = vld [vmem:[#allocation10 + $0x580] ss:$24 sps:$4 sm:$0xff]   ;;  %v10458_v0 = vld [vmem:[#allocation10 + $0x250] ss:$24 sps:$4 sm:$0xff]  }
 0x125   :  { %1952 = vmatprep.subr.bf16.mxu0 %v10382_v2  ;;  %2003 = vmatprep.subr.bf16.mxu1 %v10385_v3  ;;  %v10469_v2 = vld [vmem:[#allocation10 + $0x554] ss:$24 sps:$4 sm:$0xff]   ;;  %v10466_v3 = vld [vmem:[#allocation10 + $0x224] ss:$24 sps:$4 sm:$0xff]  }
 0x128   :  { %1953 = vmatpush2.bf16.msra.mxu0 %v10380_v5  ;;  %2004 = vmatpush2.bf16.msra.mxu1 %v10383_v7  ;;  %v10467_v5 = vld [vmem:[#allocation10 + $0x550] ss:$24 sps:$4 sm:$0xff]   ;;  %v10464_v7 = vld [vmem:[#allocation10 + $0x220] ss:$24 sps:$4 sm:$0xff]  }
 0x129   :  { %1954 = vmatprep.subr.bf16.mxu0 %v10388_v8  ;;  %2005 = vmatprep.subr.bf16.mxu1 %v10391_v10  ;;  %v10475_v8 = vld [vmem:[#allocation10 + $0x524] ss:$24 sps:$4 sm:$0xff]   ;;  %v10472_v10 = vld [vmem:[#allocation10 + $0x1f4] ss:$24 sps:$4 sm:$0xff]  }
 0x12c   :  { %1955 = vmatpush2.bf16.msra.mxu0 %v10386_v11  ;;  %2006 = vmatpush2.bf16.msra.mxu1 %v10389_v12  ;;  %v10473_v11 = vld [vmem:[#allocation10 + $0x520] ss:$24 sps:$4 sm:$0xff]   ;;  %v10470_v12 = vld [vmem:[#allocation10 + $0x1f0] ss:$24 sps:$4 sm:$0xff]  }
 0x12d   :  { %2007 = vmatprep.subr.bf16.mxu1 %v10394_v13  ;;  %2030 = vmatprep.subr.bf16.mxu0 %v10397_v14  ;;  %v10481_v13 = vld [vmem:[#allocation10 + $0x4f4] ss:$24 sps:$4 sm:$0xff]   ;;  %v10478_v14 = vld [vmem:[#allocation10 + $0x1c4] ss:$24 sps:$4 sm:$0xff]  }
 0x12f   :  { %1957 = vmatmul.mubr.bf16.vlgmr.msra.gmra.mxu0 %v11762_v57 }
 0x130   :  { %1966 = vmatprep.mubr.bf16.mxu0 %v11776_v16  ;;  %2008 = vmatpush2.bf16.msra.mxu1 %v10392_v15  ;;  %v10410_v16 = vld [vmem:[#allocation10 + $0xd0] ss:$24 sps:$4 sm:$0xff]  }
 0x131   :  { %2031 = vmatpush1.bf16.msra.mxu0 %v10395_v18  ;;  %2083 = vmatprep.subr.bf16.mxu1 %v10403_v19  ;;  %v10479_v15 = vld [vmem:[#allocation10 + $0x4f0] ss:$24 sps:$4 sm:$0xff]   ;;  %v10476_v18 = vld [vmem:[#allocation10 + $0x1c0] ss:$24 sps:$4 sm:$0xff]   ;;  %v10487_v19 = vld [vmem:[#allocation10 + $0x4c4] ss:$24 sps:$4 sm:$0xff]  }
 0x132   :  { %2032 = vmatprep.subr.bf16.mxu0 %v10400_v20  ;;  %v10484_v20 = vld [vmem:[#allocation10 + $0x194] ss:$24 sps:$4 sm:$0xff]  }
 0x133   :  { %2010 = vmatmul.mubr.bf16.vlgmr.msra.gmra.mxu1 %v11770_v4 }
 0x134   :  { %2019 = vmatprep.mubr.bf16.mxu1 %v11782_v21  ;;  %2084 = vmatpush1.bf16.msra.mxu1 %v10401_v23  ;;  %v10416_v21 = vld [vmem:[#allocation10 + $0xa0] ss:$24 sps:$4 sm:$0xff]  }
 0x135   :  { %2033 = vmatpush1.bf16.msra.mxu0 %v10398_v24  ;;  %2085 = vmatprep.subr.bf16.mxu1 %v10409_v25  ;;  %v10485_v23 = vld [vmem:[#allocation10 + $0x4c0] ss:$24 sps:$4 sm:$0xff]   ;;  %v10482_v24 = vld [vmem:[#allocation10 + $0x190] ss:$24 sps:$4 sm:$0xff]   ;;  %v10490_v25 = vld [vmem:[#allocation10 + $0x494] ss:$24 sps:$4 sm:$0xff]  }
 0x136   :  { %2034 = vmatprep.subr.bf16.mxu0 %v10406_v26  ;;  %v10488_v26 = vld [vmem:[#allocation10 + $0x490] ss:$24 sps:$4 sm:$0xff]  }
 0x137   :  { %1967 = vmatmul.mubr.bf16.gmra.mxu0 %v11778_v17  ;;  %v10425_v17 = vld [vmem:[#allocation10 + $0x3a0] ss:$24 sps:$4 sm:$0xff]  }
 0x138   :  { %2062 = vmatprep.mubr.bf16.mxu0 %v11759_v55  ;;  %2086 = vmatpush1.bf16.msra.mxu1 %v10407_v27  ;;  %v10433_v55 = vld [vmem:[#allocation10 + $0x374] ss:$24 sps:$4 sm:$0xff]  }
 0x139   :  { %2035 = vmatpush1.bf16.msra.mxu0 %v10404_v28  ;;  %2087 = vmatprep.subr.bf16.mxu1 %v10415_v30  ;;  %v11239_v27 = vld [vmem:[#allocation3 + $0x24] ss:$16 sps:$4 sm:$0xff]   ;;  %v11240_v28 = vld [vmem:[#allocation3 + $0x2c] ss:$16 sps:$4 sm:$0xff]   ;;  %v11242_v30 = vld [vmem:[#allocation3 + $0x28] ss:$16 sps:$4 sm:$0xff]  }
 0x13a   :  { %2036 = vmatprep.subr.bf16.mxu0 %v10412_v29  ;;  %v11241_v29 = vld [vmem:[#allocation3 + $0x20] ss:$16 sps:$4 sm:$0xff]  }
 0x13b   :  { %2020 = vmatmul.mubr.bf16.gmra.mxu1 %v11784_v22  ;;  %v10439_v22 = vld [vmem:[#allocation10 + $0x344] ss:$24 sps:$4 sm:$0xff]  }
 0x13c   :  { %2088 = vmatpush1.bf16.msra.mxu1 %v10413_v31  ;;  %2115 = vmatprep.mubr.bf16.mxu1 %v11767_v1  ;;  %v10437_v1 = vld [vmem:[#allocation10 + $0x340] ss:$24 sps:$4 sm:$0xff]  }
 0x13d   :  { %2037 = vmatpush1.bf16.msra.mxu0 %v10410_v16  ;;  %2089 = vmatprep.subr.bf16.mxu1 %v10421_v32 }
 0x13e   :  { %2038 = vmatprep.subr.bf16.mxu0 %v10418_v33 }
 0x140   :  { %2090 = vmatpush1.bf16.msra.mxu1 %v10419_v35 }
 0x141   :  { %2039 = vmatpush1.bf16.msra.mxu0 %v10416_v21  ;;  %2091 = vmatprep.subr.bf16.mxu1 %v10427_v36 }
 0x142   :  { %2040 = vmatprep.subr.bf16.mxu0 %v10424_v37 }
 0x144   :  { %2092 = vmatpush1.bf16.msra.mxu1 %v10425_v17 }
 0x145   :  { %2041 = vmatpush1.bf16.msra.mxu0 %v10422_v38  ;;  %2093 = vmatprep.subr.bf16.mxu1 %v10433_v55  ;;  %v2138_v38 = vlaneseq }
 0x146   :  { %2042 = vmatprep.subr.bf16.mxu0 %v10430_v39 }
 0x148   :  { %2094 = vmatpush1.bf16.msra.mxu1 %v10431_v41 }
 0x149   :  { %2043 = vmatpush1.bf16.msra.mxu0 %v10428_v42  ;;  %2095 = vmatprep.subr.bf16.mxu1 %v10439_v22 }
 0x14a   :  { %2044 = vmatprep.subr.bf16.mxu0 %v10436_v43 }
 0x14c   :  { %2096 = vmatpush1.bf16.msra.mxu1 %v10437_v1  ;;  %v2136_v1 = vld [vmem:[#allocation11] sm:$0x3f] }
 0x14d   :  { %2045 = vmatpush1.bf16.msra.mxu0 %v10434_v34  ;;  %2097 = vmatprep.subr.bf16.mxu1 %v10445_v44 }
 0x14e   :  { %2046 = vmatprep.subr.bf16.mxu0 %v10442_v45 }
 0x150   :  { %2098 = vmatpush1.bf16.msra.mxu1 %v10443_v46 }
 0x151   :  { %2047 = vmatpush2.bf16.msra.mxu0 %v10440_v48  ;;  %2099 = vmatprep.subr.bf16.mxu1 %v10451_v49 }
 0x152   :  { %2048 = vmatprep.subr.bf16.mxu0 %v10448_v50 }
 0x154   :  { %2100 = vmatpush2.bf16.msra.mxu1 %v10449_v51  ;;  %v2192_v51 = vld [vmem:[%s13966_s4] sm:$0x3f] }
 0x155   :  { %2049 = vmatpush2.bf16.msra.mxu0 %v10446_v53  ;;  %2101 = vmatprep.subr.bf16.mxu1 %v10457_v54 }
 0x156   :  { %2050 = vmatprep.subr.bf16.mxu0 %v10454_v56 }
 0x158   :  { %2102 = vmatpush2.bf16.msra.mxu1 %v10455_v58 }
 0x159   :  { %2051 = vmatpush2.bf16.msra.mxu0 %v10452_v59  ;;  %2103 = vmatprep.subr.bf16.mxu1 %v10463_v60 }
 0x15a   :  { %2052 = vmatprep.subr.bf16.mxu0 %v10460_v61 }
 0x15c   :  { %2104 = vmatpush2.bf16.msra.mxu1 %v10461_v63 }
 0x15d   :  { %2053 = vmatpush2.bf16.msra.mxu0 %v10458_v0  ;;  %2105 = vmatprep.subr.bf16.mxu1 %v10469_v2 }
 0x15e   :  { %2054 = vmatprep.subr.bf16.mxu0 %v10466_v3 }
 0x160   :  { %2106 = vmatpush2.bf16.msra.mxu1 %v10467_v5 }
 0x161   :  { %2055 = vmatpush2.bf16.msra.mxu0 %v10464_v7  ;;  %2107 = vmatprep.subr.bf16.mxu1 %v10475_v8 }
 0x162   :  { %2056 = vmatprep.subr.bf16.mxu0 %v10472_v10 }
 0x164   :  { %2108 = vmatpush2.bf16.msra.mxu1 %v10473_v11 }
 0x165   :  { %2057 = vmatpush2.bf16.msra.mxu0 %v10470_v12  ;;  %2109 = vmatprep.subr.bf16.mxu1 %v10481_v13 }
 0x166   :  { %2058 = vmatprep.subr.bf16.mxu0 %v10478_v14 }
 0x168   :  { %2110 = vmatpush2.bf16.msra.mxu1 %v10479_v15  ;;  %v11500_v15 = vmov 1983009808  }
 0x169   :  { %2059 = vmatpush2.bf16.msra.mxu0 %v10476_v18  ;;  %2111 = vmatprep.subr.bf16.mxu1 %v10487_v19  ;;  %v2301_v18 = vunpack.c.l.s4 %v11500_v15 }
 0x16a   :  { %2060 = vmatprep.subr.bf16.mxu0 %v10484_v20 }
 0x16c   :  { %2112 = vmatpush2.bf16.msra.mxu1 %v10485_v23 }
 0x16d   :  { %2061 = vmatpush2.bf16.msra.mxu0 %v10482_v24  ;;  %2113 = vmatprep.subr.bf16.mxu1 %v10490_v25 }
 0x170   :  { %2063 = vmatmul.mubr.bf16.vlgmr.msra.gmra.mxu0 %v11762_v57  ;;  %2114 = vmatpush2.bf16.msra.mxu1 %v10488_v26 }
 0x171   :  { %2072 = vmatprep.mubr.bf16.mxu0 %v11239_v27 }
 0x173   :  { %2116 = vmatmul.mubr.bf16.vlgmr.msra.gmra.mxu1 %v11770_v4  ;;  %v11800_v4 = vshrl.u32 %v2138_v38, 7 }
 0x174   :  { %2125 = vmatprep.mubr.bf16.mxu1 %v11240_v28 }
 0x175   :  { %v11803_v22 = vsub.s32 1, %v11800_v4  ;;  %v11806_v43 = vsub.s32 0, %v11800_v4  ;;  %v2148_v5 = vsub.s32 2, %v11800_v4  ;;  %v2152_v13 = vsub.s32 3, %v11800_v4 }
 0x177   :  { %14161 = vst [vmem:[#allocation29_spill] sm:$0xff] %v11803_v22  ;;  %14162 = vst [vmem:[#allocation30_spill] sm:$0xff] %v11806_v43  ;;  %v2145_v46 = vrot.slane %v2136_v1, %v11803_v22  ;;  %v2141_v50 = vrot.slane %v2136_v1, %v11806_v43  ;;  %v2197_v60 = vrot.slane %v2192_v51, %v11806_v43 }
 0x178   :  { %2073 = vmatmul.mubr.bf16.gmra.mxu0 %v11241_v29  ;;  %v2201_v63 = vrot.slane %v2192_v51, %v11803_v22  ;;  %v11817_v25 = vrot.slane %v2136_v1, %v2148_v5 }
 0x17b   :  { %2126 = vmatmul.mubr.bf16.gmra.mxu1 %v11242_v30 }
 0x1af   :  { %v1852_v31 = vpop.f32.mrf.mxu0 }
 0x1b1   :  { %v1854_v32 = vpop.f32.mrf.mxu0 }
 0x1b3   :  { %v1905_v16 = vpop.f32.mrf.mxu1  ;;  %v1856_v35 = vpop.f32.mrf.mxu0 }
 0x1b4   :  { %v1906_v49 = vadd.f32 %v1905_v16, %v1852_v31 }
 0x1b5   :  { %v1907_v33 = vpop.f32.mrf.mxu1  ;;  %v1858_v36 = vpop.f32.mrf.mxu0 }
 0x1b6   :  { %v1908_v45 = vadd.f32 %v1907_v33, %v1854_v32  ;;  %v2168_v2 = vmul.f32 %v2141_v50, %v1906_v49  ;;  %v11819_v32 = vrot.slane %v2192_v51, %v2148_v5  ;;  %v11821_v33 = vrot.slane %v2136_v1, %v2152_v13 }
 0x1b7   :  { %v1909_v21 = vpop.f32.mrf.mxu1 }
 0x1b8   :  { %v1910_v53 = vadd.f32 %v1909_v21, %v1856_v35  ;;  %v2169_v61 = vmul.f32 %v2145_v46, %v1908_v45  ;;  %v2224_v23 = vadd.f32 %v2197_v60, %v2168_v2  ;;  %v2302_v21 = vunpack.c.0.s8 %v2301_v18 }
 0x1b9   :  { %v1911_v37 = vpop.f32.mrf.mxu1 }
 0x1ba   :  { %v1912_v48 = vadd.f32 %v1911_v37, %v1858_v36  ;;  %v2174_v3 = vmul.f32 %v2141_v50, %v1910_v53  ;;  %v2225_v14 = vadd.f32 %v2201_v63, %v2169_v61  ;;  %v2248_v38 = vmax.f32 %v2224_v23, 0.0 }
 0x1bb   :  { %v1862_v57 = vpop.f32.mrf.mxu0 }
 0x1bc   :  { %v2175_v0 = vmul.f32 %v2145_v46, %v1912_v48  ;;  %v2230_v24 = vadd.f32 %v2197_v60, %v2174_v3  ;;  %v2249_v35 = vmax.f32 %v2225_v14, 0.0 }
 0x1bd   :  { %v1864_v55 = vpop.f32.mrf.mxu0 }
 0x1be   :  { %v1915_v17 = vpop.f32.mrf.mxu1  ;;  %v2231_v19 = vadd.f32 %v2201_v63, %v2175_v0  ;;  %v2296_v53 = vcombine.low %v2248_v38, %v2249_v35 }
 0x1bf   :  { %v1866_v41 = vpop.f32.mrf.mxu0  ;;  %v1916_v54 = vadd.f32 %v1915_v17, %v1862_v57  ;;  %v11823_v17 = vrot.slane %v2192_v51, %v2152_v13  ;;  %v11829_v51 = vsub.s32 %v2302_v21, %v11800_v4 }
 0x1c0   :  { %v1917_v39 = vpop.f32.mrf.mxu1  ;;  %v2255_v36 = vmax.f32 %v2231_v19, 0.0 }
 0x1c1   :  { %v1868_v34 = vpop.f32.mrf.mxu0  ;;  %v1918_v56 = vadd.f32 %v1917_v39, %v1864_v55  ;;  %v2180_v7 = vmul.f32 %v2141_v50, %v1916_v54  ;;  %v2254_v55 = vmax.f32 %v2230_v24, 0.0  ;;  %v2297_v54 = vcombine.high %v2248_v38, %v2249_v35 }
 0x1c2   :  { %v1919_v42 = vpop.f32.mrf.mxu1  ;;  %v2306_v14 = vrot.slane %v2296_v53, %v11829_v51 }
 0x1c3   :  { %v1920_v58 = vadd.f32 %v1919_v42, %v1866_v41  ;;  %v2181_v8 = vmul.f32 %v2145_v46, %v1918_v56  ;;  %v2236_v26 = vadd.f32 %v2197_v60, %v2180_v7  ;;  %v2350_v56 = vcombine.low %v2254_v55, %v2255_v36 }
 0x1c4   :  { %v1921_v44 = vpop.f32.mrf.mxu1  ;;  %v2313_v15 = vrot.slane %v2297_v54, %v11829_v51 }
 0x1c5   :  { %v1922_v59 = vadd.f32 %v1921_v44, %v1868_v34  ;;  %v2186_v10 = vmul.f32 %v2141_v50, %v1920_v58  ;;  %v2237_v27 = vadd.f32 %v2201_v63, %v2181_v8  ;;  %v2260_v42 = vmax.f32 %v2236_v26, 0.0 }
 0x1c7   :  { %v2187_v11 = vmul.f32 %v2145_v46, %v1922_v59  ;;  %v2242_v28 = vadd.f32 %v2197_v60, %v2186_v10  ;;  %v2261_v34 = vmax.f32 %v2237_v27, 0.0  ;;  %v2351_v59 = vcombine.high %v2254_v55, %v2255_v36 }
 0x1c9   :  { %v2243_v29 = vadd.f32 %v2201_v63, %v2187_v11  ;;  %v2266_v44 = vmax.f32 %v2242_v28, 0.0  ;;  %v2404_v0 = vcombine.low %v2260_v42, %v2261_v34  ;;  %v2405_v2 = vcombine.high %v2260_v42, %v2261_v34 }
 0x1ca   :  { %v11846_v27 = vrot.slane %v2351_v59, %v11829_v51 }
 0x1cb   :  { %v2267_v45 = vmax.f32 %v2243_v29, 0.0  ;;  %v11849_v28 = vrot.slane %v2404_v0, %v11829_v51  ;;  %v11852_v29 = vrot.slane %v2405_v2, %v11829_v51 }
 0x1cd   :  { %v2458_v3 = vcombine.low %v2266_v44, %v2267_v45  ;;  %v2459_v5 = vcombine.high %v2266_v44, %v2267_v45 }
 0x1ef   :  { %v1958_v12 = vpop.f32.mrf.mxu0 }
 0x1f1   :  { %v1960_v20 = vpop.f32.mrf.mxu0 }
 0x1f3   :  { %v1962_v30 = vpop.f32.mrf.mxu0  ;;  %v2011_v31 = vpop.f32.mrf.mxu1 }
 0x1f4   :  { %v2012_v16 = vadd.f32 %v2011_v31, %v1958_v12 }
 0x1f5   :  { %v1964_v37 = vpop.f32.mrf.mxu0  ;;  %v2013_v57 = vpop.f32.mrf.mxu1 }
 0x1f6   :  { %v2170_v39 = vmul.f32 %v11817_v25, %v2012_v16  ;;  %v2014_v41 = vadd.f32 %v2013_v57, %v1960_v20  ;;  %v11840_v20 = vrot.slane %v2350_v56, %v11829_v51  ;;  %v11858_v16 = vrot.slane %v2459_v5, %v11829_v51 }
 0x1f7   :  { %v2015_v46 = vpop.f32.mrf.mxu1  ;;  %v1968_v49 = vpop.f32.mrf.mxu0 }
 0x1f8   :  { %v2226_v1 = vadd.f32 %v11819_v32, %v2170_v39  ;;  %v2171_v48 = vmul.f32 %v11821_v33, %v2014_v41  ;;  %v2016_v50 = vadd.f32 %v2015_v46, %v1962_v30  ;;  %v11855_v30 = vrot.slane %v2458_v3, %v11829_v51 }
 0x1f9   :  { %v2017_v58 = vpop.f32.mrf.mxu1  ;;  %v1970_v12 = vpop.f32.mrf.mxu0 }
 0x1fa   :  { %v2227_v60 = vadd.f32 %v11823_v17, %v2171_v48  ;;  %v2176_v61 = vmul.f32 %v11817_v25, %v2016_v50  ;;  %v2018_v63 = vadd.f32 %v2017_v58, %v1964_v37  ;;  %v2250_v8 = vmax.f32 %v2226_v1, 0.0 }
 0x1fb   :  { %v2021_v7 = vpop.f32.mrf.mxu1  ;;  %v1972_v37 = vpop.f32.mrf.mxu0 }
 0x1fc   :  { %v2251_v10 = vmax.f32 %v2227_v60, 0.0  ;;  %v11834_v11 = vadd.f32 %v11819_v32, %v2176_v61  ;;  %v2177_v13 = vmul.f32 %v11821_v33, %v2018_v63  ;;  %v2022_v18 = vadd.f32 %v2021_v7, %v1968_v49 }
 0x1fd   :  { %v2023_v19 = vpop.f32.mrf.mxu1 }
 0x1fe   :  { %v2298_v23 = vcombine.low %v2250_v8, %v2251_v10  ;;  %v2299_v24 = vcombine.high %v2250_v8, %v2251_v10  ;;  %v11843_v26 = vadd.f32 %v11823_v17, %v2177_v13  ;;  %v2256_v36 = vmax.f32 %v11834_v11, 0.0  ;;  %v1974_v11 = vpop.f32.mrf.mxu0 }
 0x1ff   :  { %v2025_v31 = vpop.f32.mrf.mxu1  ;;  %v2182_v38 = vmul.f32 %v11817_v25, %v2022_v18  ;;  %v2024_v55 = vadd.f32 %v2023_v19, %v1970_v12 }
 0x200   :  { %v2320_v35 = vrot.slane %v2298_v23, %v11829_v51  ;;  %v2327_v21 = vrot.slane %v2299_v24, %v11829_v51  ;;  %v2257_v57 = vmax.f32 %v11843_v26, 0.0  ;;  %v11865_v39 = vadd.f32 %v2025_v31, %v1972_v37 }
 0x201   :  { %v11874_v59 = vadd.f32 %v11819_v32, %v2182_v38  ;;  %v11877_v60 = vmul.f32 %v11821_v33, %v2024_v55 }
 0x202   :  { %v2328_v41 = vcombine.low %v2306_v14, %v2320_v35  ;;  %v2329_v42 = vcombine.high %v2306_v14, %v2320_v35  ;;  %v2330_v34 = vcombine.low %v2313_v15, %v2327_v21  ;;  %v2331_v44 = vcombine.high %v2313_v15, %v2327_v21 }
 0x203   :  { %v9505_v45 = vcombine.low %v2320_v35, %v2320_v35  ;;  %v9506_v46 = vcombine.high %v2320_v35, %v2320_v35  ;;  %v9507_v1 = vcombine.low %v2327_v21, %v2327_v21  ;;  %v9508_v48 = vcombine.high %v2327_v21, %v2327_v21 }
 0x204   :  { %v2519_v49 = vrot.slane %v2328_v41, %v11829_v51  ;;  %v2544_v50 = vrot.slane %v2329_v42, %v11829_v51  ;;  %v2569_v53 = vrot.slane %v2330_v34, %v11829_v51  ;;  %v2594_v54 = vrot.slane %v2331_v44, %v11829_v51 }
 0x205   :  { %v2526_v56 = vrot.slane %v9505_v45, %v11829_v51  ;;  %v2551_v58 = vrot.slane %v9506_v46, %v11829_v51  ;;  %v2576_v0 = vrot.slane %v9507_v1, %v11829_v51  ;;  %v11881_v2 = vrot.slane %v9508_v48, %v11829_v51 }
 0x206   :  { %v2527_v61 = vcombine.high %v2519_v49, %v2519_v49  ;;  %v2552_v63 = vcombine.high %v2544_v50, %v2544_v50  ;;  %v2577_v7 = vcombine.high %v2569_v53, %v2569_v53  ;;  %v2602_v8 = vcombine.high %v2594_v54, %v2594_v54 }
 0x207   :  { %v2528_v3 = vcombine.high %v2526_v56, %v2526_v56  ;;  %v2553_v5 = vcombine.high %v2551_v58, %v2551_v58  ;;  %v3009_v10 = vsel %vm168_vm0, %v2519_v49, -inf  ;;  %v3023_v13 = vsel %vm168_vm0, %v2526_v56, -inf }
 0x208   :  { %v3016_v12 = vsel %vm168_vm0, %v2527_v61, -inf  ;;  %v3051_v14 = vsel %vm168_vm0, %v2544_v50, -inf  ;;  %v3010_v15 = vrot.slane %v3009_v10, 4  ;;  %v3024_v19 = vrot.slane %v3023_v13, 4 }
 0x209   :  { %v3017_v18 = vrot.slane %v3016_v12, 4  ;;  %v3030_v23 = vsel %vm168_vm0, %v2528_v3, -inf  ;;  %v3052_v31 = vrot.slane %v3051_v14, 4  ;;  %v3058_v35 = vsel %vm168_vm0, %v2552_v63, -inf }
 0x20a   :  { %v3031_v24 = vrot.slane %v3030_v23, 4  ;;  %v3065_v21 = vsel %vm168_vm0, %v2551_v58, -inf  ;;  %v3011_v37 = vmax.f32 %v3009_v10, %v3010_v15  ;;  %v3025_v55 = vmax.f32 %v3023_v13, %v3024_v19 }
 0x20b   :  { %v11890_v38 = vmax.f32 %v3016_v12, %v3017_v18  ;;  %v3059_v41 = vrot.slane %v3058_v35, 4  ;;  %v3053_v34 = vmax.f32 %v3051_v14, %v3052_v31  ;;  %v3066_v44 = vrot.slane %v3065_v21, 4 }
 0x20c   :  { %v11892_v42 = vmax.f32 %v3030_v23, %v3031_v24  ;;  %v3072_v45 = vsel %vm168_vm0, %v2553_v5, -inf  ;;  %v2578_v46 = vcombine.high %v2576_v0, %v2576_v0  ;;  %v2603_v1 = vcombine.high %v11881_v2, %v11881_v2 }
 0x20d   :  { %v3012_v48 = vrot.slane %v3011_v37, 2  ;;  %v3026_v49 = vrot.slane %v3025_v55, 2  ;;  %v3054_v50 = vrot.slane %v3053_v34, 2  ;;  %v11897_v56 = vmax.f32 %v3058_v35, %v3059_v41 }
 0x20e   :  { %14163 = vst [vmem:[#allocation31_spill] sm:$0xff] %v11892_v42  ;;  %v3067_v58 = vmax.f32 %v3065_v21, %v3066_v44  ;;  %v3073_v61 = vrot.slane %v3072_v45, 4  ;;  %v3019_v3 = vrot.slane %v11890_v38, 2  ;;  %v3093_v12 = vsel %vm168_vm0, %v2569_v53, -inf }
 0x20f   :  { %v11899_v63 = vmax.f32 %v3011_v37, %v3012_v48  ;;  %v11904_v5 = vmax.f32 %v3025_v55, %v3026_v49  ;;  %v3094_v15 = vrot.slane %v3093_v12, 4  ;;  %v3100_v18 = vsel %vm168_vm0, %v2577_v7, -inf }
 0x210   :  { %v3068_v13 = vrot.slane %v3067_v58, 2  ;;  %v11906_v14 = vmax.f32 %v3072_v45, %v3073_v61  ;;  %v3107_v19 = vsel %vm168_vm0, %v2576_v0, -inf  ;;  %v3114_v23 = vsel %vm168_vm0, %v2578_v46, -inf  ;;  %v2027_v61 = vpop.f32.mrf.mxu1 }
 0x211   :  { %v3135_v24 = vsel %vm168_vm0, %v2594_v54, -inf  ;;  %v11912_v31 = vmax.f32 %v3053_v34, %v3054_v50  ;;  %v11915_v21 = vmax.f32 %v3093_v12, %v3094_v15  ;;  %v3101_v53 = vrot.slane %v3100_v18, 4 }
 0x212   :  { %14164 = vst [vmem:[#allocation32_spill] sm:$0xff] %v11906_v14  ;;  %v3108_v37 = vrot.slane %v3107_v19, 4  ;;  %v3115_v55 = vrot.slane %v3114_v23, 4  ;;  %v3136_v41 = vrot.slane %v3135_v24, 4  ;;  %v11918_v44 = vsel %vm168_vm0, %v2602_v8, -inf }
 0x213   :  { %v11920_v7 = vmax.f32 %v3067_v58, %v3068_v13  ;;  %v3149_v54 = vsel %vm168_vm0, %v11881_v2, -inf  ;;  %v11926_v34 = vmax.f32 %v3100_v18, %v3101_v53  ;;  %v11934_v8 = vsel %vm168_vm0, %v2603_v1, -inf }
 0x214   :  { %v11928_v46 = vmax.f32 %v3107_v19, %v3108_v37  ;;  %v3150_v49 = vrot.slane %v3149_v54, 4  ;;  %v11931_v50 = vmax.f32 %v3114_v23, %v3115_v55  ;;  %14166 = vst [vmem:[#allocation34_spill] sm:$0xff] %v11934_v8  ;;  %v2352_v58 = vcombine.low %v2256_v36, %v2257_v57 }
 0x215   :  { %v2353_v2 = vcombine.high %v2256_v36, %v2257_v57  ;;  %v11945_v13 = vmax.f32 %v3135_v24, %v3136_v41  ;;  %v2262_v15 = vmax.f32 %v11874_v59, 0.0  ;;  %v2239_v1 = vadd.f32 %v11823_v17, %v11877_v60 }
 0x216   :  { %14165 = vst [vmem:[#allocation33_spill] sm:$0xff] %v11931_v50  ;;  %v11950_v18 = vmax.f32 %v3149_v54, %v3150_v49  ;;  %v2374_v23 = vrot.slane %v2352_v58, %v11829_v51  ;;  %v2188_v57 = vmul.f32 %v11817_v25, %v11865_v39  ;;  %v2028_v24 = vadd.f32 %v2027_v61, %v1974_v11 }
 0x217   :  { %v11955_v26 = vrot.slane %v2353_v2, %v11829_v51  ;;  %v2263_v36 = vmax.f32 %v2239_v1, 0.0  ;;  %v11963_v37 = vmax.f32 %v11890_v38, %v3019_v3 }
 0x218   :  { %v2382_v53 = vcombine.low %v11840_v20, %v2374_v23  ;;  %v2383_v60 = vcombine.high %v11840_v20, %v2374_v23  ;;  %v9509_v49 = vcombine.low %v2374_v23, %v2374_v23  ;;  %v9510_v25 = vcombine.high %v2374_v23, %v2374_v23 }
 0x219   :  { %v2406_v20 = vcombine.low %v2262_v15, %v2263_v36  ;;  %v2407_v2 = vcombine.high %v2262_v15, %v2263_v36  ;;  %v11993_v36 = vadd.f32 %v11819_v32, %v2188_v57 }
 0x21a   :  { %v11971_v39 = vrot.slane %v2382_v53, %v11829_v51  ;;  %v11976_v38 = vrot.slane %v9509_v49, %v11829_v51  ;;  %v11979_v3 = vrot.slane %v2383_v60, %v11829_v51  ;;  %v11982_v61 = vrot.slane %v9510_v25, %v11829_v51 }
 0x21b   :  { %v2428_v11 = vrot.slane %v2406_v20, %v11829_v51  ;;  %v2435_v15 = vrot.slane %v2407_v2, %v11829_v51  ;;  %v12001_v25 = vmul.f32 %v11821_v33, %v2028_v24 }
 0x21c   :  { %14167 = vst [vmem:[#allocation35_spill] sm:$0xff] %v11976_v38  ;;  %v11988_v23 = vsel %vm168_vm0, %v11971_v39, -inf  ;;  %v12005_v19 = vsel %vm168_vm0, %v11976_v38, -inf }
 0x21d   :  { %v2436_v20 = vcombine.low %v11849_v28, %v2428_v11  ;;  %v2437_v32 = vcombine.high %v11849_v28, %v2428_v11  ;;  %v2438_v57 = vcombine.low %v11852_v29, %v2435_v15  ;;  %v2439_v2 = vcombine.high %v11852_v29, %v2435_v15 }
 0x21e   :  { %v9513_v0 = vcombine.low %v2428_v11, %v2428_v11  ;;  %v9514_v10 = vcombine.high %v2428_v11, %v2428_v11  ;;  %v9515_v60 = vcombine.low %v2435_v15, %v2435_v15  ;;  %v9516_v1 = vcombine.high %v2435_v15, %v2435_v15 }
 0x21f   :  { %v2719_v12 = vrot.slane %v2436_v20, %v11829_v51  ;;  %v2744_v33 = vrot.slane %v2437_v32, %v11829_v51  ;;  %v2769_v24 = vrot.slane %v2438_v57, %v11829_v51  ;;  %v2794_v45 = vrot.slane %v2439_v2, %v11829_v51 }
 0x220   :  { %v2726_v58 = vrot.slane %v9513_v0, %v11829_v51  ;;  %v2751_v53 = vrot.slane %v9514_v10, %v11829_v51  ;;  %v2776_v28 = vrot.slane %v9515_v60, %v11829_v51  ;;  %v2801_v57 = vrot.slane %v9516_v1, %v11829_v51 }
 0x221   :  { %v2727_v48 = vcombine.high %v2719_v12, %v2719_v12  ;;  %v2752_v11 = vcombine.high %v2744_v33, %v2744_v33  ;;  %v2777_v32 = vcombine.high %v2769_v24, %v2769_v24  ;;  %v3345_v0 = vsel %vm168_vm0, %v2719_v12, -inf }
 0x222   :  { %v2728_v20 = vcombine.high %v2726_v58, %v2726_v58  ;;  %v2753_v55 = vcombine.high %v2751_v53, %v2751_v53  ;;  %v2778_v15 = vcombine.high %v2776_v28, %v2776_v28  ;;  %v3359_v60 = vsel %vm168_vm0, %v2726_v58, -inf }
 0x223   :  { %v3352_v10 = vsel %vm168_vm0, %v2727_v48, -inf  ;;  %v3346_v35 = vrot.slane %v3345_v0, 4  ;;  %v3360_v59 = vrot.slane %v3359_v60, 4  ;;  %v3387_v2 = vsel %vm168_vm0, %v2744_v33, -inf }
 0x224   :  { %v3353_v49 = vrot.slane %v3352_v10, 4  ;;  %v3366_v29 = vsel %vm168_vm0, %v2728_v20, -inf  ;;  %v3394_v41 = vsel %vm168_vm0, %v2752_v11, -inf  ;;  %v3401_v22 = vsel %vm168_vm0, %v2751_v53, -inf }
 0x225   :  { %v3367_v54 = vrot.slane %v3366_v29, 4  ;;  %v3347_v1 = vmax.f32 %v3345_v0, %v3346_v35  ;;  %v3361_v12 = vmax.f32 %v3359_v60, %v3360_v59  ;;  %v3388_v62 = vrot.slane %v3387_v2, 4 }
 0x226   :  { %v12028_v43 = vmax.f32 %v3352_v10, %v3353_v49  ;;  %v3395_v58 = vrot.slane %v3394_v41, 4  ;;  %v3402_v40 = vrot.slane %v3401_v22, 4  ;;  %v3408_v52 = vsel %vm168_vm0, %v2753_v55, -inf }
 0x227   :  { %v12030_v48 = vmax.f32 %v3366_v29, %v3367_v54  ;;  %v2802_v6 = vcombine.high %v2794_v45, %v2794_v45  ;;  %v3348_v20 = vrot.slane %v3347_v1, 2  ;;  %v3362_v47 = vrot.slane %v3361_v12, 2 }
 0x228   :  { %v3389_v9 = vmax.f32 %v3387_v2, %v3388_v62  ;;  %v2803_v33 = vcombine.high %v2801_v57, %v2801_v57  ;;  %v12033_v38 = vmax.f32 %v3394_v41, %v3395_v58  ;;  %v3403_v11 = vmax.f32 %v3401_v22, %v3402_v40 }
 0x229   :  { %14168 = vst [vmem:[#allocation36_spill] sm:$0xff] %v12030_v48  ;;  %v3409_v53 = vrot.slane %v3408_v52, 4  ;;  %v3429_v54 = vsel %vm168_vm0, %v2769_v24, -inf  ;;  %v12038_v29 = vmax.f32 %v3347_v1, %v3348_v20  ;;  %v12042_v60 = vmax.f32 %v3361_v12, %v3362_v47 }
 0x22a   :  { %v3390_v49 = vrot.slane %v3389_v9, 2  ;;  %v3404_v0 = vrot.slane %v3403_v11, 2  ;;  %v3430_v10 = vrot.slane %v3429_v54, 4  ;;  %v3436_v62 = vsel %vm168_vm0, %v2777_v32, -inf }
 0x22b   :  { %v12040_v55 = vmax.f32 %v3408_v52, %v3409_v53  ;;  %v3443_v40 = vsel %vm168_vm0, %v2776_v28, -inf  ;;  %v3450_v22 = vsel %vm168_vm0, %v2778_v15, -inf  ;;  %v3437_v24 = vrot.slane %v3436_v62, 4 }
 0x22c   :  { %v12047_v41 = vmax.f32 %v3389_v9, %v3390_v49  ;;  %v12050_v58 = vmax.f32 %v3429_v54, %v3430_v10  ;;  %v3444_v1 = vrot.slane %v3443_v40, 4  ;;  %v3451_v20 = vrot.slane %v3450_v22, 4 }
 0x22d   :  { %14169 = vst [vmem:[#allocation37_spill] sm:$0xff] %v12040_v55  ;;  %v3471_v52 = vsel %vm168_vm0, %v2794_v45, -inf  ;;  %v12054_v47 = vsel %vm168_vm0, %v2802_v6, -inf  ;;  %v12056_v12 = vmax.f32 %v3403_v11, %v3404_v0  ;;  %v12060_v15 = vmax.f32 %v3436_v62, %v3437_v24 }
 0x22e   :  { %v3472_v9 = vrot.slane %v3471_v52, 4  ;;  %v12062_v53 = vmax.f32 %v3443_v40, %v3444_v1  ;;  %v3485_v54 = vsel %vm168_vm0, %v2801_v57, -inf  ;;  %v12066_v10 = vmax.f32 %v3450_v22, %v3451_v20 }
 0x22f   :  { %v3486_v45 = vrot.slane %v3485_v54, 4  ;;  %v12069_v6 = vsel %vm168_vm0, %v2803_v33, -inf  ;;  %v2245_v11 = vadd.f32 %v11823_v17, %v12001_v25  ;;  %v14172_v62 = vcombine.low %v11846_v27, %v11955_v26 }
 0x230   :  { %14170 = vst [vmem:[#allocation38_spill] sm:$0xff] %v12066_v10  ;;  %14171 = vst [vmem:[#allocation39_spill] sm:$0xff] %v12069_v6  ;;  %v12074_v28 = vmax.f32 %v3471_v52, %v3472_v9  ;;  %v14173_v57 = vcombine.high %v11846_v27, %v11955_v26  ;;  %v2652_v17 = vcombine.high %v11979_v3, %v11979_v3  ;;  %v3021_v25 = vrot.slane %v11963_v37, 1 }
 0x231   :  { %v12080_v40 = vrot.slane %v14172_v62, %v11829_v51  ;;  %v12088_v33 = vmax.f32 %v3485_v54, %v3486_v45  ;;  %v2269_v24 = vmax.f32 %v2245_v11, 0.0  ;;  %v14174_v52 = vrot.slane %v11899_v63, 1 }
 0x232   :  { %v12086_v22 = vrot.slane %v14173_v57, %v11829_v51  ;;  %v14176_v9 = vrot.slane %v11897_v56, 2  ;;  %v14177_v45 = vmax.f32 %v11993_v36, 0.0  ;;  %v14179_v59 = vrot.slane %v11912_v31, 1 }
 0x233   :  { %v2677_v1 = vcombine.high %v12080_v40, %v12080_v40  ;;  %v12100_v27 = vmax.f32 %v11899_v63, %v14174_v52  ;;  %v14181_v0 = vrot.slane %v11915_v21, 2  ;;  %v3103_v2 = vrot.slane %v11926_v34, 2 }
 0x234   :  { %v3062_v54 = vmax.f32 %v11897_v56, %v14176_v9  ;;  %v2460_v11 = vcombine.low %v14177_v45, %v2269_v24  ;;  %v14178_v62 = vmov %v14177_v45  ;;  %v12112_v49 = vmax.f32 %v11912_v31, %v14179_v59 }
 0x235   :  { %14175 = vst [vmem:[#allocation40_spill] sm:$0xff] %v12100_v27  ;;  %v2461_v57 = vcombine.high %v14178_v62, %v2269_v24  ;;  %v3097_v63 = vmax.f32 %v11915_v21, %v14181_v0  ;;  %v3138_v56 = vrot.slane %v11945_v13, 2  ;;  %v14182_v9 = vrot.slane %v11918_v44, 4 }
 0x236   :  { %14180 = vst [vmem:[#allocation41_spill] sm:$0xff] %v12112_v49  ;;  %v3063_v52 = vrot.slane %v3062_v54, 1  ;;  %v2482_v36 = vrot.slane %v2460_v11, %v11829_v51  ;;  %v12127_v31 = vmax.f32 %v11963_v37, %v3021_v25  ;;  %v3104_v21 = vmax.f32 %v11926_v34, %v3103_v2 }
 0x237   :  { %v3144_v45 = vmax.f32 %v11918_v44, %v14182_v9  ;;  %v12124_v24 = vrot.slane %v2461_v57, %v11829_v51  ;;  %v3098_v59 = vrot.slane %v3097_v63, 1  ;;  %v3139_v0 = vmax.f32 %v11945_v13, %v3138_v56 }
 0x238   :  { %14183 = vst [vmem:[#allocation42_spill] sm:$0xff] %v12127_v31  ;;  %v14184_v35 = vrot.slane %v11988_v23, 4  ;;  %v2490_v44 = vcombine.low %v11855_v30, %v2482_v36  ;;  %v2491_v11 = vcombine.high %v11855_v30, %v2482_v36  ;;  %v12138_v9 = vmax.f32 %v3062_v54, %v3063_v52 }
 0x239   :  { %v3145_v62 = vrot.slane %v3144_v45, 2  ;;  %v9517_v34 = vcombine.low %v2482_v36, %v2482_v36  ;;  %v9518_v2 = vcombine.high %v2482_v36, %v2482_v36  ;;  %v12155_v52 = vmax.f32 %v3097_v63, %v3098_v59 }
 0x23a   :  { %v3179_v32 = vmax.f32 %v11988_v23, %v14184_v35  ;;  %14185 = vst [vmem:[#allocation43_spill] sm:$0xff] %v12138_v9  ;;  %v12145_v25 = vrot.slane %v2490_v44, %v11829_v51  ;;  %v12148_v23 = vrot.slane %v2491_v11, %v11829_v51  ;;  %v3105_v35 = vrot.slane %v3104_v21, 1 }
 0x23b   :  { %v12153_v54 = vrot.slane %v9517_v34, %v11829_v51  ;;  %14187 = vst [vmem:[#allocation45_spill] sm:$0xff] %v12155_v52  ;;  %v3140_v56 = vrot.slane %v3139_v0, 1  ;;  %v3146_v36 = vmax.f32 %v3144_v45, %v3145_v62  ;;  %v12160_v44 = vrot.slane %v9518_v2, %v11829_v51 }
 0x23c   :  { %v12164_v11 = vsel %vm168_vm0, %v12145_v25, -inf  ;;  %v3180_v30 = vrot.slane %v3179_v32, 2  ;;  %v12171_v59 = vmax.f32 %v3104_v21, %v3105_v35  ;;  %v14190_v13 = vcombine.high %v11971_v39, %v11971_v39 }
 0x23d   :  { %14186 = vst [vmem:[#allocation44_spill] sm:$0xff] %v12153_v54  ;;  %v12169_v63 = vsel %vm168_vm0, %v12153_v54, -inf  ;;  %v12173_v45 = vmax.f32 %v3139_v0, %v3140_v56  ;;  %v3147_v34 = vrot.slane %v3146_v36, 1  ;;  %v3219_v37 = vsel %vm168_vm0, %v11979_v3, -inf }
 0x23e   :  { %14188 = vst [vmem:[#allocation46_spill] sm:$0xff] %v12171_v59  ;;  %v3181_v2 = vmax.f32 %v3179_v32, %v3180_v30  ;;  %v3184_v57 = vsel %vm168_vm0, %v14190_v13, -inf  ;;  %v3226_v10 = vsel %vm168_vm0, %v2652_v17, -inf  ;;  %v3261_v21 = vsel %vm168_vm0, %v12080_v40, -inf }
 0x23f   :  { %14189 = vst [vmem:[#allocation47_spill] sm:$0xff] %v12173_v45  ;;  %v3185_v20 = vrot.slane %v3184_v57, 4  ;;  %v12185_v0 = vmax.f32 %v3146_v36, %v3147_v34  ;;  %v3220_v56 = vrot.slane %v3219_v37, 4  ;;  %v3227_v32 = vrot.slane %v3226_v10, 4 }
 0x240   :  { %v3182_v35 = vrot.slane %v3181_v2, 1  ;;  %v3262_v62 = vrot.slane %v3261_v21, 4  ;;  %v3268_v39 = vsel %vm168_vm0, %v2677_v1, -inf  ;;  %v3303_v13 = vsel %vm168_vm0, %v12086_v22, -inf }
 0x241   :  { %14191 = vst [vmem:[#allocation48_spill] sm:$0xff] %v12185_v0  ;;  %v3186_v30 = vmax.f32 %v3184_v57, %v3185_v20  ;;  %v3221_v3 = vmax.f32 %v3219_v37, %v3220_v56  ;;  %v3228_v17 = vmax.f32 %v3226_v10, %v3227_v32  ;;  %v3269_v48 = vrot.slane %v3268_v39, 4 }
 0x242   :  { %v12190_v55 = vmax.f32 %v3181_v2, %v3182_v35  ;;  %v3263_v36 = vmax.f32 %v3261_v21, %v3262_v62  ;;  %v3304_v34 = vrot.slane %v3303_v13, 4  ;;  %v14193_v8 = vcombine.high %v12086_v22, %v12086_v22 }
 0x243   :  { %v3187_v40 = vrot.slane %v3186_v30, 2  ;;  %v3222_v57 = vrot.slane %v3221_v3, 2  ;;  %v3229_v1 = vrot.slane %v3228_v17, 2  ;;  %v3270_v50 = vmax.f32 %v3268_v39, %v3269_v48 }
 0x244   :  { %14192 = vst [vmem:[#allocation49_spill] sm:$0xff] %v12190_v55  ;;  %v3310_v20 = vsel %vm168_vm0, %v14193_v8, -inf  ;;  %v3264_v2 = vrot.slane %v3263_v36, 2  ;;  %v3305_v35 = vmax.f32 %v3303_v13, %v3304_v34  ;;  %v3778_v10 = vsel %vm3777_vm11, %v12112_v49, %v12100_v27 }
 0x245   :  { %v3311_v14 = vrot.slane %v3310_v20, 4  ;;  %v3188_v42 = vmax.f32 %v3186_v30, %v3187_v40  ;;  %v3223_v37 = vmax.f32 %v3221_v3, %v3222_v57  ;;  %v3230_v62 = vmax.f32 %v3228_v17, %v3229_v1 }
 0x246   :  { %v3271_v21 = vrot.slane %v3270_v50, 2  ;;  %v3265_v22 = vmax.f32 %v3263_v36, %v3264_v2  ;;  %v3306_v54 = vrot.slane %v3305_v35, 2  ;;  %v3780_v8 = vsel %vm3779_vm12, %v12155_v52, %v3778_v10 }
 0x247   :  { %v3312_v56 = vmax.f32 %v3310_v20, %v3311_v14  ;;  %v3189_v32 = vrot.slane %v3188_v42, 1  ;;  %v3224_v48 = vrot.slane %v3223_v37, 1  ;;  %v3231_v39 = vrot.slane %v3230_v62, 1 }
 0x248   :  { %v3272_v6 = vmax.f32 %v3270_v50, %v3271_v21  ;;  %v3266_v13 = vrot.slane %v3265_v22, 1  ;;  %v3307_v34 = vmax.f32 %v3305_v35, %v3306_v54  ;;  %v3782_v3 = vsel %vm14093_vm14, %v12173_v45, %v3780_v8 }
 0x249   :  { %v3313_v30 = vrot.slane %v3312_v56, 2  ;;  %v12201_v40 = vmax.f32 %v3188_v42, %v3189_v32  ;;  %v12205_v17 = vmax.f32 %v3223_v37, %v3224_v48  ;;  %v12207_v14 = vmax.f32 %v3230_v62, %v3231_v39 }
 0x24a   :  { %v3273_v36 = vrot.slane %v3272_v6, 1  ;;  %v12209_v57 = vmax.f32 %v3265_v22, %v3266_v13  ;;  %v3308_v1 = vrot.slane %v3307_v34, 1  ;;  %v3784_v50 = vsel %vm317_vm5, %v12190_v55, %v3782_v3 }
 0x24b   :  { %14194 = vst [vmem:[#allocation50_spill] sm:$0xff] %v12201_v40  ;;  %14195 = vst [vmem:[#allocation51_spill] sm:$0xff] %v12205_v17  ;;  %v3314_v20 = vmax.f32 %v3312_v56, %v3313_v30  ;;  %v3791_v42 = vsel %vm3777_vm11, %v12138_v9, %v12127_v31  ;;  %v3786_v35 = vsel %vm14092_vm15, %v12205_v17, %v3784_v50  ;;  %v14205_v50 = vrot.slane %v11928_v46, 2 }
 0x24c   :  { %14196 = vst [vmem:[#allocation52_spill] sm:$0xff] %v12207_v14  ;;  %14197 = vst [vmem:[#allocation53_spill] sm:$0xff] %v12209_v57  ;;  %v12216_v54 = vmax.f32 %v3272_v6, %v3273_v36  ;;  %v3792_v10 = vsel %vm3779_vm12, %v12171_v59, %v3791_v42  ;;  %v12222_v37 = vmax.f32 %v3307_v34, %v3308_v1  ;;  %v3070_v1 = vrot.slane %v11920_v7, 1 }
 0x24d   :  { %v3315_v2 = vrot.slane %v3314_v20, 1  ;;  %v3788_v62 = vsel %vm14091_vm1, %v12209_v57, %v3786_v35  ;;  %v3793_v21 = vsel %vm14093_vm14, %v12185_v0, %v3792_v10  ;;  %v14200_v6 = vcombine.low %v11955_v26, %v11955_v26 }
 0x24e   :  { %14198 = vst [vmem:[#allocation54_spill] sm:$0xff] %v12216_v54  ;;  %14199 = vst [vmem:[#allocation55_spill] sm:$0xff] %v12222_v37  ;;  %v3794_v22 = vsel %vm317_vm5, %v12201_v40, %v3793_v21  ;;  %v14202_v8 = vcombine.high %v11955_v26, %v11955_v26  ;;  %v14203_v39 = vcombine.low %v11858_v16, %v12124_v24  ;;  %v3028_v26 = vrot.slane %v11904_v5, 1 }
 0x24f   :  { %v12232_v56 = vrot.slane %v14200_v6, %v11829_v51  ;;  %v12234_v32 = vmax.f32 %v3314_v20, %v3315_v2  ;;  %v3790_v13 = vsel %vm14090_vm3, %v12222_v37, %v3788_v62  ;;  %v3795_v34 = vsel %vm14092_vm15, %v12207_v14, %v3794_v22 }
 0x250   :  { %v12242_v48 = vrot.slane %v14202_v8, %v11829_v51  ;;  %v12248_v30 = vrot.slane %v14203_v39, %v11829_v51  ;;  %v14204_v3 = vcombine.high %v11858_v16, %v12124_v24  ;;  %v3796_v20 = vsel %vm14091_vm1, %v12216_v54, %v3795_v34 }
 0x251   :  { %14201 = vst [vmem:[#allocation56_spill] sm:$0xff] %v12234_v32  ;;  %v3111_v42 = vmax.f32 %v11928_v46, %v14205_v50  ;;  %v3152_v2 = vrot.slane %v11950_v18, 2  ;;  %v3797_v35 = vsel %vm14090_vm3, %v12234_v32, %v3796_v20  ;;  %v12271_v16 = vmax.f32 %v11904_v5, %v3028_v26 }
 0x252   :  { %v12258_v36 = vrot.slane %v14204_v3, %v11829_v51  ;;  %v14207_v10 = vrot.slane %v12005_v19, 4  ;;  %v3233_v21 = vsel %vm168_vm0, %v11982_v61, -inf  ;;  %v10163_v6 = vpack.i.bf16 %v3797_v35, %v3790_v13 }
 0x253   :  { %14206 = vst [vmem:[#allocation57_spill] sm:$0xff] %v12271_v16  ;;  %v12279_v22 = vmax.f32 %v11920_v7, %v3070_v1  ;;  %v3112_v46 = vrot.slane %v3111_v42, 1  ;;  %v3153_v8 = vmax.f32 %v11950_v18, %v3152_v2  ;;  %v3234_v34 = vrot.slane %v3233_v21, 4 }
 0x254   :  { %v3193_v62 = vmax.f32 %v12005_v19, %v14207_v10  ;;  %v3275_v5 = vsel %vm168_vm0, %v12232_v56, -inf  ;;  %v3317_v3 = vsel %vm168_vm0, %v12242_v48, -inf  ;;  %10164 = vrot.lane.b32.xlu0 %v10163_v6, %s11501_s30  ;;  %v3350_v18 = vrot.slane %v12038_v29, 1 }
 0x255   :  { %14208 = vst [vmem:[#allocation58_spill] sm:$0xff] %v12279_v22  ;;  %v12287_v19 = vmax.f32 %v3111_v42, %v3112_v46  ;;  %v3154_v13 = vrot.slane %v3153_v8, 1  ;;  %v3276_v26 = vrot.slane %v3275_v5, 4  ;;  %v3318_v7 = vrot.slane %v3317_v3, 4 }
 0x256   :  { %v3194_v39 = vrot.slane %v3193_v62, 2  ;;  %v3235_v1 = vmax.f32 %v3233_v21, %v3234_v34  ;;  %v3392_v50 = vrot.slane %v12047_v41, 1  ;;  %v14211_v32 = vrot.slane %v12050_v58, 2 }
 0x257   :  { %14209 = vst [vmem:[#allocation59_spill] sm:$0xff] %v12287_v19  ;;  %v12291_v2 = vmax.f32 %v3153_v8, %v3154_v13  ;;  %v3277_v35 = vmax.f32 %v3275_v5, %v3276_v26  ;;  %v3319_v10 = vmax.f32 %v3317_v3, %v3318_v7  ;;  %v12297_v46 = vmax.f32 %v12038_v29, %v3350_v18 }
 0x258   :  { %v3195_v20 = vmax.f32 %v3193_v62, %v3194_v39  ;;  %v3433_v54 = vmax.f32 %v12050_v58, %v14211_v32  ;;  %v3236_v42 = vrot.slane %v3235_v1, 2  ;;  %v12300_v62 = vmax.f32 %v12047_v41, %v3392_v50 }
 0x259   :  { %14210 = vst [vmem:[#allocation60_spill] sm:$0xff] %v12291_v2  ;;  %14212 = vst [vmem:[#allocation61_spill] sm:$0xff] %v12297_v46  ;;  %v3278_v21 = vrot.slane %v3277_v35, 2  ;;  %v3320_v39 = vrot.slane %v3319_v10, 2  ;;  %v3474_v8 = vrot.slane %v12074_v28, 2  ;;  %v14215_v3 = vrot.slane %v12164_v11, 4 }
 0x25a   :  { %v3196_v6 = vrot.slane %v3195_v20, 1  ;;  %14213 = vst [vmem:[#allocation62_spill] sm:$0xff] %v12300_v62  ;;  %v3434_v34 = vrot.slane %v3433_v54, 1  ;;  %v3237_v5 = vmax.f32 %v3235_v1, %v3236_v42  ;;  %v3555_v32 = vsel %vm168_vm0, %v12148_v23, -inf }
 0x25b   :  { %v3515_v58 = vmax.f32 %v12164_v11, %v14215_v3  ;;  %v3279_v29 = vmax.f32 %v3277_v35, %v3278_v21  ;;  %v3321_v26 = vmax.f32 %v3319_v10, %v3320_v39  ;;  %v3475_v41 = vmax.f32 %v12074_v28, %v3474_v8 }
 0x25c   :  { %v12303_v13 = vmax.f32 %v3195_v20, %v3196_v6  ;;  %v12310_v7 = vmax.f32 %v3433_v54, %v3434_v34  ;;  %v3238_v18 = vrot.slane %v3237_v5, 1  ;;  %v3556_v14 = vrot.slane %v3555_v32, 4 }
 0x25d   :  { %v3516_v50 = vrot.slane %v3515_v58, 2  ;;  %v3597_v20 = vsel %vm168_vm0, %v12248_v30, -inf  ;;  %v3280_v1 = vrot.slane %v3279_v29, 1  ;;  %v3322_v6 = vrot.slane %v3321_v26, 1 }
 0x25e   :  { %14214 = vst [vmem:[#allocation63_spill] sm:$0xff] %v12303_v13  ;;  %14216 = vst [vmem:[#allocation64_spill] sm:$0xff] %v12310_v7  ;;  %v3476_v42 = vrot.slane %v3475_v41, 1  ;;  %v3598_v40 = vrot.slane %v3597_v20, 4  ;;  %v12315_v11 = vmax.f32 %v3237_v5, %v3238_v18  ;;  %v3557_v0 = vmax.f32 %v3555_v32, %v3556_v14 }
 0x25f   :  { %v3517_v3 = vmax.f32 %v3515_v58, %v3516_v50  ;;  %v3639_v54 = vsel %vm168_vm0, %v12258_v36, -inf  ;;  %v12319_v35 = vmax.f32 %v3279_v29, %v3280_v1  ;;  %v12321_v28 = vmax.f32 %v3321_v26, %v3322_v6 }
 0x260   :  { %14217 = vst [vmem:[#allocation65_spill] sm:$0xff] %v12315_v11  ;;  %v12323_v10 = vmax.f32 %v3475_v41, %v3476_v42  ;;  %v3599_v21 = vmax.f32 %v3597_v20, %v3598_v40  ;;  %v3558_v34 = vrot.slane %v3557_v0, 2  ;;  %v3640_v8 = vrot.slane %v3639_v54, 4 }
 0x261   :  { %14218 = vst [vmem:[#allocation66_spill] sm:$0xff] %v12319_v35  ;;  %14219 = vst [vmem:[#allocation67_spill] sm:$0xff] %v12321_v28  ;;  %v3518_v39 = vrot.slane %v3517_v3, 1  ;;  %v3798_v5 = vsel %vm3777_vm11, %v12279_v22, %v12271_v16  ;;  %v3826_v58 = vsel %vm3777_vm11, %v12300_v62, %v12297_v46  ;;  %v2852_v32 = vcombine.high %v12148_v23, %v12148_v23 }
 0x262   :  { %14220 = vst [vmem:[#allocation68_spill] sm:$0xff] %v12323_v10  ;;  %v3600_v18 = vrot.slane %v3599_v21, 2  ;;  %v3799_v14 = vsel %vm3779_vm12, %v12287_v19, %v3798_v5  ;;  %v3559_v40 = vmax.f32 %v3557_v0, %v3558_v34  ;;  %v3641_v26 = vmax.f32 %v3639_v54, %v3640_v8 }
 0x263   :  { %v12335_v29 = vmax.f32 %v3517_v3, %v3518_v39  ;;  %v3800_v41 = vsel %vm14093_vm14, %v12291_v2, %v3799_v14  ;;  %v3827_v1 = vsel %vm3779_vm12, %v12310_v7, %v3826_v58  ;;  %v14222_v6 = vcombine.low %v12124_v24, %v12124_v24 }
 0x264   :  { %v3601_v50 = vmax.f32 %v3599_v21, %v3600_v18  ;;  %v3801_v20 = vsel %vm317_vm5, %v12303_v13, %v3800_v41  ;;  %v3560_v23 = vrot.slane %v3559_v40, 1  ;;  %v3642_v3 = vrot.slane %v3641_v26, 2 }
 0x265   :  { %14221 = vst [vmem:[#allocation69_spill] sm:$0xff] %v12335_v29  ;;  %v12347_v42 = vrot.slane %v14222_v6, %v11829_v51  ;;  %v3802_v0 = vsel %vm14092_vm15, %v12315_v11, %v3801_v20  ;;  %v3828_v54 = vsel %vm14093_vm14, %v12323_v10, %v3827_v1  ;;  %v2877_v8 = vcombine.high %v12248_v30, %v12248_v30 }
 0x266   :  { %v3602_v21 = vrot.slane %v3601_v50, 1  ;;  %v3803_v39 = vsel %vm14091_vm1, %v12319_v35, %v3802_v0  ;;  %v3829_v34 = vsel %vm317_vm5, %v12335_v29, %v3828_v54  ;;  %v12359_v5 = vmax.f32 %v3559_v40, %v3560_v23  ;;  %v12383_v0 = vpop.f32.mrf.mxu1 }
 0x267   :  { %v3643_v18 = vmax.f32 %v3641_v26, %v3642_v3  ;;  %v3804_v14 = vsel %vm14090_vm3, %v12321_v28, %v3803_v39  ;;  %v14224_v58 = vcombine.high %v12124_v24, %v12124_v24  ;;  %v2902_v1 = vcombine.high %v12258_v36, %v12258_v36 }
 0x268   :  { %14223 = vst [vmem:[#allocation70_spill] sm:$0xff] %v12359_v5  ;;  %v12369_v20 = vmax.f32 %v3601_v50, %v3602_v21  ;;  %v14226_v6 = vrot.slane %v12028_v43, 2  ;;  %v3364_v40 = vrot.slane %v12042_v60, 1  ;;  %v3830_v23 = vsel %vm14092_vm15, %v12359_v5, %v3829_v34 }
 0x269   :  { %v12367_v41 = vrot.slane %v14224_v58, %v11829_v51  ;;  %v3644_v26 = vrot.slane %v3643_v18, 1  ;;  %v14227_v3 = vrot.slane %v12033_v38, 2  ;;  %v3406_v50 = vrot.slane %v12056_v12, 1 }
 0x26a   :  { %14225 = vst [vmem:[#allocation71_spill] sm:$0xff] %v12369_v20  ;;  %v3356_v30 = vmax.f32 %v12028_v43, %v14226_v6  ;;  %v3831_v36 = vsel %vm14091_vm1, %v12369_v20, %v3830_v23  ;;  %v12388_v43 = vmax.f32 %v12042_v60, %v3364_v40  ;;  %v3439_v21 = vrot.slane %v12060_v15, 2 }
 0x26b   :  { %v3398_v24 = vmax.f32 %v12033_v38, %v14227_v3  ;;  %v12391_v39 = vmax.f32 %v3643_v18, %v3644_v26  ;;  %v12394_v58 = vmax.f32 %v12056_v12, %v3406_v50  ;;  %v14231_v38 = vrot.slane %v12062_v53, 2  ;;  %v12399_v3 = vpop.f32.mrf.mxu0 }
 0x26c   :  { %v3357_v54 = vrot.slane %v3356_v30, 1  ;;  %14228 = vst [vmem:[#allocation72_spill] sm:$0xff] %v12388_v43  ;;  %v3440_v23 = vmax.f32 %v12060_v15, %v3439_v21  ;;  %v14233_v60 = vrot.slane %v12054_v47, 4  ;;  %v3488_v18 = vrot.slane %v12088_v33, 2 }
 0x26d   :  { %14229 = vst [vmem:[#allocation73_spill] sm:$0xff] %v12391_v39  ;;  %v3399_v34 = vrot.slane %v3398_v24, 1  ;;  %14230 = vst [vmem:[#allocation74_spill] sm:$0xff] %v12394_v58  ;;  %v3447_v6 = vmax.f32 %v12062_v53, %v14231_v38  ;;  %v3832_v12 = vsel %vm14090_vm3, %v12391_v39, %v3831_v36  ;;  %v14235_v53 = vcombine.high %v12145_v25, %v12145_v25  ;;  %v12425_v11 = vpop.f32.mrf.mxu0 }
 0x26e   :  { %v12401_v28 = vmax.f32 %v3356_v30, %v3357_v54  ;;  %v3480_v40 = vmax.f32 %v12054_v47, %v14233_v60  ;;  %v12416_v54 = vpop.f32.mrf.mxu1  ;;  %v10168_v15 = vpack.i.bf16 %v3832_v12, %v3804_v14  ;;  %v3441_v21 = vrot.slane %v3440_v23, 1 }
 0x26f   :  { %v12410_v26 = vmax.f32 %v3398_v24, %v3399_v34  ;;  %v3448_v50 = vrot.slane %v3447_v6, 1  ;;  %v3520_v30 = vsel %vm168_vm0, %v14235_v53, -inf  ;;  %v3489_v47 = vmax.f32 %v12088_v33, %v3488_v18 }
 0x270   :  { %14232 = vst [vmem:[#allocation75_spill] sm:$0xff] %v12401_v28  ;;  %v3481_v38 = vrot.slane %v3480_v40, 2  ;;  %v3521_v35 = vrot.slane %v3520_v30, 4  ;;  %v14237_v36 = vrot.slane %v12169_v63, 4  ;;  %v3562_v34 = vsel %vm168_vm0, %v2852_v32, -inf  ;;  %10169 = vrot.lane.b32.xlu1 %v10168_v15, %s11501_s30 }
 0x271   :  { %14234 = vst [vmem:[#allocation76_spill] sm:$0xff] %v12410_v26  ;;  %v12419_v60 = vmax.f32 %v3447_v6, %v3448_v50  ;;  %v12428_v25 = vmax.f32 %v3440_v23, %v3441_v21  ;;  %v3490_v12 = vrot.slane %v3489_v47, 1  ;;  %v3563_v53 = vrot.slane %v3562_v34, 4  ;;  %v12433_v50 = vpop.f32.mrf.mxu1 }
 0x272   :  { %v3529_v24 = vmax.f32 %v12169_v63, %v14237_v36  ;;  %v3482_v14 = vmax.f32 %v3480_v40, %v3481_v38  ;;  %v3522_v13 = vmax.f32 %v3520_v30, %v3521_v35  ;;  %v3569_v6 = vsel %vm168_vm0, %v12160_v44, -inf  ;;  %v12439_v35 = vpop.f32.mrf.mxu0 }
 0x273   :  { %14236 = vst [vmem:[#allocation77_spill] sm:$0xff] %v12419_v60  ;;  %14238 = vst [vmem:[#allocation78_spill] sm:$0xff] %v12428_v25  ;;  %v3604_v18 = vsel %vm168_vm0, %v2877_v8, -inf  ;;  %v12435_v32 = vmax.f32 %v3489_v47, %v3490_v12  ;;  %v3564_v36 = vmax.f32 %v3562_v34, %v3563_v53  ;;  %v3570_v2 = vrot.slane %v3569_v6, 4  ;;  %v12444_v34 = vpop.f32.mrf.mxu1 }
 0x274   :  { %v3530_v33 = vrot.slane %v3529_v24, 2  ;;  %v3483_v63 = vrot.slane %v3482_v14, 1  ;;  %v3523_v15 = vrot.slane %v3522_v13, 2  ;;  %v3605_v21 = vrot.slane %v3604_v18, 4 }
 0x275   :  { %14239 = vst [vmem:[#allocation79_spill] sm:$0xff] %v12435_v32  ;;  %v3611_v40 = vsel %vm168_vm0, %v12347_v42, -inf  ;;  %v3565_v38 = vrot.slane %v3564_v36, 2  ;;  %v3571_v19 = vmax.f32 %v3569_v6, %v3570_v2  ;;  %v3646_v47 = vsel %vm168_vm0, %v2902_v1, -inf  ;;  %v12450_v2 = vpop.f32.mrf.mxu0 }
 0x276   :  { %v3531_v23 = vmax.f32 %v3529_v24, %v3530_v33  ;;  %v12441_v30 = vmax.f32 %v3482_v14, %v3483_v63  ;;  %v3612_v8 = vrot.slane %v3611_v40, 4  ;;  %v3524_v22 = vmax.f32 %v3522_v13, %v3523_v15 }
 0x277   :  { %v3606_v39 = vmax.f32 %v3604_v18, %v3605_v21  ;;  %v3566_v12 = vmax.f32 %v3564_v36, %v3565_v38  ;;  %v3572_v24 = vrot.slane %v3571_v19, 2  ;;  %v3647_v33 = vrot.slane %v3646_v47, 4 }
 0x278   :  { %14240 = vst [vmem:[#allocation80_spill] sm:$0xff] %v12441_v30  ;;  %v3532_v16 = vrot.slane %v3531_v23, 1  ;;  %v3613_v53 = vmax.f32 %v3611_v40, %v3612_v8  ;;  %v3525_v20 = vrot.slane %v3524_v22, 1  ;;  %v3653_v14 = vsel %vm168_vm0, %v12367_v41, -inf }
 0x279   :  { %v3607_v29 = vrot.slane %v3606_v39, 2  ;;  %v3567_v13 = vrot.slane %v3566_v12, 1  ;;  %v3573_v6 = vmax.f32 %v3571_v19, %v3572_v24  ;;  %v3648_v63 = vmax.f32 %v3646_v47, %v3647_v33  ;;  %v10496_v33 = vld [vmem:[#allocation13 + $0x164] ss:$8 sps:$4 sm:$0xff]  }
 0x27a   :  { %v12446_v5 = vmax.f32 %v3531_v23, %v3532_v16  ;;  %v3614_v18 = vrot.slane %v3613_v53, 2  ;;  %v12452_v1 = vmax.f32 %v3524_v22, %v3525_v20  ;;  %v3654_v36 = vrot.slane %v3653_v14, 4  ;;  %v12457_v16 = vpop.f32.mrf.mxu1  ;;  %v10491_v20 = vld [vmem:[#allocation13 + $0x170] ss:$8 sps:$4 sm:$0xff]  }
 0x27b   :  { %v3608_v15 = vmax.f32 %v3606_v39, %v3607_v29  ;;  %v3833_v21 = vsel %vm3777_vm11, %v12410_v26, %v12401_v28  ;;  %v12459_v23 = vmax.f32 %v3566_v12, %v3567_v13  ;;  %v3574_v40 = vrot.slane %v3573_v6, 1  ;;  %v2074_v29 = vpop.f32.mrf.mxu0  ;;  %v10493_v39 = vld [vmem:[#allocation13 + $0x174] ss:$8 sps:$4 sm:$0xff]  }
 0x27c   :  { %14241 = vst [vmem:[#allocation81_spill] sm:$0xff] %v12446_v5  ;;  %14242 = vst [vmem:[#allocation82_spill] sm:$0xff] %v12452_v1  ;;  %v3615_v38 = vmax.f32 %v3613_v53, %v3614_v18  ;;  %v3649_v8 = vrot.slane %v3648_v63, 2  ;;  %v3655_v7 = vmax.f32 %v3653_v14, %v3654_v36  ;;  %v3834_v19 = vsel %vm3779_vm12, %v12428_v25, %v3833_v21  ;;  %v2129_v21 = vpop.f32.mrf.mxu1 }
 0x27d   :  { %14243 = vst [vmem:[#allocation83_spill] sm:$0xff] %v12459_v23  ;;  %v3609_v10 = vrot.slane %v3608_v15, 1  ;;  %v3840_v22 = vsel %vm3777_vm11, %v12394_v58, %v12388_v43  ;;  %v12466_v47 = vmax.f32 %v3573_v6, %v3574_v40  ;;  %v3835_v53 = vsel %vm14093_vm14, %v12441_v30, %v3834_v19  ;;  %5156 = vmatprep.subr.bf16.mxu0 %v10493_v39  ;;  %v10497_v58 = vld [vmem:[#allocation13 + $0x70] ss:$8 sps:$4 sm:$0xff]   ;;  %v10499_v6 = vld [vmem:[#allocation13 + $0x74] ss:$8 sps:$4 sm:$0xff]   ;;  %v2076_v39 = vpop.f32.mrf.mxu0 }
 0x27e   :  { %v3616_v24 = vrot.slane %v3615_v38, 1  ;;  %v3650_v12 = vmax.f32 %v3648_v63, %v3649_v8  ;;  %v3656_v14 = vrot.slane %v3655_v7, 2  ;;  %v3836_v18 = vsel %vm317_vm5, %v12452_v1, %v3835_v53  ;;  %5157 = vmatpush1.bf16.msra.mxu0 %v10491_v20  ;;  %5367 = vmatprep.subr.bf16.mxu1 %v10499_v6 }
 0x27f   :  { %14244 = vst [vmem:[#allocation84_spill] sm:$0xff] %v12466_v47  ;;  %v12470_v13 = vmax.f32 %v3608_v15, %v3609_v10  ;;  %v3841_v36 = vsel %vm3779_vm12, %v12419_v60, %v3840_v22  ;;  %v3837_v8 = vsel %vm14092_vm15, %v12459_v23, %v3836_v18  ;;  %v10494_v15 = vld [vmem:[#allocation13 + $0x160] ss:$8 sps:$4 sm:$0xff]   ;;  %5158 = vmatprep.subr.bf16.mxu0 %v10496_v33  ;;  %v2156_v20 = vsub.s32 4, %v11800_v4 }
 0x280   :  { %v12476_v40 = vmax.f32 %v3615_v38, %v3616_v24  ;;  %v3651_v63 = vrot.slane %v3650_v12, 1  ;;  %v3842_v10 = vsel %vm14093_vm14, %v12435_v32, %v3841_v36  ;;  %v3657_v19 = vmax.f32 %v3655_v7, %v3656_v14  ;;  %v10502_v24 = vld [vmem:[#allocation13 + $0x154] ss:$8 sps:$4 sm:$0xff]   ;;  %v10505_v14 = vld [vmem:[#allocation13 + $0x64] ss:$8 sps:$4 sm:$0xff]   ;;  %5368 = vmatpush1.bf16.msra.mxu1 %v10497_v58 }
 0x281   :  { %14245 = vst [vmem:[#allocation85_spill] sm:$0xff] %v12470_v13  ;;  %v3838_v53 = vsel %vm14091_vm1, %v12470_v13, %v3837_v8  ;;  %v3843_v22 = vsel %vm317_vm5, %v12446_v5, %v3842_v10  ;;  %v2118_v38 = vadd.f32 %v12383_v0, %v12399_v3  ;;  %v2120_v7 = vadd.f32 %v12416_v54, %v12425_v11  ;;  %v10503_v33 = vld [vmem:[#allocation13 + $0x60] ss:$8 sps:$4 sm:$0xff]   ;;  %v11243_v10 = vld [vmem:[#allocation11] sm:$0x3f] }
 0x282   :  { %14246 = vst [vmem:[#allocation86_spill] sm:$0xff] %v12476_v40  ;;  %v12488_v60 = vmax.f32 %v3650_v12, %v3651_v63  ;;  %v3844_v18 = vsel %vm14092_vm15, %v12466_v47, %v3843_v22  ;;  %v3658_v36 = vrot.slane %v3657_v19, 1  ;;  %v2160_v0 = vsub.s32 5, %v11800_v4  ;;  %v2131_v12 = vpop.f32.mrf.mxu1  ;;  %v11244_v11 = vld [vmem:[%s13966_s4] sm:$0x3f]  ;;  %5159 = vmatpush1.bf16.msra.mxu0 %v10494_v15  ;;  %5369 = vmatprep.subr.bf16.mxu1 %v10505_v14 }
 0x283   :  { %v3845_v8 = vsel %vm14091_vm1, %v12476_v40, %v3844_v18  ;;  %v2122_v3 = vadd.f32 %v12433_v50, %v12439_v35  ;;  %v2157_v22 = vrot.slane %v11243_v10, %v2156_v20  ;;  %v2213_v54 = vrot.slane %v11244_v11, %v2156_v20  ;;  %v10500_v4 = vld [vmem:[#allocation13 + $0x150] ss:$8 sps:$4 sm:$0xff]   ;;  %v2078_v35 = vpop.f32.mrf.mxu0  ;;  %5160 = vmatprep.subr.bf16.mxu0 %v10502_v24  ;;  %v10511_v20 = vld [vmem:[#allocation13 + $0x54] ss:$8 sps:$4 sm:$0xff]   ;;  %v10517_v24 = vld [vmem:[#allocation13 + $0x44] ss:$8 sps:$4 sm:$0xff]  }
 0x284   :  { %14247 = vst [vmem:[#allocation87_spill] sm:$0xff] %v12488_v60  ;;  %v3839_v63 = vsel %vm14090_vm3, %v12488_v60, %v3838_v53  ;;  %v2124_v6 = vadd.f32 %v12444_v34, %v12450_v2  ;;  %v12507_v18 = vmax.f32 %v3657_v19, %v3658_v36  ;;  %v2161_v50 = vrot.slane %v11243_v10, %v2160_v0  ;;  %v10508_v53 = vld [vmem:[#allocation13 + $0x144] ss:$8 sps:$4 sm:$0xff]   ;;  %v2133_v36 = vpop.f32.mrf.mxu1 }
 0x285   :  { %v2217_v58 = vrot.slane %v11244_v11, %v2160_v0  ;;  %v2128_v40 = vadd.f32 %v12457_v16, %v2074_v29  ;;  %v2172_v47 = vmul.f32 %v2157_v22, %v2118_v38  ;;  %v2178_v5 = vmul.f32 %v2157_v22, %v2122_v3  ;;  %5370 = vmatpush1.bf16.msra.mxu1 %v10503_v33  ;;  %v10509_v0 = vld [vmem:[#allocation13 + $0x50] ss:$8 sps:$4 sm:$0xff]   ;;  %v10506_v38 = vld [vmem:[#allocation13 + $0x140] ss:$8 sps:$4 sm:$0xff]   ;;  %v2080_v3 = vpop.f32.mrf.mxu0 }
 0x286   :  { %14248 = vst [vmem:[#allocation88_spill] sm:$0xff] %v12507_v18  ;;  %v2130_v32 = vadd.f32 %v2129_v21, %v2076_v39  ;;  %v2132_v43 = vadd.f32 %v2131_v12, %v2078_v35  ;;  %v3846_v34 = vsel %vm14090_vm3, %v12507_v18, %v3845_v8  ;;  %v2173_v2 = vmul.f32 %v2161_v50, %v2120_v7  ;;  %v10514_v8 = vld [vmem:[#allocation13 + $0x134] ss:$8 sps:$4 sm:$0xff]   ;;  %v14249_v7 = vld [vmem:[#allocation39_spill] sm:$0xff] }
 0x287   :  { %v2179_v15 = vmul.f32 %v2161_v50, %v2124_v6  ;;  %v2184_v19 = vmul.f32 %v2157_v22, %v2128_v40  ;;  %v10173_v10 = vpack.i.bf16 %v3846_v34, %v3839_v63  ;;  %v2228_v11 = vadd.f32 %v2213_v54, %v2172_v47  ;;  %5161 = vmatpush1.bf16.msra.mxu0 %v10500_v4  ;;  %v14250_v40 = vld [vmem:[#allocation44_spill] sm:$0xff] }
 0x288   :  { %v2234_v16 = vadd.f32 %v2213_v54, %v2178_v5  ;;  %v2185_v29 = vmul.f32 %v2161_v50, %v2130_v32  ;;  %v2229_v21 = vadd.f32 %v2217_v58, %v2173_v2  ;;  %v2190_v12 = vmul.f32 %v2157_v22, %v2132_v43  ;;  %5162 = vmatprep.subr.bf16.mxu0 %v10508_v53  ;;  %v10515_v34 = vld [vmem:[#allocation13 + $0x40] ss:$8 sps:$4 sm:$0xff]  }
 0x289   :  { %v2235_v39 = vadd.f32 %v2217_v58, %v2179_v15  ;;  %v2240_v14 = vadd.f32 %v2213_v54, %v2184_v19  ;;  %10174 = vrot.lane.b32.xlu0 %v10173_v10, %s11501_s30  ;;  %v2134_v5 = vadd.f32 %v2133_v36, %v2080_v3  ;;  %5371 = vmatprep.subr.bf16.mxu1 %v10511_v20  ;;  %v2252_v32 = vmax.f32 %v2228_v11, 0.0  ;;  %v10512_v15 = vld [vmem:[#allocation13 + $0x130] ss:$8 sps:$4 sm:$0xff]   ;;  %v10523_v19 = vld [vmem:[#allocation13 + $0x34] ss:$8 sps:$4 sm:$0xff]  }
 0x28a   :  { %v2241_v47 = vadd.f32 %v2217_v58, %v2185_v29  ;;  %v2253_v63 = vmax.f32 %v2229_v21, 0.0  ;;  %v2258_v4 = vmax.f32 %v2234_v16, 0.0  ;;  %5372 = vmatpush1.bf16.msra.mxu1 %v10509_v0  ;;  %v12516_v22 = vadd.f32 %v2213_v54, %v2190_v12  ;;  %v10520_v20 = vld [vmem:[#allocation13 + $0x124] ss:$8 sps:$4 sm:$0xff]  }
 0x28b   :  { %v2259_v35 = vmax.f32 %v2235_v39, 0.0  ;;  %v2264_v2 = vmax.f32 %v2240_v14, 0.0  ;;  %v2191_v53 = vmul.f32 %v2161_v50, %v2134_v5  ;;  %5163 = vmatpush1.bf16.msra.mxu0 %v10506_v38  ;;  %5373 = vmatprep.subr.bf16.mxu1 %v10517_v24  ;;  %v10521_v39 = vld [vmem:[#allocation13 + $0x30] ss:$8 sps:$4 sm:$0xff]  }
 0x28c   :  { %v2265_v43 = vmax.f32 %v2241_v47, 0.0  ;;  %v2332_v33 = vcombine.low %v2252_v32, %v2253_v63  ;;  %v2333_v10 = vcombine.high %v2252_v32, %v2253_v63  ;;  %5164 = vmatprep.subr.bf16.mxu0 %v10514_v8  ;;  %v10518_v8 = vld [vmem:[#allocation13 + $0x120] ss:$8 sps:$4 sm:$0xff]  }
 0x28d   :  { %v2386_v29 = vcombine.low %v2258_v4, %v2259_v35  ;;  %v2387_v36 = vcombine.high %v2258_v4, %v2259_v35  ;;  %v12518_v21 = vadd.f32 %v2217_v58, %v2191_v53  ;;  %v10526_v4 = vld [vmem:[#allocation13 + $0x114] ss:$8 sps:$4 sm:$0xff]  }
 0x28e   :  { %v2440_v11 = vcombine.low %v2264_v2, %v2265_v43  ;;  %v2441_v16 = vcombine.high %v2264_v2, %v2265_v43  ;;  %v2340_v54 = vrot.slane %v2332_v33, %v11829_v51  ;;  %v2347_v50 = vrot.slane %v2333_v10, %v11829_v51  ;;  %5374 = vmatpush1.bf16.msra.mxu1 %v10515_v34  ;;  %v10529_v33 = vld [vmem:[#allocation13 + $0x24] ss:$8 sps:$4 sm:$0xff]  }
 0x28f   :  { %v2394_v38 = vrot.slane %v2386_v29, %v11829_v51  ;;  %v12526_v24 = vrot.slane %v2387_v36, %v11829_v51  ;;  %5165 = vmatpush1.bf16.msra.mxu0 %v10512_v15  ;;  %5375 = vmatprep.subr.bf16.mxu1 %v10523_v19  ;;  %v10527_v29 = vld [vmem:[#allocation13 + $0x20] ss:$8 sps:$4 sm:$0xff]  }
 0x290   :  { %v12529_v14 = vrot.slane %v2440_v11, %v11829_v51  ;;  %v12532_v58 = vrot.slane %v2441_v16, %v11829_v51  ;;  %v2348_v47 = vcombine.high %v2340_v54, %v2340_v54  ;;  %v2349_v5 = vcombine.high %v2347_v50, %v2347_v50  ;;  %5166 = vmatprep.subr.bf16.mxu0 %v10520_v20 }
 0x291   :  { %v2535_v32 = vrot.slane %v2340_v54, %v11829_v51  ;;  %v2585_v63 = vrot.slane %v2347_v50, %v11829_v51  ;;  %v2402_v35 = vcombine.high %v2394_v38, %v2394_v38  ;;  %v12542_v2 = vrot.slane %v2394_v38, %v11829_v51  ;;  %v10524_v54 = vld [vmem:[#allocation13 + $0x110] ss:$8 sps:$4 sm:$0xff]   ;;  %v10535_v50 = vld [vmem:[#allocation13 + $0x14] ss:$8 sps:$4 sm:$0xff]  }
 0x292   :  { %v2560_v15 = vrot.slane %v2348_v47, %v11829_v51  ;;  %v2610_v10 = vrot.slane %v2349_v5, %v11829_v51  ;;  %5376 = vmatpush1.bf16.msra.mxu1 %v10521_v39  ;;  %v12554_v16 = vrot.slane %v12526_v24, %v11829_v51 }
 0x293   :  { %v2536_v53 = vcombine.high %v2535_v32, %v2535_v32  ;;  %v2586_v19 = vcombine.high %v2585_v63, %v2585_v63  ;;  %v3037_v36 = vsel %vm168_vm0, %v2535_v32, -inf  ;;  %v3121_v20 = vsel %vm168_vm0, %v2585_v63, -inf  ;;  %5167 = vmatpush1.bf16.msra.mxu0 %v10518_v8  ;;  %5377 = vmatprep.subr.bf16.mxu1 %v10529_v33  ;;  %v10532_v32 = vld [vmem:[#allocation13 + $0x104] ss:$8 sps:$4 sm:$0xff]   ;;  %v10533_v33 = vld [vmem:[#allocation13 + $0x10] ss:$8 sps:$4 sm:$0xff]  }
 0x294   :  { %v12550_v11 = vrot.slane %v2402_v35, %v11829_v51  ;;  %v2561_v38 = vcombine.high %v2560_v15, %v2560_v15  ;;  %v2611_v47 = vcombine.high %v2610_v10, %v2610_v10  ;;  %v3038_v5 = vrot.slane %v3037_v36, 4  ;;  %5168 = vmatprep.subr.bf16.mxu0 %v10526_v4  ;;  %v10530_v4 = vld [vmem:[#allocation13 + $0x100] ss:$8 sps:$4 sm:$0xff]  }
 0x295   :  { %v3044_v39 = vsel %vm168_vm0, %v2536_v53, -inf  ;;  %v3079_v63 = vsel %vm168_vm0, %v2560_v15, -inf  ;;  %v3122_v35 = vrot.slane %v3121_v20, 4  ;;  %v3128_v12 = vsel %vm168_vm0, %v2586_v19, -inf }
 0x296   :  { %v3045_v6 = vrot.slane %v3044_v39, 4  ;;  %v3039_v0 = vmax.f32 %v3037_v36, %v3038_v5  ;;  %v3080_v3 = vrot.slane %v3079_v63, 4  ;;  %v3086_v8 = vsel %vm168_vm0, %v2561_v38, -inf  ;;  %5378 = vmatpush1.bf16.msra.mxu1 %v10527_v29 }
 0x297   :  { %v3129_v43 = vrot.slane %v3128_v12, 4  ;;  %v3087_v18 = vrot.slane %v3086_v8, 4  ;;  %v3123_v60 = vmax.f32 %v3121_v20, %v3122_v35  ;;  %v3163_v53 = vsel %vm168_vm0, %v2610_v10, -inf  ;;  %5169 = vmatpush1.bf16.msra.mxu0 %v10524_v54  ;;  %5379 = vmatprep.subr.bf16.mxu1 %v10535_v50 }
 0x298   :  { %v3046_v34 = vmax.f32 %v3044_v39, %v3045_v6  ;;  %v3040_v13 = vrot.slane %v3039_v0, 2  ;;  %v3081_v15 = vmax.f32 %v3079_v63, %v3080_v3  ;;  %v3164_v1 = vrot.slane %v3163_v53, 4  ;;  %5170 = vmatprep.subr.bf16.mxu0 %v10532_v32 }
 0x299   :  { %v3130_v23 = vmax.f32 %v3128_v12, %v3129_v43  ;;  %v3088_v36 = vmax.f32 %v3086_v8, %v3087_v18  ;;  %v3124_v5 = vrot.slane %v3123_v60, 2  ;;  %v3170_v38 = vsel %vm168_vm0, %v2611_v47, -inf }
 0x29a   :  { %v3047_v19 = vrot.slane %v3046_v34, 2  ;;  %v3041_v29 = vmax.f32 %v3039_v0, %v3040_v13  ;;  %v3082_v30 = vrot.slane %v3081_v15, 2  ;;  %v3165_v39 = vmax.f32 %v3163_v53, %v3164_v1  ;;  %5380 = vmatpush1.bf16.msra.mxu1 %v10533_v33 }
 0x29b   :  { %v3131_v6 = vrot.slane %v3130_v23, 2  ;;  %v3089_v10 = vrot.slane %v3088_v36, 2  ;;  %v3125_v54 = vmax.f32 %v3123_v60, %v3124_v5  ;;  %v3171_v35 = vrot.slane %v3170_v38, 4  ;;  %5171 = vmatpush1.bf16.msra.mxu0 %v10530_v4 }
 0x29c   :  { %v3048_v20 = vmax.f32 %v3046_v34, %v3047_v19  ;;  %v3042_v50 = vrot.slane %v3041_v29, 1  ;;  %v3083_v3 = vmax.f32 %v3081_v15, %v3082_v30  ;;  %v3166_v43 = vrot.slane %v3165_v39, 2 }
 0x29d   :  { %v3132_v12 = vmax.f32 %v3130_v23, %v3131_v6  ;;  %v3090_v63 = vmax.f32 %v3088_v36, %v3089_v10  ;;  %v3126_v18 = vrot.slane %v3125_v54, 1  ;;  %v3172_v8 = vmax.f32 %v3170_v38, %v3171_v35 }
 0x29e   :  { %v3049_v32 = vrot.slane %v3048_v20, 1  ;;  %v3084_v25 = vrot.slane %v3083_v3, 1  ;;  %v12562_v13 = vmax.f32 %v3165_v39, %v3166_v43  ;;  %v2636_v1 = vcombine.high %v12542_v2, %v12542_v2 }
 0x29f   :  { %v3133_v47 = vrot.slane %v3132_v12, 1  ;;  %v12566_v0 = vmax.f32 %v3041_v29, %v3042_v50  ;;  %v3091_v34 = vrot.slane %v3090_v63, 1  ;;  %v12574_v33 = vmax.f32 %v3125_v54, %v3126_v18 }
 0x2a0   :  { %v12568_v60 = vmax.f32 %v3048_v20, %v3049_v32  ;;  %v12572_v23 = vmax.f32 %v3083_v3, %v3084_v25  ;;  %v3173_v53 = vrot.slane %v3172_v8, 2  ;;  %v2661_v4 = vcombine.high %v12550_v11, %v12550_v11 }
 0x2a1   :  { %14251 = vst [vmem:[#allocation39_spill] sm:$0xff] %v12566_v0  ;;  %14254 = vst [vmem:[#allocation90_spill] sm:$0xff] %v12574_v33  ;;  %v12578_v15 = vmax.f32 %v3132_v12, %v3133_v47  ;;  %v2686_v36 = vcombine.high %v12554_v16, %v12554_v16  ;;  %v14256_v5 = vcombine.high %v12526_v24, %v12526_v24  ;;  %v3205_v29 = vsel %vm168_vm0, %v12542_v2, -inf }
 0x2a2   :  { %14252 = vst [vmem:[#allocation44_spill] sm:$0xff] %v12568_v60  ;;  %14253 = vst [vmem:[#allocation89_spill] sm:$0xff] %v12572_v23  ;;  %v12589_v25 = vmax.f32 %v3090_v63, %v3091_v34  ;;  %v3212_v6 = vsel %vm168_vm0, %v2636_v1, -inf  ;;  %v3247_v39 = vsel %vm168_vm0, %v12550_v11, -inf  ;;  %v3206_v20 = vrot.slane %v3205_v29, 4 }
 0x2a3   :  { %14255 = vst [vmem:[#allocation91_spill] sm:$0xff] %v12578_v15  ;;  %v12587_v38 = vrot.slane %v14256_v5, %v11829_v51  ;;  %v3213_v10 = vrot.slane %v3212_v6, 4  ;;  %v3248_v54 = vrot.slane %v3247_v39, 4  ;;  %v12597_v35 = vsel %vm168_vm0, %v2661_v4, -inf  ;;  %v10539_v63 = vld [vmem:[#allocation13] ss:$8 sps:$4 sm:$0xff]  }
 0x2a4   :  { %14257 = vst [vmem:[#allocation92_spill] sm:$0xff] %v12589_v25  ;;  %v12599_v50 = vmax.f32 %v3172_v8, %v3173_v53  ;;  %v3289_v24 = vsel %vm168_vm0, %v12554_v16, -inf  ;;  %v12604_v3 = vsel %vm168_vm0, %v2686_v36, -inf  ;;  %v2456_v2 = vcombine.high %v12529_v14, %v12529_v14 }
 0x2a5   :  { %v3207_v12 = vmax.f32 %v3205_v29, %v3206_v20  ;;  %v12610_v43 = vmax.f32 %v3212_v6, %v3213_v10  ;;  %v3290_v32 = vrot.slane %v3289_v24, 4  ;;  %v2457_v18 = vcombine.high %v12532_v58, %v12532_v58 }
 0x2a6   :  { %v2735_v16 = vrot.slane %v12529_v14, %v11829_v51  ;;  %v2760_v8 = vrot.slane %v2456_v2, %v11829_v51  ;;  %v12618_v1 = vmax.f32 %v3247_v39, %v3248_v54  ;;  %v2785_v53 = vrot.slane %v12532_v58, %v11829_v51  ;;  %v10536_v2 = vld [vmem:[#allocation13 + $0x1f0] ss:$8 sps:$4 sm:$0xff]   ;;  %v10538_v39 = vld [vmem:[#allocation13 + $0x1f4] ss:$8 sps:$4 sm:$0xff]  }
 0x2a7   :  { %v3208_v47 = vrot.slane %v3207_v12, 2  ;;  %v2810_v5 = vrot.slane %v2457_v18, %v11829_v51  ;;  %v3215_v6 = vrot.slane %v12610_v43, 2  ;;  %v12626_v20 = vmax.f32 %v3289_v24, %v3290_v32  ;;  %5172 = vmatprep.subr.bf16.mxu0 %v10538_v39  ;;  %v10541_v24 = vld [vmem:[#allocation13 + $0x4] ss:$8 sps:$4 sm:$0xff]  }
 0x2a8   :  { %v2736_v4 = vcombine.high %v2735_v16, %v2735_v16  ;;  %v2761_v36 = vcombine.high %v2760_v8, %v2760_v8  ;;  %v3373_v29 = vsel %vm168_vm0, %v2735_v16, -inf  ;;  %v2786_v14 = vcombine.high %v2785_v53, %v2785_v53  ;;  %5173 = vmatpush2.bf16.msra.mxu0 %v10536_v2  ;;  %5381 = vmatprep.subr.bf16.mxu1 %v10541_v24  ;;  %v10550_v2 = vld [vmem:[#allocation13 + $0x1d4] ss:$8 sps:$4 sm:$0xff]  }
 0x2a9   :  { %v3374_v10 = vrot.slane %v3373_v29, 4  ;;  %v2811_v54 = vcombine.high %v2810_v5, %v2810_v5  ;;  %v3415_v34 = vsel %vm168_vm0, %v2760_v8, -inf  ;;  %v12631_v30 = vmax.f32 %v3207_v12, %v3208_v47  ;;  %v10544_v12 = vld [vmem:[#allocation13 + $0x1e4] ss:$8 sps:$4 sm:$0xff]   ;;  %v10545_v47 = vld [vmem:[#allocation13 + $0xf0] ss:$8 sps:$4 sm:$0xff]   ;;  %5382 = vmatpush1.bf16.msra.mxu1 %v10539_v63 }
 0x2aa   :  { %v3380_v11 = vsel %vm168_vm0, %v2736_v4, -inf  ;;  %v3422_v58 = vsel %vm168_vm0, %v2761_v36, -inf  ;;  %v3416_v19 = vrot.slane %v3415_v34, 4  ;;  %v3457_v26 = vsel %vm168_vm0, %v2785_v53, -inf  ;;  %v10542_v4 = vld [vmem:[#allocation13 + $0x1e0] ss:$8 sps:$4 sm:$0xff]   ;;  %5174 = vmatprep.subr.bf16.mxu0 %v10544_v12 }
 0x2ab   :  { %v3375_v18 = vmax.f32 %v3373_v29, %v3374_v10  ;;  %v3381_v16 = vrot.slane %v3380_v11, 4  ;;  %v3423_v32 = vrot.slane %v3422_v58, 4  ;;  %v3464_v62 = vsel %vm168_vm0, %v2786_v14, -inf  ;;  %v10547_v53 = vld [vmem:[#allocation13 + $0xf4] ss:$8 sps:$4 sm:$0xff]  }
 0x2ac   :  { %v3499_v28 = vsel %vm168_vm0, %v2810_v5, -inf  ;;  %v3417_v36 = vmax.f32 %v3415_v34, %v3416_v19  ;;  %v3458_v59 = vrot.slane %v3457_v26, 4  ;;  %v3465_v10 = vrot.slane %v3464_v62, 4  ;;  %5383 = vmatprep.subr.bf16.mxu1 %v10547_v53  ;;  %5175 = vmatpush2.bf16.msra.mxu0 %v10542_v4  ;;  %v10556_v63 = vld [vmem:[#allocation13 + $0x1c4] ss:$8 sps:$4 sm:$0xff]  }
 0x2ad   :  { %v3376_v8 = vrot.slane %v3375_v18, 2  ;;  %v3382_v46 = vmax.f32 %v3380_v11, %v3381_v16  ;;  %v3424_v29 = vmax.f32 %v3422_v58, %v3423_v32  ;;  %v3500_v39 = vrot.slane %v3499_v28, 4  ;;  %v10548_v16 = vld [vmem:[#allocation13 + $0x1d0] ss:$8 sps:$4 sm:$0xff]   ;;  %v10553_v58 = vld [vmem:[#allocation13 + $0xe4] ss:$8 sps:$4 sm:$0xff]   ;;  %5176 = vmatprep.subr.bf16.mxu0 %v10550_v2  ;;  %5384 = vmatpush2.bf16.msra.mxu1 %v10545_v47 }
 0x2ae   :  { %v3506_v9 = vsel %vm168_vm0, %v2811_v54, -inf  ;;  %v3418_v37 = vrot.slane %v3417_v36, 2  ;;  %v3459_v5 = vmax.f32 %v3457_v26, %v3458_v59  ;;  %v3466_v11 = vmax.f32 %v3464_v62, %v3465_v10  ;;  %v10551_v26 = vld [vmem:[#allocation13 + $0xe0] ss:$8 sps:$4 sm:$0xff]   ;;  %5385 = vmatprep.subr.bf16.mxu1 %v10553_v58  ;;  %v10559_v10 = vld [vmem:[#allocation13 + $0xd4] ss:$8 sps:$4 sm:$0xff]  }
 0x2af   :  { %v3377_v31 = vmax.f32 %v3375_v18, %v3376_v8  ;;  %v3383_v14 = vrot.slane %v3382_v46, 2  ;;  %v3425_v57 = vrot.slane %v3424_v29, 2  ;;  %v3501_v19 = vmax.f32 %v3499_v28, %v3500_v39 }
 0x2b0   :  { %v3507_v34 = vrot.slane %v3506_v9, 4  ;;  %v3419_v17 = vmax.f32 %v3417_v36, %v3418_v37  ;;  %v3460_v54 = vrot.slane %v3459_v5, 2  ;;  %v3467_v8 = vrot.slane %v3466_v11, 2  ;;  %5177 = vmatpush2.bf16.msra.mxu0 %v10548_v16 }
 0x2b1   :  { %v3378_v24 = vrot.slane %v3377_v31, 1  ;;  %v3384_v32 = vmax.f32 %v3382_v46, %v3383_v14  ;;  %v3426_v18 = vmax.f32 %v3424_v29, %v3425_v57  ;;  %v3502_v55 = vrot.slane %v3501_v19, 2  ;;  %v10554_v57 = vld [vmem:[#allocation13 + $0x1c0] ss:$8 sps:$4 sm:$0xff]   ;;  %5178 = vmatprep.subr.bf16.mxu0 %v10556_v63  ;;  %v10562_v14 = vld [vmem:[#allocation13 + $0x1b4] ss:$8 sps:$4 sm:$0xff]   ;;  %5386 = vmatpush2.bf16.msra.mxu1 %v10551_v26 }
 0x2b2   :  { %v3508_v59 = vmax.f32 %v3506_v9, %v3507_v34  ;;  %v12638_v62 = vmax.f32 %v12610_v43, %v3215_v6  ;;  %v3420_v12 = vrot.slane %v3419_v17, 1  ;;  %v3461_v4 = vmax.f32 %v3459_v5, %v3460_v54  ;;  %v14266_v54 = vld [vmem:[#allocation31_spill] sm:$0xff]  ;;  %5387 = vmatprep.subr.bf16.mxu1 %v10559_v10 }
 0x2b3   :  { %v3385_v28 = vrot.slane %v3384_v32, 1  ;;  %v3427_v39 = vrot.slane %v3426_v18, 1  ;;  %v3468_v46 = vmax.f32 %v3466_v11, %v3467_v8  ;;  %v12640_v37 = vmax.f32 %v3501_v19, %v3502_v55  ;;  %v10557_v19 = vld [vmem:[#allocation13 + $0xd0] ss:$8 sps:$4 sm:$0xff]   ;;  %v14268_v8 = vld [vmem:[#allocation32_spill] sm:$0xff] }
 0x2b4   :  { %v3509_v36 = vrot.slane %v3508_v59, 2  ;;  %v12643_v9 = vmax.f32 %v3377_v31, %v3378_v24  ;;  %v3462_v47 = vrot.slane %v3461_v4, 1  ;;  %v14259_v43 = vmax.f32 %v12518_v21, 0.0  ;;  %v14271_v21 = vld [vmem:[#allocation34_spill] sm:$0xff]  ;;  %5179 = vmatpush2.bf16.msra.mxu0 %v10554_v57 }
 0x2b5   :  { %v14260_v6 = vmax.f32 %v12516_v22, 0.0  ;;  %v12649_v5 = vmax.f32 %v3384_v32, %v3385_v28  ;;  %v12651_v2 = vmax.f32 %v3419_v17, %v3420_v12  ;;  %v12653_v55 = vmax.f32 %v3426_v18, %v3427_v39  ;;  %v10565_v17 = vld [vmem:[#allocation13 + $0xc4] ss:$8 sps:$4 sm:$0xff]   ;;  %v14270_v12 = vld [vmem:[#allocation33_spill] sm:$0xff]  ;;  %5180 = vmatprep.subr.bf16.mxu0 %v10562_v14  ;;  %5388 = vmatpush2.bf16.msra.mxu1 %v10557_v19  ;;  %v10566_v19 = vld [vmem:[#allocation13 + $0x1a0] ss:$8 sps:$4 sm:$0xff]  }
 0x2b6   :  { %14258 = vst [vmem:[#allocation93_spill] sm:$0xff] %v12643_v9  ;;  %v3469_v11 = vrot.slane %v3468_v46, 1  ;;  %v14264_v34 = vmov %v14259_v43  ;;  %v14267_v63 = vrot.slane %v14266_v54, 2  ;;  %v12664_v18 = vmax.f32 %v3508_v59, %v3509_v36  ;;  %v10568_v36 = vld [vmem:[#allocation13 + $0x1a4] ss:$8 sps:$4 sm:$0xff]   ;;  %5389 = vmatprep.subr.bf16.mxu1 %v10565_v17 }
 0x2b7   :  { %v2494_v53 = vcombine.low %v14260_v6, %v14259_v43  ;;  %14261 = vst [vmem:[#allocation94_spill] sm:$0xff] %v12649_v5  ;;  %14262 = vst [vmem:[#allocation95_spill] sm:$0xff] %v12651_v2  ;;  %v14265_v16 = vmov %v14260_v6  ;;  %v14269_v26 = vrot.slane %v14268_v8, 2  ;;  %v3117_v39 = vrot.slane %v14270_v12, 2  ;;  %v10560_v6 = vld [vmem:[#allocation13 + $0x1b0] ss:$8 sps:$4 sm:$0xff]  }
 0x2b8   :  { %14263 = vst [vmem:[#allocation96_spill] sm:$0xff] %v12653_v55  ;;  %v2495_v58 = vcombine.high %v14265_v16, %v14264_v34  ;;  %v3034_v32 = vmax.f32 %v14266_v54, %v14267_v63  ;;  %v14272_v43 = vrot.slane %v14271_v21, 4  ;;  %v12677_v16 = vmax.f32 %v3468_v46, %v3469_v11  ;;  %5181 = vmatpush2.bf16.msra.mxu0 %v10560_v6  ;;  %v10574_v17 = vld [vmem:[#allocation13 + $0x194] ss:$8 sps:$4 sm:$0xff]  }
 0x2b9   :  { %v2502_v24 = vrot.slane %v2494_v53, %v11829_v51  ;;  %v3076_v28 = vmax.f32 %v14268_v8, %v14269_v26  ;;  %v12673_v53 = vmax.f32 %v3461_v4, %v3462_v47  ;;  %v3118_v8 = vmax.f32 %v14270_v12, %v3117_v39  ;;  %v10563_v26 = vld [vmem:[#allocation13 + $0xc0] ss:$8 sps:$4 sm:$0xff]   ;;  %5182 = vmatprep.subr.bf16.mxu0 %v10568_v36 }
 0x2ba   :  { %v3158_v22 = vmax.f32 %v14271_v21, %v14272_v43  ;;  %v2509_v34 = vrot.slane %v2495_v58, %v11829_v51  ;;  %14274 = vst [vmem:[#allocation32_spill] sm:$0xff] %v12677_v16  ;;  %v3035_v54 = vrot.slane %v3034_v32, 1  ;;  %v10571_v58 = vld [vmem:[#allocation13 + $0xb4] ss:$8 sps:$4 sm:$0xff]   ;;  %v14275_v46 = vrot.slane %v12562_v13, 1  ;;  %5390 = vmatpush2.bf16.msra.mxu1 %v10563_v26 }
 0x2bb   :  { %14273 = vst [vmem:[#allocation31_spill] sm:$0xff] %v12673_v53  ;;  %v2510_v10 = vcombine.high %v2502_v24, %v2502_v24  ;;  %v2835_v59 = vrot.slane %v2502_v24, %v11829_v51  ;;  %v3077_v63 = vrot.slane %v3076_v28, 1  ;;  %v3119_v14 = vrot.slane %v3118_v8, 1  ;;  %5391 = vmatprep.subr.bf16.mxu1 %v10571_v58 }
 0x2bc   :  { %v2511_v21 = vcombine.high %v2509_v34, %v2509_v34  ;;  %v2885_v47 = vrot.slane %v2509_v34, %v11829_v51  ;;  %v3159_v43 = vrot.slane %v3158_v22, 2  ;;  %v12686_v11 = vmax.f32 %v12562_v13, %v14275_v46  ;;  %v10569_v13 = vld [vmem:[#allocation13 + $0xb0] ss:$8 sps:$4 sm:$0xff]   ;;  %5183 = vmatpush2.bf16.msra.mxu0 %v10566_v19  ;;  %v10575_v19 = vld [vmem:[#allocation13 + $0xa0] ss:$8 sps:$4 sm:$0xff]  }
 0x2bd   :  { %v2836_v57 = vcombine.high %v2835_v59, %v2835_v59  ;;  %v2860_v4 = vrot.slane %v2510_v10, %v11829_v51  ;;  %v3541_v24 = vsel %vm168_vm0, %v2835_v59, -inf  ;;  %v12694_v45 = vmax.f32 %v3034_v32, %v3035_v54  ;;  %v10572_v32 = vld [vmem:[#allocation13 + $0x190] ss:$8 sps:$4 sm:$0xff]   ;;  %5184 = vmatprep.subr.bf16.mxu0 %v10574_v17 }
 0x2be   :  { %14276 = vst [vmem:[#allocation33_spill] sm:$0xff] %v12686_v11  ;;  %v2886_v39 = vcombine.high %v2885_v47, %v2885_v47  ;;  %v12689_v31 = vrot.slane %v2511_v21, %v11829_v51  ;;  %v3542_v10 = vrot.slane %v3541_v24, 4  ;;  %v3625_v29 = vsel %vm168_vm0, %v2885_v47, -inf  ;;  %v10577_v51 = vld [vmem:[#allocation13 + $0xa4] ss:$8 sps:$4 sm:$0xff]   ;;  %5392 = vmatpush2.bf16.msra.mxu1 %v10569_v13 }
 0x2bf   :  { %v2861_v12 = vcombine.high %v2860_v4, %v2860_v4  ;;  %v3548_v34 = vsel %vm168_vm0, %v2836_v57, -inf  ;;  %v3583_v59 = vsel %vm168_vm0, %v2860_v4, -inf  ;;  %v12696_v49 = vmax.f32 %v3076_v28, %v3077_v63  ;;  %v10580_v63 = vld [vmem:[#allocation13 + $0x184] ss:$8 sps:$4 sm:$0xff]   ;;  %5393 = vmatprep.subr.bf16.mxu1 %v10577_v51 }
 0x2c0   :  { %v3543_v6 = vmax.f32 %v3541_v24, %v3542_v10  ;;  %v3549_v46 = vrot.slane %v3548_v34, 4  ;;  %v3584_v52 = vrot.slane %v3583_v59, 4  ;;  %v3626_v21 = vrot.slane %v3625_v29, 4  ;;  %5185 = vmatpush2.bf16.msra.mxu0 %v10572_v32 }
 0x2c1   :  { %v12699_v36 = vsel %vm168_vm0, %v2861_v12, -inf  ;;  %v12702_v57 = vsel %vm168_vm0, %v2886_v39, -inf  ;;  %v3160_v4 = vmax.f32 %v3158_v22, %v3159_v43  ;;  %v12708_v28 = vmax.f32 %v3118_v8, %v3119_v14  ;;  %v14277_v39 = vld [vmem:[#allocation35_spill] sm:$0xff]  ;;  %5186 = vmatprep.subr.bf16.mxu0 %v10580_v63 }
 0x2c2   :  { %v3544_v26 = vrot.slane %v3543_v6, 2  ;;  %v12706_v47 = vmax.f32 %v3548_v34, %v3549_v46  ;;  %v12710_v58 = vmax.f32 %v3583_v59, %v3584_v52  ;;  %v14278_v22 = vcombine.high %v14277_v39, %v14277_v39  ;;  %v10583_v52 = vld [vmem:[#allocation13 + $0x94] ss:$8 sps:$4 sm:$0xff]   ;;  %5394 = vmatpush2.bf16.msra.mxu1 %v10575_v19  ;;  %v10586_v63 = vld [vmem:[#allocation13 + $0x84] ss:$8 sps:$4 sm:$0xff]  }
 0x2c3   :  { %v3161_v12 = vrot.slane %v3160_v4, 1  ;;  %v12719_v34 = vmax.f32 %v3625_v29, %v3626_v21  ;;  %v14279_v59 = vcombine.high %v11982_v61, %v11982_v61  ;;  %v3250_v39 = vrot.slane %v12618_v1, 2  ;;  %5395 = vmatprep.subr.bf16.mxu1 %v10583_v52 }
 0x2c4   :  { %v3198_v43 = vsel %vm168_vm0, %v14278_v22, -inf  ;;  %v12717_v10 = vmax.f32 %v3543_v6, %v3544_v26  ;;  %v3551_v17 = vrot.slane %v12706_v47, 2  ;;  %v14280_v13 = vcombine.high %v12232_v56, %v12232_v56  ;;  %v10578_v6 = vld [vmem:[#allocation13 + $0x180] ss:$8 sps:$4 sm:$0xff]  }
 0x2c5   :  { %v3199_v14 = vrot.slane %v3198_v43, 4  ;;  %v3240_v46 = vsel %vm168_vm0, %v14279_v59, -inf  ;;  %v12732_v21 = vmax.f32 %v3160_v4, %v3161_v12  ;;  %v14281_v26 = vrot.slane %v12631_v30, 1  ;;  %v10589_v59 = vld [vmem:[#allocation13 + $0x274] ss:$8 sps:$4 sm:$0xff]   ;;  %5187 = vmatpush2.bf16.msra.mxu0 %v10578_v6 }
 0x2c6   :  { %v3282_v29 = vsel %vm168_vm0, %v14280_v13, -inf  ;;  %v3241_v61 = vrot.slane %v3240_v46, 4  ;;  %v3251_v54 = vmax.f32 %v12618_v1, %v3250_v39  ;;  %v3292_v56 = vrot.slane %v12626_v20, 2  ;;  %v10581_v12 = vld [vmem:[#allocation13 + $0x90] ss:$8 sps:$4 sm:$0xff]   ;;  %5639 = vmatprep.subr.bf16.mxu0 %v10589_v59 }
 0x2c7   :  { %v3200_v51 = vmax.f32 %v3198_v43, %v3199_v14  ;;  %v12737_v22 = vmax.f32 %v12631_v30, %v14281_v26  ;;  %v3283_v8 = vrot.slane %v3282_v29, 4  ;;  %v14283_v32 = vcombine.high %v12242_v48, %v12242_v48  ;;  %5396 = vmatpush2.bf16.msra.mxu1 %v10581_v12 }
 0x2c8   :  { %v3242_v14 = vmax.f32 %v3240_v46, %v3241_v61  ;;  %v3331_v30 = vsel %vm168_vm0, %v12587_v38, -inf  ;;  %v3252_v26 = vrot.slane %v3251_v54, 1  ;;  %v3293_v39 = vmax.f32 %v12626_v20, %v3292_v56  ;;  %5397 = vmatprep.subr.bf16.mxu1 %v10586_v63 }
 0x2c9   :  { %14282 = vst [vmem:[#allocation34_spill] sm:$0xff] %v12737_v22  ;;  %v3324_v4 = vsel %vm168_vm0, %v14283_v32, -inf  ;;  %v3201_v43 = vrot.slane %v3200_v51, 2  ;;  %v3284_v1 = vmax.f32 %v3282_v29, %v3283_v8  ;;  %v3332_v24 = vrot.slane %v3331_v30, 4  ;;  %v10584_v8 = vld [vmem:[#allocation13 + $0x80] ss:$8 sps:$4 sm:$0xff]  }
 0x2ca   :  { %v3325_v13 = vrot.slane %v3324_v4, 4  ;;  %v3243_v48 = vrot.slane %v3242_v14, 2  ;;  %v3805_v19 = vsel %vm3777_vm11, %v12696_v49, %v12694_v45  ;;  %v12752_v61 = vmax.f32 %v3251_v54, %v3252_v26 }
 0x2cb   :  { %v3202_v27 = vmax.f32 %v3200_v51, %v3201_v43  ;;  %v3285_v52 = vrot.slane %v3284_v1, 2  ;;  %v3333_v32 = vmax.f32 %v3331_v30, %v3332_v24  ;;  %v3806_v6 = vsel %vm3779_vm12, %v12708_v28, %v3805_v19  ;;  %v10595_v51 = vld [vmem:[#allocation13 + $0x374] ss:$8 sps:$4 sm:$0xff]   ;;  %5398 = vmatpush2.bf16.msra.mxu1 %v10584_v8 }
 0x2cc   :  { %v3326_v16 = vmax.f32 %v3324_v4, %v3325_v13  ;;  %14284 = vst [vmem:[#allocation35_spill] sm:$0xff] %v12752_v61  ;;  %v3244_v20 = vmax.f32 %v3242_v14, %v3243_v48  ;;  %v3294_v43 = vrot.slane %v3293_v39, 1  ;;  %v3807_v59 = vsel %vm14093_vm14, %v12732_v21, %v3806_v6  ;;  %5889 = vmatprep.subr.bf16.mxu1 %v10595_v51 }
 0x2cd   :  { %v3203_v29 = vrot.slane %v3202_v27, 1  ;;  %v3286_v4 = vmax.f32 %v3284_v1, %v3285_v52  ;;  %v3334_v13 = vrot.slane %v3333_v32, 2  ;;  %v3812_v12 = vsel %vm3777_vm11, %v12572_v23, %v12566_v0  ;;  %v14372_v0 = vld [vmem:[#allocation60_spill] sm:$0xff] }
 0x2ce   :  { %v3327_v56 = vrot.slane %v3326_v16, 2  ;;  %v3245_v26 = vrot.slane %v3244_v20, 1  ;;  %v12764_v14 = vmax.f32 %v12706_v47, %v3551_v17  ;;  %v3813_v1 = vsel %vm3779_vm12, %v12574_v33, %v3812_v12  ;;  %v14371_v33 = vld [vmem:[#allocation59_spill] sm:$0xff] }
 0x2cf   :  { %v12758_v54 = vmax.f32 %v3202_v27, %v3203_v29  ;;  %v3287_v30 = vrot.slane %v3286_v4, 1  ;;  %v3335_v63 = vmax.f32 %v3333_v32, %v3334_v13  ;;  %v12776_v47 = vmax.f32 %v3293_v39, %v3294_v43 }
 0x2d0   :  { %v3328_v24 = vmax.f32 %v3326_v16, %v3327_v56  ;;  %v12768_v48 = vmax.f32 %v3244_v20, %v3245_v26  ;;  %v3814_v16 = vsel %vm14093_vm14, %v12686_v11, %v3813_v1  ;;  %v2853_v56 = vcombine.high %v12160_v44, %v12160_v44  ;;  %v14289_v26 = vld [vmem:[#allocation37_spill] sm:$0xff]  ;;  %v14291_v44 = vld [vmem:[#allocation38_spill] sm:$0xff] }
 0x2d1   :  { %v3808_v27 = vsel %vm317_vm5, %v12758_v54, %v3807_v59  ;;  %v12774_v52 = vmax.f32 %v3286_v4, %v3287_v30  ;;  %14285 = vst [vmem:[#allocation97_spill] sm:$0xff] %v12776_v47  ;;  %v3336_v17 = vrot.slane %v3335_v63, 1  ;;  %v3815_v32 = vsel %vm317_vm5, %v12737_v22, %v3814_v16  ;;  %v14287_v4 = vld [vmem:[#allocation36_spill] sm:$0xff] }
 0x2d2   :  { %v3329_v19 = vrot.slane %v3328_v24, 1  ;;  %v3809_v8 = vsel %vm14092_vm15, %v12768_v48, %v3808_v27  ;;  %v3816_v20 = vsel %vm14092_vm15, %v12752_v61, %v3815_v32  ;;  %v14288_v43 = vrot.slane %v14287_v4, 2 }
 0x2d3   :  { %v12788_v6 = vmax.f32 %v3335_v63, %v3336_v17  ;;  %v3810_v39 = vsel %vm14091_vm1, %v12774_v52, %v3809_v8  ;;  %v3817_v51 = vsel %vm14091_vm1, %v12776_v47, %v3816_v20  ;;  %v2878_v59 = vcombine.high %v12347_v42, %v12347_v42 }
 0x2d4   :  { %v12780_v29 = vmax.f32 %v3328_v24, %v3329_v19  ;;  %v3370_v13 = vmax.f32 %v14287_v4, %v14288_v43  ;;  %v14290_v24 = vrot.slane %v14289_v26, 2  ;;  %v3453_v30 = vrot.slane %v14291_v44, 2 }
 0x2d5   :  { %14286 = vst [vmem:[#allocation98_spill] sm:$0xff] %v12788_v6  ;;  %v14292_v63 = vrot.slane %v14249_v7, 4  ;;  %v3818_v27 = vsel %vm14090_vm3, %v12788_v6, %v3817_v51  ;;  %v14293_v42 = vcombine.high %v14250_v40, %v14250_v40  ;;  %v14294_v43 = vrot.slane %v12640_v37, 1 }
 0x2d6   :  { %v3412_v12 = vmax.f32 %v14289_v26, %v14290_v24  ;;  %v3811_v19 = vsel %vm14090_vm3, %v12780_v29, %v3810_v39  ;;  %v3371_v16 = vrot.slane %v3370_v13, 1  ;;  %v3454_v20 = vmax.f32 %v14291_v44, %v3453_v30 }
 0x2d7   :  { %v3494_v1 = vmax.f32 %v14249_v7, %v14292_v63  ;;  %v3534_v17 = vsel %vm168_vm0, %v14293_v42, -inf  ;;  %v10178_v32 = vpack.i.bf16 %v3818_v27, %v3811_v19  ;;  %v2903_v7 = vcombine.high %v12367_v41, %v12367_v41 }
 0x2d8   :  { %v3413_v8 = vrot.slane %v3412_v12, 1  ;;  %v12820_v39 = vmax.f32 %v12640_v37, %v14294_v43  ;;  %v3535_v51 = vrot.slane %v3534_v17, 4  ;;  %v3576_v26 = vsel %vm168_vm0, %v2853_v56, -inf }
 0x2d9   :  { %v3495_v4 = vrot.slane %v3494_v1, 2  ;;  %10179 = vrot.lane.b32.xlu1 %v10178_v32, %s11501_s30  ;;  %v12824_v40 = vmax.f32 %v3370_v13, %v3371_v16  ;;  %v3455_v24 = vrot.slane %v3454_v20, 1  ;;  %v3577_v19 = vrot.slane %v3576_v26, 4 }
 0x2da   :  { %14295 = vst [vmem:[#allocation36_spill] sm:$0xff] %v12820_v39  ;;  %v3536_v44 = vmax.f32 %v3534_v17, %v3535_v51  ;;  %v3586_v30 = vrot.slane %v12710_v58, 2  ;;  %v3618_v41 = vsel %vm168_vm0, %v2878_v59, -inf  ;;  %v3628_v27 = vrot.slane %v12719_v34, 2 }
 0x2db   :  { %v3496_v63 = vmax.f32 %v3494_v1, %v3495_v4  ;;  %v12829_v42 = vmax.f32 %v3412_v12, %v3413_v8  ;;  %v3578_v43 = vmax.f32 %v3576_v26, %v3577_v19  ;;  %v3619_v46 = vrot.slane %v3618_v41, 4 }
 0x2dc   :  { %v3537_v56 = vrot.slane %v3536_v44, 2  ;;  %v3587_v32 = vmax.f32 %v12710_v58, %v3586_v30  ;;  %v3629_v13 = vmax.f32 %v12719_v34, %v3628_v27  ;;  %v3660_v1 = vsel %vm168_vm0, %v2903_v7, -inf }
 0x2dd   :  { %v3497_v37 = vrot.slane %v3496_v63, 1  ;;  %v14296_v16 = vrot.slane %v12717_v10, 1  ;;  %v3579_v59 = vrot.slane %v3578_v43, 2  ;;  %v3620_v4 = vmax.f32 %v3618_v41, %v3619_v46 }
 0x2de   :  { %v3661_v51 = vrot.slane %v3660_v1, 4  ;;  %v12839_v12 = vmax.f32 %v3454_v20, %v3455_v24  ;;  %v3538_v8 = vmax.f32 %v3536_v44, %v3537_v56  ;;  %v3588_v26 = vrot.slane %v3587_v32, 1 }
 0x2df   :  { %v12837_v17 = vmax.f32 %v12717_v10, %v14296_v16  ;;  %v3667_v19 = vsel %vm168_vm0, %v12689_v31, -inf  ;;  %v3580_v58 = vmax.f32 %v3578_v43, %v3579_v59  ;;  %v3621_v30 = vrot.slane %v3620_v4, 2 }
 0x2e0   :  { %v3662_v34 = vmax.f32 %v3660_v1, %v3661_v51  ;;  %v3668_v27 = vrot.slane %v3667_v19, 4  ;;  %v12843_v7 = vmax.f32 %v3496_v63, %v3497_v37  ;;  %v3539_v6 = vrot.slane %v3538_v8, 1 }
 0x2e1   :  { %14297 = vst [vmem:[#allocation37_spill] sm:$0xff] %v12837_v17  ;;  %v3630_v47 = vrot.slane %v3629_v13, 1  ;;  %v3847_v10 = vsel %vm3777_vm11, %v12829_v42, %v12824_v40  ;;  %v3581_v46 = vrot.slane %v3580_v58, 1  ;;  %v3622_v20 = vmax.f32 %v3620_v4, %v3621_v30 }
 0x2e2   :  { %v3663_v24 = vrot.slane %v3662_v34, 2  ;;  %v3669_v44 = vmax.f32 %v3667_v19, %v3668_v27  ;;  %v12848_v41 = vmax.f32 %v3538_v8, %v3539_v6  ;;  %v12850_v56 = vmax.f32 %v3587_v32, %v3588_v26 }
 0x2e3   :  { %v3848_v43 = vsel %vm3779_vm12, %v12839_v12, %v3847_v10  ;;  %v3854_v63 = vsel %vm3777_vm11, %v12651_v2, %v12643_v9  ;;  %v12857_v37 = vmax.f32 %v3580_v58, %v3581_v46  ;;  %v3623_v1 = vrot.slane %v3622_v20, 1  ;;  %v14325_v2 = vld [vmem:[#allocation55_spill] sm:$0xff] }
 0x2e4   :  { %14298 = vst [vmem:[#allocation38_spill] sm:$0xff] %v12850_v56  ;;  %v3664_v16 = vmax.f32 %v3662_v34, %v3663_v24  ;;  %v3670_v59 = vrot.slane %v3669_v44, 2  ;;  %v12859_v51 = vmax.f32 %v3629_v13, %v3630_v47  ;;  %v3849_v6 = vsel %vm14093_vm14, %v12843_v7, %v3848_v43 }
 0x2e5   :  { %v3855_v32 = vsel %vm3779_vm12, %v12673_v53, %v3854_v63  ;;  %v3175_v4 = vrot.slane %v12599_v50, 1  ;;  %v12866_v8 = vmax.f32 %v3622_v20, %v3623_v1  ;;  %v3850_v58 = vsel %vm317_vm5, %v12848_v41, %v3849_v6 }
 0x2e6   :  { %14299 = vst [vmem:[#allocation99_spill] sm:$0xff] %v12859_v51  ;;  %v3665_v26 = vrot.slane %v3664_v16, 1  ;;  %v3671_v19 = vmax.f32 %v3669_v44, %v3670_v59  ;;  %v3851_v30 = vsel %vm14092_vm15, %v12857_v37, %v3850_v58  ;;  %v3856_v47 = vsel %vm14093_vm14, %v12820_v39, %v3855_v32 }
 0x2e7   :  { %v3217_v13 = vrot.slane %v12638_v62, 1  ;;  %v14300_v34 = vrot.slane %v12597_v35, 4  ;;  %v3852_v20 = vsel %vm14091_vm1, %v12866_v8, %v3851_v30  ;;  %v3857_v24 = vsel %vm317_vm5, %v12837_v17, %v3856_v47 }
 0x2e8   :  { %v12878_v10 = vmax.f32 %v3664_v16, %v3665_v26  ;;  %v3672_v46 = vrot.slane %v3671_v19, 1  ;;  %v3858_v44 = vsel %vm14092_vm15, %v12850_v56, %v3857_v24  ;;  %v14301_v63 = vrot.slane %v12604_v3, 4 }
 0x2e9   :  { %v3256_v27 = vmax.f32 %v12597_v35, %v14300_v34  ;;  %v14302_v35 = vcombine.high %v12587_v38, %v12587_v38  ;;  %v3859_v32 = vsel %vm14091_vm1, %v12859_v51, %v3858_v44  ;;  %v3511_v47 = vrot.slane %v12664_v18, 1 }
 0x2ea   :  { %v3298_v1 = vmax.f32 %v12604_v3, %v14301_v63  ;;  %v12893_v59 = vmax.f32 %v3671_v19, %v3672_v46  ;;  %v3853_v6 = vsel %vm14090_vm3, %v12878_v10, %v3852_v20  ;;  %v3553_v3 = vrot.slane %v12764_v14, 1 }
 0x2eb   :  { %v3257_v43 = vrot.slane %v3256_v27, 2  ;;  %v3338_v16 = vsel %vm168_vm0, %v14302_v35, -inf  ;;  %v14304_v19 = vrot.slane %v12699_v36, 4  ;;  %v14305_v20 = vrot.slane %v12702_v57, 4 }
 0x2ec   :  { %14303 = vst [vmem:[#allocation100_spill] sm:$0xff] %v12893_v59  ;;  %v3339_v26 = vrot.slane %v3338_v16, 4  ;;  %v3299_v30 = vrot.slane %v3298_v1, 2  ;;  %v3860_v38 = vsel %vm14090_vm3, %v12893_v59, %v3859_v32  ;;  %v12913_v35 = vmax.f32 %v12638_v62, %v3217_v13 }
 0x2ed   :  { %v3258_v58 = vmax.f32 %v3256_v27, %v3257_v43  ;;  %v3592_v46 = vmax.f32 %v12699_v36, %v14304_v19  ;;  %v3634_v24 = vmax.f32 %v12702_v57, %v14305_v20  ;;  %v10183_v44 = vpack.i.bf16 %v3860_v38, %v3853_v6 }
 0x2ee   :  { %v3340_v34 = vmax.f32 %v3338_v16, %v3339_v26  ;;  %v12910_v27 = vmax.f32 %v12599_v50, %v3175_v4  ;;  %v3300_v63 = vmax.f32 %v3298_v1, %v3299_v30  ;;  %14307 = vst [vmem:[#allocation102_spill] sm:$0xff] %v12913_v35  ;;  %v12917_v36 = vmax.f32 %v12664_v18, %v3511_v47  ;;  %v12929_v30 = vpop.permute.xlu0 %10164 }
 0x2ef   :  { %v3259_v43 = vrot.slane %v3258_v58, 1  ;;  %v3593_v32 = vrot.slane %v3592_v46, 2  ;;  %v3635_v16 = vrot.slane %v3634_v24, 2  ;;  %10184 = vrot.lane.b32.xlu0 %v10183_v44, %s11501_s30  ;;  %v12920_v26 = vmax.f32 %v12764_v14, %v3553_v3 }
 0x2f0   :  { %14306 = vst [vmem:[#allocation101_spill] sm:$0xff] %v12910_v27  ;;  %v3341_v51 = vrot.slane %v3340_v34, 2  ;;  %14308 = vst [vmem:[#allocation103_spill] sm:$0xff] %v12917_v36  ;;  %v14310_v50 = vcombine.high %v12689_v31, %v12689_v31  ;;  %v3819_v62 = vsel %vm3777_vm11, %v12589_v25, %v12568_v60  ;;  %v3301_v47 = vrot.slane %v3300_v63, 1  ;;  %v10629_v60 = vld [vmem:[#allocation13 + $0x310] ss:$8 sps:$4 sm:$0xff]  }
 0x2f1   :  { %14309 = vst [vmem:[#allocation104_spill] sm:$0xff] %v12920_v26  ;;  %v3594_v13 = vmax.f32 %v3592_v46, %v3593_v32  ;;  %v3636_v1 = vmax.f32 %v3634_v24, %v3635_v16  ;;  %v12931_v18 = vmax.f32 %v3258_v58, %v3259_v43  ;;  %v3820_v14 = vsel %vm3779_vm12, %v12578_v15, %v3819_v62  ;;  %v14345_v15 = vld [vmem:[#allocation70_spill] sm:$0xff] }
 0x2f2   :  { %v3674_v57 = vsel %vm168_vm0, %v14310_v50, -inf  ;;  %v3342_v4 = vmax.f32 %v3340_v34, %v3341_v51  ;;  %v3861_v31 = vsel %vm3777_vm11, %v12653_v55, %v12649_v5  ;;  %v3821_v51 = vsel %vm14093_vm14, %v12910_v27, %v3820_v14  ;;  %v14312_v34 = vld [vmem:[#allocation32_spill] sm:$0xff]  ;;  %v14324_v55 = vld [vmem:[#allocation53_spill] sm:$0xff]  ;;  %v14344_v27 = vld [vmem:[#allocation82_spill] sm:$0xff] }
 0x2f3   :  { %v3675_v6 = vrot.slane %v3674_v57, 4  ;;  %14311 = vst [vmem:[#allocation105_spill] sm:$0xff] %v12931_v18  ;;  %v3595_v3 = vrot.slane %v3594_v13, 1  ;;  %v3637_v38 = vrot.slane %v3636_v1, 1  ;;  %v3862_v46 = vsel %vm3779_vm12, %v14312_v34, %v3861_v31  ;;  %v14323_v34 = vld [vmem:[#allocation51_spill] sm:$0xff] }
 0x2f4   :  { %v10167_v58 = vunpack.i.h.bf16 %v12929_v30  ;;  %v14062_v20 = vunpack.i.l.bf16 %v12929_v30  ;;  %v3343_v24 = vrot.slane %v3342_v4, 1  ;;  %v3822_v32 = vsel %vm317_vm5, %v12913_v35, %v3821_v51 }
 0x2f5   :  { %v3676_v19 = vmax.f32 %v3674_v57, %v3675_v6  ;;  %v12944_v44 = vmax.f32 %v3594_v13, %v3595_v3  ;;  %v3863_v16 = vsel %vm14093_vm14, %v12917_v36, %v3862_v46  ;;  %v12953_v57 = vmax.f32 %v3300_v63, %v3301_v47  ;;  %v14322_v36 = vld [vmem:[#allocation49_spill] sm:$0xff] }
 0x2f6   :  { %v3893_v50 = vsel %vm14089_vm10, %v14062_v20, %v10167_v58  ;;  %v3823_v6 = vsel %vm14092_vm15, %v12931_v18, %v3822_v32  ;;  %v3864_v13 = vsel %vm317_vm5, %v12920_v26, %v3863_v16  ;;  %v12959_v14 = vmax.f32 %v3636_v1, %v3637_v38  ;;  %v12969_v20 = vpop.permute.xlu1 %10169  ;;  %v14320_v26 = vld [vmem:[#allocation45_spill] sm:$0xff] }
 0x2f7   :  { %14313 = vst [vmem:[#allocation106_spill] sm:$0xff] %v12944_v44  ;;  %v3677_v43 = vrot.slane %v3676_v19, 2  ;;  %14314 = vst [vmem:[#allocation107_spill] sm:$0xff] %v12953_v57  ;;  %v3865_v31 = vsel %vm14092_vm15, %v12944_v44, %v3864_v13  ;;  %v12963_v3 = vmax.f32 %v3342_v4, %v3343_v24  ;;  %v3824_v46 = vsel %vm14091_vm1, %v12953_v57, %v3823_v6  ;;  %v14318_v6 = vld [vmem:[#allocation40_spill] sm:$0xff]  ;;  %v14319_v44 = vld [vmem:[#allocation41_spill] sm:$0xff] }
 0x2f8   :  { %14315 = vst [vmem:[#allocation108_spill] sm:$0xff] %v12959_v14  ;;  %v3911_v63 = vrot.slane %v3893_v50, 1  ;;  %v3866_v47 = vsel %vm14091_vm1, %v12959_v14, %v3865_v31  ;;  %v3929_v32 = vrot.slane %v3893_v50, 4  ;;  %v3935_v38 = vrot.slane %v3893_v50, 5 }
 0x2f9   :  { %v3678_v62 = vmax.f32 %v3676_v19, %v3677_v43  ;;  %14316 = vst [vmem:[#allocation109_spill] sm:$0xff] %v12963_v3  ;;  %v3917_v19 = vrot.slane %v3893_v50, 2  ;;  %v3923_v43 = vrot.slane %v3893_v50, 3  ;;  %v3941_v16 = vrot.slane %v3893_v50, 6 }
 0x2fa   :  { %v3947_v13 = vrot.slane %v3893_v50, 7  ;;  %v3825_v4 = vsel %vm14090_vm3, %v12963_v3, %v3824_v46  ;;  %v4091_v59 = vmax.f32 %v14318_v6, %v3893_v50  ;;  %v4097_v31 = vmax.f32 %v14319_v44, %v3911_v63 }
 0x2fb   :  { %v3679_v51 = vrot.slane %v3678_v62, 1  ;;  %v14075_v14 = vunpack.i.l.bf16 %v12969_v20  ;;  %v4103_v17 = vmax.f32 %v14320_v26, %v3917_v19  ;;  %v4115_v39 = vmax.f32 %v14322_v36, %v3929_v32  ;;  %v14326_v36 = vld [vmem:[#allocation42_spill] sm:$0xff] }
 0x2fc   :  { %v4121_v53 = vmax.f32 %v14323_v34, %v3935_v38  ;;  %v4127_v46 = vmax.f32 %v14324_v55, %v3941_v16  ;;  %v4133_v5 = vmax.f32 %v14325_v2, %v3947_v13  ;;  %v14327_v34 = vld [vmem:[#allocation43_spill] sm:$0xff]  ;;  %v14328_v55 = vld [vmem:[#allocation46_spill] sm:$0xff]  ;;  %v14329_v2 = vld [vmem:[#allocation48_spill] sm:$0xff] }
 0x2fd   :  { %v12971_v1 = vmax.f32 %v3678_v62, %v3679_v51  ;;  %v14321_v62 = vld [vmem:[#allocation47_spill] sm:$0xff]  ;;  %v3894_v50 = vsel %vm14089_vm10, %v10167_v58, %v14075_v14  ;;  %v14331_v58 = vld [vmem:[#allocation52_spill] sm:$0xff] }
 0x2fe   :  { %v4109_v51 = vmax.f32 %v14321_v62, %v3923_v43  ;;  %v3912_v44 = vrot.slane %v3894_v50, 1  ;;  %v3918_v63 = vrot.slane %v3894_v50, 2  ;;  %v3930_v26 = vrot.slane %v3894_v50, 4 }
 0x2ff   :  { %14317 = vst [vmem:[#allocation110_spill] sm:$0xff] %v12971_v1  ;;  %v3867_v24 = vsel %vm14090_vm3, %v12971_v1, %v3866_v47  ;;  %v3924_v47 = vrot.slane %v3894_v50, 3  ;;  %v3936_v19 = vrot.slane %v3894_v50, 5  ;;  %v3942_v43 = vrot.slane %v3894_v50, 6  ;;  %v14333_v1 = vld [vmem:[#allocation56_spill] sm:$0xff] }
 0x300   :  { %v10188_v56 = vpack.i.bf16 %v3867_v24, %v3825_v4  ;;  %v3948_v4 = vrot.slane %v3894_v50, 7  ;;  %v4092_v32 = vmax.f32 %v14326_v36, %v3894_v50  ;;  %v4098_v38 = vmax.f32 %v14327_v34, %v3912_v44  ;;  %v14330_v24 = vld [vmem:[#allocation50_spill] sm:$0xff] }
 0x301   :  { %v4104_v16 = vmax.f32 %v14328_v55, %v3918_v63  ;;  %v4110_v13 = vmax.f32 %v14329_v2, %v3924_v47  ;;  %v4116_v6 = vmax.f32 %v14330_v24, %v3930_v26  ;;  %v4122_v62 = vmax.f32 %v14331_v58, %v3936_v19 }
 0x302   :  { %10189 = vrot.lane.b32.xlu1 %v10188_v56, %s11501_s30  ;;  %v14332_v56 = vld [vmem:[#allocation54_spill] sm:$0xff]  ;;  %v4134_v9 = vmax.f32 %v14333_v1, %v3948_v4  ;;  %v10097_v3 = vpack.c.bf16 %v4092_v32, %v4091_v59  ;;  %v10100_v57 = vpack.c.bf16 %v4098_v38, %v4097_v31  ;;  %v14083_v63 = vunpack.i.h.bf16 %v12969_v20 }
 0x303   :  { %v4128_v14 = vmax.f32 %v14332_v56, %v3942_v43  ;;  %v10103_v18 = vpack.c.bf16 %v4104_v16, %v4103_v17  ;;  %v10106_v61 = vpack.c.bf16 %v4110_v13, %v4109_v51  ;;  %v10109_v35 = vpack.c.bf16 %v4116_v6, %v4115_v39 }
 0x304   :  { %v10112_v50 = vpack.c.bf16 %v4122_v62, %v4121_v53  ;;  %v10118_v44 = vpack.c.bf16 %v4134_v9, %v4133_v5  ;;  %v4529_v34 = vunpack.c.l.b16 %v10100_v57  ;;  %v4523_v55 = vunpack.c.l.b16 %v10097_v3 }
 0x305   :  { %v10115_v36 = vpack.c.bf16 %v4128_v14, %v4127_v46  ;;  %v4535_v47 = vunpack.c.l.b16 %v10103_v18  ;;  %v4530_v26 = vunpack.c.h.b16 %v10100_v57  ;;  %v4541_v2 = vunpack.c.l.b16 %v10106_v61  ;;  %v13000_v57 = vpop.permute.xlu0 %10174 }
 0x306   :  { %v4547_v19 = vunpack.c.l.b16 %v10109_v35  ;;  %v4524_v24 = vunpack.c.h.b16 %v10097_v3  ;;  %v4536_v43 = vunpack.c.h.b16 %v10103_v18  ;;  %v4553_v58 = vunpack.c.l.b16 %v10112_v50 }
 0x307   :  { %v4559_v1 = vunpack.c.l.b16 %v10115_v36  ;;  %v4542_v59 = vunpack.c.h.b16 %v10106_v61  ;;  %v4548_v31 = vunpack.c.h.b16 %v10109_v35  ;;  %v4565_v17 = vunpack.c.l.b16 %v10118_v44 }
 0x308   :  { %v4619_v51 = vrot.slane %v4529_v34, 7  ;;  %v4554_v39 = vunpack.c.h.b16 %v10112_v50  ;;  %v4560_v53 = vunpack.c.h.b16 %v10115_v36  ;;  %v4566_v14 = vunpack.c.h.b16 %v10118_v44 }
 0x309   :  { %v4621_v9 = vrot.slane %v4535_v47, 6  ;;  %v4623_v46 = vrot.slane %v4541_v2, 5  ;;  %v4625_v4 = vrot.slane %v4547_v19, 4  ;;  %v4633_v32 = vrot.slane %v4530_v26, 7 }
 0x30a   :  { %v4620_v5 = vsel %vm3777_vm11, %v4619_v51, %v4523_v55  ;;  %v4627_v18 = vrot.slane %v4553_v58, 3  ;;  %v4629_v38 = vrot.slane %v4559_v1, 2  ;;  %v4635_v16 = vrot.slane %v4536_v43, 6 }
 0x30b   :  { %v4622_v3 = vsel %vm3779_vm12, %v4621_v9, %v4620_v5  ;;  %v4631_v35 = vrot.slane %v4565_v17, 1  ;;  %v4634_v13 = vsel %vm3777_vm11, %v4633_v32, %v4524_v24  ;;  %v4637_v6 = vrot.slane %v4542_v59, 5 }
 0x30c   :  { %v4624_v61 = vsel %vm14093_vm14, %v4623_v46, %v4622_v3  ;;  %v4636_v56 = vsel %vm3779_vm12, %v4635_v16, %v4634_v13  ;;  %v4639_v50 = vrot.slane %v4548_v31, 4  ;;  %v14084_v36 = vunpack.i.h.bf16 %v13000_v57  ;;  %v14335_v13 = vld [vmem:[#allocation61_spill] sm:$0xff] }
 0x30d   :  { %v4626_v62 = vsel %vm317_vm5, %v4625_v4, %v4624_v61  ;;  %v4638_v34 = vsel %vm14093_vm14, %v4637_v6, %v4636_v56  ;;  %v4641_v47 = vrot.slane %v4554_v39, 3  ;;  %v10176_v55 = vunpack.i.l.bf16 %v13000_v57 }
 0x30e   :  { %v4628_v44 = vsel %vm14092_vm15, %v4627_v18, %v4626_v62  ;;  %v4640_v2 = vsel %vm317_vm5, %v4639_v50, %v4638_v34  ;;  %v4643_v19 = vrot.slane %v4560_v53, 2  ;;  %v4645_v24 = vrot.slane %v4566_v14, 1  ;;  %v14336_v62 = vld [vmem:[#allocation75_spill] sm:$0xff]  ;;  %v14337_v50 = vld [vmem:[#allocation62_spill] sm:$0xff]  ;;  %v14338_v34 = vld [vmem:[#allocation76_spill] sm:$0xff] }
 0x30f   :  { %v4630_v26 = vsel %vm14091_vm1, %v4629_v38, %v4628_v44  ;;  %v4642_v58 = vsel %vm14092_vm15, %v4641_v47, %v4640_v2  ;;  %v3898_v1 = vsel %vm14089_vm10, %v14083_v63, %v10176_v55  ;;  %v3899_v59 = vsel %vm14089_vm10, %v10176_v55, %v14084_v36  ;;  %v14339_v55 = vld [vmem:[#allocation64_spill] sm:$0xff]  ;;  %v14340_v2 = vld [vmem:[#allocation78_spill] sm:$0xff]  ;;  %v14343_v36 = vld [vmem:[#allocation69_spill] sm:$0xff] }
 0x310   :  { %v13014_v43 = vsel %vm14090_vm3, %v4631_v35, %v4630_v26  ;;  %v4644_v31 = vsel %vm14091_vm1, %v4643_v19, %v4642_v58  ;;  %v3953_v17 = vrot.slane %v3898_v1, 1  ;;  %v3954_v51 = vrot.slane %v3899_v59, 1  ;;  %vm13052_vm1 = vmand %vm168_vm0, %vm151_vm2 }
 0x311   :  { %14334 = vst [vmem:[#allocation40_spill] sm:$0xff] %v13014_v43  ;;  %v3959_v39 = vrot.slane %v3898_v1, 2  ;;  %v13025_v53 = vsel %vm14090_vm3, %v4645_v24, %v4644_v31  ;;  %v3960_v14 = vrot.slane %v3899_v59, 2  ;;  %v3965_v9 = vrot.slane %v3898_v1, 3  ;;  %v14341_v24 = vld [vmem:[#allocation68_spill] sm:$0xff] }
 0x312   :  { %v3966_v5 = vrot.slane %v3899_v59, 3  ;;  %v13029_v46 = vpack.c.b16 %v13025_v53, %v13014_v43  ;;  %v3971_v4 = vrot.slane %v3898_v1, 4  ;;  %v3972_v32 = vrot.slane %v3899_v59, 4  ;;  %v14342_v31 = vld [vmem:[#allocation80_spill] sm:$0xff] }
 0x313   :  { %v3977_v3 = vrot.slane %v3898_v1, 5  ;;  %v3978_v18 = vrot.slane %v3899_v59, 5  ;;  %v3983_v38 = vrot.slane %v3898_v1, 6  ;;  %v3984_v16 = vrot.slane %v3899_v59, 6 }
 0x314   :  { %v3989_v61 = vrot.slane %v3898_v1, 7  ;;  %4799 = vst [vmem:[#allocation4 + $0x58] sm:$0xff] %v13029_v46  ;;  %v3990_v35 = vrot.slane %v3899_v59, 7  ;;  %v4139_v6 = vmax.f32 %v14335_v13, %v3898_v1  ;;  %v4140_v56 = vmax.f32 %v14336_v62, %v3899_v59  ;;  %v14346_v13 = vld [vmem:[#allocation83_spill] sm:$0xff] }
 0x315   :  { %v4145_v44 = vmax.f32 %v14337_v50, %v3953_v17  ;;  %v4146_v47 = vmax.f32 %v14338_v34, %v3954_v51  ;;  %v4151_v26 = vmax.f32 %v14339_v55, %v3959_v39  ;;  %v4152_v19 = vmax.f32 %v14340_v2, %v3960_v14  ;;  %v14347_v62 = vld [vmem:[#allocation71_spill] sm:$0xff]  ;;  %v14348_v50 = vld [vmem:[#allocation85_spill] sm:$0xff] }
 0x316   :  { %v4157_v58 = vmax.f32 %v14341_v24, %v3965_v9  ;;  %v4158_v63 = vmax.f32 %v14342_v31, %v3966_v5  ;;  %v4163_v22 = vmax.f32 %v14343_v36, %v3971_v4  ;;  %v4164_v11 = vmax.f32 %v14344_v27, %v3972_v32  ;;  %v14349_v34 = vld [vmem:[#allocation73_spill] sm:$0xff]  ;;  %v14350_v55 = vld [vmem:[#allocation87_spill] sm:$0xff] }
 0x317   :  { %v4169_v1 = vmax.f32 %v14345_v15, %v3977_v3  ;;  %v4170_v59 = vmax.f32 %v14346_v13, %v3978_v18  ;;  %v4175_v17 = vmax.f32 %v14347_v62, %v3983_v38  ;;  %v4176_v51 = vmax.f32 %v14348_v50, %v3984_v16 }
 0x318   :  { %v4181_v39 = vmax.f32 %v14349_v34, %v3989_v61  ;;  %v4182_v14 = vmax.f32 %v14350_v55, %v3990_v35  ;;  %v10124_v2 = vpack.c.bf16 %v4146_v47, %v4145_v44  ;;  %v10127_v9 = vpack.c.bf16 %v4152_v19, %v4151_v26 }
 0x319   :  { %v10121_v24 = vpack.c.bf16 %v4140_v56, %v4139_v6  ;;  %v10130_v5 = vpack.c.bf16 %v4158_v63, %v4157_v58  ;;  %v10133_v31 = vpack.c.bf16 %v4164_v11, %v4163_v22  ;;  %v10136_v36 = vpack.c.bf16 %v4170_v59, %v4169_v1 }
 0x31a   :  { %v4577_v4 = vunpack.c.l.b16 %v10124_v2  ;;  %v10139_v27 = vpack.c.bf16 %v4176_v51, %v4175_v17  ;;  %v10142_v32 = vpack.c.bf16 %v4182_v14, %v4181_v39  ;;  %v4583_v15 = vunpack.c.l.b16 %v10127_v9 }
 0x31b   :  { %vm170_vm10 = vcmask 1045508   ;;  %v4578_v3 = vunpack.c.h.b16 %v10124_v2  ;;  %v4584_v18 = vunpack.c.h.b16 %v10127_v9  ;;  %v4589_v38 = vunpack.c.l.b16 %v10130_v5 }
 0x31c   :  { %vm171_vm3 = vsmask.f32 5376  ;;  %v4571_v16 = vunpack.c.l.b16 %v10121_v24  ;;  %v4572_v13 = vunpack.c.h.b16 %v10121_v24  ;;  %v4595_v61 = vunpack.c.l.b16 %v10133_v31 }
 0x31d   :  { %v4590_v62 = vunpack.c.h.b16 %v10130_v5  ;;  %v4601_v35 = vunpack.c.l.b16 %v10136_v36  ;;  %v4703_v44 = vrot.slane %v4577_v4, 7  ;;  %v4705_v47 = vrot.slane %v4583_v15, 6  ;;  %vm172_vm15 = vmand %vm170_vm10, %vm171_vm3  ;;  %v4871_v15 = vld [vmem:[#allocation4 + $0x40] sm:$0xcc] }
 0x31e   :  { %v4596_v6 = vunpack.c.h.b16 %v10133_v31  ;;  %v4602_v63 = vunpack.c.h.b16 %v10136_v36  ;;  %v4607_v11 = vunpack.c.l.b16 %v10139_v27  ;;  %v4613_v22 = vunpack.c.l.b16 %v10142_v32  ;;  %v4869_v31 = vld [vmem:[#allocation4] sm:$0xcc]  ;;  %vm13068_vm3 = vmor %vm172_vm15, %vm13052_vm1 }
 0x31f   :  { %v4704_v56 = vsel %vm3777_vm11, %v4703_v44, %v4571_v16  ;;  %v4707_v26 = vrot.slane %v4589_v38, 5  ;;  %v4717_v19 = vrot.slane %v4578_v3, 7  ;;  %v4719_v58 = vrot.slane %v4584_v18, 6  ;;  %v174_v44 = vld [vmem:[#allocation4 + $0x70] sm:$0x33] }
 0x320   :  { %v4608_v1 = vunpack.c.h.b16 %v10139_v27  ;;  %v4614_v59 = vunpack.c.h.b16 %v10142_v32  ;;  %v4706_v17 = vsel %vm3779_vm12, %v4705_v47, %v4704_v56  ;;  %v4709_v50 = vrot.slane %v4595_v61, 4  ;;  %v189_v47 = vld [vmem:[#allocation4 + $0x18] sm:$0x33] }
 0x321   :  { %v4708_v34 = vsel %vm14093_vm14, %v4707_v26, %v4706_v17  ;;  %v4711_v39 = vrot.slane %v4601_v35, 3  ;;  %v4718_v55 = vsel %vm3777_vm11, %v4717_v19, %v4572_v13  ;;  %v4721_v14 = vrot.slane %v4590_v62, 5  ;;  %v4870_v19 = vld [vmem:[#allocation4 + $0x58] sm:$0x77] }
 0x322   :  { %v4710_v2 = vsel %vm317_vm5, %v4709_v50, %v4708_v34  ;;  %v4713_v9 = vrot.slane %v4607_v11, 2  ;;  %v4720_v24 = vsel %vm3779_vm12, %v4719_v58, %v4718_v55  ;;  %v4723_v5 = vrot.slane %v4596_v6, 4  ;;  %v4941_v50 = vld [vmem:[#allocation4] sm:$0x88] }
 0x323   :  { %vm14353_vm2 = vcmask 1045509   ;;  %v4715_v4 = vrot.slane %v4613_v22, 1  ;;  %v4722_v27 = vsel %vm14093_vm14, %v4721_v14, %v4720_v24  ;;  %v4725_v32 = vrot.slane %v4602_v63, 3 }
 0x324   :  { %v4712_v36 = vsel %vm14353_vm2, %v4711_v39, %v4710_v2  ;;  %vm14354_vm0 = vcmask 1046534   ;;  %v4724_v18 = vsel %vm317_vm5, %v4723_v5, %v4722_v27  ;;  %v4727_v38 = vrot.slane %v4608_v1, 2  ;;  %vm14378_vm1 = vmmov %vm14353_vm2 }
 0x325   :  { %v4714_v3 = vsel %vm14354_vm0, %v4713_v9, %v4712_v36  ;;  %v14355_v16 = vmov 0  ;;  %vm14358_vm10 = vcmask 1047559   ;;  %v4726_v61 = vsel %vm14353_vm2, %v4725_v32, %v4724_v18  ;;  %vm14360_vm14 = vmmov %vm14354_vm0 }
 0x326   :  { %v14356_v16 = vsel %vm13068_vm3, 4294967295, %v14355_v16  ;;  %v13073_v13 = vsel %vm14358_vm10, %v4715_v4, %v4714_v3  ;;  %v4729_v62 = vrot.slane %v4614_v59, 1  ;;  %v4874_v35 = vshrl.u32 %v4869_v31, 16  ;;  %vm14361_vm0 = vmmov %vm14358_vm10  ;;  %v4942_v59 = vld [vmem:[#allocation4 + $0x40] sm:$0x88] }
 0x327   :  { %14357 = vst [vmem:[#allocation41_spill] sm:$0xff] %v14356_v16  ;;  %14359 = vst [vmem:[#allocation45_spill] sm:$0xff] %v13073_v13  ;;  %v4728_v6 = vsel %vm14360_vm14, %v4727_v38, %v4726_v61  ;;  %v4877_v63 = vshll.u32 %v4869_v31, 16  ;;  %v4892_v11 = vshrl.u32 %v4871_v15, 16  ;;  %v4895_v56 = vshll.u32 %v4871_v15, 16 }
 0x328   :  { %v13078_v22 = vsel %vm14361_vm0, %v4729_v62, %v4728_v6  ;;  %v175_v58 = vsel %vm13068_vm3, 0, %v174_v44  ;;  %v190_v1 = vsel %vm13068_vm3, 0, %v189_v47  ;;  %v4876_v17 = vrot.slane %v4874_v35, 6 }
 0x329   :  { %v4790_v26 = vpack.c.b16 %v13078_v22, %v13073_v13  ;;  %176 = vst [vmem:[#allocation4 + $0x70] sm:$0x33] %v175_v58  ;;  %191 = vst [vmem:[#allocation4 + $0x18] sm:$0x33] %v190_v1  ;;  %v4879_v51 = vrot.slane %v4877_v63, 7  ;;  %v4894_v34 = vrot.slane %v4892_v11, 6 }
 0x32a   :  { %v5418_v39 = vshrl.u32 %v13029_v46, 16  ;;  %v4883_v14 = vshrl.u32 %v4870_v19, 16  ;;  %v4886_v2 = vshll.u32 %v4870_v19, 16  ;;  %v4897_v9 = vrot.slane %v4895_v56, 7 }
 0x32b   :  { %4802 = vst [vmem:[#allocation4 + $0x10] sm:$0xff] %v4790_v26  ;;  %v5431_v55 = vshrl.u32 %v4790_v26, 16  ;;  %v5426_v5 = vshrl.u32 %v4942_v59, 16  ;;  %v5413_v36 = vshrl.u32 %v4941_v50, 16  ;;  %v9569_v4 = vrot.slane %v4941_v50, 11 }
 0x32c   :  { %v4949_v27 = vrot.slane %v4870_v19, 7  ;;  %v5420_v32 = vrot.slane %v5418_v39, 7  ;;  %v5434_v15 = vshll.u32 %v4790_v26, 16  ;;  %v4880_v3 = vor.u32 %v4879_v51, %v4876_v17 }
 0x32d   :  { %v5433_v31 = vrot.slane %v5431_v55, 7  ;;  %v4885_v18 = vrot.slane %v4883_v14, 6  ;;  %v4888_v38 = vrot.slane %v4886_v2, 7  ;;  %v4898_v61 = vor.u32 %v4897_v9, %v4894_v34  ;;  %v10587_v9 = vld [vmem:[#allocation13 + $0x270] ss:$8 sps:$4 sm:$0xff]  }
 0x32e   :  { %v9570_v62 = vrot.slane %v4942_v59, 11  ;;  %v5421_v35 = vshll.u32 %v13029_v46, 16  ;;  %v9640_v44 = vrot.slane %v5426_v5, 11  ;;  %v9639_v63 = vrot.slane %v5413_v36, 11 }
 0x32f   :  { %v5436_v47 = vor.u32 %v5434_v15, %v5433_v31  ;;  %v4950_v19 = vsel %vm11628_vm6, %v9569_v4, %v4949_v27  ;;  %v4881_v50 = vrot.slane %v4880_v3, 4  ;;  %v4889_v26 = vor.u32 %v4888_v38, %v4885_v18  ;;  %v10592_v31 = vld [vmem:[#allocation13 + $0x264] ss:$8 sps:$4 sm:$0xff]   ;;  %v10590_v38 = vld [vmem:[#allocation13 + $0x260] ss:$8 sps:$4 sm:$0xff]  }
 0x330   :  { %v5423_v1 = vor.u32 %v5421_v35, %v5420_v32  ;;  %v4899_v17 = vrot.slane %v4898_v61, 4  ;;  %v10593_v61 = vld [vmem:[#allocation13 + $0x370] ss:$8 sps:$4 sm:$0xff]   ;;  %v5936_v35 = vld [vmem:[#allocation4 + $0x58] sm:$0xff]  ;;  %vm14377_vm15 = vcmask 1043459   ;;  %vm14380_vm2 = vcmask 1046534  }
 0x331   :  { %v13096_v39 = vsel %vm11674_vm13, %v9640_v44, %v5436_v47  ;;  %v4890_v32 = vsel %vm11686_vm4, %v4881_v50, %v4889_v26  ;;  %v10601_v44 = vld [vmem:[#allocation13 + $0x364] ss:$8 sps:$4 sm:$0xff]   ;;  %v11314_v47 = vpack.c.b16 %v13078_v22, %v13025_v53  ;;  %v10602_v50 = vld [vmem:[#allocation13 + $0x240] ss:$8 sps:$4 sm:$0xff]   ;;  %v10605_v26 = vld [vmem:[#allocation13 + $0x350] ss:$8 sps:$4 sm:$0xff]  }
 0x332   :  { %v4872_v6 = vld [vmem:[#allocation4 + $0x10] sm:$0x77]  ;;  %v13100_v36 = vsel %vm11674_vm13, %v9639_v63, %v5423_v1  ;;  %vm14379_vm10 = vmmov %vm14377_vm15 }
 0x333   :  { %v4953_v11 = vrot.slane %v4872_v6, 7  ;;  %v4901_v56 = vshrl.u32 %v4872_v6, 16  ;;  %v4904_v58 = vshll.u32 %v4872_v6, 16  ;;  %v9642_v4 = vcombine.high %v13100_v36, %v13096_v39  ;;  %v10596_v6 = vld [vmem:[#allocation13 + $0x250] ss:$8 sps:$4 sm:$0xff]  }
 0x334   :  { %v10599_v63 = vld [vmem:[#allocation13 + $0x360] ss:$8 sps:$4 sm:$0xff]   ;;  %v10607_v1 = vld [vmem:[#allocation13 + $0x354] ss:$8 sps:$4 sm:$0xff]  }
 0x335   :  { %v4954_v51 = vsel %vm11628_vm6, %v9570_v62, %v4953_v11  ;;  %v4903_v59 = vrot.slane %v4901_v56, 6  ;;  %v4906_v34 = vrot.slane %v4904_v58, 7  ;;  %v10598_v62 = vld [vmem:[#allocation13 + $0x254] ss:$8 sps:$4 sm:$0xff]   ;;  %v5941_v11 = vshrl.u32 %v5936_v35, 16 }
 0x336   :  { %v9571_v14 = vcombine.low %v4950_v19, %v4954_v51  ;;  %v9572_v2 = vcombine.high %v4950_v19, %v4954_v51  ;;  %v5944_v56 = vshll.u32 %v5936_v35, 16  ;;  %v10604_v58 = vld [vmem:[#allocation13 + $0x244] ss:$8 sps:$4 sm:$0xff]   ;;  %v5938_v19 = vld [vmem:[#allocation4 + $0x10] sm:$0xff] }
 0x337   :  { %v4907_v5 = vor.u32 %v4906_v34, %v4903_v59  ;;  %v5955_v59 = vshrl.u32 %v5938_v19, 16  ;;  %v5958_v53 = vshll.u32 %v5938_v19, 16  ;;  %v10610_v22 = vld [vmem:[#allocation13 + $0x234] ss:$8 sps:$4 sm:$0xff]   ;;  %v10613_v34 = vld [vmem:[#allocation13 + $0x344] ss:$8 sps:$4 sm:$0xff]  }
 0x338   :  { %5188 = vmatprep.mubr.bf16.mxu0 %v9572_v2  ;;  %v5946_v51 = vrot.slane %v5944_v56, 5  ;;  %v13110_v2 = vld [vmem:[#allocation4 + $0x70] sm:$0x11]  ;;  %v10625_v56 = vld [vmem:[#allocation13 + $0x324] ss:$8 sps:$4 sm:$0xff]  }
 0x339   :  { %5189 = vmatmul.mubr.bf16.vlgmr.msra.gmra.mxu0 %v9571_v14  ;;  %v4908_v15 = vsel %vm11686_vm4, %v4899_v17, %v4907_v5  ;;  %v5943_v17 = vrot.slane %v5941_v11, 4  ;;  %v10608_v14 = vld [vmem:[#allocation13 + $0x230] ss:$8 sps:$4 sm:$0xff]   ;;  %v5960_v27 = vrot.slane %v5958_v53, 5  ;;  %v10622_v11 = vld [vmem:[#allocation13 + $0x214] ss:$8 sps:$4 sm:$0xff]  }
 0x33a   :  { %5640 = vmatpush1.bf16.msra.mxu0 %v10587_v9  ;;  %v9605_v3 = vcombine.low %v4890_v32, %v4908_v15  ;;  %v9606_v18 = vcombine.high %v4890_v32, %v4908_v15  ;;  %5671 = vmatprep.mubr.bf16.mxu0 %v9642_v4  ;;  %v10611_v9 = vld [vmem:[#allocation13 + $0x340] ss:$8 sps:$4 sm:$0xff]   ;;  %v5957_v4 = vrot.slane %v5955_v59, 4  ;;  %v10616_v32 = vld [vmem:[#allocation13 + $0x224] ss:$8 sps:$4 sm:$0xff]   ;;  %v14365_v59 = vunpack.i.l.bf16 %v12969_v20 }
 0x33b   :  { %5641 = vmatprep.subr.bf16.mxu0 %v10592_v31  ;;  %v5947_v5 = vor.u32 %v5946_v51, %v5943_v17  ;;  %v5950_v31 = vshll.u32 %v13110_v2, 16  ;;  %v10619_v15 = vld [vmem:[#allocation13 + $0x334] ss:$8 sps:$4 sm:$0xff]   ;;  %vm14366_vm4 = vcmask 916480  }
 0x33c   :  { %5399 = vmatprep.mubr.bf16.mxu1 %v9606_v18  ;;  %v10614_v18 = vld [vmem:[#allocation13 + $0x220] ss:$8 sps:$4 sm:$0xff]   ;;  %vm14367_vm14 = vmmov %vm14366_vm4 }
 0x33d   :  { %5400 = vmatmul.mubr.bf16.vlgmr.msra.gmra.mxu1 %v9605_v3  ;;  %v13113_v3 = vld [vmem:[#allocation4 + $0x18] sm:$0x11]  ;;  %v5952_v35 = vrot.slane %v5950_v31, 5  ;;  %vm14382_vm0 = vmmov %vm14366_vm4 }
 0x33e   :  { %5642 = vmatpush1.bf16.msra.mxu0 %v10590_v38  ;;  %5890 = vmatpush1.bf16.msra.mxu1 %v10593_v61  ;;  %v10617_v38 = vld [vmem:[#allocation13 + $0x330] ss:$8 sps:$4 sm:$0xff]   ;;  %v5964_v61 = vshll.u32 %v13113_v3, 16 }
 0x33f   :  { %5921 = vmatprep.mubr.bf16.mxu1 %v11314_v47  ;;  %5643 = vmatprep.subr.bf16.mxu0 %v10598_v62  ;;  %v5948_v62 = vrot.slane %v5947_v5, 4  ;;  %v13116_v47 = vld [vmem:[#allocation4 + $0x58] sm:$0xee] }
 0x340   :  { %5891 = vmatprep.subr.bf16.mxu1 %v10601_v44  ;;  %v5961_v44 = vor.u32 %v5960_v27, %v5957_v4 }
 0x341   :  { %v13139_v5 = vsel %vm11705_vm7, %v5948_v62, %v5952_v35  ;;  %v14369_v35 = vld [vmem:[#allocation57_spill] sm:$0xff] }
 0x342   :  { %5644 = vmatpush1.bf16.msra.mxu0 %v10596_v6  ;;  %5892 = vmatpush1.bf16.msra.mxu1 %v10599_v63  ;;  %v13118_v6 = vld [vmem:[#allocation4 + $0x10] sm:$0xee]  ;;  %v5962_v31 = vrot.slane %v5961_v44, 4 }
 0x343   :  { %5645 = vmatprep.subr.bf16.mxu0 %v10604_v58  ;;  %5893 = vmatprep.subr.bf16.mxu1 %v10607_v1 }
 0x346   :  { %5646 = vmatpush1.bf16.msra.mxu0 %v10602_v50  ;;  %5894 = vmatpush1.bf16.msra.mxu1 %v10605_v26  ;;  %v13126_v50 = vrot.slane %v5964_v61, 5  ;;  %v10628_v61 = vld [vmem:[#allocation13 + $0x204] ss:$8 sps:$4 sm:$0xff]  }
 0x347   :  { %5647 = vmatprep.subr.bf16.mxu0 %v10610_v22  ;;  %5895 = vmatprep.subr.bf16.mxu1 %v10613_v34  ;;  %v10620_v34 = vld [vmem:[#allocation13 + $0x210] ss:$8 sps:$4 sm:$0xff]  }
 0x34a   :  { %5648 = vmatpush1.bf16.msra.mxu0 %v10608_v14  ;;  %5896 = vmatpush1.bf16.msra.mxu1 %v10611_v9  ;;  %v10623_v14 = vld [vmem:[#allocation13 + $0x320] ss:$8 sps:$4 sm:$0xff]  }
 0x34b   :  { %v13120_v63 = vpop.permute.xlu1 %10179  ;;  %5649 = vmatprep.subr.bf16.mxu0 %v10616_v32  ;;  %5897 = vmatprep.subr.bf16.mxu1 %v10619_v15  ;;  %v11068_v9 = vld [vmem:[#allocation16 + $0x260] ss:$8 sps:$4 sm:$0xff]  }
 0x34c   :  { %v14094_v1 = vunpack.i.h.bf16 %v13120_v63  ;;  %v10181_v19 = vunpack.i.l.bf16 %v13120_v63 }
 0x34e   :  { %v3895_v53 = vsel %vm14366_vm4, %v14365_v59, %v10181_v19  ;;  %v3896_v22 = vsel %vm14367_vm14, %v10181_v19, %v14094_v1  ;;  %5650 = vmatpush1.bf16.msra.mxu0 %v10614_v18  ;;  %5898 = vmatpush1.bf16.msra.mxu1 %v10617_v38  ;;  %v10631_v18 = vld [vmem:[#allocation13 + $0x314] ss:$8 sps:$4 sm:$0xff]   ;;  %vm14383_vm4 = vmmov %vm14382_vm0  ;;  %vm14384_vm14 = vcmask 1047559  }
 0x34f   :  { %v3913_v4 = vrot.slane %v3895_v53, 1  ;;  %v3914_v27 = vrot.slane %v3896_v22, 1  ;;  %v3919_v32 = vrot.slane %v3895_v53, 2  ;;  %v3920_v15 = vrot.slane %v3896_v22, 2  ;;  %5651 = vmatprep.subr.bf16.mxu0 %v10622_v11  ;;  %5899 = vmatprep.subr.bf16.mxu1 %v10625_v56  ;;  %v10626_v11 = vld [vmem:[#allocation13 + $0x200] ss:$8 sps:$4 sm:$0xff]  }
 0x350   :  { %v3925_v59 = vrot.slane %v3895_v53, 3  ;;  %v3926_v24 = vrot.slane %v3896_v22, 3  ;;  %v3931_v58 = vrot.slane %v3895_v53, 4  ;;  %v3932_v19 = vrot.slane %v3896_v22, 4  ;;  %v14370_v56 = vld [vmem:[#allocation58_spill] sm:$0xff] }
 0x351   :  { %v3937_v38 = vrot.slane %v3895_v53, 5  ;;  %v3938_v1 = vrot.slane %v3896_v22, 5  ;;  %v3943_v51 = vrot.slane %v3895_v53, 6  ;;  %v3944_v26 = vrot.slane %v3896_v22, 6 }
 0x352   :  { %v3949_v17 = vrot.slane %v3895_v53, 7  ;;  %v3950_v62 = vrot.slane %v3896_v22, 7  ;;  %v4093_v44 = vmax.f32 %v14369_v35, %v3895_v53  ;;  %v4094_v46 = vmax.f32 %v12694_v45, %v3896_v22  ;;  %5652 = vmatpush1.bf16.msra.mxu0 %v10620_v34  ;;  %5900 = vmatpush1.bf16.msra.mxu1 %v10623_v14  ;;  %v14373_v53 = vld [vmem:[#allocation63_spill] sm:$0xff]  ;;  %v10634_v22 = vld [vmem:[#allocation13 + $0x2f4] ss:$8 sps:$4 sm:$0xff]  }
 0x353   :  { %v4099_v55 = vmax.f32 %v14370_v56, %v3913_v4  ;;  %v4100_v16 = vmax.f32 %v12696_v49, %v3914_v27  ;;  %v4105_v25 = vmax.f32 %v14371_v33, %v3919_v32  ;;  %v4106_v23 = vmax.f32 %v12708_v28, %v3920_v15  ;;  %5653 = vmatprep.subr.bf16.mxu0 %v10628_v61  ;;  %v10637_v34 = vld [vmem:[#allocation13 + $0x304] ss:$8 sps:$4 sm:$0xff]   ;;  %v14374_v14 = vld [vmem:[#allocation65_spill] sm:$0xff]  ;;  %v14375_v33 = vld [vmem:[#allocation66_spill] sm:$0xff] }
 0x354   :  { %v4111_v43 = vmax.f32 %v14372_v0, %v3925_v59  ;;  %v4112_v13 = vmax.f32 %v12732_v21, %v3926_v24  ;;  %v4117_v35 = vmax.f32 %v14373_v53, %v3931_v58  ;;  %v4118_v45 = vmax.f32 %v12758_v54, %v3932_v19  ;;  %5901 = vmatprep.subr.bf16.mxu1 %v10631_v18  ;;  %v14376_v32 = vld [vmem:[#allocation67_spill] sm:$0xff]  ;;  %v10632_v58 = vld [vmem:[#allocation13 + $0x2f0] ss:$8 sps:$4 sm:$0xff]  }
 0x355   :  { %v4123_v4 = vmax.f32 %v14374_v14, %v3937_v38  ;;  %v4124_v49 = vmax.f32 %v12768_v48, %v3938_v1  ;;  %v4129_v27 = vmax.f32 %v14375_v33, %v3943_v51  ;;  %v4130_v28 = vmax.f32 %v12774_v52, %v3944_v26  ;;  %v10635_v18 = vld [vmem:[#allocation13 + $0x300] ss:$8 sps:$4 sm:$0xff]   ;;  %v10640_v38 = vld [vmem:[#allocation13 + $0x2e4] ss:$8 sps:$4 sm:$0xff]   ;;  %v10643_v52 = vld [vmem:[#allocation13 + $0x3f4] ss:$8 sps:$4 sm:$0xff]  }
 0x356   :  { %v4135_v15 = vmax.f32 %v14376_v32, %v3949_v17  ;;  %v4136_v0 = vmax.f32 %v12780_v29, %v3950_v62  ;;  %v10098_v21 = vpack.c.bf16 %v4094_v46, %v4093_v44  ;;  %v10101_v24 = vpack.c.bf16 %v4100_v16, %v4099_v55  ;;  %5654 = vmatpush1.bf16.msra.mxu0 %v10626_v11  ;;  %v10638_v17 = vld [vmem:[#allocation13 + $0x2e0] ss:$8 sps:$4 sm:$0xff]  }
 0x357   :  { %v10104_v54 = vpack.c.bf16 %v4106_v23, %v4105_v25  ;;  %v10107_v61 = vpack.c.bf16 %v4112_v13, %v4111_v43  ;;  %v10110_v59 = vpack.c.bf16 %v4118_v45, %v4117_v35  ;;  %v10113_v19 = vpack.c.bf16 %v4124_v49, %v4123_v4  ;;  %5902 = vmatpush1.bf16.msra.mxu1 %v10629_v60 }
 0x358   :  { %v13157_v48 = vpack.c.bf16 %v4130_v28, %v4129_v27  ;;  %v10119_v1 = vpack.c.bf16 %v4136_v0, %v4135_v15  ;;  %5655 = vmatprep.subr.bf16.mxu0 %v10634_v22  ;;  %5903 = vmatprep.subr.bf16.mxu1 %v10637_v34  ;;  %v13162_v29 = vsel %vm11705_vm7, %v5962_v31, %v13126_v50  ;;  %v6228_v16 = vrot.slane %v13113_v3, 5  ;;  %v10641_v50 = vld [vmem:[#allocation13 + $0x3f0] ss:$8 sps:$4 sm:$0xff]   ;;  %v10646_v31 = vld [vmem:[#allocation13 + $0x2d4] ss:$8 sps:$4 sm:$0xff]  }
 0x359   :  { %v4525_v23 = vunpack.c.l.b16 %v10098_v21  ;;  %v4526_v25 = vunpack.c.h.b16 %v10098_v21  ;;  %v4531_v43 = vunpack.c.l.b16 %v10101_v24  ;;  %v4537_v13 = vunpack.c.l.b16 %v10104_v54  ;;  %v10649_v22 = vld [vmem:[#allocation13 + $0x3e4] ss:$8 sps:$4 sm:$0xff]   ;;  %v10644_v15 = vld [vmem:[#allocation13 + $0x2d0] ss:$8 sps:$4 sm:$0xff]  }
 0x35a   :  { %v4532_v60 = vunpack.c.h.b16 %v10101_v24  ;;  %v4538_v55 = vunpack.c.h.b16 %v10104_v54  ;;  %v4543_v46 = vunpack.c.l.b16 %v10107_v61  ;;  %v4549_v26 = vunpack.c.l.b16 %v10110_v59  ;;  %5656 = vmatpush2.bf16.msra.mxu0 %v10632_v58  ;;  %v10647_v54 = vld [vmem:[#allocation13 + $0x3e0] ss:$8 sps:$4 sm:$0xff]  }
 0x35b   :  { %v4544_v51 = vunpack.c.h.b16 %v10107_v61  ;;  %v4550_v62 = vunpack.c.h.b16 %v10110_v59  ;;  %v4555_v44 = vunpack.c.l.b16 %v10113_v19  ;;  %v4561_v11 = vunpack.c.l.b16 %v13157_v48  ;;  %5904 = vmatpush1.bf16.msra.mxu1 %v10635_v18  ;;  %5657 = vmatprep.subr.bf16.mxu0 %v10640_v38 }
 0x35c   :  { %v4556_v56 = vunpack.c.h.b16 %v10113_v19  ;;  %v4567_v53 = vunpack.c.l.b16 %v10119_v1  ;;  %v4647_v35 = vrot.slane %v4531_v43, 7  ;;  %v4649_v45 = vrot.slane %v4537_v13, 6  ;;  %5905 = vmatprep.subr.bf16.mxu1 %v10643_v52 }
 0x35d   :  { %v4562_v34 = vunpack.c.h.b16 %v13157_v48  ;;  %v4568_v14 = vunpack.c.h.b16 %v10119_v1  ;;  %v4651_v4 = vrot.slane %v4543_v46, 5  ;;  %v4653_v49 = vrot.slane %v4549_v26, 4  ;;  %v10652_v48 = vld [vmem:[#allocation13 + $0x2c4] ss:$8 sps:$4 sm:$0xff]   ;;  %v10655_v1 = vld [vmem:[#allocation13 + $0x3d4] ss:$8 sps:$4 sm:$0xff]  }
 0x35e   :  { %v4648_v33 = vsel %vm3777_vm11, %v4647_v35, %v4525_v23  ;;  %v4655_v27 = vrot.slane %v4555_v44, 3  ;;  %v4661_v28 = vrot.slane %v4532_v60, 7  ;;  %v4663_v32 = vrot.slane %v4538_v55, 6  ;;  %5658 = vmatpush2.bf16.msra.mxu0 %v10638_v17  ;;  %v10650_v26 = vld [vmem:[#allocation13 + $0x2c0] ss:$8 sps:$4 sm:$0xff]  }
 0x35f   :  { %v4650_v0 = vsel %vm3779_vm12, %v4649_v45, %v4648_v33  ;;  %v4657_v21 = vrot.slane %v4561_v11, 2  ;;  %v4659_v24 = vrot.slane %v4567_v53, 1  ;;  %v4665_v58 = vrot.slane %v4544_v51, 5  ;;  %5906 = vmatpush2.bf16.msra.mxu1 %v10641_v50  ;;  %5659 = vmatprep.subr.bf16.mxu0 %v10646_v31  ;;  %v10653_v50 = vld [vmem:[#allocation13 + $0x3d0] ss:$8 sps:$4 sm:$0xff]  }
 0x360   :  { %v4652_v61 = vsel %vm14377_vm15, %v4651_v4, %v4650_v0  ;;  %v4662_v59 = vsel %vm3777_vm11, %v4661_v28, %v4526_v25  ;;  %v4667_v19 = vrot.slane %v4550_v62, 4  ;;  %v4669_v18 = vrot.slane %v4556_v56, 3  ;;  %5907 = vmatprep.subr.bf16.mxu1 %v10649_v22  ;;  %v10658_v31 = vld [vmem:[#allocation13 + $0x2b4] ss:$8 sps:$4 sm:$0xff]   ;;  %vm14385_vm15 = vmmov %vm14378_vm1  ;;  %v10661_v22 = vld [vmem:[#allocation13 + $0x3c4] ss:$8 sps:$4 sm:$0xff]  }
 0x361   :  { %v13171_v38 = vpop.permute.xlu0 %10184  ;;  %v4654_v52 = vsel %vm317_vm5, %v4653_v49, %v4652_v61  ;;  %v4664_v23 = vsel %vm3779_vm12, %v4663_v32, %v4662_v59  ;;  %v4671_v25 = vrot.slane %v4562_v34, 2  ;;  %v4673_v46 = vrot.slane %v4568_v14, 1  ;;  %v10656_v32 = vld [vmem:[#allocation13 + $0x2b0] ss:$8 sps:$4 sm:$0xff]  }
 0x362   :  { %v10187_v43 = vunpack.i.h.bf16 %v13171_v38  ;;  %v10186_v13 = vunpack.i.l.bf16 %v13171_v38  ;;  %v4656_v60 = vsel %vm14378_vm1, %v4655_v27, %v4654_v52  ;;  %v4666_v55 = vsel %vm14379_vm10, %v4665_v58, %v4664_v23  ;;  %5660 = vmatpush2.bf16.msra.mxu0 %v10644_v15  ;;  %vm14386_vm1 = vmmov %vm14380_vm2  ;;  %v10659_v58 = vld [vmem:[#allocation13 + $0x3c0] ss:$8 sps:$4 sm:$0xff]   ;;  %v14389_v52 = vld [vmem:[#allocation74_spill] sm:$0xff] }
 0x363   :  { %v4658_v17 = vsel %vm14380_vm2, %v4657_v21, %v4656_v60  ;;  %v4668_v51 = vsel %vm317_vm5, %v4667_v19, %v4666_v55  ;;  %v14381_v62 = vunpack.i.h.bf16 %v13000_v57  ;;  %5908 = vmatpush2.bf16.msra.mxu1 %v10647_v54  ;;  %5661 = vmatprep.subr.bf16.mxu0 %v10652_v48  ;;  %vm14387_vm10 = vmmov %vm14384_vm14  ;;  %v14388_v19 = vld [vmem:[#allocation72_spill] sm:$0xff]  ;;  %v14390_v60 = vld [vmem:[#allocation77_spill] sm:$0xff]  ;;  %vm14400_vm2 = vcmask 1043459  }
 0x364   :  { %v3901_v11 = vsel %vm14383_vm4, %v10186_v13, %v10187_v43  ;;  %v4660_v56 = vsel %vm14384_vm14, %v4659_v24, %v4658_v17  ;;  %v4670_v53 = vsel %vm14385_vm15, %v4669_v18, %v4668_v51  ;;  %5909 = vmatprep.subr.bf16.mxu1 %v10655_v1  ;;  %v10664_v48 = vld [vmem:[#allocation13 + $0x2a4] ss:$8 sps:$4 sm:$0xff]   ;;  %vm14402_vm4 = vmmov %vm14400_vm2 }
 0x365   :  { %v3900_v44 = vsel %vm14382_vm0, %v14381_v62, %v10186_v13  ;;  %v3956_v45 = vrot.slane %v3901_v11, 1  ;;  %v4672_v57 = vsel %vm14386_vm1, %v4671_v25, %v4670_v53  ;;  %v3962_v14 = vrot.slane %v3901_v11, 2  ;;  %v10667_v25 = vld [vmem:[#allocation13 + $0x3b4] ss:$8 sps:$4 sm:$0xff]   ;;  %vm14401_vm0 = vmmov %vm14385_vm15 }
 0x366   :  { %v3955_v35 = vrot.slane %v3900_v44, 1  ;;  %v3961_v34 = vrot.slane %v3900_v44, 2  ;;  %v3967_v4 = vrot.slane %v3900_v44, 3  ;;  %v4674_v49 = vsel %vm14387_vm10, %v4673_v46, %v4672_v57  ;;  %5662 = vmatpush2.bf16.msra.mxu0 %v10650_v26  ;;  %v14391_v26 = vld [vmem:[#allocation79_spill] sm:$0xff]  ;;  %v14392_v62 = vld [vmem:[#allocation81_spill] sm:$0xff]  ;;  %vm14403_vm14 = vmmov %vm14386_vm1 }
 0x367   :  { %v3968_v33 = vrot.slane %v3901_v11, 3  ;;  %v3973_v27 = vrot.slane %v3900_v44, 4  ;;  %v3974_v28 = vrot.slane %v3901_v11, 4  ;;  %v4788_v15 = vpack.c.b16 %v4674_v49, %v4660_v56  ;;  %5910 = vmatpush2.bf16.msra.mxu1 %v10653_v50  ;;  %5663 = vmatprep.subr.bf16.mxu0 %v10658_v31  ;;  %v10662_v50 = vld [vmem:[#allocation13 + $0x2a0] ss:$8 sps:$4 sm:$0xff]   ;;  %vm14405_vm15 = vmmov %vm14387_vm10 }
 0x368   :  { %v3979_v0 = vrot.slane %v3900_v44, 5  ;;  %v3980_v21 = vrot.slane %v3901_v11, 5  ;;  %v3985_v24 = vrot.slane %v3900_v44, 6  ;;  %v3986_v54 = vrot.slane %v3901_v11, 6  ;;  %5911 = vmatprep.subr.bf16.mxu1 %v10661_v22  ;;  %v14395_v22 = vld [vmem:[#allocation88_spill] sm:$0xff]  ;;  %vm14406_vm1 = vmmov %vm14401_vm0 }
 0x369   :  { %v3991_v61 = vrot.slane %v3900_v44, 7  ;;  %v3992_v59 = vrot.slane %v3901_v11, 7  ;;  %v4141_v18 = vmax.f32 %v14388_v19, %v3900_v44  ;;  %4800 = vst [vmem:[#allocation4 + $0x20] sm:$0xff] %v4788_v15  ;;  %v4142_v1 = vmax.f32 %v12824_v40, %v3901_v11  ;;  %v14393_v40 = vld [vmem:[#allocation84_spill] sm:$0xff] }
 0x36a   :  { %v4147_v23 = vmax.f32 %v14389_v52, %v3955_v35  ;;  %v4148_v13 = vmax.f32 %v12829_v42, %v3956_v45  ;;  %v4153_v55 = vmax.f32 %v14390_v60, %v3961_v34  ;;  %v4154_v46 = vmax.f32 %v12839_v12, %v3962_v14  ;;  %5664 = vmatpush2.bf16.msra.mxu0 %v10656_v32  ;;  %v14394_v42 = vld [vmem:[#allocation86_spill] sm:$0xff]  ;;  %v10673_v14 = vld [vmem:[#allocation13 + $0x3a4] ss:$8 sps:$4 sm:$0xff]   ;;  %v10934_v15 = vld [vmem:[#allocation14 + $0x440] ss:$8 sps:$4 sm:$0xff]  }
 0x36b   :  { %v4159_v17 = vmax.f32 %v14391_v26, %v3967_v4  ;;  %v4160_v51 = vmax.f32 %v12843_v7, %v3968_v33  ;;  %v4165_v44 = vmax.f32 %v14392_v62, %v3973_v27  ;;  %v4166_v31 = vmax.f32 %v12848_v41, %v3974_v28  ;;  %5912 = vmatpush2.bf16.msra.mxu1 %v10659_v58  ;;  %v10665_v35 = vld [vmem:[#allocation13 + $0x3b0] ss:$8 sps:$4 sm:$0xff]   ;;  %v10670_v45 = vld [vmem:[#allocation13 + $0x294] ss:$8 sps:$4 sm:$0xff]   ;;  %v10671_v58 = vld [vmem:[#allocation13 + $0x3a0] ss:$8 sps:$4 sm:$0xff]  }
 0x36c   :  { %v4171_v11 = vmax.f32 %v14393_v40, %v3979_v0  ;;  %v4172_v56 = vmax.f32 %v12857_v37, %v3980_v21  ;;  %v4177_v53 = vmax.f32 %v14394_v42, %v3985_v24  ;;  %v4178_v12 = vmax.f32 %v12866_v8, %v3986_v54  ;;  %5665 = vmatprep.subr.bf16.mxu0 %v10664_v48  ;;  %v10668_v8 = vld [vmem:[#allocation13 + $0x290] ss:$8 sps:$4 sm:$0xff]   ;;  %v10676_v54 = vld [vmem:[#allocation13 + $0x284] ss:$8 sps:$4 sm:$0xff]  }
 0x36d   :  { %v4183_v57 = vmax.f32 %v14395_v22, %v3991_v61  ;;  %v4184_v7 = vmax.f32 %v12878_v10, %v3992_v59  ;;  %v10122_v34 = vpack.c.bf16 %v4142_v1, %v4141_v18  ;;  %v10125_v4 = vpack.c.bf16 %v4148_v13, %v4147_v23  ;;  %5913 = vmatprep.subr.bf16.mxu1 %v10667_v25  ;;  %v10679_v1 = vld [vmem:[#allocation13 + $0x394] ss:$8 sps:$4 sm:$0xff]   ;;  %v10677_v62 = vld [vmem:[#allocation13 + $0x390] ss:$8 sps:$4 sm:$0xff]   ;;  %v10682_v42 = vld [vmem:[#allocation13 + $0x384] ss:$8 sps:$4 sm:$0xff]  }
 0x36e   :  { %v10128_v41 = vpack.c.bf16 %v4154_v46, %v4153_v55  ;;  %v10131_v49 = vpack.c.bf16 %v4160_v51, %v4159_v17  ;;  %v10134_v33 = vpack.c.bf16 %v4166_v31, %v4165_v44  ;;  %v13207_v37 = vpack.c.bf16 %v4172_v56, %v4171_v11  ;;  %5666 = vmatpush2.bf16.msra.mxu0 %v10662_v50  ;;  %v10685_v44 = vld [vmem:[#allocation13 + $0x474] ss:$8 sps:$4 sm:$0xff]  }
 0x36f   :  { %v13209_v27 = vpack.c.bf16 %v4178_v12, %v4177_v53  ;;  %v13211_v28 = vpack.c.bf16 %v4184_v7, %v4183_v57  ;;  %v14396_v32 = vrot.slane %v13110_v2, 5  ;;  %v14397_v10 = vrot.slane %v13116_v47, 9  ;;  %5914 = vmatpush2.bf16.msra.mxu1 %v10665_v35  ;;  %5667 = vmatprep.subr.bf16.mxu0 %v10670_v45 }
 0x370   :  { %v4579_v21 = vunpack.c.l.b16 %v10125_v4  ;;  %v4585_v24 = vunpack.c.l.b16 %v10128_v41  ;;  %v9710_v61 = vcombine.high %v13139_v5, %v13162_v29  ;;  %v14399_v59 = vrot.slane %v13118_v6, 9  ;;  %5915 = vmatprep.subr.bf16.mxu1 %v10673_v14  ;;  %v10683_v14 = vld [vmem:[#allocation13 + $0x470] ss:$8 sps:$4 sm:$0xff]  }
 0x371   :  { %v13219_v0 = vsel %vm11643_vm9, %v14397_v10, %v14396_v32  ;;  %v4573_v47 = vunpack.c.l.b16 %v10122_v34  ;;  %v4580_v19 = vunpack.c.h.b16 %v10125_v4  ;;  %v4591_v18 = vunpack.c.l.b16 %v10131_v49  ;;  %v10688_v10 = vld [vmem:[#allocation13 + $0x464] ss:$8 sps:$4 sm:$0xff]  }
 0x372   :  { %v13229_v2 = vsel %vm11643_vm9, %v14399_v59, %v6228_v16  ;;  %v4597_v48 = vunpack.c.l.b16 %v10134_v33  ;;  %v4574_v52 = vunpack.c.h.b16 %v10122_v34  ;;  %v4586_v23 = vunpack.c.h.b16 %v10128_v41  ;;  %5668 = vmatpush2.bf16.msra.mxu0 %v10668_v8  ;;  %v10674_v16 = vld [vmem:[#allocation13 + $0x280] ss:$8 sps:$4 sm:$0xff]  }
 0x373   :  { %v4603_v13 = vunpack.c.l.b16 %v13207_v37  ;;  %v4609_v60 = vunpack.c.l.b16 %v13209_v27  ;;  %v4592_v55 = vunpack.c.h.b16 %v10131_v49  ;;  %v4598_v3 = vunpack.c.h.b16 %v10134_v33  ;;  %5916 = vmatpush2.bf16.msra.mxu1 %v10671_v58  ;;  %5669 = vmatprep.subr.bf16.mxu0 %v10676_v54 }
 0x374   :  { %v4615_v6 = vunpack.c.l.b16 %v13211_v28  ;;  %v4731_v25 = vrot.slane %v4579_v21, 7  ;;  %v4604_v46 = vunpack.c.h.b16 %v13207_v37  ;;  %v4610_v26 = vunpack.c.h.b16 %v13209_v27  ;;  %v10190_v56 = vpop.permute.xlu1 %10189  ;;  %5917 = vmatprep.subr.bf16.mxu1 %v10679_v1  ;;  %v10680_v37 = vld [vmem:[#allocation13 + $0x380] ss:$8 sps:$4 sm:$0xff]   ;;  %v10691_v21 = vld [vmem:[#allocation13 + $0x574] ss:$8 sps:$4 sm:$0xff]  }
 0x375   :  { %v4616_v17 = vunpack.c.h.b16 %v13211_v28  ;;  %v4733_v51 = vrot.slane %v4585_v24, 6  ;;  %v4735_v31 = vrot.slane %v4591_v18, 5  ;;  %v4737_v40 = vrot.slane %v4597_v48, 4 }
 0x376   :  { %v4732_v50 = vsel %vm3777_vm11, %v4731_v25, %v4573_v47  ;;  %v4745_v11 = vrot.slane %v4580_v19, 7  ;;  %v4739_v35 = vrot.slane %v4603_v13, 3  ;;  %v4741_v45 = vrot.slane %v4609_v60, 2  ;;  %5670 = vmatpush2.bf16.msra.mxu0 %v10674_v16  ;;  %v10686_v13 = vld [vmem:[#allocation13 + $0x460] ss:$8 sps:$4 sm:$0xff]  }
 0x377   :  { %v4734_v53 = vsel %vm3779_vm12, %v4733_v51, %v4732_v50  ;;  %v4747_v12 = vrot.slane %v4586_v23, 6  ;;  %v4743_v57 = vrot.slane %v4615_v6, 1  ;;  %v4749_v34 = vrot.slane %v4592_v55, 5  ;;  %5918 = vmatpush2.bf16.msra.mxu1 %v10677_v62  ;;  %6169 = vmatprep.subr.bf16.mxu0 %v10685_v44  ;;  %v10694_v6 = vld [vmem:[#allocation13 + $0x454] ss:$8 sps:$4 sm:$0xff]   ;;  %v14417_v50 = vld [vmem:[#allocation40_spill] sm:$0xff] }
 0x378   :  { %v4736_v22 = vsel %vm14400_vm2, %v4735_v31, %v4734_v53  ;;  %v4746_v7 = vsel %vm3777_vm11, %v4745_v11, %v4574_v52  ;;  %v4751_v49 = vrot.slane %v4598_v3, 4  ;;  %v10192_v33 = vunpack.i.h.bf16 %v10190_v56  ;;  %5919 = vmatprep.subr.bf16.mxu1 %v10682_v42  ;;  %v10697_v25 = vld [vmem:[#allocation13 + $0x564] ss:$8 sps:$4 sm:$0xff]   ;;  %v14416_v44 = vld [vmem:[#allocation45_spill] sm:$0xff] }
 0x379   :  { %v4738_v4 = vsel %vm317_vm5, %v4737_v40, %v4736_v22  ;;  %v4748_v41 = vsel %vm3779_vm12, %v4747_v12, %v4746_v7  ;;  %v4753_v8 = vrot.slane %v4604_v46, 3  ;;  %v10191_v32 = vunpack.i.l.bf16 %v10190_v56  ;;  %v10692_v40 = vld [vmem:[#allocation13 + $0x450] ss:$8 sps:$4 sm:$0xff]   ;;  %v10700_v7 = vld [vmem:[#allocation13 + $0x444] ss:$8 sps:$4 sm:$0xff]  }
 0x37a   :  { %v4740_v27 = vsel %vm14401_vm0, %v4739_v35, %v4738_v4  ;;  %v4750_v28 = vsel %vm14402_vm4, %v4749_v34, %v4748_v41  ;;  %v4755_v54 = vrot.slane %v4610_v26, 2  ;;  %v4757_v59 = vrot.slane %v4616_v17, 1  ;;  %vm14411_vm0 = vmmov %vm14403_vm14  ;;  %v10695_v35 = vld [vmem:[#allocation13 + $0x560] ss:$8 sps:$4 sm:$0xff]  }
 0x37b   :  { %v4742_v24 = vsel %vm14403_vm14, %v4741_v45, %v4740_v27  ;;  %v4752_v58 = vsel %vm317_vm5, %v4751_v49, %v4750_v28  ;;  %v14404_v47 = vcombine.low %v13100_v36, %v13096_v39  ;;  %v14407_v48 = vunpack.i.h.bf16 %v13120_v63  ;;  %5920 = vmatpush2.bf16.msra.mxu1 %v10680_v37  ;;  %v10689_v36 = vld [vmem:[#allocation13 + $0x570] ss:$8 sps:$4 sm:$0xff]   ;;  %vm14413_vm14 = vmmov %vm14405_vm15  ;;  %v10703_v49 = vld [vmem:[#allocation13 + $0x554] ss:$8 sps:$4 sm:$0xff]  }
 0x37c   :  { %v4744_v19 = vsel %vm14405_vm15, %v4743_v57, %v4742_v24  ;;  %v4754_v18 = vsel %vm14406_vm1, %v4753_v8, %v4752_v58  ;;  %vm14408_vm10 = vcmask 916480   ;;  %v14409_v52 = vunpack.i.l.bf16 %v12929_v30  ;;  %6431 = vmatprep.subr.bf16.mxu1 %v10691_v21  ;;  %v10698_v8 = vld [vmem:[#allocation13 + $0x440] ss:$8 sps:$4 sm:$0xff]  }
 0x37d   :  { %5672 = vmatmul.mubr.bf16.vlgmr.msra.gmra.mxu0 %v14404_v47  ;;  %v13255_v1 = vsel %vm14408_vm10, %v14407_v48, %v10191_v32  ;;  %vm14410_vm2 = vmmov %vm14408_vm10  ;;  %v4756_v60 = vsel %vm14411_vm0, %v4755_v54, %v4754_v18  ;;  %v9746_v30 = vcombine.high %v13219_v0, %v13229_v2  ;;  %v14414_v55 = vunpack.i.h.bf16 %v12969_v20  ;;  %v14419_v24 = vld [vmem:[#allocation39_spill] sm:$0xff]  ;;  %v10701_v54 = vld [vmem:[#allocation13 + $0x550] ss:$8 sps:$4 sm:$0xff]  }
 0x37e   :  { %v13260_v23 = vsel %vm14410_vm2, %v10191_v32, %v14409_v52  ;;  %6170 = vmatpush1.bf16.msra.mxu0 %v10683_v14  ;;  %vm14412_vm4 = vmmov %vm14410_vm2  ;;  %6201 = vmatprep.mubr.bf16.mxu0 %v9710_v61  ;;  %v4758_v63 = vsel %vm14413_vm14, %v4757_v59, %v4756_v60  ;;  %v3915_v38 = vrot.slane %v13255_v1, 1  ;;  %v3921_v16 = vrot.slane %v13255_v1, 2  ;;  %v14420_v59 = vld [vmem:[#allocation44_spill] sm:$0xff] }
 0x37f   :  { %v13266_v39 = vsel %vm14412_vm4, %v10187_v43, %v10192_v33  ;;  %vm14415_vm15 = vmmov %vm14410_vm2  ;;  %v3916_v43 = vrot.slane %v13260_v23, 1  ;;  %6171 = vmatprep.subr.bf16.mxu0 %v10688_v10  ;;  %v4791_v61 = vpack.c.b16 %v4758_v63, %v4744_v19  ;;  %v3922_v46 = vrot.slane %v13260_v23, 2  ;;  %v14421_v19 = vld [vmem:[#allocation89_spill] sm:$0xff]  ;;  %v14422_v48 = vld [vmem:[#allocation92_spill] sm:$0xff] }
 0x380   :  { %v13277_v3 = vsel %vm14415_vm15, %v10192_v33, %v14414_v55  ;;  %v3927_v26 = vrot.slane %v13255_v1, 3  ;;  %v3928_v20 = vrot.slane %v13260_v23, 3  ;;  %v3933_v17 = vrot.slane %v13255_v1, 4  ;;  %v14425_v55 = vld [vmem:[#allocation33_spill] sm:$0xff]  ;;  %vm14455_vm15 = vmmov %vm14411_vm0 }
 0x381   :  { %v3934_v51 = vrot.slane %v13260_v23, 4  ;;  %v3939_v62 = vrot.slane %v13255_v1, 5  ;;  %v14418_v31 = vpack.c.b16 %v14416_v44, %v14417_v50  ;;  %4803 = vst [vmem:[#allocation4 + $0x48] sm:$0xff] %v4791_v61  ;;  %v3940_v11 = vrot.slane %v13260_v23, 5  ;;  %v10709_v50 = vld [vmem:[#allocation13 + $0x544] ss:$8 sps:$4 sm:$0xff]  }
 0x382   :  { %6172 = vmatpush1.bf16.msra.mxu0 %v10686_v13  ;;  %v3945_v56 = vrot.slane %v13255_v1, 6  ;;  %v3946_v42 = vrot.slane %v13260_v23, 6  ;;  %v3951_v53 = vrot.slane %v13255_v1, 7  ;;  %v3952_v45 = vrot.slane %v13260_v23, 7  ;;  %v14423_v13 = vld [vmem:[#allocation90_spill] sm:$0xff] }
 0x383   :  { %5922 = vmatmul.mubr.bf16.vlgmr.msra.gmra.mxu1 %v14418_v31  ;;  %v3957_v12 = vrot.slane %v13266_v39, 1  ;;  %v3958_v22 = vrot.slane %v13277_v3, 1  ;;  %v3963_v57 = vrot.slane %v13266_v39, 2  ;;  %6173 = vmatprep.subr.bf16.mxu0 %v10694_v6  ;;  %v3964_v34 = vrot.slane %v13277_v3, 2  ;;  %v14428_v31 = vld [vmem:[#allocation102_spill] sm:$0xff] }
 0x384   :  { %6432 = vmatpush1.bf16.msra.mxu1 %v10689_v36  ;;  %6463 = vmatprep.mubr.bf16.mxu1 %v9746_v30  ;;  %v3969_v14 = vrot.slane %v13266_v39, 3  ;;  %v3970_v4 = vrot.slane %v13277_v3, 3  ;;  %v3975_v41 = vrot.slane %v13266_v39, 4  ;;  %v3976_v33 = vrot.slane %v13277_v3, 4  ;;  %v10706_v36 = vld [vmem:[#allocation13 + $0x434] ss:$8 sps:$4 sm:$0xff]  }
 0x385   :  { %6433 = vmatprep.subr.bf16.mxu1 %v10697_v25  ;;  %v3981_v37 = vrot.slane %v13266_v39, 5  ;;  %v3982_v27 = vrot.slane %v13277_v3, 5  ;;  %v3987_v28 = vrot.slane %v13266_v39, 6  ;;  %v3988_v32 = vrot.slane %v13277_v3, 6  ;;  %v14424_v30 = vld [vmem:[#allocation91_spill] sm:$0xff]  ;;  %v14426_v25 = vld [vmem:[#allocation101_spill] sm:$0xff] }
 0x386   :  { %6174 = vmatpush1.bf16.msra.mxu0 %v10692_v40  ;;  %v3993_v10 = vrot.slane %v13266_v39, 7  ;;  %v3994_v21 = vrot.slane %v13277_v3, 7  ;;  %v4095_v58 = vmax.f32 %v14419_v24, %v13255_v1  ;;  %v4096_v47 = vmax.f32 %v14420_v59, %v13260_v23  ;;  %v14427_v1 = vld [vmem:[#allocation34_spill] sm:$0xff]  ;;  %v14429_v40 = vld [vmem:[#allocation35_spill] sm:$0xff]  ;;  %v14431_v24 = vld [vmem:[#allocation97_spill] sm:$0xff] }
 0x387   :  { %v4101_v18 = vmax.f32 %v14421_v19, %v3915_v38  ;;  %v4102_v52 = vmax.f32 %v14422_v48, %v3916_v43  ;;  %v4107_v60 = vmax.f32 %v14423_v13, %v3921_v16  ;;  %6175 = vmatprep.subr.bf16.mxu0 %v10700_v7  ;;  %v4108_v63 = vmax.f32 %v14424_v30, %v3922_v46  ;;  %v10704_v7 = vld [vmem:[#allocation13 + $0x430] ss:$8 sps:$4 sm:$0xff]   ;;  %v14432_v59 = vld [vmem:[#allocation107_spill] sm:$0xff] }
 0x388   :  { %6434 = vmatpush1.bf16.msra.mxu1 %v10695_v35  ;;  %v4113_v6 = vmax.f32 %v14425_v55, %v3927_v26  ;;  %v4114_v61 = vmax.f32 %v14426_v25, %v3928_v20  ;;  %v4119_v44 = vmax.f32 %v14427_v1, %v3933_v17  ;;  %v4120_v23 = vmax.f32 %v14428_v31, %v3934_v51  ;;  %v14430_v35 = vld [vmem:[#allocation105_spill] sm:$0xff]  ;;  %v14433_v19 = vld [vmem:[#allocation98_spill] sm:$0xff]  ;;  %v10707_v13 = vld [vmem:[#allocation13 + $0x540] ss:$8 sps:$4 sm:$0xff]  }
 0x389   :  { %6435 = vmatprep.subr.bf16.mxu1 %v10703_v49  ;;  %v4125_v38 = vmax.f32 %v14429_v40, %v3939_v62  ;;  %v4126_v43 = vmax.f32 %v14430_v35, %v3940_v11  ;;  %v4131_v16 = vmax.f32 %v14431_v24, %v3945_v56  ;;  %v4132_v46 = vmax.f32 %v14432_v59, %v3946_v42  ;;  %v14434_v48 = vld [vmem:[#allocation109_spill] sm:$0xff]  ;;  %v14436_v51 = vld [vmem:[#allocation94_spill] sm:$0xff]  ;;  %v14437_v30 = vld [vmem:[#allocation95_spill] sm:$0xff] }
 0x38a   :  { %6176 = vmatpush1.bf16.msra.mxu0 %v10698_v8  ;;  %v4137_v26 = vmax.f32 %v14433_v19, %v3951_v53  ;;  %v4138_v20 = vmax.f32 %v14434_v48, %v3952_v45  ;;  %v14435_v17 = vld [vmem:[#allocation93_spill] sm:$0xff]  ;;  %v4144_v62 = vmax.f32 %v14436_v51, %v13277_v3  ;;  %v4149_v11 = vmax.f32 %v14437_v30, %v3957_v12  ;;  %v14438_v55 = vld [vmem:[#allocation96_spill] sm:$0xff]  ;;  %v14439_v8 = vld [vmem:[#allocation31_spill] sm:$0xff] }
 0x38b   :  { %v4143_v49 = vmax.f32 %v14435_v17, %v13266_v39  ;;  %v4150_v56 = vmax.f32 %v14438_v55, %v3958_v22  ;;  %v4155_v25 = vmax.f32 %v14439_v8, %v3963_v57  ;;  %6177 = vmatprep.subr.bf16.mxu0 %v10706_v36  ;;  %v10712_v42 = vld [vmem:[#allocation13 + $0x424] ss:$8 sps:$4 sm:$0xff]   ;;  %v14443_v39 = vld [vmem:[#allocation37_spill] sm:$0xff]  ;;  %v14445_v19 = vld [vmem:[#allocation38_spill] sm:$0xff]  ;;  %v13346_v8 = vpack.c.bf16 %v4096_v47, %v4095_v58 }
 0x38c   :  { %6436 = vmatpush1.bf16.msra.mxu1 %v10701_v54  ;;  %v14440_v1 = vld [vmem:[#allocation32_spill] sm:$0xff]  ;;  %v14442_v40 = vld [vmem:[#allocation103_spill] sm:$0xff]  ;;  %v4167_v54 = vmax.f32 %v14443_v39, %v3975_v41  ;;  %v10715_v24 = vld [vmem:[#allocation13 + $0x534] ss:$8 sps:$4 sm:$0xff]   ;;  %v4173_v12 = vmax.f32 %v14445_v19, %v3981_v37  ;;  %v13350_v37 = vpack.c.bf16 %v4108_v63, %v4107_v60  ;;  %vm14451_vm1 = vcmask 1043459  }
 0x38d   :  { %v4156_v53 = vmax.f32 %v14440_v1, %v3964_v34  ;;  %v14441_v31 = vld [vmem:[#allocation36_spill] sm:$0xff]  ;;  %v4162_v35 = vmax.f32 %v14442_v40, %v3970_v4  ;;  %6437 = vmatprep.subr.bf16.mxu1 %v10709_v50  ;;  %v14446_v48 = vld [vmem:[#allocation106_spill] sm:$0xff]  ;;  %v14447_v17 = vld [vmem:[#allocation99_spill] sm:$0xff]  ;;  %v13362_v58 = vpack.c.bf16 %v4144_v62, %v4143_v49  ;;  %v13364_v47 = vpack.c.bf16 %v4150_v56, %v4149_v11 }
 0x38e   :  { %v4161_v45 = vmax.f32 %v14441_v31, %v3969_v14  ;;  %v14444_v59 = vld [vmem:[#allocation104_spill] sm:$0xff]  ;;  %v4174_v22 = vmax.f32 %v14446_v48, %v3982_v27  ;;  %v4179_v57 = vmax.f32 %v14447_v17, %v3987_v28  ;;  %6178 = vmatpush1.bf16.msra.mxu0 %v10704_v7  ;;  %v14450_v55 = vld [vmem:[#allocation110_spill] sm:$0xff]  ;;  %v13352_v27 = vpack.c.bf16 %v4114_v61, %v4113_v6  ;;  %vm14453_vm2 = vmmov %vm14451_vm1 }
 0x38f   :  { %v4168_v3 = vmax.f32 %v14444_v59, %v3976_v33  ;;  %v10710_v36 = vld [vmem:[#allocation13 + $0x420] ss:$8 sps:$4 sm:$0xff]   ;;  %v4186_v4 = vmax.f32 %v14450_v55, %v3994_v21  ;;  %v10713_v41 = vld [vmem:[#allocation13 + $0x530] ss:$8 sps:$4 sm:$0xff]   ;;  %v10718_v50 = vld [vmem:[#allocation13 + $0x414] ss:$8 sps:$4 sm:$0xff]   ;;  %v13348_v33 = vpack.c.bf16 %v4102_v52, %v4101_v18  ;;  %v13354_v28 = vpack.c.bf16 %v4120_v23, %v4119_v44  ;;  %6179 = vmatprep.subr.bf16.mxu0 %v10712_v42 }
 0x390   :  { %v14448_v51 = vld [vmem:[#allocation108_spill] sm:$0xff]  ;;  %6438 = vmatpush1.bf16.msra.mxu1 %v10707_v13  ;;  %v13360_v21 = vpack.c.bf16 %v4138_v20, %v4137_v26  ;;  %v13366_v18 = vpack.c.bf16 %v4156_v53, %v4155_v25  ;;  %v13368_v52 = vpack.c.bf16 %v4162_v35, %v4161_v45  ;;  %v10716_v63 = vld [vmem:[#allocation13 + $0x410] ss:$8 sps:$4 sm:$0xff]   ;;  %v13372_v6 = vpack.c.bf16 %v4174_v22, %v4173_v12  ;;  %v10727_v49 = vld [vmem:[#allocation13 + $0x514] ss:$8 sps:$4 sm:$0xff]  }
 0x391   :  { %v4180_v34 = vmax.f32 %v14448_v51, %v3988_v32  ;;  %v14449_v30 = vld [vmem:[#allocation100_spill] sm:$0xff]  ;;  %v13356_v32 = vpack.c.bf16 %v4126_v43, %v4125_v38  ;;  %6439 = vmatprep.subr.bf16.mxu1 %v10715_v24  ;;  %v13370_v60 = vpack.c.bf16 %v4168_v3, %v4167_v54  ;;  %v4527_v23 = vunpack.c.l.b16 %v13346_v8  ;;  %v10725_v54 = vld [vmem:[#allocation13 + $0x510] ss:$8 sps:$4 sm:$0xff]   ;;  %v10730_v24 = vld [vmem:[#allocation13 + $0x4f4] ss:$8 sps:$4 sm:$0xff]  }
 0x392   :  { %v4185_v14 = vmax.f32 %v14449_v30, %v3993_v10  ;;  %v10721_v7 = vld [vmem:[#allocation13 + $0x524] ss:$8 sps:$4 sm:$0xff]   ;;  %v13358_v10 = vpack.c.bf16 %v4132_v46, %v4131_v16  ;;  %6180 = vmatpush1.bf16.msra.mxu0 %v10710_v36  ;;  %v10719_v38 = vld [vmem:[#allocation13 + $0x520] ss:$8 sps:$4 sm:$0xff]   ;;  %v4528_v16 = vunpack.c.h.b16 %v13346_v8  ;;  %v4533_v46 = vunpack.c.l.b16 %v13348_v33  ;;  %v10728_v55 = vld [vmem:[#allocation13 + $0x4f0] ss:$8 sps:$4 sm:$0xff]  }
 0x393   :  { %v13374_v61 = vpack.c.bf16 %v4180_v34, %v4179_v57  ;;  %6181 = vmatprep.subr.bf16.mxu0 %v10718_v50  ;;  %v10724_v43 = vld [vmem:[#allocation13 + $0x404] ss:$8 sps:$4 sm:$0xff]   ;;  %v4534_v26 = vunpack.c.h.b16 %v13348_v33  ;;  %v4539_v20 = vunpack.c.l.b16 %v13350_v37  ;;  %v4540_v13 = vunpack.c.h.b16 %v13350_v37  ;;  %v10722_v31 = vld [vmem:[#allocation13 + $0x400] ss:$8 sps:$4 sm:$0xff]  }
 0x394   :  { %v13376_v44 = vpack.c.bf16 %v4186_v4, %v4185_v14  ;;  %6440 = vmatpush1.bf16.msra.mxu1 %v10713_v41  ;;  %v4545_v62 = vunpack.c.l.b16 %v13352_v27  ;;  %v4546_v11 = vunpack.c.h.b16 %v13352_v27  ;;  %v4551_v56 = vunpack.c.l.b16 %v13354_v28  ;;  %v10733_v48 = vld [vmem:[#allocation13 + $0x504] ss:$8 sps:$4 sm:$0xff]   ;;  %v10731_v33 = vld [vmem:[#allocation13 + $0x500] ss:$8 sps:$4 sm:$0xff]  }
 0x395   :  { %6441 = vmatprep.subr.bf16.mxu1 %v10721_v7  ;;  %v4552_v25 = vunpack.c.h.b16 %v13354_v28  ;;  %v4557_v42 = vunpack.c.l.b16 %v13356_v32  ;;  %v4558_v1 = vunpack.c.h.b16 %v13356_v32  ;;  %v4563_v53 = vunpack.c.l.b16 %v13358_v10  ;;  %v10736_v37 = vld [vmem:[#allocation13 + $0x4e4] ss:$8 sps:$4 sm:$0xff]  }
 0x396   :  { %6182 = vmatpush1.bf16.msra.mxu0 %v10716_v63  ;;  %v4564_v45 = vunpack.c.h.b16 %v13358_v10  ;;  %v4569_v40 = vunpack.c.l.b16 %v13360_v21  ;;  %v4570_v35 = vunpack.c.h.b16 %v13360_v21  ;;  %v4575_v39 = vunpack.c.l.b16 %v13362_v58  ;;  %v10739_v10 = vld [vmem:[#allocation13 + $0x5f4] ss:$8 sps:$4 sm:$0xff]  }
 0x397   :  { %6183 = vmatprep.subr.bf16.mxu0 %v10724_v43  ;;  %v4576_v59 = vunpack.c.h.b16 %v13362_v58  ;;  %v4581_v3 = vunpack.c.l.b16 %v13364_v47  ;;  %v4582_v19 = vunpack.c.h.b16 %v13364_v47  ;;  %v4587_v12 = vunpack.c.l.b16 %v13366_v18 }
 0x398   :  { %6442 = vmatpush1.bf16.msra.mxu1 %v10719_v38  ;;  %v4588_v22 = vunpack.c.h.b16 %v13366_v18  ;;  %v4593_v17 = vunpack.c.l.b16 %v13368_v52  ;;  %v4594_v57 = vunpack.c.h.b16 %v13368_v52  ;;  %v4599_v36 = vunpack.c.l.b16 %v13370_v60  ;;  %v10746_v18 = vld [vmem:[#allocation13 + $0x4c0] ss:$8 sps:$4 sm:$0xff]  }
 0x399   :  { %6443 = vmatprep.subr.bf16.mxu1 %v10727_v49  ;;  %v4600_v51 = vunpack.c.h.b16 %v13370_v60  ;;  %v4605_v34 = vunpack.c.l.b16 %v13372_v6  ;;  %v4606_v30 = vunpack.c.h.b16 %v13372_v6  ;;  %v4675_v14 = vrot.slane %v4533_v46, 7  ;;  %v10752_v6 = vld [vmem:[#allocation13 + $0x4b0] ss:$8 sps:$4 sm:$0xff]  }
 0x39a   :  { %6184 = vmatpush1.bf16.msra.mxu0 %v10722_v31  ;;  %v4611_v4 = vunpack.c.l.b16 %v13374_v61  ;;  %v4617_v8 = vunpack.c.l.b16 %v13376_v44  ;;  %v4677_v41 = vrot.slane %v4539_v20, 6  ;;  %v4679_v50 = vrot.slane %v4545_v62, 5 }
 0x39b   :  { %6185 = vmatprep.subr.bf16.mxu0 %v10730_v24  ;;  %v4676_v27 = vsel %vm3777_vm11, %v4675_v14, %v4527_v23  ;;  %v4681_v28 = vrot.slane %v4551_v56, 4  ;;  %v4683_v7 = vrot.slane %v4557_v42, 3  ;;  %v4689_v32 = vrot.slane %v4534_v26, 7  ;;  %v10737_v24 = vld [vmem:[#allocation13 + $0x5f0] ss:$8 sps:$4 sm:$0xff]  }
 0x39c   :  { %6444 = vmatpush1.bf16.msra.mxu1 %v10725_v54  ;;  %v4678_v63 = vsel %vm3779_vm12, %v4677_v41, %v4676_v27  ;;  %v4685_v38 = vrot.slane %v4563_v53, 2  ;;  %v4687_v43 = vrot.slane %v4569_v40, 1  ;;  %v4691_v46 = vrot.slane %v4540_v13, 6  ;;  %v10734_v54 = vld [vmem:[#allocation13 + $0x4e0] ss:$8 sps:$4 sm:$0xff]  }
 0x39d   :  { %6445 = vmatprep.subr.bf16.mxu1 %v10733_v48  ;;  %v4680_v49 = vsel %vm14451_vm1, %v4679_v50, %v4678_v63  ;;  %v4690_v20 = vsel %vm3777_vm11, %v4689_v32, %v4528_v16  ;;  %v4693_v62 = vrot.slane %v4546_v11, 5  ;;  %v4695_v31 = vrot.slane %v4552_v25, 4  ;;  %v10742_v53 = vld [vmem:[#allocation13 + $0x4d4] ss:$8 sps:$4 sm:$0xff]   ;;  %v10745_v11 = vld [vmem:[#allocation13 + $0x5e4] ss:$8 sps:$4 sm:$0xff]  }
 0x39e   :  { %6186 = vmatpush2.bf16.msra.mxu0 %v10728_v55  ;;  %v4682_v23 = vsel %vm317_vm5, %v4681_v28, %v4680_v49  ;;  %v4692_v56 = vsel %vm3779_vm12, %v4691_v46, %v4690_v20  ;;  %v4697_v26 = vrot.slane %v4558_v1, 3  ;;  %v4759_v42 = vrot.slane %v4581_v3, 7  ;;  %v10751_v32 = vld [vmem:[#allocation13 + $0x5d4] ss:$8 sps:$4 sm:$0xff]   ;;  %v11245_v20 = vld [vmem:[#allocation4 + $0x58] sm:$0xee] }
 0x39f   :  { %6187 = vmatprep.subr.bf16.mxu0 %v10736_v37  ;;  %vm14452_vm10 = vcmask 1045509   ;;  %v4694_v40 = vsel %vm14453_vm2, %v4693_v62, %v4692_v56  ;;  %v4699_v48 = vrot.slane %v4564_v45, 2  ;;  %v4761_v16 = vrot.slane %v4587_v12, 6  ;;  %v10740_v45 = vld [vmem:[#allocation13 + $0x4d0] ss:$8 sps:$4 sm:$0xff]  }
 0x3a0   :  { %6446 = vmatpush1.bf16.msra.mxu1 %v10731_v33  ;;  %v4684_v13 = vsel %vm14452_vm10, %v4683_v7, %v4682_v23  ;;  %v4696_v14 = vsel %vm317_vm5, %v4695_v31, %v4694_v40  ;;  %v4760_v55 = vsel %vm3777_vm11, %v4759_v42, %v4575_v39  ;;  %v4763_v1 = vrot.slane %v4593_v17, 5  ;;  %vm14454_vm4 = vmmov %vm14452_vm10  ;;  %v10743_v39 = vld [vmem:[#allocation13 + $0x5e0] ss:$8 sps:$4 sm:$0xff]   ;;  %v10748_v17 = vld [vmem:[#allocation13 + $0x4c4] ss:$8 sps:$4 sm:$0xff]  }
 0x3a1   :  { %6447 = vmatprep.subr.bf16.mxu1 %v10739_v10  ;;  %v4686_v25 = vsel %vm14411_vm0, %v4685_v38, %v4684_v13  ;;  %v4698_v3 = vsel %vm14454_vm4, %v4697_v26, %v4696_v14  ;;  %v4701_v41 = vrot.slane %v4570_v35, 1  ;;  %v4762_v50 = vsel %vm3779_vm12, %v4761_v16, %v4760_v55  ;;  %vm14456_vm10 = vmmov %vm14413_vm14  ;;  %v10754_v49 = vld [vmem:[#allocation13 + $0x4b4] ss:$8 sps:$4 sm:$0xff]   ;;  %v6479_v31 = vld [vmem:[#allocation4 + $0x18] sm:$0x33] }
 0x3a2   :  { %v4765_v33 = vrot.slane %v4599_v36, 4  ;;  %6188 = vmatpush2.bf16.msra.mxu0 %v10734_v54  ;;  %v4688_v12 = vsel %vm14413_vm14, %v4687_v43, %v4686_v25  ;;  %v4700_v37 = vsel %vm14455_vm15, %v4699_v48, %v4698_v3  ;;  %v4764_v27 = vsel %vm14451_vm1, %v4763_v1, %v4762_v50  ;;  %vm14457_vm2 = vmmov %vm14454_vm4  ;;  %v11246_v54 = vld [vmem:[#allocation4 + $0x10] sm:$0xee]  ;;  %v13456_v25 = vld [vmem:[#allocation4 + $0x48] sm:$0xff] }
 0x3a3   :  { %v4767_v28 = vrot.slane %v4605_v34, 3  ;;  %6189 = vmatprep.subr.bf16.mxu0 %v10742_v53  ;;  %v4702_v7 = vsel %vm14456_vm10, %v4701_v41, %v4700_v37  ;;  %v4773_v35 = vrot.slane %v4582_v19, 7  ;;  %v4775_v36 = vrot.slane %v4588_v22, 6  ;;  %vm14460_vm4 = vmmov %vm14457_vm2  ;;  %v10760_v53 = vld [vmem:[#allocation13 + $0x4a4] ss:$8 sps:$4 sm:$0xff]  }
 0x3a4   :  { %6448 = vmatpush2.bf16.msra.mxu1 %v10737_v24  ;;  %v4766_v21 = vsel %vm317_vm5, %v4765_v33, %v4764_v27  ;;  %v4612_v10 = vunpack.c.h.b16 %v13374_v61  ;;  %v4769_v63 = vrot.slane %v4611_v4, 2  ;;  %v4618_v38 = vunpack.c.h.b16 %v13376_v44  ;;  %v10749_v4 = vld [vmem:[#allocation13 + $0x5d0] ss:$8 sps:$4 sm:$0xff]   ;;  %vm14461_vm14 = vmmov %vm14411_vm0  ;;  %v10755_v24 = vld [vmem:[#allocation13 + $0x5c0] ss:$8 sps:$4 sm:$0xff]  }
 0x3a5   :  { %6449 = vmatprep.subr.bf16.mxu1 %v10745_v11  ;;  %v4768_v34 = vsel %vm14457_vm2, %v4767_v28, %v4766_v21  ;;  %v4774_v43 = vsel %vm3777_vm11, %v4773_v35, %v4576_v59  ;;  %v4777_v47 = vrot.slane %v4594_v57, 5  ;;  %v4779_v46 = vrot.slane %v4600_v51, 4  ;;  %vm14458_vm11 = vmmov %vm14451_vm1  ;;  %v10757_v57 = vld [vmem:[#allocation13 + $0x5c4] ss:$8 sps:$4 sm:$0xff]   ;;  %v6478_v13 = vld [vmem:[#allocation4 + $0x70] sm:$0x33] }
 0x3a6   :  { %6190 = vmatpush2.bf16.msra.mxu0 %v10740_v45  ;;  %v4770_v19 = vsel %vm14411_vm0, %v4769_v63, %v4768_v34  ;;  %v4776_v22 = vsel %vm3779_vm12, %v4775_v36, %v4774_v43  ;;  %v4789_v61 = vpack.c.b16 %v4702_v7, %v4688_v12  ;;  %v4771_v58 = vrot.slane %v4617_v8, 1  ;;  %vm14459_vm12 = vmmov %vm14456_vm10  ;;  %v10758_v48 = vld [vmem:[#allocation13 + $0x4a0] ss:$8 sps:$4 sm:$0xff]   ;;  %v10763_v16 = vld [vmem:[#allocation13 + $0x5b4] ss:$8 sps:$4 sm:$0xff]  }
 0x3a7   :  { %6191 = vmatprep.subr.bf16.mxu0 %v10748_v17  ;;  %v4778_v52 = vsel %vm14458_vm11, %v4777_v47, %v4776_v22  ;;  %v4781_v59 = vrot.slane %v4606_v30, 3  ;;  %v6481_v62 = vshrl.u32 %v11245_v20, 16  ;;  %v4783_v51 = vrot.slane %v4612_v10, 2  ;;  %v177_v14 = vld [vmem:[#allocation4 + $0x80] sm:$0x33] }
 0x3a8   :  { %6450 = vmatpush2.bf16.msra.mxu1 %v10743_v39  ;;  %v4780_v60 = vsel %vm317_vm5, %v4779_v46, %v4778_v52  ;;  %4801 = vst [vmem:[#allocation4 + $0x8] sm:$0xff] %v4789_v61  ;;  %v6499_v23 = vshrl.u32 %v11246_v54, 16  ;;  %v6502_v56 = vshll.u32 %v11246_v54, 16  ;;  %v4772_v44 = vsel %vm14459_vm12, %v4771_v58, %v4770_v19  ;;  %vm14462_vm5 = vmmov %vm14456_vm10  ;;  %v10761_v1 = vld [vmem:[#allocation13 + $0x5b0] ss:$8 sps:$4 sm:$0xff]  }
 0x3a9   :  { %6451 = vmatprep.subr.bf16.mxu1 %v10751_v32  ;;  %v4782_v8 = vsel %vm14460_vm4, %v4781_v59, %v4780_v60  ;;  %v4785_v26 = vrot.slane %v4618_v38, 1  ;;  %v6484_v30 = vshll.u32 %v11245_v20, 16  ;;  %v6508_v11 = vshrl.u32 %v6479_v31, 16  ;;  %v10766_v3 = vld [vmem:[#allocation13 + $0x494] ss:$8 sps:$4 sm:$0xff]   ;;  %v13460_v17 = vld [vmem:[#allocation4 + $0x20] sm:$0xff] }
 0x3aa   :  { %6192 = vmatpush2.bf16.msra.mxu0 %v10746_v18  ;;  %v4784_v42 = vsel %vm14461_vm14, %v4783_v51, %v4782_v8  ;;  %v6501_v41 = vrot.slane %v6499_v23, 5  ;;  %v6504_v50 = vrot.slane %v6502_v56, 6  ;;  %v6511_v33 = vshll.u32 %v6479_v31, 16  ;;  %v192_v45 = vld [vmem:[#allocation4 + $0x68] sm:$0x33] }
 0x3ab   :  { %6193 = vmatprep.subr.bf16.mxu0 %v10754_v49  ;;  %v4786_v40 = vsel %vm14462_vm5, %v4785_v26, %v4784_v42  ;;  %v10769_v12 = vld [vmem:[#allocation13 + $0x5a4] ss:$8 sps:$4 sm:$0xff]   ;;  %v6483_v37 = vrot.slane %v6481_v62, 5  ;;  %v6486_v27 = vrot.slane %v6484_v30, 6  ;;  %v6490_v28 = vshrl.u32 %v6478_v13, 16 }
 0x3ac   :  { %6452 = vmatpush2.bf16.msra.mxu1 %v10749_v4  ;;  %v4792_v55 = vpack.c.b16 %v4786_v40, %v4772_v44  ;;  %v13458_v39 = vld [vmem:[#allocation4 + $0x38] sm:$0x88]  ;;  %v6493_v7 = vshll.u32 %v6478_v13, 16  ;;  %v9886_v21 = vcombine.high %v13460_v17, %v13456_v25  ;;  %v180_v35 = vld [vmem:[#allocation4 + $0x88] sm:$0x33]  ;;  %v9885_v34 = vcombine.low %v13460_v17, %v13456_v25  ;;  %v7674_v62 = vld [vmem:[#allocation4 + $0x20] sm:$0xff] }
 0x3ad   :  { %6453 = vmatprep.subr.bf16.mxu1 %v10757_v57  ;;  %v195_v36 = vld [vmem:[#allocation4 + $0x60] sm:$0x33]  ;;  %v10764_v32 = vld [vmem:[#allocation13 + $0x490] ss:$8 sps:$4 sm:$0xff]   ;;  %v13464_v10 = vld [vmem:[#allocation4 + $0x50] sm:$0x88]  ;;  %v6505_v47 = vor.u32 %v6504_v50, %v6501_v41  ;;  %v6487_v49 = vor.u32 %v6486_v27, %v6483_v37 }
 0x3ae   :  { %6194 = vmatpush2.bf16.msra.mxu0 %v10752_v6  ;;  %4804 = vst [vmem:[#allocation4 + $0x30] sm:$0xff] %v4792_v55  ;;  %v178_v38 = vsel %vm13068_vm3, 0, %v177_v14  ;;  %v6894_v43 = vld [vmem:[#allocation4 + $0x20] sm:$0x77]  ;;  %v6510_v18 = vrot.slane %v6508_v11, 5  ;;  %v6513_v19 = vrot.slane %v6511_v33, 6 }
 0x3af   :  { %6195 = vmatprep.subr.bf16.mxu0 %v10760_v53  ;;  %179 = vst [vmem:[#allocation4 + $0x80] sm:$0x33] %v178_v38  ;;  %v193_v22 = vsel %vm13068_vm3, 0, %v192_v45  ;;  %v6896_v46 = vld [vmem:[#allocation4 + $0x48] sm:$0x77]  ;;  %v6492_v58 = vrot.slane %v6490_v28, 5 }
 0x3b0   :  { %6454 = vmatpush2.bf16.msra.mxu1 %v10755_v24  ;;  %v10767_v61 = vld [vmem:[#allocation13 + $0x5a0] ss:$8 sps:$4 sm:$0xff]   ;;  %v10772_v4 = vld [vmem:[#allocation13 + $0x484] ss:$8 sps:$4 sm:$0xff]   ;;  %194 = vst [vmem:[#allocation4 + $0x68] sm:$0x33] %v193_v22  ;;  %v6514_v56 = vor.u32 %v6513_v19, %v6510_v18 }
 0x3b1   :  { %6455 = vmatprep.subr.bf16.mxu1 %v10763_v16  ;;  %v6495_v52 = vrot.slane %v6493_v7, 6  ;;  %v9813_v59 = vrot.slane %v13458_v39, 11  ;;  %v6903_v57 = vrot.slane %v6894_v43, 7  ;;  %v9814_v20 = vrot.slane %v13464_v10, 11  ;;  %v10775_v60 = vld [vmem:[#allocation13 + $0x594] ss:$8 sps:$4 sm:$0xff]  }
 0x3b2   :  { %6196 = vmatpush2.bf16.msra.mxu0 %v10758_v48  ;;  %v6907_v51 = vrot.slane %v6896_v46, 7  ;;  %v181_v31 = vsel %vm13068_vm3, 0, %v180_v35  ;;  %v196_v54 = vsel %vm13068_vm3, 0, %v195_v36  ;;  %v6506_v23 = vrot.slane %v6505_v47, 4  ;;  %v10770_v44 = vld [vmem:[#allocation13 + $0x480] ss:$8 sps:$4 sm:$0xff]  }
 0x3b3   :  { %6197 = vmatprep.subr.bf16.mxu0 %v10766_v3  ;;  %182 = vst [vmem:[#allocation4 + $0x88] sm:$0x33] %v181_v31  ;;  %197 = vst [vmem:[#allocation4 + $0x60] sm:$0x33] %v196_v54  ;;  %v13480_v26 = vsel %vm11628_vm6, %v9813_v59, %v6903_v57  ;;  %v7679_v30 = vshrl.u32 %v7674_v62, 16  ;;  %v6488_v53 = vrot.slane %v6487_v49, 4  ;;  %v6496_v13 = vor.u32 %v6495_v52, %v6492_v58 }
 0x3b4   :  { %6456 = vmatpush2.bf16.msra.mxu1 %v10761_v1  ;;  %v13484_v6 = vsel %vm11628_vm6, %v9814_v20, %v6907_v51  ;;  %v10773_v42 = vld [vmem:[#allocation13 + $0x590] ss:$8 sps:$4 sm:$0xff]   ;;  %v10781_v24 = vld [vmem:[#allocation13 + $0x674] ss:$8 sps:$4 sm:$0xff]   ;;  %v10778_v11 = vld [vmem:[#allocation13 + $0x584] ss:$8 sps:$4 sm:$0xff]   ;;  %v13492_v55 = vsel %vm11711_vm8, %v6506_v23, %v6514_v56  ;;  %v9745_v47 = vcombine.low %v13219_v0, %v13229_v2 }
 0x3b5   :  { %6457 = vmatprep.subr.bf16.mxu1 %v10769_v12  ;;  %v9851_v40 = vcombine.low %v13480_v26, %v13484_v6  ;;  %v9852_v48 = vcombine.high %v13480_v26, %v13484_v6  ;;  %v7676_v16 = vld [vmem:[#allocation4 + $0x48] sm:$0xff]  ;;  %v7682_v3 = vshll.u32 %v7674_v62, 16  ;;  %v7681_v33 = vrot.slane %v7679_v30, 4  ;;  %v10776_v37 = vld [vmem:[#allocation13 + $0x580] ss:$8 sps:$4 sm:$0xff]  }
 0x3b6   :  { %6198 = vmatpush2.bf16.msra.mxu0 %v10764_v32  ;;  %v13494_v1 = vld [vmem:[#allocation4 + $0x8] sm:$0xff]  ;;  %v13496_v50 = vld [vmem:[#allocation4 + $0x80] sm:$0x11]  ;;  %v7693_v45 = vshrl.u32 %v7676_v16, 16  ;;  %v9709_v12 = vcombine.low %v13139_v5, %v13162_v29  ;;  %v13502_v27 = vsel %vm11711_vm8, %v6488_v53, %v6496_v13  ;;  %v13507_v32 = vld [vmem:[#allocation4 + $0x30] sm:$0xff]  ;;  %v7696_v29 = vshll.u32 %v7676_v16, 16 }
 0x3b7   :  { %6199 = vmatprep.subr.bf16.mxu0 %v10772_v4  ;;  %v10779_v41 = vld [vmem:[#allocation13 + $0x670] ss:$8 sps:$4 sm:$0xff]   ;;  %v10784_v28 = vld [vmem:[#allocation13 + $0x664] ss:$8 sps:$4 sm:$0xff]   ;;  %v7684_v7 = vrot.slane %v7682_v3, 5  ;;  %v7688_v35 = vshll.u32 %v13496_v50, 16  ;;  %v9780_v36 = vcombine.high %v13502_v27, %v13492_v55 }
 0x3b8   :  { %6458 = vmatpush2.bf16.msra.mxu1 %v10767_v61  ;;  %v8870_v63 = vshrl.u32 %v13494_v1, 16  ;;  %v7695_v5 = vrot.slane %v7693_v45, 4  ;;  %v8346_v38 = vld [vmem:[#allocation4 + $0x78] sm:$0x88]  ;;  %v8348_v43 = vld [vmem:[#allocation4 + $0x28] sm:$0x88] }
 0x3b9   :  { %6459 = vmatprep.subr.bf16.mxu1 %v10775_v60  ;;  %v10782_v18 = vld [vmem:[#allocation13 + $0x660] ss:$8 sps:$4 sm:$0xff]   ;;  %v13512_v19 = vld [vmem:[#allocation4 + $0x68] sm:$0x11]  ;;  %v7685_v22 = vor.u32 %v7684_v7, %v7681_v33  ;;  %v7698_v46 = vrot.slane %v7696_v29, 5  ;;  %v8884_v4 = vshrl.u32 %v13507_v32, 16 }
 0x3ba   :  { %6200 = vmatpush2.bf16.msra.mxu0 %v10770_v44  ;;  %v10787_v61 = vld [vmem:[#allocation13 + $0x654] ss:$8 sps:$4 sm:$0xff]   ;;  %v7690_v49 = vrot.slane %v7688_v35, 5  ;;  %v7702_v58 = vshll.u32 %v13512_v19, 16  ;;  %v8351_v52 = vshrl.u32 %v8346_v38, 16  ;;  %v8358_v0 = vrot.slane %v8870_v63, 7 }
 0x3bb   :  { %6717 = vmatprep.subr.bf16.mxu0 %v10781_v24  ;;  %v7686_v59 = vrot.slane %v7685_v22, 4  ;;  %v7699_v57 = vor.u32 %v7698_v46, %v7695_v5  ;;  %v8364_v2 = vshrl.u32 %v8348_v43, 16  ;;  %v8873_v20 = vshll.u32 %v13494_v1, 16  ;;  %v10785_v51 = vld [vmem:[#allocation13 + $0x650] ss:$8 sps:$4 sm:$0xff]   ;;  %v13812_v33 = vld [vmem:[#allocation8 + $0x148] sm:$0xff] }
 0x3bc   :  { %6460 = vmatpush2.bf16.msra.mxu1 %v10773_v42  ;;  %v7704_v62 = vrot.slane %v7702_v58, 5  ;;  %v9989_v60 = vrot.slane %v8351_v52, 11  ;;  %v10790_v54 = vld [vmem:[#allocation13 + $0x644] ss:$8 sps:$4 sm:$0xff]   ;;  %v8887_v23 = vshll.u32 %v13507_v32, 16  ;;  %v8371_v8 = vrot.slane %v8884_v4, 7 }
 0x3bd   :  { %6461 = vmatprep.subr.bf16.mxu1 %v10778_v11  ;;  %6202 = vmatmul.mubr.bf16.vlgmr.msra.gmra.mxu0 %v9709_v12  ;;  %v7700_v31 = vrot.slane %v7699_v57, 4  ;;  %v8361_v56 = vor.u32 %v8873_v20, %v8358_v0  ;;  %v9990_v44 = vrot.slane %v8364_v2, 11  ;;  %v13526_v30 = vsel %vm11705_vm7, %v7686_v59, %v7690_v49  ;;  %v10788_v14 = vld [vmem:[#allocation13 + $0x640] ss:$8 sps:$4 sm:$0xff]   ;;  %v10793_v3 = vld [vmem:[#allocation13 + $0x634] ss:$8 sps:$4 sm:$0xff]  }
 0x3be   :  { %6718 = vmatpush1.bf16.msra.mxu0 %v10779_v41  ;;  %6749 = vmatprep.mubr.bf16.mxu0 %v9780_v36  ;;  %v8374_v11 = vor.u32 %v8887_v23, %v8371_v8  ;;  %v10791_v12 = vld [vmem:[#allocation13 + $0x630] ss:$8 sps:$4 sm:$0xff]   ;;  %v10799_v7 = vld [vmem:[#allocation13 + $0x614] ss:$8 sps:$4 sm:$0xff]   ;;  %v10802_v36 = vld [vmem:[#allocation13 + $0x604] ss:$8 sps:$4 sm:$0xff]  }
 0x3bf   :  { %6719 = vmatprep.subr.bf16.mxu0 %v10784_v28  ;;  %v13530_v42 = vsel %vm11705_vm7, %v7700_v31, %v7704_v62  ;;  %v13538_v16 = vsel %vm11674_vm13, %v9989_v60, %v8361_v56  ;;  %v10794_v28 = vld [vmem:[#allocation13 + $0x620] ss:$8 sps:$4 sm:$0xff]   ;;  %v10797_v35 = vld [vmem:[#allocation13 + $0x610] ss:$8 sps:$4 sm:$0xff]   ;;  %v10805_v29 = vld [vmem:[#allocation13 + $0x6f4] ss:$8 sps:$4 sm:$0xff]  }
 0x3c0   :  { %6462 = vmatpush2.bf16.msra.mxu1 %v10776_v37  ;;  %v9919_v24 = vcombine.low %v13526_v30, %v13530_v42  ;;  %v9920_v53 = vcombine.high %v13526_v30, %v13530_v42  ;;  %v13544_v41 = vsel %vm11674_vm13, %v9990_v44, %v8374_v11  ;;  %v10796_v37 = vld [vmem:[#allocation13 + $0x624] ss:$8 sps:$4 sm:$0xff]   ;;  %v10800_v5 = vld [vmem:[#allocation13 + $0x600] ss:$8 sps:$4 sm:$0xff]   ;;  %v10803_v38 = vld [vmem:[#allocation13 + $0x6f0] ss:$8 sps:$4 sm:$0xff]  }
 0x3c1   :  { %v10808_v43 = vld [vmem:[#allocation13 + $0x6e4] ss:$8 sps:$4 sm:$0xff]   ;;  %v10809_v22 = vld [vmem:[#allocation13 + $0x6d0] ss:$8 sps:$4 sm:$0xff]   ;;  %v10817_v49 = vld [vmem:[#allocation13 + $0x6b4] ss:$8 sps:$4 sm:$0xff]  }
 0x3c2   :  { %6720 = vmatpush1.bf16.msra.mxu0 %v10782_v18  ;;  %v10811_v18 = vld [vmem:[#allocation13 + $0x6d4] ss:$8 sps:$4 sm:$0xff]   ;;  %v10814_v46 = vld [vmem:[#allocation13 + $0x6c4] ss:$8 sps:$4 sm:$0xff]   ;;  %v10815_v58 = vld [vmem:[#allocation13 + $0x6b0] ss:$8 sps:$4 sm:$0xff]  }
 0x3c3   :  { %6464 = vmatmul.mubr.bf16.vlgmr.msra.gmra.mxu1 %v9745_v47  ;;  %6721 = vmatprep.subr.bf16.mxu0 %v10787_v61  ;;  %v10806_v47 = vld [vmem:[#allocation13 + $0x6e0] ss:$8 sps:$4 sm:$0xff]   ;;  %v10820_v52 = vld [vmem:[#allocation13 + $0x6a4] ss:$8 sps:$4 sm:$0xff]   ;;  %v6962_v59 = vshrl.u32 %v13456_v25, 16  ;;  %v6949_v2 = vshrl.u32 %v13460_v17, 16 }
 0x3c4   :  { %v10812_v61 = vld [vmem:[#allocation13 + $0x6c0] ss:$8 sps:$4 sm:$0xff]   ;;  %v10823_v0 = vld [vmem:[#allocation13 + $0x694] ss:$8 sps:$4 sm:$0xff]   ;;  %v6957_v62 = vshrl.u32 %v13464_v10, 16  ;;  %v6965_v44 = vshll.u32 %v13456_v25, 16 }
 0x3c5   :  { %v10818_v57 = vld [vmem:[#allocation13 + $0x6a0] ss:$8 sps:$4 sm:$0xff]   ;;  %v6964_v60 = vrot.slane %v6962_v59, 7  ;;  %v10826_v31 = vld [vmem:[#allocation13 + $0x684] ss:$8 sps:$4 sm:$0xff]   ;;  %v6951_v56 = vrot.slane %v6949_v2, 7 }
 0x3c6   :  { %6722 = vmatpush1.bf16.msra.mxu0 %v10785_v51  ;;  %v10821_v51 = vld [vmem:[#allocation13 + $0x690] ss:$8 sps:$4 sm:$0xff]   ;;  %v6952_v8 = vshll.u32 %v13460_v17, 16  ;;  %v9816_v11 = vrot.slane %v6957_v62, 11  ;;  %v10847_v2 = vld [vmem:[#allocation14 + $0x114] ss:$8 sps:$4 sm:$0xff]  }
 0x3c7   :  { %6723 = vmatprep.subr.bf16.mxu0 %v10790_v54  ;;  %v6944_v54 = vshrl.u32 %v13458_v39, 16  ;;  %v9779_v39 = vcombine.low %v13502_v27, %v13492_v55  ;;  %v10836_v55 = vld [vmem:[#allocation14 + $0x140] ss:$8 sps:$4 sm:$0xff]   ;;  %v10841_v27 = vld [vmem:[#allocation14 + $0x134] ss:$8 sps:$4 sm:$0xff]   ;;  %14493 = vst [vmem:[#allocation83_spill] sm:$0xff] %v13812_v33 }
 0x3c8   :  { %v6954_v10 = vor.u32 %v6952_v8, %v6951_v56  ;;  %v10839_v13 = vld [vmem:[#allocation14 + $0x130] ss:$8 sps:$4 sm:$0xff]   ;;  %v10850_v56 = vld [vmem:[#allocation14 + $0x104] ss:$8 sps:$4 sm:$0xff]   ;;  %v10848_v8 = vld [vmem:[#allocation14 + $0x100] ss:$8 sps:$4 sm:$0xff]  }
 0x3c9   :  { %v4831_v59 = vld [vmem:[#allocation8 + $0xd0] sm:$0xff]  ;;  %v4828_v62 = vld [vmem:[#allocation8 + $0xb8] sm:$0xff]  ;;  %v13668_v30 = vld [vmem:[#allocation8 + $0xc8] sm:$0xff] }
 0x3ca   :  { %6724 = vmatpush1.bf16.msra.mxu0 %v10788_v14  ;;  %v6967_v14 = vor.u32 %v6965_v44, %v6964_v60  ;;  %v10845_v60 = vld [vmem:[#allocation14 + $0x110] ss:$8 sps:$4 sm:$0xff]   ;;  %v10940_v25 = vld [vmem:[#allocation14 + $0x420] ss:$8 sps:$4 sm:$0xff]   ;;  %v10945_v17 = vld [vmem:[#allocation14 + $0x414] ss:$8 sps:$4 sm:$0xff]  }
 0x3cb   :  { %6725 = vmatprep.subr.bf16.mxu0 %v10793_v3  ;;  %v10824_v3 = vld [vmem:[#allocation13 + $0x680] ss:$8 sps:$4 sm:$0xff]   ;;  %v4824_v44 = vld [vmem:[#allocation8 + $0x98] sm:$0xff]  ;;  %v11106_v6 = vld [vmem:[#allocation16 + $0x204] ss:$8 sps:$4 sm:$0xff]  }
 0x3cc   :  { %v11098_v26 = vld [vmem:[#allocation16 + $0x210] ss:$8 sps:$4 sm:$0xff]  }
 0x3cd   :  { %v13671_v42 = vld [vmem:[#allocation8 + $0xc0] sm:$0xff] }
 0x3ce   :  { %6726 = vmatpush1.bf16.msra.mxu0 %v10791_v12  ;;  %v10829_v12 = vld [vmem:[#allocation14 + $0x174] ss:$8 sps:$4 sm:$0xff]  }
 0x3cf   :  { %6727 = vmatprep.subr.bf16.mxu0 %v10796_v37  ;;  %v9815_v37 = vrot.slane %v6944_v54, 11  ;;  %v4825_v54 = vld [vmem:[#allocation8 + $0xa0] sm:$0xff] }
 0x3d0   :  { %v13815_v45 = vld [vmem:[#allocation8 + $0x140] sm:$0xff] }
 0x3d1   :  { %14494 = vst [vmem:[#allocation71_spill] sm:$0xff] %v13815_v45 }
 0x3d2   :  { %6728 = vmatpush1.bf16.msra.mxu0 %v10794_v28  ;;  %v13558_v28 = vsel %vm11674_vm13, %v9816_v11, %v6967_v14  ;;  %v4823_v11 = vld [vmem:[#allocation8 + $0x90] sm:$0xff]  ;;  %v4822_v14 = vld [vmem:[#allocation8 + $0x88] sm:$0xff] }
 0x3d3   :  { %6729 = vmatprep.subr.bf16.mxu0 %v10799_v7  ;;  %v10827_v7 = vld [vmem:[#allocation14 + $0x170] ss:$8 sps:$4 sm:$0xff]  }
 0x3d6   :  { %6730 = vmatpush1.bf16.msra.mxu0 %v10797_v35  ;;  %v13564_v35 = vsel %vm11674_vm13, %v9815_v37, %v6954_v10  ;;  %v4820_v37 = vld [vmem:[#allocation8 + $0x78] sm:$0xff] }
 0x3d7   :  { %6731 = vmatprep.subr.bf16.mxu0 %v10802_v36  ;;  %v10832_v36 = vld [vmem:[#allocation14 + $0x164] ss:$8 sps:$4 sm:$0xff]   ;;  %v10851_v10 = vld [vmem:[#allocation14 + $0x1f0] ss:$8 sps:$4 sm:$0xff]  }
 0x3da   :  { %6732 = vmatpush1.bf16.msra.mxu0 %v10800_v5  ;;  %v9818_v5 = vcombine.high %v13564_v35, %v13558_v28 }
 0x3db   :  { %6733 = vmatprep.subr.bf16.mxu0 %v10805_v29  ;;  %v10830_v29 = vld [vmem:[#allocation14 + $0x160] ss:$8 sps:$4 sm:$0xff]  }
 0x3de   :  { %6734 = vmatpush2.bf16.msra.mxu0 %v10803_v38  ;;  %v10835_v38 = vld [vmem:[#allocation14 + $0x154] ss:$8 sps:$4 sm:$0xff]  }
 0x3df   :  { %6735 = vmatprep.subr.bf16.mxu0 %v10808_v43  ;;  %v10833_v43 = vld [vmem:[#allocation14 + $0x150] ss:$8 sps:$4 sm:$0xff]  }
 0x3e2   :  { %6736 = vmatpush2.bf16.msra.mxu0 %v10806_v47  ;;  %v10838_v47 = vld [vmem:[#allocation14 + $0x144] ss:$8 sps:$4 sm:$0xff]  }
 0x3e3   :  { %6737 = vmatprep.subr.bf16.mxu0 %v10811_v18  ;;  %v4836_v18 = vld [vmem:[#allocation8 + $0xf8] sm:$0xff] }
 0x3e4   :  { %6804 = vmatprep.subr.mxu1 %v4836_v18  ;;  %v10857_v18 = vld [vmem:[#allocation14 + $0x1d0] ss:$8 sps:$4 sm:$0xff]  }
 0x3e6   :  { %6738 = vmatpush2.bf16.msra.mxu0 %v10809_v22  ;;  %v4835_v22 = vld [vmem:[#allocation8 + $0xf0] sm:$0xff] }
 0x3e7   :  { %6739 = vmatprep.subr.bf16.mxu0 %v10814_v46  ;;  %v4834_v46 = vld [vmem:[#allocation8 + $0xe8] sm:$0xff]  ;;  %6805 = vmatpush1.msra.mxu1 %v4835_v22  ;;  %v4811_v22 = vld [vmem:[#allocation8 + $0x30] sm:$0xff] }
 0x3e8   :  { %6806 = vmatprep.subr.mxu1 %v4834_v46  ;;  %v4810_v46 = vld [vmem:[#allocation8 + $0x28] sm:$0xff] }
 0x3ea   :  { %6740 = vmatpush2.bf16.msra.mxu0 %v10812_v61  ;;  %v4833_v61 = vld [vmem:[#allocation8 + $0xe0] sm:$0xff] }
 0x3eb   :  { %6741 = vmatprep.subr.bf16.mxu0 %v10817_v49  ;;  %v10844_v49 = vld [vmem:[#allocation14 + $0x124] ss:$8 sps:$4 sm:$0xff]   ;;  %6807 = vmatpush1.msra.mxu1 %v4833_v61  ;;  %v4809_v61 = vld [vmem:[#allocation8 + $0x20] sm:$0xff] }
 0x3ee   :  { %6742 = vmatpush2.bf16.msra.mxu0 %v10815_v58  ;;  %v4832_v58 = vld [vmem:[#allocation8 + $0xd8] sm:$0xff] }
 0x3ef   :  { %6743 = vmatprep.subr.bf16.mxu0 %v10820_v52  ;;  %v10842_v52 = vld [vmem:[#allocation14 + $0x120] ss:$8 sps:$4 sm:$0xff]   ;;  %6808 = vmatprep.subr.mxu1 %v4832_v58  ;;  %v4808_v58 = vld [vmem:[#allocation8 + $0x18] sm:$0xff] }
 0x3f0   :  { %6809 = vmatpush1.msra.mxu1 %v4831_v59  ;;  %v4807_v59 = vld [vmem:[#allocation8 + $0x10] sm:$0xff] }
 0x3f2   :  { %6744 = vmatpush2.bf16.msra.mxu0 %v10818_v57  ;;  %v4830_v57 = vld [vmem:[#allocation8 + $0xc8] sm:$0xff] }
 0x3f3   :  { %6745 = vmatprep.subr.bf16.mxu0 %v10823_v0  ;;  %v4829_v0 = vld [vmem:[#allocation8 + $0xc0] sm:$0xff]  ;;  %6810 = vmatprep.subr.mxu1 %v4830_v57  ;;  %v4806_v57 = vld [vmem:[#allocation8 + $0x8] sm:$0xff] }
 0x3f4   :  { %6811 = vmatpush1.msra.mxu1 %v4829_v0  ;;  %v4805_v0 = vld [vmem:[#allocation8] sm:$0xff] }
 0x3f5   :  { %6812 = vmatprep.subr.mxu1 %v4828_v62  ;;  %v4868_v62 = vld [vmem:[#allocation8 + $0x1f8] sm:$0xff] }
 0x3f6   :  { %6746 = vmatpush2.bf16.msra.mxu0 %v10821_v51  ;;  %v4827_v51 = vld [vmem:[#allocation8 + $0xb0] sm:$0xff] }
 0x3f7   :  { %6747 = vmatprep.subr.bf16.mxu0 %v10826_v31  ;;  %v4826_v31 = vld [vmem:[#allocation8 + $0xa8] sm:$0xff]  ;;  %6813 = vmatpush1.msra.mxu1 %v4827_v51  ;;  %v4867_v51 = vld [vmem:[#allocation8 + $0x1f0] sm:$0xff] }
 0x3f8   :  { %6814 = vmatprep.subr.mxu1 %v4826_v31  ;;  %v4866_v31 = vld [vmem:[#allocation8 + $0x1e8] sm:$0xff] }
 0x3f9   :  { %6815 = vmatpush1.msra.mxu1 %v4825_v54  ;;  %v4865_v54 = vld [vmem:[#allocation8 + $0x1e0] sm:$0xff] }
 0x3fa   :  { %6748 = vmatpush2.bf16.msra.mxu0 %v10824_v3  ;;  %6816 = vmatprep.subr.mxu1 %v4824_v44  ;;  %v4821_v3 = vld [vmem:[#allocation8 + $0x80] sm:$0xff]  ;;  %v4864_v44 = vld [vmem:[#allocation8 + $0x1d8] sm:$0xff] }
 0x3fb   :  { %7170 = vmatprep.subr.bf16.mxu0 %v10829_v12  ;;  %v10853_v12 = vld [vmem:[#allocation14 + $0x1f4] ss:$8 sps:$4 sm:$0xff]   ;;  %6817 = vmatpush1.msra.mxu1 %v4823_v11  ;;  %v4863_v11 = vld [vmem:[#allocation8 + $0x1d0] sm:$0xff] }
 0x3fc   :  { %6818 = vmatprep.subr.mxu1 %v4822_v14  ;;  %v4862_v14 = vld [vmem:[#allocation8 + $0x1c8] sm:$0xff] }
 0x3fd   :  { %6750 = vmatmul.mubr.bf16.vlgmr.msra.gmra.mxu0 %v9779_v39  ;;  %6819 = vmatpush1.msra.mxu1 %v4821_v3  ;;  %v4818_v39 = vld [vmem:[#allocation8 + $0x68] sm:$0xff]  ;;  %v4861_v3 = vld [vmem:[#allocation8 + $0x1c0] sm:$0xff] }
 0x3fe   :  { %7171 = vmatpush1.bf16.msra.mxu0 %v10827_v7  ;;  %7202 = vmatprep.mubr.bf16.mxu0 %v9818_v5  ;;  %v4819_v7 = vld [vmem:[#allocation8 + $0x70] sm:$0xff] }
 0x3ff   :  { %7172 = vmatprep.subr.bf16.mxu0 %v10832_v36  ;;  %6820 = vmatprep.subr.mxu1 %v4820_v37  ;;  %v4817_v36 = vld [vmem:[#allocation8 + $0x60] sm:$0xff]  ;;  %v10856_v5 = vld [vmem:[#allocation14 + $0x1e4] ss:$8 sps:$4 sm:$0xff]   ;;  %v4860_v37 = vld [vmem:[#allocation8 + $0x1b8] sm:$0xff] }
 0x400   :  { %6821 = vmatpush1.msra.mxu1 %v4819_v7  ;;  %v4859_v7 = vld [vmem:[#allocation8 + $0x1b0] sm:$0xff] }
 0x401   :  { %6822 = vmatprep.subr.mxu1 %v4818_v39  ;;  %v4858_v39 = vld [vmem:[#allocation8 + $0x1a8] sm:$0xff] }
 0x402   :  { %7173 = vmatpush1.bf16.msra.mxu0 %v10830_v29  ;;  %v4816_v29 = vld [vmem:[#allocation8 + $0x58] sm:$0xff]  ;;  %6823 = vmatpush1.msra.mxu1 %v4817_v36  ;;  %v4857_v36 = vld [vmem:[#allocation8 + $0x1a0] sm:$0xff] }
 0x403   :  { %7174 = vmatprep.subr.bf16.mxu0 %v10835_v38  ;;  %v10854_v38 = vld [vmem:[#allocation14 + $0x1e0] ss:$8 sps:$4 sm:$0xff]   ;;  %6824 = vmatprep.subr.mxu1 %v4816_v29  ;;  %v4856_v29 = vld [vmem:[#allocation8 + $0x198] sm:$0xff] }
 0x406   :  { %7175 = vmatpush1.bf16.msra.mxu0 %v10833_v43  ;;  %v4815_v43 = vld [vmem:[#allocation8 + $0x50] sm:$0xff] }
 0x407   :  { %7176 = vmatprep.subr.bf16.mxu0 %v10838_v47  ;;  %v4814_v47 = vld [vmem:[#allocation8 + $0x48] sm:$0xff]  ;;  %6825 = vmatpush1.msra.mxu1 %v4815_v43  ;;  %v4855_v43 = vld [vmem:[#allocation8 + $0x190] sm:$0xff] }
 0x408   :  { %6826 = vmatprep.subr.mxu1 %v4814_v47  ;;  %v4854_v47 = vld [vmem:[#allocation8 + $0x188] sm:$0xff] }
 0x40a   :  { %7177 = vmatpush1.bf16.msra.mxu0 %v10836_v55  ;;  %v4813_v55 = vld [vmem:[#allocation8 + $0x40] sm:$0xff] }
 0x40b   :  { %7178 = vmatprep.subr.bf16.mxu0 %v10841_v27  ;;  %v10859_v27 = vld [vmem:[#allocation14 + $0x1d4] ss:$8 sps:$4 sm:$0xff]   ;;  %6827 = vmatpush1.msra.mxu1 %v4813_v55 }
 0x40c   :  { %v4853_v55 = vld [vmem:[#allocation8 + $0x180] sm:$0xff] }
 0x40e   :  { %7179 = vmatpush1.bf16.msra.mxu0 %v10839_v13  ;;  %v4812_v13 = vld [vmem:[#allocation8 + $0x38] sm:$0xff] }
 0x40f   :  { %7180 = vmatprep.subr.bf16.mxu0 %v10844_v49  ;;  %6828 = vmatprep.subr.mxu1 %v4812_v13  ;;  %v10862_v49 = vld [vmem:[#allocation14 + $0x1c4] ss:$8 sps:$4 sm:$0xff]   ;;  %v4852_v13 = vld [vmem:[#allocation8 + $0x178] sm:$0xff] }
 0x410   :  { %6829 = vmatpush1.msra.mxu1 %v4811_v22  ;;  %v4851_v22 = vld [vmem:[#allocation8 + $0x170] sm:$0xff] }
 0x411   :  { %6830 = vmatprep.subr.mxu1 %v4810_v46  ;;  %v4850_v46 = vld [vmem:[#allocation8 + $0x168] sm:$0xff] }
 0x412   :  { %7181 = vmatpush1.bf16.msra.mxu0 %v10842_v52  ;;  %v10860_v52 = vld [vmem:[#allocation14 + $0x1c0] ss:$8 sps:$4 sm:$0xff]   ;;  %6831 = vmatpush1.msra.mxu1 %v4809_v61  ;;  %v9817_v61 = vcombine.low %v13564_v35, %v13558_v28  ;;  %v10890_v28 = vld [vmem:[#allocation14 + $0x234] ss:$8 sps:$4 sm:$0xff]  }
 0x413   :  { %7182 = vmatprep.subr.bf16.mxu0 %v10847_v2  ;;  %6832 = vmatprep.subr.mxu1 %v4808_v58  ;;  %v10865_v2 = vld [vmem:[#allocation14 + $0x1b4] ss:$8 sps:$4 sm:$0xff]   ;;  %v10879_v58 = vld [vmem:[#allocation14 + $0x260] ss:$8 sps:$4 sm:$0xff]  }
 0x414   :  { %6833 = vmatpush1.msra.mxu1 %v4807_v59  ;;  %v10882_v59 = vld [vmem:[#allocation14 + $0x250] ss:$8 sps:$4 sm:$0xff]  }
 0x415   :  { %6834 = vmatprep.subr.mxu1 %v4806_v57  ;;  %v10887_v57 = vld [vmem:[#allocation14 + $0x244] ss:$8 sps:$4 sm:$0xff]   ;;  %v4849_v35 = vld [vmem:[#allocation8 + $0x160] sm:$0xff] }
 0x416   :  { %7183 = vmatpush1.bf16.msra.mxu0 %v10845_v60  ;;  %v10863_v60 = vld [vmem:[#allocation14 + $0x1b0] ss:$8 sps:$4 sm:$0xff]   ;;  %6835 = vmatpush1.msra.mxu1 %v4805_v0  ;;  %v10885_v0 = vld [vmem:[#allocation14 + $0x240] ss:$8 sps:$4 sm:$0xff]  }
 0x417   :  { %7184 = vmatprep.subr.bf16.mxu0 %v10850_v56  ;;  %6836 = vmatprep.subr.mxu1 %v4868_v62  ;;  %v10868_v56 = vld [vmem:[#allocation14 + $0x1a4] ss:$8 sps:$4 sm:$0xff]  }
 0x418   :  { %6837 = vmatpush2.msra.mxu1 %v4867_v51  ;;  %v4847_v62 = vld [vmem:[#allocation8 + $0x150] sm:$0xff]  ;;  %v4845_v51 = vld [vmem:[#allocation8 + $0x140] sm:$0xff] }
 0x419   :  { %6838 = vmatprep.subr.mxu1 %v4866_v31  ;;  %v10888_v31 = vld [vmem:[#allocation14 + $0x230] ss:$8 sps:$4 sm:$0xff]  }
 0x41a   :  { %7185 = vmatpush1.bf16.msra.mxu0 %v10848_v8  ;;  %v10866_v8 = vld [vmem:[#allocation14 + $0x1a0] ss:$8 sps:$4 sm:$0xff]   ;;  %6839 = vmatpush2.msra.mxu1 %v4865_v54 }
 0x41b   :  { %7186 = vmatprep.subr.bf16.mxu0 %v10853_v12  ;;  %6840 = vmatprep.subr.mxu1 %v4864_v44  ;;  %v10871_v12 = vld [vmem:[#allocation14 + $0x194] ss:$8 sps:$4 sm:$0xff]   ;;  %v4843_v54 = vld [vmem:[#allocation8 + $0x130] sm:$0xff]  ;;  %v4842_v44 = vld [vmem:[#allocation8 + $0x128] sm:$0xff] }
 0x41c   :  { %6841 = vmatpush2.msra.mxu1 %v4863_v11  ;;  %v4840_v11 = vld [vmem:[#allocation8 + $0x118] sm:$0xff] }
 0x41d   :  { %6842 = vmatprep.subr.mxu1 %v4862_v14  ;;  %v10891_v14 = vld [vmem:[#allocation14 + $0x220] ss:$8 sps:$4 sm:$0xff]  }
 0x41e   :  { %7187 = vmatpush2.bf16.msra.mxu0 %v10851_v10  ;;  %v10869_v10 = vld [vmem:[#allocation14 + $0x190] ss:$8 sps:$4 sm:$0xff]   ;;  %6843 = vmatpush2.msra.mxu1 %v4861_v3 }
 0x41f   :  { %7188 = vmatprep.subr.bf16.mxu0 %v10856_v5  ;;  %6844 = vmatprep.subr.mxu1 %v4860_v37  ;;  %v10874_v5 = vld [vmem:[#allocation14 + $0x184] ss:$8 sps:$4 sm:$0xff]  }
 0x420   :  { %6845 = vmatpush2.msra.mxu1 %v4859_v7  ;;  %v4839_v3 = vld [vmem:[#allocation8 + $0x110] sm:$0xff]  ;;  %v4838_v37 = vld [vmem:[#allocation8 + $0x108] sm:$0xff]  ;;  %v10988_v7 = vld [vmem:[#allocation14 + $0x74] ss:$8 sps:$4 sm:$0xff]  }
 0x421   :  { %6846 = vmatprep.subr.mxu1 %v4858_v39  ;;  %v10894_v39 = vld [vmem:[#allocation14 + $0x210] ss:$8 sps:$4 sm:$0xff]  }
 0x422   :  { %7189 = vmatpush2.bf16.msra.mxu0 %v10854_v38  ;;  %v10872_v38 = vld [vmem:[#allocation14 + $0x180] ss:$8 sps:$4 sm:$0xff]   ;;  %6847 = vmatpush2.msra.mxu1 %v4857_v36  ;;  %v10899_v36 = vld [vmem:[#allocation14 + $0x204] ss:$8 sps:$4 sm:$0xff]  }
 0x423   :  { %7190 = vmatprep.subr.bf16.mxu0 %v10859_v27  ;;  %6848 = vmatprep.subr.mxu1 %v4856_v29  ;;  %v10877_v27 = vld [vmem:[#allocation14 + $0x274] ss:$8 sps:$4 sm:$0xff]  }
 0x424   :  { %6849 = vmatpush2.msra.mxu1 %v4855_v43  ;;  %v10902_v29 = vld [vmem:[#allocation14 + $0x2f4] ss:$8 sps:$4 sm:$0xff]   ;;  %v10905_v43 = vld [vmem:[#allocation14 + $0x2e4] ss:$8 sps:$4 sm:$0xff]  }
 0x425   :  { %6850 = vmatprep.subr.mxu1 %v4854_v47  ;;  %v10903_v47 = vld [vmem:[#allocation14 + $0x2e0] ss:$8 sps:$4 sm:$0xff]  }
 0x426   :  { %7191 = vmatpush2.bf16.msra.mxu0 %v10857_v18  ;;  %6851 = vmatpush2.msra.mxu1 %v4853_v55  ;;  %v10875_v18 = vld [vmem:[#allocation14 + $0x270] ss:$8 sps:$4 sm:$0xff]   ;;  %v10908_v55 = vld [vmem:[#allocation14 + $0x2d4] ss:$8 sps:$4 sm:$0xff]  }
 0x427   :  { %7192 = vmatprep.subr.bf16.mxu0 %v10862_v49  ;;  %6852 = vmatprep.subr.mxu1 %v4852_v13  ;;  %v10881_v49 = vld [vmem:[#allocation14 + $0x264] ss:$8 sps:$4 sm:$0xff]  }
 0x428   :  { %6853 = vmatpush2.msra.mxu1 %v4851_v22  ;;  %v10911_v13 = vld [vmem:[#allocation14 + $0x2c4] ss:$8 sps:$4 sm:$0xff]   ;;  %v10914_v22 = vld [vmem:[#allocation14 + $0x2b4] ss:$8 sps:$4 sm:$0xff]  }
 0x429   :  { %6854 = vmatprep.subr.mxu1 %v4850_v46  ;;  %v10912_v46 = vld [vmem:[#allocation14 + $0x2b0] ss:$8 sps:$4 sm:$0xff]  }
 0x42a   :  { %7193 = vmatpush2.bf16.msra.mxu0 %v10860_v52  ;;  %v10884_v52 = vld [vmem:[#allocation14 + $0x254] ss:$8 sps:$4 sm:$0xff]   ;;  %6855 = vmatpush2.msra.mxu1 %v4849_v35  ;;  %v7966_v35 = vrot.slane %v13512_v19, 5 }
 0x42b   :  { %7194 = vmatprep.subr.bf16.mxu0 %v10865_v2  ;;  %v4848_v2 = vld [vmem:[#allocation8 + $0x158] sm:$0xff] }
 0x42c   :  { %6856 = vmatprep.subr.mxu1 %v4848_v2  ;;  %v10921_v2 = vld [vmem:[#allocation14 + $0x280] ss:$8 sps:$4 sm:$0xff]  }
 0x42d   :  { %6857 = vmatpush2.msra.mxu1 %v4847_v62  ;;  %v10927_v62 = vld [vmem:[#allocation14 + $0x474] ss:$8 sps:$4 sm:$0xff]  }
 0x42e   :  { %7195 = vmatpush2.bf16.msra.mxu0 %v10863_v60  ;;  %v4846_v60 = vld [vmem:[#allocation8 + $0x148] sm:$0xff] }
 0x42f   :  { %7196 = vmatprep.subr.bf16.mxu0 %v10868_v56  ;;  %6858 = vmatprep.subr.mxu1 %v4846_v60  ;;  %v10893_v56 = vld [vmem:[#allocation14 + $0x224] ss:$8 sps:$4 sm:$0xff]  }
 0x430   :  { %6859 = vmatpush2.msra.mxu1 %v4845_v51  ;;  %v7962_v51 = vrot.slane %v13496_v50, 5  ;;  %v10928_v50 = vld [vmem:[#allocation14 + $0x460] ss:$8 sps:$4 sm:$0xff]  }
 0x432   :  { %7197 = vmatpush2.bf16.msra.mxu0 %v10866_v8  ;;  %v4841_v8 = vld [vmem:[#allocation8 + $0x120] sm:$0xff] }
 0x433   :  { %7198 = vmatprep.subr.bf16.mxu0 %v10871_v12  ;;  %v10896_v12 = vld [vmem:[#allocation14 + $0x214] ss:$8 sps:$4 sm:$0xff]  }
 0x436   :  { %7199 = vmatpush2.bf16.msra.mxu0 %v10869_v10  ;;  %v4837_v10 = vld [vmem:[#allocation8 + $0x100] sm:$0xff] }
 0x437   :  { %7200 = vmatprep.subr.bf16.mxu0 %v10874_v5  ;;  %v10897_v5 = vld [vmem:[#allocation14 + $0x200] ss:$8 sps:$4 sm:$0xff]  }
 0x43a   :  { %7201 = vmatpush2.bf16.msra.mxu0 %v10872_v38  ;;  %v10900_v38 = vld [vmem:[#allocation14 + $0x2f0] ss:$8 sps:$4 sm:$0xff]  }
 0x43b   :  { %7627 = vmatprep.subr.bf16.mxu0 %v10877_v27  ;;  %v10906_v27 = vld [vmem:[#allocation14 + $0x2d0] ss:$8 sps:$4 sm:$0xff]  }
 0x43d   :  { %7203 = vmatmul.mubr.bf16.vlgmr.msra.gmra.mxu0 %v9817_v61  ;;  %v10917_v61 = vld [vmem:[#allocation14 + $0x2a4] ss:$8 sps:$4 sm:$0xff]  }
 0x43e   :  { %7628 = vmatpush1.bf16.msra.mxu0 %v10875_v18  ;;  %7659 = vmatprep.mubr.bf16.mxu0 %v9886_v21  ;;  %v4844_v21 = vld [vmem:[#allocation8 + $0x138] sm:$0xff]  ;;  %v10909_v18 = vld [vmem:[#allocation14 + $0x2c0] ss:$8 sps:$4 sm:$0xff]  }
 0x43f   :  { %7629 = vmatprep.subr.bf16.mxu0 %v10881_v49  ;;  %6860 = vmatprep.subr.mxu1 %v4844_v21  ;;  %v10915_v49 = vld [vmem:[#allocation14 + $0x2a0] ss:$8 sps:$4 sm:$0xff]  }
 0x440   :  { %6861 = vmatpush2.msra.mxu1 %v4843_v54 }
 0x441   :  { %6862 = vmatprep.subr.mxu1 %v4842_v44  ;;  %v10933_v44 = vld [vmem:[#allocation14 + $0x454] ss:$8 sps:$4 sm:$0xff]  }
 0x442   :  { %7630 = vmatpush1.bf16.msra.mxu0 %v10879_v58  ;;  %6863 = vmatpush2.msra.mxu1 %v4841_v8  ;;  %v10920_v58 = vld [vmem:[#allocation14 + $0x294] ss:$8 sps:$4 sm:$0xff]   ;;  %v10931_v8 = vld [vmem:[#allocation14 + $0x450] ss:$8 sps:$4 sm:$0xff]  }
 0x443   :  { %7631 = vmatprep.subr.bf16.mxu0 %v10884_v52  ;;  %6864 = vmatprep.subr.mxu1 %v4840_v11  ;;  %v10918_v52 = vld [vmem:[#allocation14 + $0x290] ss:$8 sps:$4 sm:$0xff]   ;;  %v10936_v11 = vld [vmem:[#allocation14 + $0x444] ss:$8 sps:$4 sm:$0xff]  }
 0x444   :  { %6865 = vmatpush2.msra.mxu1 %v4839_v3  ;;  %v10937_v3 = vld [vmem:[#allocation14 + $0x430] ss:$8 sps:$4 sm:$0xff]  }
 0x445   :  { %6866 = vmatprep.subr.mxu1 %v4838_v37  ;;  %v5190_v37 = vpop.f32.mrf.mxu0 }
 0x446   :  { %7632 = vmatpush1.bf16.msra.mxu0 %v10882_v59  ;;  %6867 = vmatpush2.msra.mxu1 %v4837_v10  ;;  %v7955_v59 = vld [vmem:[#allocation4 + $0x48] sm:$0xee]  ;;  %v10948_v10 = vld [vmem:[#allocation14 + $0x404] ss:$8 sps:$4 sm:$0xff]  }
 0x447   :  { %7633 = vmatprep.subr.bf16.mxu0 %v10887_v57  ;;  %7381 = vmatprep.subr.bf16.mxu1 %v10988_v7  ;;  %v10923_v57 = vld [vmem:[#allocation14 + $0x284] ss:$8 sps:$4 sm:$0xff]   ;;  %v10946_v7 = vld [vmem:[#allocation14 + $0x400] ss:$8 sps:$4 sm:$0xff]  }
 0x44a   :  { %7634 = vmatpush1.bf16.msra.mxu0 %v10885_v0  ;;  %v7954_v0 = vld [vmem:[#allocation4 + $0x20] sm:$0xee] }
 0x44b   :  { %7635 = vmatprep.subr.bf16.mxu0 %v10890_v28  ;;  %v9954_v28 = vrot.slane %v7955_v59, 9  ;;  %v9953_v60 = vrot.slane %v7954_v0, 9  ;;  %v10958_v59 = vld [vmem:[#allocation14 + $0x4c0] ss:$8 sps:$4 sm:$0xff]  }
 0x44d   :  { %v13577_v21 = vsel %vm11643_vm9, %v9954_v28, %v7966_v35  ;;  %v13581_v54 = vsel %vm11643_vm9, %v9953_v60, %v7962_v51  ;;  %v10961_v35 = vld [vmem:[#allocation14 + $0x4b0] ss:$8 sps:$4 sm:$0xff]   ;;  %v10964_v51 = vld [vmem:[#allocation14 + $0x4a0] ss:$8 sps:$4 sm:$0xff]  }
 0x44e   :  { %7636 = vmatpush1.bf16.msra.mxu0 %v10888_v31  ;;  %v10925_v31 = vld [vmem:[#allocation14 + $0x470] ss:$8 sps:$4 sm:$0xff]   ;;  %v9956_v19 = vcombine.high %v13581_v54, %v13577_v21 }
 0x44f   :  { %7637 = vmatprep.subr.bf16.mxu0 %v10893_v56  ;;  %v10930_v56 = vld [vmem:[#allocation14 + $0x464] ss:$8 sps:$4 sm:$0xff]  }
 0x452   :  { %7638 = vmatpush1.bf16.msra.mxu0 %v10891_v14  ;;  %v10939_v14 = vld [vmem:[#allocation14 + $0x434] ss:$8 sps:$4 sm:$0xff]  }
 0x453   :  { %7639 = vmatprep.subr.bf16.mxu0 %v10896_v12  ;;  %v10942_v12 = vld [vmem:[#allocation14 + $0x424] ss:$8 sps:$4 sm:$0xff]  }
 0x456   :  { %7640 = vmatpush1.bf16.msra.mxu0 %v10894_v39  ;;  %v5192_v39 = vpop.f32.mrf.mxu0 }
 0x457   :  { %7641 = vmatprep.subr.bf16.mxu0 %v10899_v36  ;;  %v5401_v36 = vpop.f32.mrf.mxu1 }
 0x45a   :  { %7642 = vmatpush1.bf16.msra.mxu0 %v10897_v5  ;;  %v10951_v5 = vld [vmem:[#allocation14 + $0x4f4] ss:$8 sps:$4 sm:$0xff]  }
 0x45b   :  { %7643 = vmatprep.subr.bf16.mxu0 %v10902_v29  ;;  %v10949_v29 = vld [vmem:[#allocation14 + $0x4f0] ss:$8 sps:$4 sm:$0xff]  }
 0x45e   :  { %7644 = vmatpush2.bf16.msra.mxu0 %v10900_v38  ;;  %v5194_v38 = vpop.f32.mrf.mxu0 }
 0x45f   :  { %7645 = vmatprep.subr.bf16.mxu0 %v10905_v43  ;;  %v5403_v43 = vpop.f32.mrf.mxu1 }
 0x462   :  { %7646 = vmatpush2.bf16.msra.mxu0 %v10903_v47  ;;  %v10954_v47 = vld [vmem:[#allocation14 + $0x4e4] ss:$8 sps:$4 sm:$0xff]  }
 0x463   :  { %7647 = vmatprep.subr.bf16.mxu0 %v10908_v55  ;;  %v10952_v55 = vld [vmem:[#allocation14 + $0x4e0] ss:$8 sps:$4 sm:$0xff]  }
 0x466   :  { %7648 = vmatpush2.bf16.msra.mxu0 %v10906_v27  ;;  %v5196_v27 = vpop.f32.mrf.mxu0 }
 0x467   :  { %7649 = vmatprep.subr.bf16.mxu0 %v10911_v13  ;;  %v5405_v13 = vpop.f32.mrf.mxu1 }
 0x46a   :  { %7650 = vmatpush2.bf16.msra.mxu0 %v10909_v18  ;;  %v10957_v18 = vld [vmem:[#allocation14 + $0x4d4] ss:$8 sps:$4 sm:$0xff]  }
 0x46b   :  { %7651 = vmatprep.subr.bf16.mxu0 %v10914_v22  ;;  %v5673_v22 = vpop.f32.mrf.mxu0 }
 0x46e   :  { %7652 = vmatpush2.bf16.msra.mxu0 %v10912_v46  ;;  %v10955_v46 = vld [vmem:[#allocation14 + $0x4d0] ss:$8 sps:$4 sm:$0xff]  }
 0x46f   :  { %7653 = vmatprep.subr.bf16.mxu0 %v10917_v61  ;;  %v5407_v61 = vpop.f32.mrf.mxu1 }
 0x472   :  { %7654 = vmatpush2.bf16.msra.mxu0 %v10915_v49  ;;  %v10960_v49 = vld [vmem:[#allocation14 + $0x4c4] ss:$8 sps:$4 sm:$0xff]  }
 0x473   :  { %7655 = vmatprep.subr.bf16.mxu0 %v10920_v58  ;;  %v5675_v58 = vpop.f32.mrf.mxu0 }
 0x475   :  { %v5677_v0 = vpop.f32.mrf.mxu0 }
 0x476   :  { %7656 = vmatpush2.bf16.msra.mxu0 %v10918_v52  ;;  %v5923_v52 = vpop.f32.mrf.mxu1 }
 0x477   :  { %7657 = vmatprep.subr.bf16.mxu0 %v10923_v57  ;;  %v10963_v57 = vld [vmem:[#allocation14 + $0x4b4] ss:$8 sps:$4 sm:$0xff]  }
 0x478   :  { %v5925_v28 = vpop.f32.mrf.mxu1 }
 0x47a   :  { %7658 = vmatpush2.bf16.msra.mxu0 %v10921_v2  ;;  %v10966_v2 = vld [vmem:[#allocation14 + $0x4a4] ss:$8 sps:$4 sm:$0xff]   ;;  %v5927_v60 = vpop.f32.mrf.mxu1 }
 0x47b   :  { %8169 = vmatprep.subr.bf16.mxu0 %v10927_v62  ;;  %v5679_v62 = vpop.f32.mrf.mxu0 }
 0x47d   :  { %7660 = vmatmul.mubr.bf16.vlgmr.msra.gmra.mxu0 %v9885_v34  ;;  %v10943_v34 = vld [vmem:[#allocation14 + $0x410] ss:$8 sps:$4 sm:$0xff]  }
 0x47e   :  { %8170 = vmatpush1.bf16.msra.mxu0 %v10925_v31  ;;  %8201 = vmatprep.mubr.bf16.mxu0 %v9956_v19  ;;  %v6203_v31 = vpop.f32.mrf.mxu0  ;;  %v5929_v19 = vpop.f32.mrf.mxu1 }
 0x47f   :  { %8171 = vmatprep.subr.bf16.mxu0 %v10930_v56  ;;  %v10969_v56 = vld [vmem:[#allocation14 + $0x494] ss:$8 sps:$4 sm:$0xff]  }
 0x482   :  { %8172 = vmatpush1.bf16.msra.mxu0 %v10928_v50  ;;  %v10967_v50 = vld [vmem:[#allocation14 + $0x490] ss:$8 sps:$4 sm:$0xff]  }
 0x483   :  { %8173 = vmatprep.subr.bf16.mxu0 %v10933_v44  ;;  %v6205_v44 = vpop.f32.mrf.mxu0 }
 0x486   :  { %8174 = vmatpush1.bf16.msra.mxu0 %v10931_v8  ;;  %v6465_v8 = vpop.f32.mrf.mxu1 }
 0x487   :  { %8175 = vmatprep.subr.bf16.mxu0 %v10936_v11  ;;  %v10972_v11 = vld [vmem:[#allocation14 + $0x484] ss:$8 sps:$4 sm:$0xff]  }
 0x48a   :  { %8176 = vmatpush1.bf16.msra.mxu0 %v10934_v15  ;;  %v5402_v15 = vadd.f32 %v5401_v36, %v5190_v37  ;;  %v6780_v37 = vld [vmem:[%s13969_s7] sm:$0x3] }
 0x48b   :  { %8177 = vmatprep.subr.bf16.mxu0 %v10939_v14  ;;  %v5404_v14 = vadd.f32 %v5403_v43, %v5192_v39  ;;  %v10973_v39 = vld [vmem:[#allocation16 + $0x170] ss:$8 sps:$4 sm:$0xff]  }
 0x48e   :  { %8178 = vmatpush1.bf16.msra.mxu0 %v10937_v3  ;;  %v5682_v3 = vadd.f32 %v5673_v22, %v5402_v15  ;;  %v10979_v22 = vld [vmem:[#allocation16 + $0x164] ss:$8 sps:$4 sm:$0xff]  }
 0x48f   :  { %8179 = vmatprep.subr.bf16.mxu0 %v10942_v12  ;;  %v10970_v12 = vld [vmem:[#allocation14 + $0x480] ss:$8 sps:$4 sm:$0xff]  }
 0x492   :  { %8180 = vmatpush1.bf16.msra.mxu0 %v10940_v25  ;;  %v6207_v25 = vpop.f32.mrf.mxu0 }
 0x493   :  { %8181 = vmatprep.subr.bf16.mxu0 %v10945_v17  ;;  %v6467_v17 = vpop.f32.mrf.mxu1 }
 0x494   :  { %v6209_v43 = vpop.f32.mrf.mxu0 }
 0x496   :  { %8182 = vmatpush1.bf16.msra.mxu0 %v10943_v34  ;;  %v10975_v34 = vld [vmem:[#allocation16 + $0x174] ss:$8 sps:$4 sm:$0xff]  }
 0x497   :  { %8183 = vmatprep.subr.bf16.mxu0 %v10948_v10  ;;  %v5406_v10 = vadd.f32 %v5405_v13, %v5194_v38  ;;  %v9955_v38 = vcombine.low %v13581_v54, %v13577_v21  ;;  %v6469_v13 = vpop.f32.mrf.mxu1 }
 0x49a   :  { %8184 = vmatpush1.bf16.msra.mxu0 %v10946_v7  ;;  %v5683_v7 = vadd.f32 %v5675_v58, %v5404_v14 }
 0x49b   :  { %8185 = vmatprep.subr.bf16.mxu0 %v10951_v5  ;;  %v5932_v5 = vadd.f32 %v5923_v52, %v5682_v3  ;;  %v14467_v52 = vld [vmem:[#allocation30_spill] sm:$0xff] }
 0x49e   :  { %8186 = vmatpush2.bf16.msra.mxu0 %v10949_v29  ;;  %v5408_v29 = vadd.f32 %v5407_v61, %v5196_v27  ;;  %v9992_v27 = vcombine.high %v13494_v1, %v13507_v32  ;;  %v11052_v32 = vld [vmem:[#allocation14 + $0xc0] ss:$8 sps:$4 sm:$0xff]  }
 0x49f   :  { %8187 = vmatprep.subr.bf16.mxu0 %v10954_v47  ;;  %v6764_v47 = vld [vmem:[%s13968_s6] sm:$0x3] }
 0x4a0   :  { %v5685_v36 = vadd.f32 %v5679_v62, %v5408_v29 }
 0x4a2   :  { %8188 = vmatpush2.bf16.msra.mxu0 %v10952_v55  ;;  %v5684_v55 = vadd.f32 %v5677_v0, %v5406_v10  ;;  %v10985_v10 = vld [vmem:[#allocation16 + $0x144] ss:$8 sps:$4 sm:$0xff]  }
 0x4a3   :  { %8189 = vmatprep.subr.bf16.mxu0 %v10957_v18  ;;  %v5933_v18 = vadd.f32 %v5925_v28, %v5683_v7  ;;  %v6785_v28 = vrot.slane %v6780_v37, %v14467_v52 }
 0x4a4   :  { %v5934_v61 = vadd.f32 %v5927_v60, %v5684_v55 }
 0x4a6   :  { %8190 = vmatpush2.bf16.msra.mxu0 %v10955_v46  ;;  %v6212_v46 = vadd.f32 %v6203_v31, %v5932_v5  ;;  %v6214_v21 = vadd.f32 %v6207_v25, %v5934_v61  ;;  %v6471_v31 = vpop.f32.mrf.mxu1 }
 0x4a7   :  { %8191 = vmatprep.subr.bf16.mxu0 %v10960_v49  ;;  %v6213_v49 = vadd.f32 %v6205_v44, %v5933_v18 }
 0x4a8   :  { %v6474_v58 = vadd.f32 %v6465_v8, %v6212_v46 }
 0x4a9   :  { %v6475_v54 = vadd.f32 %v6467_v17, %v6213_v49  ;;  %v10980_v17 = vld [vmem:[#allocation16 + $0x150] ss:$8 sps:$4 sm:$0xff]  }
 0x4aa   :  { %8192 = vmatpush2.bf16.msra.mxu0 %v10958_v59  ;;  %v6769_v59 = vrot.slane %v6764_v47, %v14467_v52  ;;  %v10989_v49 = vld [vmem:[#allocation16 + $0x130] ss:$8 sps:$4 sm:$0xff]  }
 0x4ab   :  { %8193 = vmatprep.subr.bf16.mxu0 %v10963_v57  ;;  %v5935_v57 = vadd.f32 %v5929_v19, %v5685_v36  ;;  %v6476_v19 = vadd.f32 %v6469_v13, %v6214_v21  ;;  %v11003_v21 = vld [vmem:[#allocation16 + $0x114] ss:$8 sps:$4 sm:$0xff]  }
 0x4ad   :  { %v6215_v44 = vadd.f32 %v6209_v43, %v5935_v57  ;;  %v10986_v43 = vld [vmem:[#allocation14 + $0x70] ss:$8 sps:$4 sm:$0xff]   ;;  %v10992_v57 = vld [vmem:[#allocation14 + $0x60] ss:$8 sps:$4 sm:$0xff]  }
 0x4ae   :  { %8194 = vmatpush2.bf16.msra.mxu0 %v10961_v35  ;;  %v14468_v35 = vld [vmem:[#allocation29_spill] sm:$0xff] }
 0x4af   :  { %8195 = vmatprep.subr.bf16.mxu0 %v10966_v2  ;;  %v6773_v2 = vrot.slane %v6764_v47, %v14468_v35  ;;  %v6789_v60 = vrot.slane %v6780_v37, %v14468_v35  ;;  %v6477_v14 = vadd.f32 %v6471_v31, %v6215_v44  ;;  %v10983_v37 = vld [vmem:[#allocation16 + $0x140] ss:$8 sps:$4 sm:$0xff]   ;;  %v11009_v31 = vld [vmem:[#allocation16 + $0x104] ss:$8 sps:$4 sm:$0xff]   ;;  %v11015_v44 = vld [vmem:[#allocation16 + $0x1f4] ss:$8 sps:$4 sm:$0xff]  }
 0x4b2   :  { %8196 = vmatpush2.bf16.msra.mxu0 %v10964_v51  ;;  %v10977_v51 = vld [vmem:[#allocation16 + $0x160] ss:$8 sps:$4 sm:$0xff]  }
 0x4b3   :  { %8197 = vmatprep.subr.bf16.mxu0 %v10969_v56 }
 0x4b6   :  { %8198 = vmatpush2.bf16.msra.mxu0 %v10967_v50  ;;  %v10982_v50 = vld [vmem:[#allocation16 + $0x154] ss:$8 sps:$4 sm:$0xff]  }
 0x4b7   :  { %8199 = vmatprep.subr.bf16.mxu0 %v10972_v11 }
 0x4ba   :  { %8200 = vmatpush2.bf16.msra.mxu0 %v10970_v12 }
 0x4bb   :  { %8611 = vmatprep.subr.bf16.mxu0 %v10975_v34 }
 0x4bd   :  { %v6751_v0 = vpop.f32.mrf.mxu0  ;;  %8202 = vmatmul.mubr.bf16.vlgmr.msra.gmra.mxu0 %v9955_v38 }
 0x4be   :  { %v6760_v62 = vadd.f32 %v6751_v0, %v6474_v58  ;;  %8612 = vmatpush1.bf16.msra.mxu0 %v10973_v39  ;;  %8643 = vmatprep.mubr.bf16.mxu0 %v9992_v27  ;;  %v10991_v39 = vld [vmem:[#allocation16 + $0x134] ss:$8 sps:$4 sm:$0xff]   ;;  %v10997_v58 = vld [vmem:[#allocation16 + $0x124] ss:$8 sps:$4 sm:$0xff]  }
 0x4bf   :  { %v6753_v56 = vpop.f32.mrf.mxu0  ;;  %8613 = vmatprep.subr.bf16.mxu0 %v10979_v22  ;;  %v10994_v22 = vld [vmem:[#allocation14 + $0x64] ss:$8 sps:$4 sm:$0xff]  }
 0x4c0   :  { %v6776_v8 = vmul.f32 %v6769_v59, %v6760_v62  ;;  %v6761_v11 = vadd.f32 %v6753_v56, %v6475_v54  ;;  %v10998_v54 = vld [vmem:[#allocation14 + $0x50] ss:$8 sps:$4 sm:$0xff]   ;;  %v11006_v62 = vld [vmem:[#allocation14 + $0x44] ss:$8 sps:$4 sm:$0xff]   ;;  %v11004_v56 = vld [vmem:[#allocation14 + $0x40] ss:$8 sps:$4 sm:$0xff]  }
 0x4c1   :  { %v6755_v15 = vpop.f32.mrf.mxu0 }
 0x4c2   :  { %v6792_v3 = vadd.f32 %v6785_v28, %v6776_v8  ;;  %v6777_v12 = vmul.f32 %v6773_v2, %v6761_v11  ;;  %v6762_v25 = vadd.f32 %v6755_v15, %v6476_v19  ;;  %8614 = vmatpush1.bf16.msra.mxu0 %v10977_v51  ;;  %v11001_v51 = vld [vmem:[#allocation16 + $0x110] ss:$8 sps:$4 sm:$0xff]   ;;  %v11018_v8 = vld [vmem:[#allocation14 + $0x24] ss:$8 sps:$4 sm:$0xff]   ;;  %v11016_v15 = vld [vmem:[#allocation14 + $0x20] ss:$8 sps:$4 sm:$0xff]  }
 0x4c3   :  { %v6757_v34 = vpop.f32.mrf.mxu0  ;;  %8615 = vmatprep.subr.bf16.mxu0 %v10982_v50  ;;  %v11007_v50 = vld [vmem:[#allocation16 + $0x100] ss:$8 sps:$4 sm:$0xff]   ;;  %v11010_v19 = vld [vmem:[#allocation14 + $0x30] ss:$8 sps:$4 sm:$0xff]   ;;  %v11021_v11 = vld [vmem:[#allocation16 + $0x1e4] ss:$8 sps:$4 sm:$0xff]  }
 0x4c4   :  { %v6793_v7 = vadd.f32 %v6789_v60, %v6777_v12  ;;  %v6778_v5 = vmul.f32 %v6769_v59, %v6762_v25  ;;  %v6763_v29 = vadd.f32 %v6757_v34, %v6477_v14  ;;  %v13602_v47 = vmax.f32 %v6792_v3, 0.0  ;;  %v11024_v14 = vld [vmem:[#allocation14 + $0x14] ss:$8 sps:$4 sm:$0xff]   ;;  %v11019_v3 = vld [vmem:[#allocation16 + $0x1e0] ss:$8 sps:$4 sm:$0xff]  }
 0x4c5   :  { %v11027_v12 = vld [vmem:[#allocation16 + $0x1d4] ss:$8 sps:$4 sm:$0xff]   ;;  %v11022_v25 = vld [vmem:[#allocation14 + $0x10] ss:$8 sps:$4 sm:$0xff]  }
 0x4c6   :  { %v13604_v55 = vmax.f32 %v6793_v7, 0.0  ;;  %v6794_v18 = vadd.f32 %v6785_v28, %v6778_v5  ;;  %v6779_v46 = vmul.f32 %v6773_v2, %v6763_v29  ;;  %8616 = vmatpush1.bf16.msra.mxu0 %v10980_v17  ;;  %v6800_v13 = vmul.f32 %v13602_v47, %v13602_v47  ;;  %v11000_v28 = vld [vmem:[#allocation14 + $0x54] ss:$8 sps:$4 sm:$0xff]   ;;  %v10995_v2 = vld [vmem:[#allocation16 + $0x120] ss:$8 sps:$4 sm:$0xff]  }
 0x4c7   :  { %8617 = vmatprep.subr.bf16.mxu0 %v10985_v10  ;;  %v11030_v17 = vld [vmem:[#allocation14 + $0x4] ss:$8 sps:$4 sm:$0xff]   ;;  %v11025_v34 = vld [vmem:[#allocation16 + $0x1d0] ss:$8 sps:$4 sm:$0xff]   ;;  %v11028_v7 = vld [vmem:[#allocation14] ss:$8 sps:$4 sm:$0xff]  }
 0x4c8   :  { %v6795_v36 = vadd.f32 %v6789_v60, %v6779_v46  ;;  %v6801_v38 = vmul.f32 %v13604_v55, %v13604_v55  ;;  %v13610_v27 = vmax.f32 %v6794_v18, 0.0  ;;  %v11012_v60 = vld [vmem:[#allocation14 + $0x34] ss:$8 sps:$4 sm:$0xff]   ;;  %v11033_v10 = vld [vmem:[#allocation16 + $0x1c4] ss:$8 sps:$4 sm:$0xff]  }
 0x4c9   :  { %v11036_v5 = vld [vmem:[#allocation14 + $0xf4] ss:$8 sps:$4 sm:$0xff]   ;;  %v11031_v29 = vld [vmem:[#allocation16 + $0x1c0] ss:$8 sps:$4 sm:$0xff]   ;;  %v11034_v46 = vld [vmem:[#allocation14 + $0xf0] ss:$8 sps:$4 sm:$0xff]  }
 0x4ca   :  { %v13612_v61 = vmax.f32 %v6795_v36, 0.0  ;;  %6868 = vmatprep.mubr.f32.mxu1 %v6801_v38  ;;  %8618 = vmatpush1.bf16.msra.mxu0 %v10983_v37  ;;  %v6802_v0 = vmul.f32 %v13610_v27, %v13610_v27  ;;  %v11039_v18 = vld [vmem:[#allocation16 + $0x1b4] ss:$8 sps:$4 sm:$0xff]   ;;  %v11042_v37 = vld [vmem:[#allocation14 + $0xe4] ss:$8 sps:$4 sm:$0xff]  }
 0x4cb   :  { %6869 = vmatmul.mubr.f32.vlgmr.msra.gmra.mxu1 %v6800_v13  ;;  %8619 = vmatprep.subr.bf16.mxu0 %v10991_v39  ;;  %v11037_v39 = vld [vmem:[#allocation16 + $0x1b0] ss:$8 sps:$4 sm:$0xff]   ;;  %v11045_v36 = vld [vmem:[#allocation16 + $0x1a4] ss:$8 sps:$4 sm:$0xff]   ;;  %v11040_v38 = vld [vmem:[#allocation14 + $0xe0] ss:$8 sps:$4 sm:$0xff]  }
 0x4cc   :  { %7382 = vmatpush1.bf16.msra.mxu1 %v10986_v43  ;;  %v6803_v59 = vmul.f32 %v13612_v61, %v13612_v61  ;;  %v11048_v43 = vld [vmem:[#allocation14 + $0xd4] ss:$8 sps:$4 sm:$0xff]   ;;  %v8872_v13 = vrot.slane %v8870_v63, 4 }
 0x4cd   :  { %7383 = vmatprep.subr.bf16.mxu1 %v10994_v22  ;;  %v8875_v22 = vrot.slane %v8873_v20, 5 }
 0x4ce   :  { %6874 = vmatprep.mubr.f32.mxu1 %v6803_v59  ;;  %8620 = vmatpush1.bf16.msra.mxu0 %v10989_v49  ;;  %v8886_v49 = vrot.slane %v8884_v4, 4  ;;  %v11043_v59 = vld [vmem:[#allocation16 + $0x1a0] ss:$8 sps:$4 sm:$0xff]   ;;  %v11057_v4 = vld [vmem:[#allocation16 + $0x184] ss:$8 sps:$4 sm:$0xff]  }
 0x4cf   :  { %6875 = vmatmul.mubr.f32.gmra.mxu1 %v6802_v0  ;;  %8621 = vmatprep.subr.bf16.mxu0 %v10997_v58  ;;  %v8889_v58 = vrot.slane %v8887_v23, 5  ;;  %v8868_v0 = vld [vmem:[#allocation4 + $0x60] sm:$0x11]  ;;  %v8876_v63 = vor.u32 %v8875_v22, %v8872_v13  ;;  %v11060_v23 = vld [vmem:[#allocation14 + $0xb4] ss:$8 sps:$4 sm:$0xff]  }
 0x4d0   :  { %7384 = vmatpush1.bf16.msra.mxu1 %v10992_v57  ;;  %7413 = vmatprep.mubr.bf16.mxu1 %v9852_v48  ;;  %v11013_v48 = vld [vmem:[#allocation16 + $0x1f0] ss:$8 sps:$4 sm:$0xff]   ;;  %v8893_v20 = vshll.u32 %v8868_v0, 16  ;;  %v11091_v13 = vld [vmem:[#allocation14 + $0x364] ss:$8 sps:$4 sm:$0xff]  }
 0x4d1   :  { %7385 = vmatprep.subr.bf16.mxu1 %v11000_v28  ;;  %v8866_v57 = vld [vmem:[#allocation4 + $0x88] sm:$0x11]  ;;  %v8890_v1 = vor.u32 %v8889_v58, %v8886_v49  ;;  %v11094_v49 = vld [vmem:[#allocation16 + $0x224] ss:$8 sps:$4 sm:$0xff]   ;;  %v11089_v58 = vld [vmem:[#allocation14 + $0x360] ss:$8 sps:$4 sm:$0xff]  }
 0x4d2   :  { %8622 = vmatpush1.bf16.msra.mxu0 %v10995_v2  ;;  %v11051_v28 = vld [vmem:[#allocation16 + $0x194] ss:$8 sps:$4 sm:$0xff]   ;;  %v11046_v2 = vld [vmem:[#allocation14 + $0xd0] ss:$8 sps:$4 sm:$0xff]  }
 0x4d3   :  { %8623 = vmatprep.subr.bf16.mxu0 %v11003_v21  ;;  %v11054_v21 = vld [vmem:[#allocation14 + $0xc4] ss:$8 sps:$4 sm:$0xff]   ;;  %v11086_v22 = vld [vmem:[#allocation16 + $0x230] ss:$8 sps:$4 sm:$0xff]   ;;  %v11100_v0 = vld [vmem:[#allocation16 + $0x214] ss:$8 sps:$4 sm:$0xff]  }
 0x4d4   :  { %7386 = vmatpush1.bf16.msra.mxu1 %v10998_v54  ;;  %v8879_v54 = vshll.u32 %v8866_v57, 16  ;;  %v11092_v57 = vld [vmem:[#allocation16 + $0x220] ss:$8 sps:$4 sm:$0xff]  }
 0x4d5   :  { %7387 = vmatprep.subr.bf16.mxu1 %v11006_v62  ;;  %v11049_v62 = vld [vmem:[#allocation16 + $0x190] ss:$8 sps:$4 sm:$0xff]  }
 0x4d6   :  { %8624 = vmatpush1.bf16.msra.mxu0 %v11001_v51  ;;  %v8877_v51 = vrot.slane %v8876_v63, 4  ;;  %v11112_v63 = vld [vmem:[#allocation16 + $0x2f4] ss:$8 sps:$4 sm:$0xff]  }
 0x4d7   :  { %8625 = vmatprep.subr.bf16.mxu0 %v11009_v31  ;;  %v8881_v31 = vrot.slane %v8879_v54, 5  ;;  %v11107_v54 = vld [vmem:[#allocation14 + $0x330] ss:$8 sps:$4 sm:$0xff]  }
 0x4d8   :  { %7388 = vmatpush1.bf16.msra.mxu1 %v11004_v56  ;;  %v8891_v56 = vrot.slane %v8890_v1, 4  ;;  %v11115_v1 = vld [vmem:[#allocation14 + $0x324] ss:$8 sps:$4 sm:$0xff]  }
 0x4d9   :  { %7389 = vmatprep.subr.bf16.mxu1 %v11012_v60  ;;  %v8895_v60 = vrot.slane %v8893_v20, 5  ;;  %v11110_v20 = vld [vmem:[#allocation16 + $0x2f0] ss:$8 sps:$4 sm:$0xff]  }
 0x4da   :  { %8626 = vmatpush1.bf16.msra.mxu0 %v11007_v50  ;;  %v11055_v50 = vld [vmem:[#allocation16 + $0x180] ss:$8 sps:$4 sm:$0xff]  }
 0x4db   :  { %8627 = vmatprep.subr.bf16.mxu0 %v11015_v44  ;;  %v11064_v44 = vld [vmem:[#allocation16 + $0x274] ss:$8 sps:$4 sm:$0xff]  }
 0x4dc   :  { %7390 = vmatpush1.bf16.msra.mxu1 %v11010_v19  ;;  %v11058_v19 = vld [vmem:[#allocation14 + $0xb0] ss:$8 sps:$4 sm:$0xff]  }
 0x4dd   :  { %7391 = vmatprep.subr.bf16.mxu1 %v11018_v8  ;;  %v11067_v8 = vld [vmem:[#allocation14 + $0xa4] ss:$8 sps:$4 sm:$0xff]  }
 0x4de   :  { %8628 = vmatpush2.bf16.msra.mxu0 %v11013_v48  ;;  %v13631_v48 = vsel %vm11705_vm7, %v8877_v51, %v8881_v31  ;;  %v11124_v51 = vld [vmem:[#allocation16 + $0x2d4] ss:$8 sps:$4 sm:$0xff]   ;;  %v11119_v31 = vld [vmem:[#allocation14 + $0x310] ss:$8 sps:$4 sm:$0xff]  }
 0x4df   :  { %8629 = vmatprep.subr.bf16.mxu0 %v11021_v11  ;;  %v13635_v11 = vsel %vm11705_vm7, %v8891_v56, %v8895_v60  ;;  %v11127_v56 = vld [vmem:[#allocation14 + $0x304] ss:$8 sps:$4 sm:$0xff]   ;;  %v11122_v60 = vld [vmem:[#allocation16 + $0x2d0] ss:$8 sps:$4 sm:$0xff]  }
 0x4e0   :  { %7392 = vmatpush1.bf16.msra.mxu1 %v11016_v15  ;;  %v11062_v15 = vld [vmem:[#allocation16 + $0x270] ss:$8 sps:$4 sm:$0xff]  }
 0x4e1   :  { %7393 = vmatprep.subr.bf16.mxu1 %v11024_v14  ;;  %v11247_v14 = vld [vmem:[#allocation4 + $0x8] sm:$0xff] }
 0x4e2   :  { %8630 = vmatpush2.bf16.msra.mxu0 %v11019_v3  ;;  %v11248_v3 = vld [vmem:[#allocation4 + $0x30] sm:$0xff] }
 0x4e3   :  { %8631 = vmatprep.subr.bf16.mxu0 %v11027_v12  ;;  %v9991_v12 = vcombine.low %v11247_v14, %v11248_v3  ;;  %v11131_v14 = vld [vmem:[#allocation14 + $0x3f0] ss:$8 sps:$4 sm:$0xff]   ;;  %v11139_v3 = vld [vmem:[#allocation14 + $0x3e4] ss:$8 sps:$4 sm:$0xff]  }
 0x4e4   :  { %7394 = vmatpush1.bf16.msra.mxu1 %v11022_v25  ;;  %v11070_v25 = vld [vmem:[#allocation16 + $0x264] ss:$8 sps:$4 sm:$0xff]  }
 0x4e5   :  { %7395 = vmatprep.subr.bf16.mxu1 %v11030_v17  ;;  %v11065_v17 = vld [vmem:[#allocation14 + $0xa0] ss:$8 sps:$4 sm:$0xff]  }
 0x4e6   :  { %8632 = vmatpush2.bf16.msra.mxu0 %v11025_v34  ;;  %v10060_v34 = vcombine.high %v13631_v48, %v13635_v11 }
 0x4e7   :  { %8633 = vmatprep.subr.bf16.mxu0 %v11033_v10  ;;  %v11073_v10 = vld [vmem:[#allocation14 + $0x94] ss:$8 sps:$4 sm:$0xff]  }
 0x4e8   :  { %7396 = vmatpush1.bf16.msra.mxu1 %v11028_v7  ;;  %v11076_v7 = vld [vmem:[#allocation16 + $0x254] ss:$8 sps:$4 sm:$0xff]  }
 0x4e9   :  { %7397 = vmatprep.subr.bf16.mxu1 %v11036_v5  ;;  %v11071_v5 = vld [vmem:[#allocation14 + $0x90] ss:$8 sps:$4 sm:$0xff]  }
 0x4ea   :  { %8634 = vmatpush2.bf16.msra.mxu0 %v11031_v29  ;;  %v11079_v29 = vld [vmem:[#allocation14 + $0x84] ss:$8 sps:$4 sm:$0xff]  }
 0x4eb   :  { %8635 = vmatprep.subr.bf16.mxu0 %v11039_v18  ;;  %v11074_v18 = vld [vmem:[#allocation16 + $0x250] ss:$8 sps:$4 sm:$0xff]  }
 0x4ec   :  { %7398 = vmatpush2.bf16.msra.mxu1 %v11034_v46  ;;  %v11082_v46 = vld [vmem:[#allocation16 + $0x244] ss:$8 sps:$4 sm:$0xff]  }
 0x4ed   :  { %7399 = vmatprep.subr.bf16.mxu1 %v11042_v37  ;;  %v11077_v37 = vld [vmem:[#allocation14 + $0x80] ss:$8 sps:$4 sm:$0xff]  }
 0x4ee   :  { %8636 = vmatpush2.bf16.msra.mxu0 %v11037_v39  ;;  %v11085_v39 = vld [vmem:[#allocation14 + $0x374] ss:$8 sps:$4 sm:$0xff]  }
 0x4ef   :  { %8637 = vmatprep.subr.bf16.mxu0 %v11045_v36  ;;  %v11080_v36 = vld [vmem:[#allocation16 + $0x240] ss:$8 sps:$4 sm:$0xff]  }
 0x4f0   :  { %7400 = vmatpush2.bf16.msra.mxu1 %v11040_v38  ;;  %v11088_v38 = vld [vmem:[#allocation16 + $0x234] ss:$8 sps:$4 sm:$0xff]  }
 0x4f1   :  { %7401 = vmatprep.subr.bf16.mxu1 %v11048_v43  ;;  %v11083_v43 = vld [vmem:[#allocation14 + $0x370] ss:$8 sps:$4 sm:$0xff]  }
 0x4f2   :  { %8638 = vmatpush2.bf16.msra.mxu0 %v11043_v59  ;;  %v11097_v59 = vld [vmem:[#allocation14 + $0x354] ss:$8 sps:$4 sm:$0xff]  }
 0x4f3   :  { %8639 = vmatprep.subr.bf16.mxu0 %v11051_v28  ;;  %v11095_v28 = vld [vmem:[#allocation14 + $0x350] ss:$8 sps:$4 sm:$0xff]  }
 0x4f4   :  { %7402 = vmatpush2.bf16.msra.mxu1 %v11046_v2  ;;  %v11103_v2 = vld [vmem:[#allocation14 + $0x344] ss:$8 sps:$4 sm:$0xff]  }
 0x4f5   :  { %7403 = vmatprep.subr.bf16.mxu1 %v11054_v21  ;;  %v11109_v21 = vld [vmem:[#allocation14 + $0x334] ss:$8 sps:$4 sm:$0xff]  }
 0x4f6   :  { %8640 = vmatpush2.bf16.msra.mxu0 %v11049_v62  ;;  %v11118_v62 = vld [vmem:[#allocation16 + $0x2e4] ss:$8 sps:$4 sm:$0xff]  }
 0x4f7   :  { %8641 = vmatprep.subr.bf16.mxu0 %v11057_v4  ;;  %v11113_v4 = vld [vmem:[#allocation14 + $0x320] ss:$8 sps:$4 sm:$0xff]  }
 0x4f8   :  { %7404 = vmatpush2.bf16.msra.mxu1 %v11052_v32  ;;  %v11121_v32 = vld [vmem:[#allocation14 + $0x314] ss:$8 sps:$4 sm:$0xff]  }
 0x4f9   :  { %7405 = vmatprep.subr.bf16.mxu1 %v11060_v23  ;;  %v11116_v23 = vld [vmem:[#allocation16 + $0x2e0] ss:$8 sps:$4 sm:$0xff]  }
 0x4fa   :  { %8642 = vmatpush2.bf16.msra.mxu0 %v11055_v50  ;;  %v11130_v50 = vld [vmem:[#allocation16 + $0x2c4] ss:$8 sps:$4 sm:$0xff]  }
 0x4fb   :  { %9098 = vmatprep.subr.bf16.mxu0 %v11064_v44  ;;  %v11125_v44 = vld [vmem:[#allocation14 + $0x300] ss:$8 sps:$4 sm:$0xff]  }
 0x4fc   :  { %7406 = vmatpush2.bf16.msra.mxu1 %v11058_v19  ;;  %v11133_v19 = vld [vmem:[#allocation14 + $0x3f4] ss:$8 sps:$4 sm:$0xff]  }
 0x4fd   :  { %8644 = vmatmul.mubr.bf16.vlgmr.msra.gmra.mxu0 %v9991_v12  ;;  %7407 = vmatprep.subr.bf16.mxu1 %v11067_v8  ;;  %v11128_v8 = vld [vmem:[#allocation16 + $0x2c0] ss:$8 sps:$4 sm:$0xff]   ;;  %v11134_v12 = vld [vmem:[#allocation16 + $0x2b0] ss:$8 sps:$4 sm:$0xff]  }
 0x4fe   :  { %9099 = vmatpush1.bf16.msra.mxu0 %v11062_v15  ;;  %9130 = vmatprep.mubr.bf16.mxu0 %v10060_v34  ;;  %v11136_v15 = vld [vmem:[#allocation16 + $0x2b4] ss:$8 sps:$4 sm:$0xff]  }
 0x4ff   :  { %9100 = vmatprep.subr.bf16.mxu0 %v11070_v25  ;;  %v11142_v25 = vld [vmem:[#allocation16 + $0x2a4] ss:$8 sps:$4 sm:$0xff]   ;;  %v11145_v34 = vld [vmem:[#allocation14 + $0x3d4] ss:$8 sps:$4 sm:$0xff]  }
 0x500   :  { %7408 = vmatpush2.bf16.msra.mxu1 %v11065_v17  ;;  %v11137_v17 = vld [vmem:[#allocation14 + $0x3e0] ss:$8 sps:$4 sm:$0xff]  }
 0x501   :  { %7409 = vmatprep.subr.bf16.mxu1 %v11073_v10  ;;  %v11140_v10 = vld [vmem:[#allocation16 + $0x2a0] ss:$8 sps:$4 sm:$0xff]  }
 0x502   :  { %9101 = vmatpush1.bf16.msra.mxu0 %v11068_v9  ;;  %v11148_v9 = vld [vmem:[#allocation16 + $0x294] ss:$8 sps:$4 sm:$0xff]  }
 0x503   :  { %9102 = vmatprep.subr.bf16.mxu0 %v11076_v7  ;;  %v11143_v7 = vld [vmem:[#allocation14 + $0x3d0] ss:$8 sps:$4 sm:$0xff]  }
 0x504   :  { %7410 = vmatpush2.bf16.msra.mxu1 %v11071_v5  ;;  %v11151_v5 = vld [vmem:[#allocation14 + $0x3c4] ss:$8 sps:$4 sm:$0xff]  }
 0x505   :  { %7411 = vmatprep.subr.bf16.mxu1 %v11079_v29  ;;  %v11146_v29 = vld [vmem:[#allocation16 + $0x290] ss:$8 sps:$4 sm:$0xff]  }
 0x506   :  { %9103 = vmatpush1.bf16.msra.mxu0 %v11074_v18  ;;  %v11154_v18 = vld [vmem:[#allocation16 + $0x284] ss:$8 sps:$4 sm:$0xff]  }
 0x507   :  { %9104 = vmatprep.subr.bf16.mxu0 %v11082_v46  ;;  %v11149_v46 = vld [vmem:[#allocation14 + $0x3c0] ss:$8 sps:$4 sm:$0xff]  }
 0x508   :  { %7412 = vmatpush2.bf16.msra.mxu1 %v11077_v37  ;;  %v11157_v37 = vld [vmem:[#allocation14 + $0x3b4] ss:$8 sps:$4 sm:$0xff]  }
 0x509   :  { %7907 = vmatprep.subr.bf16.mxu1 %v11085_v39  ;;  %v11152_v39 = vld [vmem:[#allocation16 + $0x280] ss:$8 sps:$4 sm:$0xff]  }
 0x50a   :  { %9105 = vmatpush1.bf16.msra.mxu0 %v11080_v36  ;;  %v11155_v36 = vld [vmem:[#allocation14 + $0x3b0] ss:$8 sps:$4 sm:$0xff]  }
 0x50b   :  { %7414 = vmatmul.mubr.bf16.vlgmr.msra.gmra.mxu1 %v9851_v40  ;;  %9106 = vmatprep.subr.bf16.mxu0 %v11088_v38  ;;  %v11101_v40 = vld [vmem:[#allocation14 + $0x340] ss:$8 sps:$4 sm:$0xff]   ;;  %v11160_v38 = vld [vmem:[#allocation14 + $0x3a4] ss:$8 sps:$4 sm:$0xff]  }
 0x50c   :  { %7908 = vmatpush1.bf16.msra.mxu1 %v11083_v43  ;;  %7939 = vmatprep.mubr.bf16.mxu1 %v9920_v53  ;;  %v11104_v53 = vld [vmem:[#allocation16 + $0x200] ss:$8 sps:$4 sm:$0xff]   ;;  %v10059_v43 = vcombine.low %v13631_v48, %v13635_v11 }
 0x50d   :  { %7909 = vmatprep.subr.bf16.mxu1 %v11091_v13  ;;  %v11158_v13 = vld [vmem:[#allocation14 + $0x3a0] ss:$8 sps:$4 sm:$0xff]  }
 0x50e   :  { %9107 = vmatpush1.bf16.msra.mxu0 %v11086_v22  ;;  %v11163_v22 = vld [vmem:[#allocation14 + $0x394] ss:$8 sps:$4 sm:$0xff]   ;;  %v13653_v48 = vld [vmem:[#allocation8 + $0xf0] sm:$0xff]  ;;  %v13656_v11 = vld [vmem:[#allocation8 + $0xe8] sm:$0xff] }
 0x50f   :  { %9108 = vmatprep.subr.bf16.mxu0 %v11094_v49  ;;  %v11161_v49 = vld [vmem:[#allocation14 + $0x390] ss:$8 sps:$4 sm:$0xff]  }
 0x510   :  { %7910 = vmatpush1.bf16.msra.mxu1 %v11089_v58  ;;  %v11166_v58 = vld [vmem:[#allocation14 + $0x384] ss:$8 sps:$4 sm:$0xff]  }
 0x511   :  { %7911 = vmatprep.subr.bf16.mxu1 %v11097_v59  ;;  %v11164_v59 = vld [vmem:[#allocation14 + $0x380] ss:$8 sps:$4 sm:$0xff]  }
 0x512   :  { %9109 = vmatpush1.bf16.msra.mxu0 %v11092_v57  ;;  %v13647_v57 = vld [vmem:[#allocation8 + $0xf8] sm:$0xff] }
 0x513   :  { %9110 = vmatprep.subr.bf16.mxu0 %v11100_v0  ;;  %v13659_v0 = vld [vmem:[#allocation8 + $0xe0] sm:$0xff] }
 0x514   :  { %7912 = vmatpush1.bf16.msra.mxu1 %v11095_v28  ;;  %v13662_v28 = vld [vmem:[#allocation8 + $0xd8] sm:$0xff] }
 0x515   :  { %7913 = vmatprep.subr.bf16.mxu1 %v11103_v2  ;;  %v13665_v2 = vld [vmem:[#allocation8 + $0xd0] sm:$0xff] }
 0x516   :  { %9111 = vmatpush1.bf16.msra.mxu0 %v11098_v26  ;;  %v13677_v26 = vld [vmem:[#allocation8 + $0xb0] sm:$0xff] }
 0x517   :  { %9112 = vmatprep.subr.bf16.mxu0 %v11106_v6  ;;  %v13680_v6 = vld [vmem:[#allocation8 + $0xa8] sm:$0xff] }
 0x518   :  { %7914 = vmatpush1.bf16.msra.mxu1 %v11101_v40  ;;  %v13683_v40 = vld [vmem:[#allocation8 + $0xa0] sm:$0xff] }
 0x519   :  { %7915 = vmatprep.subr.bf16.mxu1 %v11109_v21  ;;  %v13686_v21 = vld [vmem:[#allocation8 + $0x98] sm:$0xff] }
 0x51a   :  { %9113 = vmatpush1.bf16.msra.mxu0 %v11104_v53  ;;  %v13689_v53 = vld [vmem:[#allocation8 + $0x90] sm:$0xff] }
 0x51b   :  { %9114 = vmatprep.subr.bf16.mxu0 %v11112_v63  ;;  %v13692_v63 = vld [vmem:[#allocation8 + $0x88] sm:$0xff] }
 0x51c   :  { %7916 = vmatpush1.bf16.msra.mxu1 %v11107_v54  ;;  %v13695_v54 = vld [vmem:[#allocation8 + $0x80] sm:$0xff] }
 0x51d   :  { %7917 = vmatprep.subr.bf16.mxu1 %v11115_v1  ;;  %v13698_v1 = vld [vmem:[#allocation8 + $0x78] sm:$0xff] }
 0x51e   :  { %9115 = vmatpush2.bf16.msra.mxu0 %v11110_v20  ;;  %v13701_v20 = vld [vmem:[#allocation8 + $0x70] sm:$0xff] }
 0x51f   :  { %9116 = vmatprep.subr.bf16.mxu0 %v11118_v62  ;;  %v13704_v62 = vld [vmem:[#allocation8 + $0x68] sm:$0xff] }
 0x520   :  { %7918 = vmatpush1.bf16.msra.mxu1 %v11113_v4  ;;  %v13707_v4 = vld [vmem:[#allocation8 + $0x60] sm:$0xff] }
 0x521   :  { %7919 = vmatprep.subr.bf16.mxu1 %v11121_v32  ;;  %v13710_v32 = vld [vmem:[#allocation8 + $0x58] sm:$0xff] }
 0x522   :  { %9117 = vmatpush2.bf16.msra.mxu0 %v11116_v23  ;;  %v13713_v23 = vld [vmem:[#allocation8 + $0x50] sm:$0xff] }
 0x523   :  { %9118 = vmatprep.subr.bf16.mxu0 %v11124_v51  ;;  %v13716_v51 = vld [vmem:[#allocation8 + $0x48] sm:$0xff] }
 0x524   :  { %7920 = vmatpush1.bf16.msra.mxu1 %v11119_v31  ;;  %v13719_v31 = vld [vmem:[#allocation8 + $0x40] sm:$0xff] }
 0x525   :  { %7921 = vmatprep.subr.bf16.mxu1 %v11127_v56  ;;  %v13722_v56 = vld [vmem:[#allocation8 + $0x38] sm:$0xff] }
 0x526   :  { %9119 = vmatpush2.bf16.msra.mxu0 %v11122_v60  ;;  %v13725_v60 = vld [vmem:[#allocation8 + $0x30] sm:$0xff] }
 0x527   :  { %9120 = vmatprep.subr.bf16.mxu0 %v11130_v50  ;;  %v13728_v50 = vld [vmem:[#allocation8 + $0x28] sm:$0xff] }
 0x528   :  { %7922 = vmatpush1.bf16.msra.mxu1 %v11125_v44  ;;  %v13731_v44 = vld [vmem:[#allocation8 + $0x20] sm:$0xff] }
 0x529   :  { %7923 = vmatprep.subr.bf16.mxu1 %v11133_v19  ;;  %v13734_v19 = vld [vmem:[#allocation8 + $0x18] sm:$0xff] }
 0x52a   :  { %9121 = vmatpush2.bf16.msra.mxu0 %v11128_v8  ;;  %v13737_v8 = vld [vmem:[#allocation8 + $0x10] sm:$0xff] }
 0x52b   :  { %9122 = vmatprep.subr.bf16.mxu0 %v11136_v15  ;;  %v13740_v15 = vld [vmem:[#allocation8 + $0x8] sm:$0xff] }
 0x52c   :  { %7924 = vmatpush2.bf16.msra.mxu1 %v11131_v14  ;;  %14469 = vst [vmem:[#allocation47_spill] sm:$0xff] %v13740_v15  ;;  %v13743_v14 = vld [vmem:[#allocation8] sm:$0xff] }
 0x52d   :  { %7925 = vmatprep.subr.bf16.mxu1 %v11139_v3  ;;  %14470 = vst [vmem:[#allocation49_spill] sm:$0xff] %v13743_v14  ;;  %v13746_v3 = vld [vmem:[#allocation8 + $0x1f8] sm:$0xff] }
 0x52e   :  { %9123 = vmatpush2.bf16.msra.mxu0 %v11134_v12  ;;  %14471 = vst [vmem:[#allocation51_spill] sm:$0xff] %v13746_v3  ;;  %v13749_v12 = vld [vmem:[#allocation8 + $0x1f0] sm:$0xff] }
 0x52f   :  { %9124 = vmatprep.subr.bf16.mxu0 %v11142_v25  ;;  %14472 = vst [vmem:[#allocation53_spill] sm:$0xff] %v13749_v12  ;;  %v13752_v25 = vld [vmem:[#allocation8 + $0x1e8] sm:$0xff] }
 0x530   :  { %7926 = vmatpush2.bf16.msra.mxu1 %v11137_v17  ;;  %14473 = vst [vmem:[#allocation55_spill] sm:$0xff] %v13752_v25  ;;  %v13755_v17 = vld [vmem:[#allocation8 + $0x1e0] sm:$0xff] }
 0x531   :  { %7927 = vmatprep.subr.bf16.mxu1 %v11145_v34  ;;  %14474 = vst [vmem:[#allocation42_spill] sm:$0xff] %v13755_v17  ;;  %v13758_v34 = vld [vmem:[#allocation8 + $0x1d8] sm:$0xff] }
 0x532   :  { %9125 = vmatpush2.bf16.msra.mxu0 %v11140_v10  ;;  %14475 = vst [vmem:[#allocation43_spill] sm:$0xff] %v13758_v34  ;;  %v13761_v10 = vld [vmem:[#allocation8 + $0x1d0] sm:$0xff] }
 0x533   :  { %9126 = vmatprep.subr.bf16.mxu0 %v11148_v9  ;;  %14476 = vst [vmem:[#allocation46_spill] sm:$0xff] %v13761_v10  ;;  %v13764_v9 = vld [vmem:[#allocation8 + $0x1c8] sm:$0xff] }
 0x534   :  { %7928 = vmatpush2.bf16.msra.mxu1 %v11143_v7  ;;  %14477 = vst [vmem:[#allocation48_spill] sm:$0xff] %v13764_v9  ;;  %v13767_v7 = vld [vmem:[#allocation8 + $0x1c0] sm:$0xff] }
 0x535   :  { %7929 = vmatprep.subr.bf16.mxu1 %v11151_v5  ;;  %14478 = vst [vmem:[#allocation50_spill] sm:$0xff] %v13767_v7  ;;  %v13770_v5 = vld [vmem:[#allocation8 + $0x1b8] sm:$0xff] }
 0x536   :  { %9127 = vmatpush2.bf16.msra.mxu0 %v11146_v29  ;;  %14479 = vst [vmem:[#allocation52_spill] sm:$0xff] %v13770_v5  ;;  %v13773_v29 = vld [vmem:[#allocation8 + $0x1b0] sm:$0xff] }
 0x537   :  { %9128 = vmatprep.subr.bf16.mxu0 %v11154_v18  ;;  %14480 = vst [vmem:[#allocation54_spill] sm:$0xff] %v13773_v29  ;;  %v13776_v18 = vld [vmem:[#allocation8 + $0x1a8] sm:$0xff] }
 0x538   :  { %7930 = vmatpush2.bf16.msra.mxu1 %v11149_v46  ;;  %14481 = vst [vmem:[#allocation56_spill] sm:$0xff] %v13776_v18  ;;  %v13779_v46 = vld [vmem:[#allocation8 + $0x1a0] sm:$0xff] }
 0x539   :  { %7931 = vmatprep.subr.bf16.mxu1 %v11157_v37  ;;  %14482 = vst [vmem:[#allocation61_spill] sm:$0xff] %v13779_v46  ;;  %v13782_v37 = vld [vmem:[#allocation8 + $0x198] sm:$0xff] }
 0x53a   :  { %9129 = vmatpush2.bf16.msra.mxu0 %v11152_v39  ;;  %14483 = vst [vmem:[#allocation75_spill] sm:$0xff] %v13782_v37  ;;  %v13785_v39 = vld [vmem:[#allocation8 + $0x190] sm:$0xff] }
 0x53b   :  { %14484 = vst [vmem:[#allocation62_spill] sm:$0xff] %v13785_v39 }
 0x53c   :  { %7932 = vmatpush2.bf16.msra.mxu1 %v11155_v36  ;;  %v13788_v36 = vld [vmem:[#allocation8 + $0x188] sm:$0xff] }
 0x53d   :  { %9131 = vmatmul.mubr.bf16.vlgmr.msra.gmra.mxu0 %v10059_v43  ;;  %7933 = vmatprep.subr.bf16.mxu1 %v11160_v38  ;;  %14485 = vst [vmem:[#allocation76_spill] sm:$0xff] %v13788_v36  ;;  %v13791_v38 = vld [vmem:[#allocation8 + $0x180] sm:$0xff]  ;;  %v13794_v43 = vld [vmem:[#allocation8 + $0x178] sm:$0xff] }
 0x53e   :  { %14486 = vst [vmem:[#allocation64_spill] sm:$0xff] %v13791_v38  ;;  %14487 = vst [vmem:[#allocation78_spill] sm:$0xff] %v13794_v43 }
 0x540   :  { %7934 = vmatpush2.bf16.msra.mxu1 %v11158_v13  ;;  %v13797_v13 = vld [vmem:[#allocation8 + $0x170] sm:$0xff] }
 0x541   :  { %7935 = vmatprep.subr.bf16.mxu1 %v11163_v22  ;;  %14488 = vst [vmem:[#allocation68_spill] sm:$0xff] %v13797_v13  ;;  %v13800_v22 = vld [vmem:[#allocation8 + $0x168] sm:$0xff] }
 0x542   :  { %14489 = vst [vmem:[#allocation80_spill] sm:$0xff] %v13800_v22 }
 0x544   :  { %7936 = vmatpush2.bf16.msra.mxu1 %v11161_v49  ;;  %v13803_v49 = vld [vmem:[#allocation8 + $0x160] sm:$0xff] }
 0x545   :  { %7937 = vmatprep.subr.bf16.mxu1 %v11166_v58  ;;  %14490 = vst [vmem:[#allocation69_spill] sm:$0xff] %v13803_v49  ;;  %v13806_v58 = vld [vmem:[#allocation8 + $0x158] sm:$0xff] }
 0x546   :  { %14491 = vst [vmem:[#allocation82_spill] sm:$0xff] %v13806_v58 }
 0x548   :  { %7938 = vmatpush2.bf16.msra.mxu1 %v11164_v59  ;;  %v13809_v59 = vld [vmem:[#allocation8 + $0x150] sm:$0xff] }
 0x549   :  { %8256 = vmatprep.subr.mxu1 %v13647_v57  ;;  %14492 = vst [vmem:[#allocation70_spill] sm:$0xff] %v13809_v59 }
 0x54b   :  { %7940 = vmatmul.mubr.bf16.vlgmr.msra.gmra.mxu1 %v9919_v24  ;;  %v13674_v24 = vld [vmem:[#allocation8 + $0xb8] sm:$0xff] }
 0x54c   :  { %8257 = vmatpush1.msra.mxu1 %v13653_v48 }
 0x54d   :  { %8258 = vmatprep.subr.mxu1 %v13656_v11 }
 0x54e   :  { %8259 = vmatpush1.msra.mxu1 %v13659_v0 }
 0x54f   :  { %8260 = vmatprep.subr.mxu1 %v13662_v28 }
 0x550   :  { %8261 = vmatpush1.msra.mxu1 %v13665_v2 }
 0x551   :  { %8262 = vmatprep.subr.mxu1 %v13668_v30 }
 0x552   :  { %8263 = vmatpush1.msra.mxu1 %v13671_v42 }
 0x553   :  { %8264 = vmatprep.subr.mxu1 %v13674_v24 }
 0x554   :  { %8265 = vmatpush1.msra.mxu1 %v13677_v26 }
 0x555   :  { %8266 = vmatprep.subr.mxu1 %v13680_v6 }
 0x556   :  { %8267 = vmatpush1.msra.mxu1 %v13683_v40 }
 0x557   :  { %8268 = vmatprep.subr.mxu1 %v13686_v21 }
 0x558   :  { %8269 = vmatpush1.msra.mxu1 %v13689_v53 }
 0x559   :  { %8270 = vmatprep.subr.mxu1 %v13692_v63 }
 0x55a   :  { %8271 = vmatpush1.msra.mxu1 %v13695_v54 }
 0x55b   :  { %8272 = vmatprep.subr.mxu1 %v13698_v1 }
 0x55c   :  { %8273 = vmatpush1.msra.mxu1 %v13701_v20 }
 0x55d   :  { %8274 = vmatprep.subr.mxu1 %v13704_v62 }
 0x55e   :  { %8275 = vmatpush1.msra.mxu1 %v13707_v4 }
 0x55f   :  { %8276 = vmatprep.subr.mxu1 %v13710_v32 }
 0x560   :  { %8277 = vmatpush1.msra.mxu1 %v13713_v23 }
 0x561   :  { %8278 = vmatprep.subr.mxu1 %v13716_v51 }
 0x562   :  { %8279 = vmatpush1.msra.mxu1 %v13719_v31 }
 0x563   :  { %8280 = vmatprep.subr.mxu1 %v13722_v56 }
 0x564   :  { %8281 = vmatpush1.msra.mxu1 %v13725_v60 }
 0x565   :  { %8282 = vmatprep.subr.mxu1 %v13728_v50 }
 0x566   :  { %8283 = vmatpush1.msra.mxu1 %v13731_v44 }
 0x567   :  { %8284 = vmatprep.subr.mxu1 %v13734_v19 }
 0x568   :  { %8285 = vmatpush1.msra.mxu1 %v13737_v8 }
 0x569   :  { %8286 = vmatprep.subr.mxu1 %v13740_v15 }
 0x56a   :  { %8287 = vmatpush1.msra.mxu1 %v13743_v14 }
 0x56b   :  { %8288 = vmatprep.subr.mxu1 %v13746_v3 }
 0x56c   :  { %8289 = vmatpush2.msra.mxu1 %v13749_v12 }
 0x56d   :  { %8290 = vmatprep.subr.mxu1 %v13752_v25 }
 0x56e   :  { %8291 = vmatpush2.msra.mxu1 %v13755_v17 }
 0x56f   :  { %8292 = vmatprep.subr.mxu1 %v13758_v34 }
 0x570   :  { %8293 = vmatpush2.msra.mxu1 %v13761_v10 }
 0x571   :  { %8294 = vmatprep.subr.mxu1 %v13764_v9 }
 0x572   :  { %8295 = vmatpush2.msra.mxu1 %v13767_v7 }
 0x573   :  { %8296 = vmatprep.subr.mxu1 %v13770_v5 }
 0x574   :  { %8297 = vmatpush2.msra.mxu1 %v13773_v29 }
 0x575   :  { %8298 = vmatprep.subr.mxu1 %v13776_v18 }
 0x576   :  { %8299 = vmatpush2.msra.mxu1 %v13779_v46 }
 0x577   :  { %8300 = vmatprep.subr.mxu1 %v13782_v37 }
 0x578   :  { %8301 = vmatpush2.msra.mxu1 %v13785_v39 }
 0x579   :  { %8302 = vmatprep.subr.mxu1 %v13788_v36 }
 0x57a   :  { %8303 = vmatpush2.msra.mxu1 %v13791_v38 }
 0x57b   :  { %8304 = vmatprep.subr.mxu1 %v13794_v43 }
 0x57c   :  { %8305 = vmatpush2.msra.mxu1 %v13797_v13 }
 0x57d   :  { %8306 = vmatprep.subr.mxu1 %v13800_v22  ;;  %v13818_v22 = vld [vmem:[#allocation8 + $0x138] sm:$0xff] }
 0x57e   :  { %8307 = vmatpush2.msra.mxu1 %v13803_v49  ;;  %14495 = vst [vmem:[#allocation85_spill] sm:$0xff] %v13818_v22  ;;  %v13821_v49 = vld [vmem:[#allocation8 + $0x130] sm:$0xff] }
 0x57f   :  { %8308 = vmatprep.subr.mxu1 %v13806_v58  ;;  %14496 = vst [vmem:[#allocation73_spill] sm:$0xff] %v13821_v49  ;;  %v13824_v58 = vld [vmem:[#allocation8 + $0x128] sm:$0xff] }
 0x580   :  { %8309 = vmatpush2.msra.mxu1 %v13809_v59  ;;  %14497 = vst [vmem:[#allocation87_spill] sm:$0xff] %v13824_v58  ;;  %v13827_v59 = vld [vmem:[#allocation8 + $0x120] sm:$0xff] }
 0x581   :  { %8310 = vmatprep.subr.mxu1 %v13812_v33  ;;  %14498 = vst [vmem:[#allocation26_spill] sm:$0xff] %v13827_v59  ;;  %v13830_v33 = vld [vmem:[#allocation8 + $0x118] sm:$0xff] }
 0x582   :  { %8311 = vmatpush2.msra.mxu1 %v13815_v45  ;;  %14499 = vst [vmem:[#allocation27_spill] sm:$0xff] %v13830_v33  ;;  %v13833_v45 = vld [vmem:[#allocation8 + $0x110] sm:$0xff] }
 0x583   :  { %8312 = vmatprep.subr.mxu1 %v13818_v22  ;;  %14500 = vst [vmem:[#allocation57_spill] sm:$0xff] %v13833_v45  ;;  %v13836_v22 = vld [vmem:[#allocation8 + $0x108] sm:$0xff] }
 0x584   :  { %8313 = vmatpush2.msra.mxu1 %v13821_v49  ;;  %14501 = vst [vmem:[#allocation58_spill] sm:$0xff] %v13836_v22  ;;  %v13839_v49 = vld [vmem:[#allocation8 + $0x100] sm:$0xff] }
 0x585   :  { %8314 = vmatprep.subr.mxu1 %v13824_v58  ;;  %14502 = vst [vmem:[#allocation59_spill] sm:$0xff] %v13839_v49 }
 0x586   :  { %8315 = vmatpush2.msra.mxu1 %v13827_v59 }
 0x587   :  { %8316 = vmatprep.subr.mxu1 %v13830_v33 }
 0x588   :  { %8317 = vmatpush2.msra.mxu1 %v13833_v45  ;;  %v11169_v45 = vld [vmem:[#allocation16 + $0x74] ss:$8 sps:$4 sm:$0xff]  }
 0x589   :  { %8318 = vmatprep.subr.mxu1 %v13836_v22 }
 0x58a   :  { %8319 = vmatpush2.msra.mxu1 %v13839_v49 }
 0x58b   :  { %v6870_v58 = vpop.f32.mrf.mxu1  ;;  %8822 = vmatprep.subr.bf16.mxu1 %v11169_v45 }
 0x58c   :  { %11215 = vrsqrt.f32 %v6870_v58 }
 0x58d   :  { %v6872_v13 = vpop.f32.mrf.mxu1 }
 0x58e   :  { %11217 = vrsqrt.f32 %v6872_v13 }
 0x58f   :  { %v6876_v59 = vpop.f32.mrf.mxu1 }
 0x590   :  { %11219 = vrsqrt.f32 %v6876_v59  ;;  %v7204_v59 = vpop.f32.mrf.mxu0 }
 0x591   :  { %v6878_v43 = vpop.f32.mrf.mxu1 }
 0x592   :  { %11221 = vrsqrt.f32 %v6878_v43  ;;  %v7206_v43 = vpop.f32.mrf.mxu0 }
 0x594   :  { %v7208_v37 = vpop.f32.mrf.mxu0 }
 0x596   :  { %v7210_v46 = vpop.f32.mrf.mxu0 }
 0x599   :  { %v11216_v33 = vpop.eup %11215 }
 0x59a   :  { %v6885_v38 = vmul.f32 %v11216_v33, %v13602_v47  ;;  %v7661_v33 = vpop.f32.mrf.mxu0 }
 0x59b   :  { %v11218_v36 = vpop.eup %11217 }
 0x59c   :  { %6889 = vst [vmem:[#allocation17] sm:$0xff] %v6885_v38  ;;  %v6886_v22 = vmul.f32 %v11218_v36, %v13604_v55  ;;  %v7663_v47 = vpop.f32.mrf.mxu0 }
 0x59d   :  { %v11220_v39 = vpop.eup %11219 }
 0x59e   :  { %6890 = vst [vmem:[#allocation17 + $0x8] sm:$0xff] %v6886_v22  ;;  %v6887_v49 = vmul.f32 %v11220_v39, %v13610_v27  ;;  %v7665_v38 = vpop.f32.mrf.mxu0 }
 0x59f   :  { %v11222_v58 = vpop.eup %11221 }
 0x5a0   :  { %6891 = vst [vmem:[#allocation17 + $0x10] sm:$0xff] %v6887_v49  ;;  %v6888_v13 = vmul.f32 %v11222_v58, %v13612_v61  ;;  %v7667_v55 = vpop.f32.mrf.mxu0  ;;  %v8216_v61 = vld [vmem:[%s13971_s9] sm:$0x3] }
 0x5a1   :  { %v8232_v58 = vld [vmem:[%s13972_s10] sm:$0x3]  ;;  %v8221_v34 = vrot.slane %v8216_v61, %v14467_v52  ;;  %v8225_v25 = vrot.slane %v8216_v61, %v14468_v35 }
 0x5a2   :  { %6892 = vst [vmem:[#allocation17 + $0x18] sm:$0xff] %v6888_v13  ;;  %v8203_v22 = vpop.f32.mrf.mxu0 }
 0x5a4   :  { %v8205_v13 = vpop.f32.mrf.mxu0 }
 0x5cb   :  { %v7415_v18 = vpop.f32.mrf.mxu1 }
 0x5cc   :  { %v7416_v36 = vadd.f32 %v7415_v18, %v7204_v59 }
 0x5cd   :  { %v7417_v29 = vpop.f32.mrf.mxu1 }
 0x5ce   :  { %v7418_v5 = vadd.f32 %v7417_v29, %v7206_v43  ;;  %v7670_v49 = vadd.f32 %v7661_v33, %v7416_v36  ;;  %v8237_v29 = vrot.slane %v8232_v58, %v14467_v52  ;;  %v8207_v33 = vpop.f32.mrf.mxu0  ;;  %v8241_v36 = vrot.slane %v8232_v58, %v14468_v35  ;;  %v11167_v58 = vld [vmem:[#allocation16 + $0x70] ss:$8 sps:$4 sm:$0xff]  }
 0x5cf   :  { %v7419_v45 = vpop.f32.mrf.mxu1 }
 0x5d0   :  { %v7420_v39 = vadd.f32 %v7419_v45, %v7208_v37  ;;  %v7671_v18 = vadd.f32 %v7663_v47, %v7418_v5  ;;  %v8209_v52 = vpop.f32.mrf.mxu0 }
 0x5d1   :  { %v7421_v27 = vpop.f32.mrf.mxu1 }
 0x5d2   :  { %v7422_v9 = vadd.f32 %v7421_v27, %v7210_v46  ;;  %v7672_v37 = vadd.f32 %v7665_v38, %v7420_v39 }
 0x5d4   :  { %v7673_v46 = vadd.f32 %v7667_v55, %v7422_v9  ;;  %v11175_v55 = vld [vmem:[#allocation16 + $0x54] ss:$8 sps:$4 sm:$0xff]  }
 0x60b   :  { %v7941_v7 = vpop.f32.mrf.mxu1 }
 0x60c   :  { %v7950_v10 = vadd.f32 %v7941_v7, %v7670_v49 }
 0x60d   :  { %v7943_v59 = vpop.f32.mrf.mxu1 }
 0x60e   :  { %v8212_v43 = vadd.f32 %v8203_v22, %v7950_v10  ;;  %v7951_v17 = vadd.f32 %v7943_v59, %v7671_v18  ;;  %v11178_v59 = vld [vmem:[#allocation16 + $0x44] ss:$8 sps:$4 sm:$0xff]  }
 0x60f   :  { %v7945_v45 = vpop.f32.mrf.mxu1 }
 0x610   :  { %v8228_v12 = vmul.f32 %v8221_v34, %v8212_v43  ;;  %v8213_v3 = vadd.f32 %v8205_v13, %v7951_v17  ;;  %v7952_v14 = vadd.f32 %v7945_v45, %v7672_v37  ;;  %v14503_v13 = vcombine.high %v13538_v16, %v13544_v41  ;;  %v11176_v43 = vld [vmem:[#allocation16 + $0x40] ss:$8 sps:$4 sm:$0xff]   ;;  %v11181_v37 = vld [vmem:[#allocation16 + $0x34] ss:$8 sps:$4 sm:$0xff]   ;;  %v11184_v45 = vld [vmem:[#allocation16 + $0x24] ss:$8 sps:$4 sm:$0xff]  }
 0x611   :  { %v7947_v7 = vpop.f32.mrf.mxu1 }
 0x612   :  { %v8244_v27 = vadd.f32 %v8237_v29, %v8228_v12  ;;  %v8229_v49 = vmul.f32 %v8225_v25, %v8213_v3  ;;  %v8214_v5 = vadd.f32 %v8207_v33, %v7952_v14  ;;  %v7953_v47 = vadd.f32 %v7947_v7, %v7673_v46  ;;  %v11172_v14 = vld [vmem:[#allocation16 + $0x64] ss:$8 sps:$4 sm:$0xff]   ;;  %v11179_v33 = vld [vmem:[#allocation16 + $0x30] ss:$8 sps:$4 sm:$0xff]   ;;  %v11187_v46 = vld [vmem:[#allocation16 + $0x14] ss:$8 sps:$4 sm:$0xff]  }
 0x613   :  { %v11185_v7 = vld [vmem:[#allocation16 + $0x10] ss:$8 sps:$4 sm:$0xff]  }
 0x614   :  { %v8230_v15 = vmul.f32 %v8221_v34, %v8214_v5  ;;  %v8215_v10 = vadd.f32 %v8209_v52, %v7953_v47  ;;  %v8245_v22 = vadd.f32 %v8241_v36, %v8229_v49  ;;  %v13856_v18 = vmax.f32 %v8244_v27, 0.0  ;;  %v11190_v27 = vld [vmem:[#allocation16 + $0x4] ss:$8 sps:$4 sm:$0xff]   ;;  %v11188_v49 = vld [vmem:[#allocation16] ss:$8 sps:$4 sm:$0xff]  }
 0x615   :  { %v11193_v5 = vld [vmem:[#allocation16 + $0xf4] ss:$8 sps:$4 sm:$0xff]   ;;  %v11191_v47 = vld [vmem:[#allocation16 + $0xf0] ss:$8 sps:$4 sm:$0xff]  }
 0x616   :  { %v8231_v38 = vmul.f32 %v8225_v25, %v8215_v10  ;;  %v13858_v61 = vmax.f32 %v8245_v22, 0.0  ;;  %v8246_v39 = vadd.f32 %v8237_v29, %v8230_v15  ;;  %v8252_v3 = vmul.f32 %v13856_v18, %v13856_v18  ;;  %v11170_v15 = vld [vmem:[#allocation16 + $0x60] ss:$8 sps:$4 sm:$0xff]   ;;  %v11173_v29 = vld [vmem:[#allocation16 + $0x50] ss:$8 sps:$4 sm:$0xff]  }
 0x617   :  { %v11196_v10 = vld [vmem:[#allocation16 + $0xe4] ss:$8 sps:$4 sm:$0xff]   ;;  %v11194_v22 = vld [vmem:[#allocation16 + $0xe0] ss:$8 sps:$4 sm:$0xff]  }
 0x618   :  { %v8253_v17 = vmul.f32 %v13858_v61, %v13858_v61  ;;  %v8247_v9 = vadd.f32 %v8241_v36, %v8231_v38  ;;  %v13864_v12 = vmax.f32 %v8246_v39, 0.0  ;;  %v11182_v36 = vld [vmem:[#allocation16 + $0x20] ss:$8 sps:$4 sm:$0xff]   ;;  %v11199_v38 = vld [vmem:[#allocation16 + $0xd4] ss:$8 sps:$4 sm:$0xff]  }
 0x619   :  { %v11197_v39 = vld [vmem:[#allocation16 + $0xd0] ss:$8 sps:$4 sm:$0xff]  }
 0x61a   :  { %8320 = vmatprep.mubr.f32.mxu1 %v8253_v17  ;;  %v13866_v52 = vmax.f32 %v8247_v9, 0.0  ;;  %v8254_v34 = vmul.f32 %v13864_v12, %v13864_v12  ;;  %v11202_v17 = vld [vmem:[#allocation16 + $0xc4] ss:$8 sps:$4 sm:$0xff]   ;;  %v11205_v9 = vld [vmem:[#allocation16 + $0xb4] ss:$8 sps:$4 sm:$0xff]  }
 0x61b   :  { %8321 = vmatmul.mubr.f32.vlgmr.msra.gmra.mxu1 %v8252_v3  ;;  %v11203_v3 = vld [vmem:[#allocation16 + $0xb0] ss:$8 sps:$4 sm:$0xff]  }
 0x61c   :  { %8823 = vmatpush1.bf16.msra.mxu1 %v11167_v58  ;;  %v8255_v25 = vmul.f32 %v13866_v52, %v13866_v52  ;;  %v11200_v58 = vld [vmem:[#allocation16 + $0xc0] ss:$8 sps:$4 sm:$0xff]  }
 0x61d   :  { %8824 = vmatprep.subr.bf16.mxu1 %v11172_v14  ;;  %v11208_v14 = vld [vmem:[#allocation16 + $0xa4] ss:$8 sps:$4 sm:$0xff]  }
 0x61e   :  { %8326 = vmatprep.mubr.f32.mxu1 %v8255_v25  ;;  %v11206_v25 = vld [vmem:[#allocation16 + $0xa0] ss:$8 sps:$4 sm:$0xff]  }
 0x61f   :  { %8327 = vmatmul.mubr.f32.gmra.mxu1 %v8254_v34  ;;  %v11209_v34 = vld [vmem:[#allocation16 + $0x90] ss:$8 sps:$4 sm:$0xff]  }
 0x620   :  { %8825 = vmatpush1.bf16.msra.mxu1 %v11170_v15  ;;  %8854 = vmatprep.mubr.bf16.mxu1 %v14503_v13  ;;  %v11211_v15 = vld [vmem:[#allocation16 + $0x94] ss:$8 sps:$4 sm:$0xff]   ;;  %v11212_v13 = vld [vmem:[#allocation16 + $0x80] ss:$8 sps:$4 sm:$0xff]  }
 0x621   :  { %8826 = vmatprep.subr.bf16.mxu1 %v11175_v55  ;;  %v11214_v55 = vld [vmem:[#allocation16 + $0x84] ss:$8 sps:$4 sm:$0xff]  }
 0x624   :  { %8827 = vmatpush1.bf16.msra.mxu1 %v11173_v29  ;;  %v14504_v29 = vcombine.low %v13538_v16, %v13544_v41  ;;  %v14505_v16 = vld [vmem:[#allocation47_spill] sm:$0xff]  ;;  %v14506_v41 = vld [vmem:[#allocation49_spill] sm:$0xff] }
 0x625   :  { %8828 = vmatprep.subr.bf16.mxu1 %v11178_v59  ;;  %v14537_v59 = vld [vmem:[#allocation58_spill] sm:$0xff] }
 0x628   :  { %8829 = vmatpush1.bf16.msra.mxu1 %v11176_v43  ;;  %v14538_v43 = vld [vmem:[#allocation59_spill] sm:$0xff] }
 0x629   :  { %8830 = vmatprep.subr.bf16.mxu1 %v11181_v37 }
 0x62c   :  { %8831 = vmatpush1.bf16.msra.mxu1 %v11179_v33 }
 0x62d   :  { %8832 = vmatprep.subr.bf16.mxu1 %v11184_v45 }
 0x630   :  { %8833 = vmatpush1.bf16.msra.mxu1 %v11182_v36 }
 0x631   :  { %8834 = vmatprep.subr.bf16.mxu1 %v11187_v46 }
 0x634   :  { %8835 = vmatpush1.bf16.msra.mxu1 %v11185_v7 }
 0x635   :  { %8836 = vmatprep.subr.bf16.mxu1 %v11190_v27 }
 0x638   :  { %8837 = vmatpush1.bf16.msra.mxu1 %v11188_v49 }
 0x639   :  { %8838 = vmatprep.subr.bf16.mxu1 %v11193_v5 }
 0x63c   :  { %8839 = vmatpush2.bf16.msra.mxu1 %v11191_v47 }
 0x63d   :  { %8840 = vmatprep.subr.bf16.mxu1 %v11196_v10 }
 0x640   :  { %8841 = vmatpush2.bf16.msra.mxu1 %v11194_v22 }
 0x641   :  { %8842 = vmatprep.subr.bf16.mxu1 %v11199_v38  ;;  %v8645_v38 = vpop.f32.mrf.mxu0 }
 0x644   :  { %8843 = vmatpush2.bf16.msra.mxu1 %v11197_v39  ;;  %v8647_v39 = vpop.f32.mrf.mxu0 }
 0x645   :  { %8844 = vmatprep.subr.bf16.mxu1 %v11202_v17 }
 0x646   :  { %v8649_v17 = vpop.f32.mrf.mxu0 }
 0x648   :  { %8845 = vmatpush2.bf16.msra.mxu1 %v11200_v58  ;;  %v8651_v58 = vpop.f32.mrf.mxu0 }
 0x649   :  { %8846 = vmatprep.subr.bf16.mxu1 %v11205_v9 }
 0x64a   :  { %v9132_v9 = vpop.f32.mrf.mxu0 }
 0x64c   :  { %8847 = vmatpush2.bf16.msra.mxu1 %v11203_v3  ;;  %v9134_v3 = vpop.f32.mrf.mxu0 }
 0x64d   :  { %8848 = vmatprep.subr.bf16.mxu1 %v11208_v14 }
 0x650   :  { %8849 = vmatpush2.bf16.msra.mxu1 %v11206_v25  ;;  %v14539_v25 = vld [vmem:[#allocation30_spill] sm:$0xff] }
 0x651   :  { %8850 = vmatprep.subr.bf16.mxu1 %v11211_v15 }
 0x654   :  { %8851 = vmatpush2.bf16.msra.mxu1 %v11209_v34 }
 0x655   :  { %8852 = vmatprep.subr.bf16.mxu1 %v11214_v55 }
 0x658   :  { %8853 = vmatpush2.bf16.msra.mxu1 %v11212_v13 }
 0x659   :  { %9185 = vmatprep.subr.mxu1 %v13647_v57  ;;  %v14507_v57 = vld [vmem:[#allocation51_spill] sm:$0xff] }
 0x65b   :  { %8855 = vmatmul.mubr.bf16.vlgmr.msra.gmra.mxu1 %v14504_v29 }
 0x65c   :  { %9186 = vmatpush1.msra.mxu1 %v13653_v48  ;;  %v14508_v48 = vld [vmem:[#allocation53_spill] sm:$0xff] }
 0x65d   :  { %9187 = vmatprep.subr.mxu1 %v13656_v11  ;;  %v14509_v11 = vld [vmem:[#allocation55_spill] sm:$0xff] }
 0x65e   :  { %9188 = vmatpush1.msra.mxu1 %v13659_v0  ;;  %v14510_v0 = vld [vmem:[#allocation42_spill] sm:$0xff] }
 0x65f   :  { %9189 = vmatprep.subr.mxu1 %v13662_v28  ;;  %v14511_v28 = vld [vmem:[#allocation43_spill] sm:$0xff] }
 0x660   :  { %9190 = vmatpush1.msra.mxu1 %v13665_v2  ;;  %v14512_v2 = vld [vmem:[#allocation46_spill] sm:$0xff] }
 0x661   :  { %9191 = vmatprep.subr.mxu1 %v13668_v30  ;;  %v14513_v30 = vld [vmem:[#allocation48_spill] sm:$0xff] }
 0x662   :  { %9192 = vmatpush1.msra.mxu1 %v13671_v42  ;;  %v14514_v42 = vld [vmem:[#allocation50_spill] sm:$0xff] }
 0x663   :  { %9193 = vmatprep.subr.mxu1 %v13674_v24  ;;  %v14515_v24 = vld [vmem:[#allocation52_spill] sm:$0xff] }
 0x664   :  { %9194 = vmatpush1.msra.mxu1 %v13677_v26  ;;  %v14516_v26 = vld [vmem:[#allocation54_spill] sm:$0xff] }
 0x665   :  { %9195 = vmatprep.subr.mxu1 %v13680_v6  ;;  %v14517_v6 = vld [vmem:[#allocation56_spill] sm:$0xff] }
 0x666   :  { %9196 = vmatpush1.msra.mxu1 %v13683_v40  ;;  %v14518_v40 = vld [vmem:[#allocation61_spill] sm:$0xff] }
 0x667   :  { %9197 = vmatprep.subr.mxu1 %v13686_v21  ;;  %v14519_v21 = vld [vmem:[#allocation75_spill] sm:$0xff] }
 0x668   :  { %9198 = vmatpush1.msra.mxu1 %v13689_v53  ;;  %v14520_v53 = vld [vmem:[#allocation62_spill] sm:$0xff] }
 0x669   :  { %9199 = vmatprep.subr.mxu1 %v13692_v63  ;;  %v14521_v63 = vld [vmem:[#allocation76_spill] sm:$0xff] }
 0x66a   :  { %9200 = vmatpush1.msra.mxu1 %v13695_v54  ;;  %v14522_v54 = vld [vmem:[#allocation64_spill] sm:$0xff] }
 0x66b   :  { %9201 = vmatprep.subr.mxu1 %v13698_v1  ;;  %v14523_v1 = vld [vmem:[#allocation78_spill] sm:$0xff] }
 0x66c   :  { %9202 = vmatpush1.msra.mxu1 %v13701_v20  ;;  %v14524_v20 = vld [vmem:[#allocation68_spill] sm:$0xff] }
 0x66d   :  { %9203 = vmatprep.subr.mxu1 %v13704_v62  ;;  %v14525_v62 = vld [vmem:[#allocation80_spill] sm:$0xff] }
 0x66e   :  { %9204 = vmatpush1.msra.mxu1 %v13707_v4  ;;  %v14526_v4 = vld [vmem:[#allocation69_spill] sm:$0xff] }
 0x66f   :  { %9205 = vmatprep.subr.mxu1 %v13710_v32  ;;  %v14527_v32 = vld [vmem:[#allocation82_spill] sm:$0xff] }
 0x670   :  { %9206 = vmatpush1.msra.mxu1 %v13713_v23  ;;  %v14528_v23 = vld [vmem:[#allocation70_spill] sm:$0xff] }
 0x671   :  { %9207 = vmatprep.subr.mxu1 %v13716_v51  ;;  %v14529_v51 = vld [vmem:[#allocation83_spill] sm:$0xff] }
 0x672   :  { %9208 = vmatpush1.msra.mxu1 %v13719_v31  ;;  %v14530_v31 = vld [vmem:[#allocation71_spill] sm:$0xff] }
 0x673   :  { %9209 = vmatprep.subr.mxu1 %v13722_v56  ;;  %v14531_v56 = vld [vmem:[#allocation85_spill] sm:$0xff] }
 0x674   :  { %9210 = vmatpush1.msra.mxu1 %v13725_v60  ;;  %v14532_v60 = vld [vmem:[#allocation73_spill] sm:$0xff] }
 0x675   :  { %9211 = vmatprep.subr.mxu1 %v13728_v50  ;;  %v14533_v50 = vld [vmem:[#allocation87_spill] sm:$0xff] }
 0x676   :  { %9212 = vmatpush1.msra.mxu1 %v13731_v44  ;;  %v14534_v44 = vld [vmem:[#allocation26_spill] sm:$0xff] }
 0x677   :  { %9213 = vmatprep.subr.mxu1 %v13734_v19  ;;  %v14535_v19 = vld [vmem:[#allocation27_spill] sm:$0xff] }
 0x678   :  { %9214 = vmatpush1.msra.mxu1 %v13737_v8  ;;  %v14536_v8 = vld [vmem:[#allocation57_spill] sm:$0xff] }
 0x679   :  { %9215 = vmatprep.subr.mxu1 %v14505_v16  ;;  %v9136_v16 = vpop.f32.mrf.mxu0 }
 0x67a   :  { %9216 = vmatpush1.msra.mxu1 %v14506_v41 }
 0x67b   :  { %9217 = vmatprep.subr.mxu1 %v14507_v57 }
 0x67c   :  { %9218 = vmatpush2.msra.mxu1 %v14508_v48 }
 0x67d   :  { %9219 = vmatprep.subr.mxu1 %v14509_v11 }
 0x67e   :  { %9220 = vmatpush2.msra.mxu1 %v14510_v0 }
 0x67f   :  { %9221 = vmatprep.subr.mxu1 %v14511_v28 }
 0x680   :  { %9222 = vmatpush2.msra.mxu1 %v14512_v2 }
 0x681   :  { %9223 = vmatprep.subr.mxu1 %v14513_v30 }
 0x682   :  { %9224 = vmatpush2.msra.mxu1 %v14514_v42 }
 0x683   :  { %9225 = vmatprep.subr.mxu1 %v14515_v24 }
 0x684   :  { %9226 = vmatpush2.msra.mxu1 %v14516_v26  ;;  %v9138_v26 = vpop.f32.mrf.mxu0 }
 0x685   :  { %9227 = vmatprep.subr.mxu1 %v14517_v6 }
 0x686   :  { %9228 = vmatpush2.msra.mxu1 %v14518_v40 }
 0x687   :  { %9229 = vmatprep.subr.mxu1 %v14519_v21 }
 0x688   :  { %9230 = vmatpush2.msra.mxu1 %v14520_v53 }
 0x689   :  { %9231 = vmatprep.subr.mxu1 %v14521_v63 }
 0x68a   :  { %9232 = vmatpush2.msra.mxu1 %v14522_v54 }
 0x68b   :  { %9233 = vmatprep.subr.mxu1 %v14523_v1 }
 0x68c   :  { %9234 = vmatpush2.msra.mxu1 %v14524_v20 }
 0x68d   :  { %9235 = vmatprep.subr.mxu1 %v14525_v62 }
 0x68e   :  { %9236 = vmatpush2.msra.mxu1 %v14526_v4 }
 0x68f   :  { %9237 = vmatprep.subr.mxu1 %v14527_v32 }
 0x690   :  { %9238 = vmatpush2.msra.mxu1 %v14528_v23 }
 0x691   :  { %9239 = vmatprep.subr.mxu1 %v14529_v51 }
 0x692   :  { %9240 = vmatpush2.msra.mxu1 %v14530_v31 }
 0x693   :  { %9241 = vmatprep.subr.mxu1 %v14531_v56 }
 0x694   :  { %9242 = vmatpush2.msra.mxu1 %v14532_v60 }
 0x695   :  { %9243 = vmatprep.subr.mxu1 %v14533_v50 }
 0x696   :  { %9244 = vmatpush2.msra.mxu1 %v14534_v44 }
 0x697   :  { %9245 = vmatprep.subr.mxu1 %v14535_v19 }
 0x698   :  { %9246 = vmatpush2.msra.mxu1 %v14536_v8 }
 0x699   :  { %9247 = vmatprep.subr.mxu1 %v14537_v59 }
 0x69a   :  { %9248 = vmatpush2.msra.mxu1 %v14538_v43 }
 0x6db   :  { %v8322_v37 = vpop.f32.mrf.mxu1 }
 0x6dc   :  { %11223 = vrsqrt.f32 %v8322_v37 }
 0x6dd   :  { %v8324_v33 = vpop.f32.mrf.mxu1 }
 0x6de   :  { %11225 = vrsqrt.f32 %v8324_v33 }
 0x6df   :  { %v8328_v45 = vpop.f32.mrf.mxu1 }
 0x6e0   :  { %11227 = vrsqrt.f32 %v8328_v45 }
 0x6e1   :  { %v8330_v36 = vpop.f32.mrf.mxu1 }
 0x6e2   :  { %11229 = vrsqrt.f32 %v8330_v36 }
 0x6e9   :  { %v11224_v46 = vpop.eup %11223 }
 0x6ea   :  { %v8337_v7 = vmul.f32 %v11224_v46, %v13856_v18  ;;  %v9145_v18 = vld [vmem:[%s13974_s12] sm:$0x3]  ;;  %s11502_s12 = smov [#allocation17]  }
 0x6eb   :  { %v11226_v27 = vpop.eup %11225  ;;  %v9150_v15 = vrot.slane %v9145_v18, %v14539_v25  ;;  %v9154_v29 = vrot.slane %v9145_v18, %v14468_v35 }
 0x6ec   :  { %8342 = vst [vmem:[#allocation17 + $0x20] sm:$0xff] %v8337_v7  ;;  %v8338_v49 = vmul.f32 %v11226_v27, %v13858_v61 }
 0x6ed   :  { %v11228_v5 = vpop.eup %11227 }
 0x6ee   :  { %8343 = vst [vmem:[#allocation17 + $0x28] sm:$0xff] %v8338_v49  ;;  %v8339_v47 = vmul.f32 %v11228_v5, %v13864_v12  ;;  %v9161_v12 = vld [vmem:[%s13975_s13] sm:$0x3]  ;;  %s9280_s13 = sshll.u32 %s11502_s12, 4  ;;  %s9281_s13 = int_to_ptr.vmem [resolvable:$true] %s9280_s13 }
 0x6ef   :  { %v11230_v10 = vpop.eup %11229  ;;  %v9166_v55 = vrot.slane %v9161_v12, %v14539_v25  ;;  %v9170_v0 = vrot.slane %v9161_v12, %v14468_v35  ;;  %s11455_s0 = scalar_lea.vmem %s9281_s13, 1536  ;;  %p11460_p8 = scmp.lt.s32.totalorder %s9281_s13, %s9281_s13 }
 0x6f0   :  { %8344 = vst [vmem:[#allocation17 + $0x30] sm:$0xff] %v8339_v47  ;;  %v8340_v22 = vmul.f32 %v11230_v10, %v13866_v52  ;;  %p11456_p7 = scmp.ne.s32.totalorder %s9281_s13, %s11455_s0  ;;  %p11461_p9 = scmp.lt.s32.totalorder %s11455_s0, %s11455_s0 }
 0x6f2   :  { %8345 = vst [vmem:[#allocation17 + $0x38] sm:$0xff] %v8340_v22  ;;  %p11462_p10 = por %p11461_p9, %p11460_p8 }
 0x6f4   :  { %p11463_p11 = pnand %p11462_p10, %p11456_p7 }
 0x71b   :  { %v8856_v61 = vpop.f32.mrf.mxu1 }
 0x71c   :  { %v8857_v14 = vadd.f32 %v8856_v61, %v8645_v38 }
 0x71d   :  { %v8858_v52 = vpop.f32.mrf.mxu1 }
 0x71e   :  { %v9141_v34 = vadd.f32 %v9132_v9, %v8857_v14  ;;  %v8859_v13 = vadd.f32 %v8858_v52, %v8647_v39 }
 0x71f   :  { %v8860_v41 = vpop.f32.mrf.mxu1 }
 0x720   :  { %v9157_v57 = vmul.f32 %v9150_v15, %v9141_v34  ;;  %v9142_v48 = vadd.f32 %v9134_v3, %v8859_v13  ;;  %v8861_v11 = vadd.f32 %v8860_v41, %v8649_v17 }
 0x721   :  { %v8862_v28 = vpop.f32.mrf.mxu1 }
 0x722   :  { %v9173_v2 = vadd.f32 %v9166_v55, %v9157_v57  ;;  %v9158_v30 = vmul.f32 %v9154_v29, %v9142_v48  ;;  %v9143_v42 = vadd.f32 %v9136_v16, %v8861_v11  ;;  %v8863_v24 = vadd.f32 %v8862_v28, %v8651_v58 }
 0x724   :  { %v9159_v6 = vmul.f32 %v9150_v15, %v9143_v42  ;;  %v9144_v40 = vadd.f32 %v9138_v26, %v8863_v24  ;;  %v9174_v21 = vadd.f32 %v9170_v0, %v9158_v30  ;;  %v9177_v53 = vmax.f32 %v9173_v2, 0.0 }
 0x726   :  { %v9160_v63 = vmul.f32 %v9154_v29, %v9144_v40  ;;  %v9178_v54 = vmax.f32 %v9174_v21, 0.0  ;;  %v9175_v1 = vadd.f32 %v9166_v55, %v9159_v6  ;;  %v9181_v4 = vmul.f32 %v9177_v53, %v9177_v53 }
 0x728   :  { %v9182_v20 = vmul.f32 %v9178_v54, %v9178_v54  ;;  %v9176_v62 = vadd.f32 %v9170_v0, %v9160_v63  ;;  %v9179_v32 = vmax.f32 %v9175_v1, 0.0 }
 0x72a   :  { %9249 = vmatprep.mubr.f32.mxu1 %v9182_v20  ;;  %v9180_v23 = vmax.f32 %v9176_v62, 0.0  ;;  %v9183_v51 = vmul.f32 %v9179_v32, %v9179_v32 }
 0x72b   :  { %9250 = vmatmul.mubr.f32.vlgmr.msra.gmra.mxu1 %v9181_v4 }
 0x72c   :  { %v9184_v35 = vmul.f32 %v9180_v23, %v9180_v23 }
 0x72e   :  { %9255 = vmatprep.mubr.f32.mxu1 %v9184_v35 }
 0x72f   :  { %9256 = vmatmul.mubr.f32.gmra.mxu1 %v9183_v51 }
 0x7eb   :  { %v9251_v31 = vpop.f32.mrf.mxu1 }
 0x7ec   :  { %11231 = vrsqrt.f32 %v9251_v31 }
 0x7ed   :  { %v9253_v56 = vpop.f32.mrf.mxu1 }
 0x7ee   :  { %11233 = vrsqrt.f32 %v9253_v56 }
 0x7ef   :  { %v9257_v60 = vpop.f32.mrf.mxu1 }
 0x7f0   :  { %11235 = vrsqrt.f32 %v9257_v60 }
 0x7f1   :  { %v9259_v50 = vpop.f32.mrf.mxu1 }
 0x7f2   :  { %11237 = vrsqrt.f32 %v9259_v50 }
 0x7f9   :  { %v11232_v44 = vpop.eup %11231 }
 0x7fa   :  { %v9266_v19 = vmul.f32 %v11232_v44, %v9177_v53 }
 0x7fb   :  { %v11234_v8 = vpop.eup %11233 }
 0x7fc   :  { %9271 = vst [vmem:[#allocation17 + $0x40] sm:$0xff] %v9266_v19  ;;  %v9267_v59 = vmul.f32 %v11234_v8, %v9178_v54 }
 0x7fd   :  { %v11236_v43 = vpop.eup %11235 }
 0x7fe   :  { %9272 = vst [vmem:[#allocation17 + $0x48] sm:$0xff] %v9267_v59  ;;  %v9268_v37 = vmul.f32 %v11236_v43, %v9179_v32 }
 0x7ff   :  { %v11238_v33 = vpop.eup %11237 }
 0x800   :  { %9273 = vst [vmem:[#allocation17 + $0x50] sm:$0xff] %v9268_v37  ;;  %v9269_v45 = vmul.f32 %v11238_v33, %v9180_v23 }
 0x802   :  { %9274 = vst [vmem:[#allocation17 + $0x58] sm:$0xff] %v9269_v45 }
 0x803   :  { %11466 = shalt.err (!%p11463_p11)
}
 0x804   :  { %9286 = dma.vmem_to_hbm [thread:$0]  %s9281_s13, 1536, %s13976_s14, [#allocation7], %s11486_s16, %s11486_s16, %s11487_s17  }
 0x805   :  { %11483 = dma.done.wait [#allocation7], 1536  }
 0x806   :  { %11484 = vsyncadd [#allocation7], 4294965760 }
 0x807   :  { %9290 = vsyncpa [#allocation6], 1 }
 0x808   :  { %9291 = vsyncpa [#allocation9], 1 }
 0x809   :  { %9292 = vsyncpa [#allocation12], 1 }
 0x80a   :  { %9293 = vsyncpa [#allocation15], 1 }
 0x80b   :  { %9294 = vsyncpa [#allocation7], 1 }

</bundles_post_ra>
